<compile_context>
chip_gen: v5e
topology: v5e:2x2
jax: 0.10.0
libtpu: 0.0.40
codegen_flags: <defaults>
</compile_context>

<pallas_src>
import functools

import jax
import jax.numpy as jnp
from jax.experimental import pallas as pl
from jax.experimental.pallas import tpu as pltpu


# ----------------------------- Pallas kernels ------------------------------

def _gn_silu_kernel(x_ref, m_ref, g_ref, b_ref, pool_ref, o_ref, *, eps):
    # x_ref: (1, P2, C) f32 flat-padded activation for one batch.
    # m_ref: (P2, 1) f32 interior mask (1 at real pixels, 0 at pads / tail).
    # pool_ref: (C, C) f32 group-pooling matrix, entry = 1/count inside a group.
    x = x_ref[0].astype(jnp.float32)                      # (P2, C)
    m = m_ref[...]                                        # (P2, 1)
    xm = x * m
    s = jnp.sum(xm, axis=0, keepdims=True)                # (1, C)
    ss = jnp.sum(xm * xm, axis=0, keepdims=True)          # (1, C)  one-pass stats
    hi = jax.lax.Precision.HIGHEST                        # tiny exact stat matmuls
    mean_c = jnp.dot(s, pool_ref[...], precision=hi,
                     preferred_element_type=jnp.float32)  # (1, C) per-channel group mean
    ex2_c = jnp.dot(ss, pool_ref[...], precision=hi,
                    preferred_element_type=jnp.float32)
    inv_c = jax.lax.rsqrt(ex2_c - mean_c * mean_c + eps)  # biased var (torch GroupNorm)
    y = (x - mean_c) * (inv_c * g_ref[...]) + b_ref[...]
    y = y * (1.0 / (1.0 + jnp.exp(-y)))                   # SiLU: x * sigmoid(x)
    o_ref[0] = (y * m).astype(o_ref.dtype)                # zero pads -> valid conv input


def _conv3x3_temb_kernel(x_ref, w_ref, b_ref, t_ref, o_ref, *, Wp, Q, off):
    # 3x3 conv as 9 accumulated matmuls over shifted slices of the flat-padded
    # input, fused with bias + temb broadcast add.  Output is written back in
    # flat-padded layout at sublane offset `off` (pads hold don't-care values
    # that the following masked GroupNorm ignores / re-zeros).
    tn = o_ref.shape[2]
    acc = jnp.zeros((Q, tn), jnp.float32)
    for k in range(9):
        s = (k // 3) * Wp + (k % 3)
        lhs = x_ref[0, pl.ds(s, Q), :].astype(jnp.bfloat16)          # (Q, Cin)
        acc = acc + jnp.dot(lhs, w_ref[k],                           # bf16 MXU, f32 acc
                            preferred_element_type=jnp.float32)
    y = acc + b_ref[...] + t_ref[0]                                  # fused epilogue
    o_ref[...] = jnp.zeros(o_ref.shape, o_ref.dtype)
    o_ref[0, pl.ds(off, Q), :] = y.astype(o_ref.dtype)


def _conv3x3_res_kernel(*refs, Wp, Q, off, has_nin):
    # conv2 + bias + shortcut (1x1 nin conv when Cin != Cout, identity otherwise),
    # all fused; output in "junk" layout (B, H*(W+2), Cout), sliced outside.
    if has_nin:
        g_ref, w_ref, b_ref, x_ref, wn_ref, bn_ref, o_ref = refs
    else:
        g_ref, w_ref, b_ref, x_ref, o_ref = refs
    tn = o_ref.shape[2]
    acc = jnp.zeros((Q, tn), jnp.float32)
    for k in range(9):
        s = (k // 3) * Wp + (k % 3)
        lhs = g_ref[0, pl.ds(s, Q), :].astype(jnp.bfloat16)
        acc = acc + jnp.dot(lhs, w_ref[k],
                            preferred_element_type=jnp.float32)
    y = acc + b_ref[...]
    xs = x_ref[0, pl.ds(off, Q), :]                                  # residual source
    if has_nin:
        y = y + jnp.dot(xs.astype(jnp.bfloat16), wn_ref[...],
                        preferred_element_type=jnp.float32) + bn_ref[...]
    else:
        y = y + xs
    o_ref[0] = y.astype(o_ref.dtype)


def _temb_kernel(t_ref, w_ref, b_ref, o_ref):
    # temb_proj(silu(temb)) — tiny (M=B) matmul, latency noise; kept simple.
    t = t_ref[...].astype(jnp.float32)
    t = t * (1.0 / (1.0 + jnp.exp(-t)))
    acc = jnp.dot(t.astype(jnp.bfloat16), w_ref[...],
                  preferred_element_type=jnp.float32)
    o_ref[...] = (acc + b_ref[...]).astype(o_ref.dtype)


# ----------------------------- Pallas wrappers ------------------------------

def groupnorm_silu_flat(xflat, mask, gamma, beta, pool, *, eps):
    B, P2, C = xflat.shape
    return pl.pallas_call(
        functools.partial(_gn_silu_kernel, eps=eps),
        out_shape=jax.ShapeDtypeStruct((B, P2, C), jnp.float32),
        grid=(B,),
        in_specs=[
            pl.BlockSpec((1, P2, C), lambda b: (b, 0, 0)),
            pl.BlockSpec((P2, 1), lambda b: (0, 0)),
            pl.BlockSpec((1, C), lambda b: (0, 0)),
            pl.BlockSpec((1, C), lambda b: (0, 0)),
            pl.BlockSpec((C, C), lambda b: (0, 0)),
        ],
        out_specs=pl.BlockSpec((1, P2, C), lambda b: (b, 0, 0)),
        compiler_params=pltpu.CompilerParams(dimension_semantics=("parallel",)),
    )(xflat, mask, gamma.reshape(1, C), beta.reshape(1, C), pool)


def conv3x3_temb(xn, w9, bias, t, *, Wp, Q, off):
    B, P2, Cin = xn.shape
    Cout = w9.shape[2]
    TN = Cout if Cout <= 256 else 256
    assert Cout % TN == 0
    Nt = Cout // TN
    return pl.pallas_call(
        functools.partial(_conv3x3_temb_kernel, Wp=Wp, Q=Q, off=off),
        out_shape=jax.ShapeDtypeStruct((B, P2, Cout), jnp.float32),
        grid=(B, Nt),
        in_specs=[
            pl.BlockSpec((1, P2, Cin), lambda b, j: (b, 0, 0)),
            pl.BlockSpec((9, Cin, TN), lambda b, j: (0, 0, j)),
            pl.BlockSpec((1, TN), lambda b, j: (0, j)),
            pl.BlockSpec((1, 1, TN), lambda b, j: (b, 0, j)),
        ],
        out_specs=pl.BlockSpec((1, P2, TN), lambda b, j: (b, 0, j)),
        compiler_params=pltpu.CompilerParams(
            dimension_semantics=("parallel", "parallel")),
    )(xn, w9, bias.reshape(1, Cout), t[:, None, :])


def conv3x3_residual(g, w9, bias, xp, wn, bn, *, Wp, Q, off):
    B, P2, C = g.shape
    Cout = w9.shape[2]
    Cin = xp.shape[2]
    TN = Cout if Cout <= 256 else 256
    assert Cout % TN == 0
    Nt = Cout // TN
    has_nin = wn is not None
    in_specs = [
        pl.BlockSpec((1, P2, C), lambda b, j: (b, 0, 0)),
        pl.BlockSpec((9, C, TN), lambda b, j: (0, 0, j)),
        pl.BlockSpec((1, TN), lambda b, j: (0, j)),
    ]
    args = [g, w9, bias.reshape(1, Cout)]
    if has_nin:
        in_specs += [
            pl.BlockSpec((1, P2, Cin), lambda b, j: (b, 0, 0)),
            pl.BlockSpec((Cin, TN), lambda b, j: (0, j)),
            pl.BlockSpec((1, TN), lambda b, j: (0, j)),
        ]
        args += [xp, wn, bn.reshape(1, Cout)]
    else:
        in_specs += [pl.BlockSpec((1, P2, TN), lambda b, j: (b, 0, j))]
        args += [xp]
    return pl.pallas_call(
        functools.partial(_conv3x3_res_kernel, Wp=Wp, Q=Q, off=off,
                          has_nin=has_nin),
        out_shape=jax.ShapeDtypeStruct((B, Q, Cout), jnp.float32),
        grid=(B, Nt),
        in_specs=in_specs,
        out_specs=pl.BlockSpec((1, Q, TN), lambda b, j: (b, 0, j)),
        compiler_params=pltpu.CompilerParams(
            dimension_semantics=("parallel", "parallel")),
    )(*args)


def temb_proj(temb, wt, bias):
    B, K = temb.shape
    N = wt.shape[1]
    return pl.pallas_call(
        _temb_kernel,
        out_shape=jax.ShapeDtypeStruct((B, N), jnp.float32),
        grid=(1,),
        in_specs=[
            pl.BlockSpec((B, K), lambda i: (0, 0)),
            pl.BlockSpec((K, N), lambda i: (0, 0)),
            pl.BlockSpec((1, N), lambda i: (0, 0)),
        ],
        out_specs=pl.BlockSpec((B, N), lambda i: (0, 0)),
    )(temb, wt, bias.reshape(1, N))


# ----------------------------- small helpers ------------------------------

def _group_pool(C, G, count):
    cpg = C // G
    gid = jnp.arange(C) // cpg
    return (gid[:, None] == gid[None, :]).astype(jnp.float32) * (1.0 / count)


def _interior_mask(H, W, P2):
    Wp = W + 2
    idx = jnp.arange(P2)
    r, c = idx // Wp, idx % Wp
    m = (r >= 1) & (r <= H) & (c >= 1) & (c <= W)
    return m.astype(jnp.float32)[:, None]


# ----------------------------- ResnetBlock forward ------------------------------

def resnet_block_forward(x, temb, p, *, num_groups=32, eps=1e-6):
    B, Cin, H, W = x.shape
    Cout = p["conv1_w9"].shape[2]
    G = num_groups
    Wp = W + 2
    P = (H + 2) * Wp
    Q = H * Wp
    P2 = ((P + 2 + 7) // 8) * 8          # tail pad so all 9 shifted slices are in-bounds
    off = Wp + 1                         # flat-padded offset of pixel (0, 0)

    # one NCHW->NHWC transpose + zero pad, then flatten (plain-JAX glue, single pass)
    x_nhwc = jnp.transpose(x, (0, 2, 3, 1))
    xp = jnp.pad(x_nhwc, ((0, 0), (1, 1), (1, 1), (0, 0))).reshape(B, P, Cin)
    xp = jnp.pad(xp, ((0, 0), (0, P2 - P), (0, 0)))

    mask = _interior_mask(H, W, P2)
    pool_in = _group_pool(Cin, G, float(H * W * (Cin // G)))
    pool_out = _group_pool(Cout, G, float(H * W * (Cout // G)))

    # norm1 + SiLU (masked; pads zeroed -> valid conv input)
    h = groupnorm_silu_flat(xp, mask, p["norm1_g"], p["norm1_b"], pool_in, eps=eps)

    # temb_proj(silu(temb))
    t = temb_proj(temb, p["temb_w_t"], p["temb_b"])                  # (B, Cout)

    # conv1 + bias + temb broadcast add (fused), output back in flat-padded layout
    h = conv3x3_temb(h, p["conv1_w9"], p["conv1_b"], t, Wp=Wp, Q=Q, off=off)

    # norm2 + SiLU (masked; re-zeroes pad positions)
    h = groupnorm_silu_flat(h, mask, p["norm2_g"], p["norm2_b"], pool_out, eps=eps)

    # TODO(synk): nn.Dropout is identity at inference; training-mode RNG dropout not implemented.
    # TODO(synk): use_conv_shortcut=True (3x3 conv shortcut) variant not implemented
    #             (module default is the 1x1 nin_shortcut / identity path).

    # conv2 + bias + shortcut (fused)
    out = conv3x3_residual(h, p["conv2_w9"], p["conv2_b"], xp,
                           p.get("nin_w2"), p.get("nin_b"), Wp=Wp, Q=Q, off=off)

    # drop the width pad columns, back to NCHW (single output pass)
    out = out.reshape(B, H, Wp, Cout)[:, :, :W, :]
    return jnp.transpose(out, (0, 3, 1, 2))


# ----------------------------- params ------------------------------

def init_params(key, in_ch, out_ch, temb_ch):
    ks = jax.random.split(key, 12)

    def conv_init(k, cout, cin, kh, kw):
        fan_in = cin * kh * kw
        return jax.random.normal(k, (cout, cin, kh, kw), jnp.float32) / jnp.sqrt(fan_in)

    p = {
        "norm1_g": 1.0 + 0.1 * jax.random.normal(ks[0], (in_ch,), jnp.float32),
        "norm1_b": 0.1 * jax.random.normal(ks[1], (in_ch,), jnp.float32),
        "conv1_w": conv_init(ks[2], out_ch, in_ch, 3, 3),
        "conv1_b": 0.01 * jax.random.normal(ks[3], (out_ch,), jnp.float32),
        "temb_w": jax.random.normal(ks[4], (out_ch, temb_ch), jnp.float32) / jnp.sqrt(temb_ch),
        "temb_b": 0.01 * jax.random.normal(ks[5], (out_ch,), jnp.float32),
        "norm2_g": 1.0 + 0.1 * jax.random.normal(ks[6], (out_ch,), jnp.float32),
        "norm2_b": 0.1 * jax.random.normal(ks[7], (out_ch,), jnp.float32),
        "conv2_w": conv_init(ks[8], out_ch, out_ch, 3, 3),
        "conv2_b": 0.01 * jax.random.normal(ks[9], (out_ch,), jnp.float32),
    }
    if in_ch != out_ch:
        p["nin_w"] = conv_init(ks[10], out_ch, in_ch, 1, 1)
        p["nin_b"] = 0.01 * jax.random.normal(ks[11], (out_ch,), jnp.float32)
    return p


def prepare_params(p):
    # One-time weight re-layout / bf16 cast (hoisted out of the forward pass).
    q = dict(p)
    co, ci = p["conv1_w"].shape[:2]
    q["conv1_w9"] = (jnp.transpose(p["conv1_w"], (2, 3, 1, 0))
                     .reshape(9, ci, co).astype(jnp.bfloat16))        # (9, Cin, Cout)
    co2, ci2 = p["conv2_w"].shape[:2]
    q["conv2_w9"] = (jnp.transpose(p["conv2_w"], (2, 3, 1, 0))
                     .reshape(9, ci2, co2).astype(jnp.bfloat16))      # (9, Cout, Cout)
    q["temb_w_t"] = jnp.transpose(p["temb_w"]).astype(jnp.bfloat16)   # (temb_ch, Cout)
    if "nin_w" in p:
        q["nin_w2"] = jnp.transpose(p["nin_w"].reshape(co, ci)).astype(jnp.bfloat16)  # (Cin, Cout)
    return q


# ----------------------------- pure-JAX reference ------------------------------
# Matches the kernel's precision policy: matmul/conv operands quantized to bf16,
# f32 accumulation (native MXU rate); everything else f32.  This deviates from a
# strict f32 torch forward by ~1e-3 relative (MXU bf16 operand rounding).

def _silu(x):
    return x * (1.0 / (1.0 + jnp.exp(-x)))


def _groupnorm_ref(x, g, b, G=32, eps=1e-6):
    B, C, H, W = x.shape
    xg = x.reshape(B, G, -1)
    mean = xg.mean(-1, keepdims=True)
    var = ((xg - mean) ** 2).mean(-1, keepdims=True)
    xn = ((xg - mean) * jax.lax.rsqrt(var + eps)).reshape(B, C, H, W)
    return xn * g[None, :, None, None] + b[None, :, None, None]


def _qconv_ref(x, w, b, pad):
    y = jax.lax.conv_general_dilated(
        x.astype(jnp.bfloat16), w.astype(jnp.bfloat16), (1, 1),
        [(pad, pad), (pad, pad)],
        dimension_numbers=("NCHW", "OIHW", "NCHW"),
        preferred_element_type=jnp.float32)
    return y.astype(jnp.float32) + b[None, :, None, None]


def resnet_block_ref(x, temb, p):
    h = _silu(_groupnorm_ref(x, p["norm1_g"], p["norm1_b"]))
    h = _qconv_ref(h, p["conv1_w"], p["conv1_b"], 1)
    t = jnp.dot(_silu(temb).astype(jnp.bfloat16),
                p["temb_w"].T.astype(jnp.bfloat16),
                preferred_element_type=jnp.float32) + p["temb_b"]
    h = h + t[:, :, None, None]
    h = _silu(_groupnorm_ref(h, p["norm2_g"], p["norm2_b"]))
    h = _qconv_ref(h, p["conv2_w"], p["conv2_b"], 1)
    if "nin_w" in p:
        xs = _qconv_ref(x, p["nin_w"], p["nin_b"], 0)
    else:
        xs = x
    return xs + h


# ----------------------------- main ------------------------------

if __name__ == "__main__":
    B, Cin, Cout, H, W = 2, 64, 128, 16, 16     # in=64, out=128, temb=512
    TEMB = 512

    key = jax.random.PRNGKey(0)
    kx, kt, kp = jax.random.split(key, 3)
    x = jax.random.normal(kx, (B, Cin, H, W), jnp.float32)
    temb = jax.random.normal(kt, (B, TEMB), jnp.float32)
    params = init_params(kp, Cin, Cout, TEMB)
    pp = prepare_params(params)

    fwd = jax.jit(resnet_block_forward)
    out = jax.block_until_ready(fwd(x, temb, pp))

    ref = jax.block_until_ready(resnet_block_ref(x, temb, params))
    assert out.shape == (B, Cout, H, W), out.shape
    max_err = float(jnp.max(jnp.abs(out - ref)))
    if not jnp.allclose(out, ref, atol=5e-3, rtol=5e-3):
        raise AssertionError(f"mismatch vs reference, max abs err = {max_err}")

    print("KERNEL_OK")
</pallas_src>

<mosaic_0001>
module attributes {stable_mosaic.version = 11 : i64} {
  func.func @_gn_silu_kernel(%arg0: i32, %arg1: memref<1x328x64xf32, #tpu.memory_space<vmem>>, %arg2: memref<328x1xf32, #tpu.memory_space<vmem>>, %arg3: memref<1x64xf32, #tpu.memory_space<vmem>>, %arg4: memref<1x64xf32, #tpu.memory_space<vmem>>, %arg5: memref<64x64xf32, #tpu.memory_space<vmem>>, %arg6: memref<1x328x64xf32, #tpu.memory_space<vmem>>) attributes {dimension_semantics = [#tpu.dimension_semantics<parallel>], iteration_bounds = array<i64: 2>, scalar_prefetch = 0 : i64, scratch_operands = 0 : i64, tpu.core_type = #tpu.core_type<tc>, window_params = [{transform_indices = @transform_0, window_bounds = array<i64: 1, 328, 64>}, {pipeline_mode = #tpu.pipeline_mode<synchronous>, transform_indices = @transform_1, window_bounds = array<i64: 328, 1>}, {pipeline_mode = #tpu.pipeline_mode<synchronous>, transform_indices = @transform_2, window_bounds = array<i64: 1, 64>}, {pipeline_mode = #tpu.pipeline_mode<synchronous>, transform_indices = @transform_3, window_bounds = array<i64: 1, 64>}, {pipeline_mode = #tpu.pipeline_mode<synchronous>, transform_indices = @transform_4, window_bounds = array<i64: 64, 64>}, {transform_indices = @transform_5, window_bounds = array<i64: 1, 328, 64>}]} {
    %c0 = arith.constant 0 : index
    %c0_0 = arith.constant 0 : index
    %c0_1 = arith.constant 0 : index
    %0 = vector.load %arg1[%c0, %c0_0, %c0_1] : memref<1x328x64xf32, #tpu.memory_space<vmem>>, vector<1x328x64xf32>
    %1 = vector.shape_cast %0 : vector<1x328x64xf32> to vector<328x64xf32>
    %c0_2 = arith.constant 0 : index
    %c0_3 = arith.constant 0 : index
    %2 = vector.load %arg2[%c0_2, %c0_3] : memref<328x1xf32, #tpu.memory_space<vmem>>, vector<328x1xf32>
    %3 = vector.broadcast %2 : vector<328x1xf32> to vector<328x64xf32>
    %4 = arith.mulf %1, %3 : vector<328x64xf32>
    %cst = arith.constant dense<0.000000e+00> : vector<64xf32>
    %5 = vector.multi_reduction <add>, %4, %cst [0] : vector<328x64xf32> to vector<64xf32>
    %6 = vector.shape_cast %5 : vector<64xf32> to vector<1x64xf32>
    %7 = arith.mulf %4, %4 : vector<328x64xf32>
    %cst_4 = arith.constant dense<0.000000e+00> : vector<64xf32>
    %8 = vector.multi_reduction <add>, %7, %cst_4 [0] : vector<328x64xf32> to vector<64xf32>
    %9 = vector.shape_cast %8 : vector<64xf32> to vector<1x64xf32>
    %c0_5 = arith.constant 0 : index
    %c0_6 = arith.constant 0 : index
    %10 = vector.load %arg5[%c0_5, %c0_6] : memref<64x64xf32, #tpu.memory_space<vmem>>, vector<64x64xf32>
    %cst_7 = arith.constant dense<0.000000e+00> : vector<1x64xf32>
    %11 = tpu.matmul %6, %10, %cst_7 {dimension_numbers = #tpu.dot_dimension_numbers<[1], [0], [0], [1], [0, 0, 1, 1], [], []>, precision = #tpu.contract_precision<fp32>} : vector<1x64xf32>, vector<64x64xf32>, vector<1x64xf32> -> vector<1x64xf32>
    %c0_8 = arith.constant 0 : index
    %c0_9 = arith.constant 0 : index
    %12 = vector.load %arg5[%c0_8, %c0_9] : memref<64x64xf32, #tpu.memory_space<vmem>>, vector<64x64xf32>
    %cst_10 = arith.constant dense<0.000000e+00> : vector<1x64xf32>
    %13 = tpu.matmul %9, %12, %cst_10 {dimension_numbers = #tpu.dot_dimension_numbers<[1], [0], [0], [1], [0, 0, 1, 1], [], []>, precision = #tpu.contract_precision<fp32>} : vector<1x64xf32>, vector<64x64xf32>, vector<1x64xf32> -> vector<1x64xf32>
    %14 = arith.mulf %11, %11 : vector<1x64xf32>
    %15 = arith.subf %13, %14 : vector<1x64xf32>
    %cst_11 = arith.constant 9.99999997E-7 : f32
    %16 = vector.broadcast %cst_11 : f32 to vector<1x64xf32>
    %17 = arith.addf %15, %16 : vector<1x64xf32>
    %18 = math.rsqrt %17 : vector<1x64xf32>
    %19 = vector.broadcast %11 : vector<1x64xf32> to vector<328x64xf32>
    %20 = arith.subf %1, %19 : vector<328x64xf32>
    %c0_12 = arith.constant 0 : index
    %c0_13 = arith.constant 0 : index
    %21 = vector.load %arg3[%c0_12, %c0_13] : memref<1x64xf32, #tpu.memory_space<vmem>>, vector<1x64xf32>
    %22 = arith.mulf %18, %21 : vector<1x64xf32>
    %23 = vector.broadcast %22 : vector<1x64xf32> to vector<328x64xf32>
    %24 = arith.mulf %20, %23 : vector<328x64xf32>
    %c0_14 = arith.constant 0 : index
    %c0_15 = arith.constant 0 : index
    %25 = vector.load %arg4[%c0_14, %c0_15] : memref<1x64xf32, #tpu.memory_space<vmem>>, vector<1x64xf32>
    %26 = vector.broadcast %25 : vector<1x64xf32> to vector<328x64xf32>
    %27 = arith.addf %24, %26 : vector<328x64xf32>
    %cst_16 = arith.constant 0.000000e+00 : f32
    %28 = vector.broadcast %cst_16 : f32 to vector<328x64xf32>
    %29 = arith.subf %28, %27 : vector<328x64xf32>
    %30 = math.exp %29 : vector<328x64xf32>
    %cst_17 = arith.constant 1.000000e+00 : f32
    %31 = vector.broadcast %cst_17 : f32 to vector<328x64xf32>
    %32 = arith.addf %31, %30 : vector<328x64xf32>
    %cst_18 = arith.constant 1.000000e+00 : f32
    %33 = vector.broadcast %cst_18 : f32 to vector<328x64xf32>
    %34 = arith.divf %33, %32 : vector<328x64xf32>
    %35 = arith.mulf %27, %34 : vector<328x64xf32>
    %36 = vector.broadcast %2 : vector<328x1xf32> to vector<328x64xf32>
    %37 = arith.mulf %35, %36 : vector<328x64xf32>
    %c0_19 = arith.constant 0 : index
    %c0_20 = arith.constant 0 : index
    %c0_21 = arith.constant 0 : index
    %38 = vector.load %arg6[%c0_19, %c0_20, %c0_21] : memref<1x328x64xf32, #tpu.memory_space<vmem>>, vector<1x328x64xf32>
    %39 = vector.shape_cast %38 : vector<1x328x64xf32> to vector<328x64xf32>
    %40 = vector.shape_cast %37 : vector<328x64xf32> to vector<1x328x64xf32>
    tpu.vector_store %arg6[%c0_19, %c0_20, %c0_21], %40 {strides = array<i32>} : memref<1x328x64xf32, #tpu.memory_space<vmem>>, vector<1x328x64xf32>,
    return
  }
  func.func @transform_0(%arg0: i32) -> (i32, i32, i32) {
    %c0_i32 = arith.constant 0 : i32
    %c0_i32_0 = arith.constant 0 : i32
    %c0_i32_1 = arith.constant 0 : i32
    return %arg0, %c0_i32, %c0_i32_0 : i32, i32, i32
  }
  func.func @transform_1(%arg0: i32) -> (i32, i32) {
    %c0_i32 = arith.constant 0 : i32
    %c0_i32_0 = arith.constant 0 : i32
    %c0_i32_1 = arith.constant 0 : i32
    return %c0_i32, %c0_i32_0 : i32, i32
  }
  func.func @transform_2(%arg0: i32) -> (i32, i32) {
    %c0_i32 = arith.constant 0 : i32
    %c0_i32_0 = arith.constant 0 : i32
    %c0_i32_1 = arith.constant 0 : i32
    return %c0_i32, %c0_i32_0 : i32, i32
  }
  func.func @transform_3(%arg0: i32) -> (i32, i32) {
    %c0_i32 = arith.constant 0 : i32
    %c0_i32_0 = arith.constant 0 : i32
    %c0_i32_1 = arith.constant 0 : i32
    return %c0_i32, %c0_i32_0 : i32, i32
  }
  func.func @transform_4(%arg0: i32) -> (i32, i32) {
    %c0_i32 = arith.constant 0 : i32
    %c0_i32_0 = arith.constant 0 : i32
    %c0_i32_1 = arith.constant 0 : i32
    return %c0_i32, %c0_i32_0 : i32, i32
  }
  func.func @transform_5(%arg0: i32) -> (i32, i32, i32) {
    %c0_i32 = arith.constant 0 : i32
    %c0_i32_0 = arith.constant 0 : i32
    %c0_i32_1 = arith.constant 0 : i32
    return %arg0, %c0_i32, %c0_i32_0 : i32, i32, i32
  }
}

module attributes {stable_mosaic.version = 11 : i64} {
  func.func @_temb_kernel(%arg0: i32, %arg1: memref<2x512xf32, #tpu.memory_space<vmem>>, %arg2: memref<512x128xbf16, #tpu.memory_space<vmem>>, %arg3: memref<1x128xf32, #tpu.memory_space<vmem>>, %arg4: memref<2x128xf32, #tpu.memory_space<vmem>>) attributes {dimension_semantics = [#tpu.dimension_semantics<arbitrary>], iteration_bounds = array<i64: 1>, scalar_prefetch = 0 : i64, scratch_operands = 0 : i64, tpu.core_type = #tpu.core_type<tc>, window_params = [{pipeline_mode = #tpu.pipeline_mode<synchronous>, transform_indices = @transform_0, window_bounds = array<i64: 2, 512>}, {pipeline_mode = #tpu.pipeline_mode<synchronous>, transform_indices = @transform_1, window_bounds = array<i64: 512, 128>}, {pipeline_mode = #tpu.pipeline_mode<synchronous>, transform_indices = @transform_2, window_bounds = array<i64: 1, 128>}, {pipeline_mode = #tpu.pipeline_mode<synchronous>, transform_indices = @transform_3, window_bounds = array<i64: 2, 128>}]} {
    %c0 = arith.constant 0 : index
    %c0_0 = arith.constant 0 : index
    %0 = vector.load %arg1[%c0, %c0_0] : memref<2x512xf32, #tpu.memory_space<vmem>>, vector<2x512xf32>
    %cst = arith.constant 0.000000e+00 : f32
    %1 = vector.broadcast %cst : f32 to vector<2x512xf32>
    %2 = arith.subf %1, %0 : vector<2x512xf32>
    %3 = math.exp %2 : vector<2x512xf32>
    %cst_1 = arith.constant 1.000000e+00 : f32
    %4 = vector.broadcast %cst_1 : f32 to vector<2x512xf32>
    %5 = arith.addf %4, %3 : vector<2x512xf32>
    %cst_2 = arith.constant 1.000000e+00 : f32
    %6 = vector.broadcast %cst_2 : f32 to vector<2x512xf32>
    %7 = arith.divf %6, %5 : vector<2x512xf32>
    %8 = arith.mulf %0, %7 : vector<2x512xf32>
    %9 = arith.truncf %8 : vector<2x512xf32> to vector<2x512xbf16>
    %c0_3 = arith.constant 0 : index
    %c0_4 = arith.constant 0 : index
    %10 = vector.load %arg2[%c0_3, %c0_4] : memref<512x128xbf16, #tpu.memory_space<vmem>>, vector<512x128xbf16>
    %cst_5 = arith.constant dense<0.000000e+00> : vector<2x128xf32>
    %11 = tpu.matmul %9, %10, %cst_5 {dimension_numbers = #tpu.dot_dimension_numbers<[1], [0], [0], [1], [0, 0, 1, 1], [], []>} : vector<2x512xbf16>, vector<512x128xbf16>, vector<2x128xf32> -> vector<2x128xf32>
    %c0_6 = arith.constant 0 : index
    %c0_7 = arith.constant 0 : index
    %12 = vector.load %arg3[%c0_6, %c0_7] : memref<1x128xf32, #tpu.memory_space<vmem>>, vector<1x128xf32>
    %13 = vector.broadcast %12 : vector<1x128xf32> to vector<2x128xf32>
    %14 = arith.addf %11, %13 : vector<2x128xf32>
    %c0_8 = arith.constant 0 : index
    %c0_9 = arith.constant 0 : index
    %15 = vector.load %arg4[%c0_8, %c0_9] : memref<2x128xf32, #tpu.memory_space<vmem>>, vector<2x128xf32>
    tpu.vector_store %arg4[%c0_8, %c0_9], %14 {strides = array<i32>} : memref<2x128xf32, #tpu.memory_space<vmem>>, vector<2x128xf32>,
    return
  }
  func.func @transform_0(%arg0: i32) -> (i32, i32) {
    %c0_i32 = arith.constant 0 : i32
    %c0_i32_0 = arith.constant 0 : i32
    %c0_i32_1 = arith.constant 0 : i32
    return %c0_i32, %c0_i32_0 : i32, i32
  }
  func.func @transform_1(%arg0: i32) -> (i32, i32) {
    %c0_i32 = arith.constant 0 : i32
    %c0_i32_0 = arith.constant 0 : i32
    %c0_i32_1 = arith.constant 0 : i32
    return %c0_i32, %c0_i32_0 : i32, i32
  }
  func.func @transform_2(%arg0: i32) -> (i32, i32) {
    %c0_i32 = arith.constant 0 : i32
    %c0_i32_0 = arith.constant 0 : i32
    %c0_i32_1 = arith.constant 0 : i32
    return %c0_i32, %c0_i32_0 : i32, i32
  }
  func.func @transform_3(%arg0: i32) -> (i32, i32) {
    %c0_i32 = arith.constant 0 : i32
    %c0_i32_0 = arith.constant 0 : i32
    %c0_i32_1 = arith.constant 0 : i32
    return %c0_i32, %c0_i32_0 : i32, i32
  }
}

module attributes {stable_mosaic.version = 11 : i64} {
  func.func @_conv3x3_temb_kernel(%arg0: i32, %arg1: i32, %arg2: memref<1x328x64xf32, #tpu.memory_space<vmem>>, %arg3: memref<9x64x128xbf16, #tpu.memory_space<vmem>>, %arg4: memref<1x128xf32, #tpu.memory_space<vmem>>, %arg5: memref<1x1x128xf32, #tpu.memory_space<vmem>>, %arg6: memref<1x328x128xf32, #tpu.memory_space<vmem>>) attributes {dimension_semantics = [#tpu.dimension_semantics<parallel>, #tpu.dimension_semantics<parallel>], iteration_bounds = array<i64: 2, 1>, scalar_prefetch = 0 : i64, scratch_operands = 0 : i64, tpu.core_type = #tpu.core_type<tc>, window_params = [{transform_indices = @transform_0, window_bounds = array<i64: 1, 328, 64>}, {transform_indices = @transform_1, window_bounds = array<i64: 9, 64, 128>}, {transform_indices = @transform_2, window_bounds = array<i64: 1, 128>}, {transform_indices = @transform_3, window_bounds = array<i64: 1, 1, 128>}, {transform_indices = @transform_4, window_bounds = array<i64: 1, 328, 128>}]} {
    %cst = arith.constant 0.000000e+00 : f32
    %0 = vector.broadcast %cst : f32 to vector<288x128xf32>
    %c0 = arith.constant 0 : index
    %c0_0 = arith.constant 0 : index
    %c0_1 = arith.constant 0 : index
    %1 = vector.load %arg2[%c0, %c0_0, %c0_1] : memref<1x328x64xf32, #tpu.memory_space<vmem>>, vector<1x288x64xf32>
    %2 = vector.shape_cast %1 : vector<1x288x64xf32> to vector<288x64xf32>
    %3 = arith.truncf %2 : vector<288x64xf32> to vector<288x64xbf16>
    %c0_2 = arith.constant 0 : index
    %c0_3 = arith.constant 0 : index
    %c0_4 = arith.constant 0 : index
    %4 = vector.load %arg3[%c0_2, %c0_3, %c0_4] : memref<9x64x128xbf16, #tpu.memory_space<vmem>>, vector<1x64x128xbf16>
    %5 = vector.shape_cast %4 : vector<1x64x128xbf16> to vector<64x128xbf16>
    %cst_5 = arith.constant dense<0.000000e+00> : vector<288x128xf32>
    %6 = tpu.matmul %3, %5, %cst_5 {dimension_numbers = #tpu.dot_dimension_numbers<[1], [0], [0], [1], [0, 0, 1, 1], [], []>} : vector<288x64xbf16>, vector<64x128xbf16>, vector<288x128xf32> -> vector<288x128xf32>
    %7 = arith.addf %0, %6 : vector<288x128xf32>
    %c0_6 = arith.constant 0 : index
    %c1 = arith.constant 1 : index
    %c0_7 = arith.constant 0 : index
    %8 = vector.load %arg2[%c0_6, %c1, %c0_7] : memref<1x328x64xf32, #tpu.memory_space<vmem>>, vector<1x288x64xf32>
    %9 = vector.shape_cast %8 : vector<1x288x64xf32> to vector<288x64xf32>
    %10 = arith.truncf %9 : vector<288x64xf32> to vector<288x64xbf16>
    %c1_8 = arith.constant 1 : index
    %c0_9 = arith.constant 0 : index
    %c0_10 = arith.constant 0 : index
    %11 = vector.load %arg3[%c1_8, %c0_9, %c0_10] : memref<9x64x128xbf16, #tpu.memory_space<vmem>>, vector<1x64x128xbf16>
    %12 = vector.shape_cast %11 : vector<1x64x128xbf16> to vector<64x128xbf16>
    %cst_11 = arith.constant dense<0.000000e+00> : vector<288x128xf32>
    %13 = tpu.matmul %10, %12, %cst_11 {dimension_numbers = #tpu.dot_dimension_numbers<[1], [0], [0], [1], [0, 0, 1, 1], [], []>} : vector<288x64xbf16>, vector<64x128xbf16>, vector<288x128xf32> -> vector<288x128xf32>
    %14 = arith.addf %7, %13 : vector<288x128xf32>
    %c0_12 = arith.constant 0 : index
    %c2 = arith.constant 2 : index
    %c0_13 = arith.constant 0 : index
    %15 = vector.load %arg2[%c0_12, %c2, %c0_13] : memref<1x328x64xf32, #tpu.memory_space<vmem>>, vector<1x288x64xf32>
    %16 = vector.shape_cast %15 : vector<1x288x64xf32> to vector<288x64xf32>
    %17 = arith.truncf %16 : vector<288x64xf32> to vector<288x64xbf16>
    %c2_14 = arith.constant 2 : index
    %c0_15 = arith.constant 0 : index
    %c0_16 = arith.constant 0 : index
    %18 = vector.load %arg3[%c2_14, %c0_15, %c0_16] : memref<9x64x128xbf16, #tpu.memory_space<vmem>>, vector<1x64x128xbf16>
    %19 = vector.shape_cast %18 : vector<1x64x128xbf16> to vector<64x128xbf16>
    %cst_17 = arith.constant dense<0.000000e+00> : vector<288x128xf32>
    %20 = tpu.matmul %17, %19, %cst_17 {dimension_numbers = #tpu.dot_dimension_numbers<[1], [0], [0], [1], [0, 0, 1, 1], [], []>} : vector<288x64xbf16>, vector<64x128xbf16>, vector<288x128xf32> -> vector<288x128xf32>
    %21 = arith.addf %14, %20 : vector<288x128xf32>
    %c0_18 = arith.constant 0 : index
    %c18 = arith.constant 18 : index
    %c0_19 = arith.constant 0 : index
    %22 = vector.load %arg2[%c0_18, %c18, %c0_19] : memref<1x328x64xf32, #tpu.memory_space<vmem>>, vector<1x288x64xf32>
    %23 = vector.shape_cast %22 : vector<1x288x64xf32> to vector<288x64xf32>
    %24 = arith.truncf %23 : vector<288x64xf32> to vector<288x64xbf16>
    %c3 = arith.constant 3 : index
    %c0_20 = arith.constant 0 : index
    %c0_21 = arith.constant 0 : index
    %25 = vector.load %arg3[%c3, %c0_20, %c0_21] : memref<9x64x128xbf16, #tpu.memory_space<vmem>>, vector<1x64x128xbf16>
    %26 = vector.shape_cast %25 : vector<1x64x128xbf16> to vector<64x128xbf16>
    %cst_22 = arith.constant dense<0.000000e+00> : vector<288x128xf32>
    %27 = tpu.matmul %24, %26, %cst_22 {dimension_numbers = #tpu.dot_dimension_numbers<[1], [0], [0], [1], [0, 0, 1, 1], [], []>} : vector<288x64xbf16>, vector<64x128xbf16>, vector<288x128xf32> -> vector<288x128xf32>
    %28 = arith.addf %21, %27 : vector<288x128xf32>
    %c0_23 = arith.constant 0 : index
    %c19 = arith.constant 19 : index
    %c0_24 = arith.constant 0 : index
    %29 = vector.load %arg2[%c0_23, %c19, %c0_24] : memref<1x328x64xf32, #tpu.memory_space<vmem>>, vector<1x288x64xf32>
    %30 = vector.shape_cast %29 : vector<1x288x64xf32> to vector<288x64xf32>
    %31 = arith.truncf %30 : vector<288x64xf32> to vector<288x64xbf16>
    %c4 = arith.constant 4 : index
    %c0_25 = arith.constant 0 : index
    %c0_26 = arith.constant 0 : index
    %32 = vector.load %arg3[%c4, %c0_25, %c0_26] : memref<9x64x128xbf16, #tpu.memory_space<vmem>>, vector<1x64x128xbf16>
    %33 = vector.shape_cast %32 : vector<1x64x128xbf16> to vector<64x128xbf16>
    %cst_27 = arith.constant dense<0.000000e+00> : vector<288x128xf32>
    %34 = tpu.matmul %31, %33, %cst_27 {dimension_numbers = #tpu.dot_dimension_numbers<[1], [0], [0], [1], [0, 0, 1, 1], [], []>} : vector<288x64xbf16>, vector<64x128xbf16>, vector<288x128xf32> -> vector<288x128xf32>
    %35 = arith.addf %28, %34 : vector<288x128xf32>
    %c0_28 = arith.constant 0 : index
    %c20 = arith.constant 20 : index
    %c0_29 = arith.constant 0 : index
    %36 = vector.load %arg2[%c0_28, %c20, %c0_29] : memref<1x328x64xf32, #tpu.memory_space<vmem>>, vector<1x288x64xf32>
    %37 = vector.shape_cast %36 : vector<1x288x64xf32> to vector<288x64xf32>
    %38 = arith.truncf %37 : vector<288x64xf32> to vector<288x64xbf16>
    %c5 = arith.constant 5 : index
    %c0_30 = arith.constant 0 : index
    %c0_31 = arith.constant 0 : index
    %39 = vector.load %arg3[%c5, %c0_30, %c0_31] : memref<9x64x128xbf16, #tpu.memory_space<vmem>>, vector<1x64x128xbf16>
    %40 = vector.shape_cast %39 : vector<1x64x128xbf16> to vector<64x128xbf16>
    %cst_32 = arith.constant dense<0.000000e+00> : vector<288x128xf32>
    %41 = tpu.matmul %38, %40, %cst_32 {dimension_numbers = #tpu.dot_dimension_numbers<[1], [0], [0], [1], [0, 0, 1, 1], [], []>} : vector<288x64xbf16>, vector<64x128xbf16>, vector<288x128xf32> -> vector<288x128xf32>
    %42 = arith.addf %35, %41 : vector<288x128xf32>
    %c0_33 = arith.constant 0 : index
    %c36 = arith.constant 36 : index
    %c0_34 = arith.constant 0 : index
    %43 = vector.load %arg2[%c0_33, %c36, %c0_34] : memref<1x328x64xf32, #tpu.memory_space<vmem>>, vector<1x288x64xf32>
    %44 = vector.shape_cast %43 : vector<1x288x64xf32> to vector<288x64xf32>
    %45 = arith.truncf %44 : vector<288x64xf32> to vector<288x64xbf16>
    %c6 = arith.constant 6 : index
    %c0_35 = arith.constant 0 : index
    %c0_36 = arith.constant 0 : index
    %46 = vector.load %arg3[%c6, %c0_35, %c0_36] : memref<9x64x128xbf16, #tpu.memory_space<vmem>>, vector<1x64x128xbf16>
    %47 = vector.shape_cast %46 : vector<1x64x128xbf16> to vector<64x128xbf16>
    %cst_37 = arith.constant dense<0.000000e+00> : vector<288x128xf32>
    %48 = tpu.matmul %45, %47, %cst_37 {dimension_numbers = #tpu.dot_dimension_numbers<[1], [0], [0], [1], [0, 0, 1, 1], [], []>} : vector<288x64xbf16>, vector<64x128xbf16>, vector<288x128xf32> -> vector<288x128xf32>
    %49 = arith.addf %42, %48 : vector<288x128xf32>
    %c0_38 = arith.constant 0 : index
    %c37 = arith.constant 37 : index
    %c0_39 = arith.constant 0 : index
    %50 = vector.load %arg2[%c0_38, %c37, %c0_39] : memref<1x328x64xf32, #tpu.memory_space<vmem>>, vector<1x288x64xf32>
    %51 = vector.shape_cast %50 : vector<1x288x64xf32> to vector<288x64xf32>
    %52 = arith.truncf %51 : vector<288x64xf32> to vector<288x64xbf16>
    %c7 = arith.constant 7 : index
    %c0_40 = arith.constant 0 : index
    %c0_41 = arith.constant 0 : index
    %53 = vector.load %arg3[%c7, %c0_40, %c0_41] : memref<9x64x128xbf16, #tpu.memory_space<vmem>>, vector<1x64x128xbf16>
    %54 = vector.shape_cast %53 : vector<1x64x128xbf16> to vector<64x128xbf16>
    %cst_42 = arith.constant dense<0.000000e+00> : vector<288x128xf32>
    %55 = tpu.matmul %52, %54, %cst_42 {dimension_numbers = #tpu.dot_dimension_numbers<[1], [0], [0], [1], [0, 0, 1, 1], [], []>} : vector<288x64xbf16>, vector<64x128xbf16>, vector<288x128xf32> -> vector<288x128xf32>
    %56 = arith.addf %49, %55 : vector<288x128xf32>
    %c0_43 = arith.constant 0 : index
    %c38 = arith.constant 38 : index
    %c0_44 = arith.constant 0 : index
    %57 = vector.load %arg2[%c0_43, %c38, %c0_44] : memref<1x328x64xf32, #tpu.memory_space<vmem>>, vector<1x288x64xf32>
    %58 = vector.shape_cast %57 : vector<1x288x64xf32> to vector<288x64xf32>
    %59 = arith.truncf %58 : vector<288x64xf32> to vector<288x64xbf16>
    %c8 = arith.constant 8 : index
    %c0_45 = arith.constant 0 : index
    %c0_46 = arith.constant 0 : index
    %60 = vector.load %arg3[%c8, %c0_45, %c0_46] : memref<9x64x128xbf16, #tpu.memory_space<vmem>>, vector<1x64x128xbf16>
    %61 = vector.shape_cast %60 : vector<1x64x128xbf16> to vector<64x128xbf16>
    %cst_47 = arith.constant dense<0.000000e+00> : vector<288x128xf32>
    %62 = tpu.matmul %59, %61, %cst_47 {dimension_numbers = #tpu.dot_dimension_numbers<[1], [0], [0], [1], [0, 0, 1, 1], [], []>} : vector<288x64xbf16>, vector<64x128xbf16>, vector<288x128xf32> -> vector<288x128xf32>
    %63 = arith.addf %56, %62 : vector<288x128xf32>
    %c0_48 = arith.constant 0 : index
    %c0_49 = arith.constant 0 : index
    %64 = vector.load %arg4[%c0_48, %c0_49] : memref<1x128xf32, #tpu.memory_space<vmem>>, vector<1x128xf32>
    %65 = vector.broadcast %64 : vector<1x128xf32> to vector<288x128xf32>
    %66 = arith.addf %63, %65 : vector<288x128xf32>
    %c0_50 = arith.constant 0 : index
    %c0_51 = arith.constant 0 : index
    %c0_52 = arith.constant 0 : index
    %67 = vector.load %arg5[%c0_50, %c0_51, %c0_52] : memref<1x1x128xf32, #tpu.memory_space<vmem>>, vector<1x1x128xf32>
    %68 = vector.shape_cast %67 : vector<1x1x128xf32> to vector<1x128xf32>
    %69 = vector.broadcast %68 : vector<1x128xf32> to vector<288x128xf32>
    %70 = arith.addf %66, %69 : vector<288x128xf32>
    %cst_53 = arith.constant 0.000000e+00 : f32
    %71 = vector.broadcast %cst_53 : f32 to vector<1x328x128xf32>
    %c0_54 = arith.constant 0 : index
    %c0_55 = arith.constant 0 : index
    %c0_56 = arith.constant 0 : index
    %72 = vector.load %arg6[%c0_54, %c0_55, %c0_56] : memref<1x328x128xf32, #tpu.memory_space<vmem>>, vector<1x328x128xf32>
    tpu.vector_store %arg6[%c0_54, %c0_55, %c0_56], %71 {strides = array<i32>} : memref<1x328x128xf32, #tpu.memory_space<vmem>>, vector<1x328x128xf32>,
    %c0_57 = arith.constant 0 : index
    %c19_58 = arith.constant 19 : index
    %c0_59 = arith.constant 0 : index
    %73 = vector.load %arg6[%c0_57, %c19_58, %c0_59] : memref<1x328x128xf32, #tpu.memory_space<vmem>>, vector<1x288x128xf32>
    %74 = vector.shape_cast %73 : vector<1x288x128xf32> to vector<288x128xf32>
    %75 = vector.shape_cast %70 : vector<288x128xf32> to vector<1x288x128xf32>
    tpu.vector_store %arg6[%c0_57, %c19_58, %c0_59], %75 {strides = array<i32>} : memref<1x328x128xf32, #tpu.memory_space<vmem>>, vector<1x288x128xf32>,
    return
  }
  func.func @transform_0(%arg0: i32, %arg1: i32) -> (i32, i32, i32) {
    %c0_i32 = arith.constant 0 : i32
    %c0_i32_0 = arith.constant 0 : i32
    %c0_i32_1 = arith.constant 0 : i32
    return %arg0, %c0_i32, %c0_i32_0 : i32, i32, i32
  }
  func.func @transform_1(%arg0: i32, %arg1: i32) -> (i32, i32, i32) {
    %c0_i32 = arith.constant 0 : i32
    %c0_i32_0 = arith.constant 0 : i32
    %c0_i32_1 = arith.constant 0 : i32
    return %c0_i32, %c0_i32_0, %arg1 : i32, i32, i32
  }
  func.func @transform_2(%arg0: i32, %arg1: i32) -> (i32, i32) {
    %c0_i32 = arith.constant 0 : i32
    %c0_i32_0 = arith.constant 0 : i32
    return %c0_i32, %arg1 : i32, i32
  }
  func.func @transform_3(%arg0: i32, %arg1: i32) -> (i32, i32, i32) {
    %c0_i32 = arith.constant 0 : i32
    %c0_i32_0 = arith.constant 0 : i32
    return %arg0, %c0_i32, %arg1 : i32, i32, i32
  }
  func.func @transform_4(%arg0: i32, %arg1: i32) -> (i32, i32, i32) {
    %c0_i32 = arith.constant 0 : i32
    %c0_i32_0 = arith.constant 0 : i32
    return %arg0, %c0_i32, %arg1 : i32, i32, i32
  }
}

module attributes {stable_mosaic.version = 11 : i64} {
  func.func @_gn_silu_kernel(%arg0: i32, %arg1: memref<1x328x128xf32, #tpu.memory_space<vmem>>, %arg2: memref<328x1xf32, #tpu.memory_space<vmem>>, %arg3: memref<1x128xf32, #tpu.memory_space<vmem>>, %arg4: memref<1x128xf32, #tpu.memory_space<vmem>>, %arg5: memref<128x128xf32, #tpu.memory_space<vmem>>, %arg6: memref<1x328x128xf32, #tpu.memory_space<vmem>>) attributes {dimension_semantics = [#tpu.dimension_semantics<parallel>], iteration_bounds = array<i64: 2>, scalar_prefetch = 0 : i64, scratch_operands = 0 : i64, tpu.core_type = #tpu.core_type<tc>, window_params = [{transform_indices = @transform_0, window_bounds = array<i64: 1, 328, 128>}, {pipeline_mode = #tpu.pipeline_mode<synchronous>, transform_indices = @transform_1, window_bounds = array<i64: 328, 1>}, {pipeline_mode = #tpu.pipeline_mode<synchronous>, transform_indices = @transform_2, window_bounds = array<i64: 1, 128>}, {pipeline_mode = #tpu.pipeline_mode<synchronous>, transform_indices = @transform_3, window_bounds = array<i64: 1, 128>}, {pipeline_mode = #tpu.pipeline_mode<synchronous>, transform_indices = @transform_4, window_bounds = array<i64: 128, 128>}, {transform_indices = @transform_5, window_bounds = array<i64: 1, 328, 128>}]} {
    %c0 = arith.constant 0 : index
    %c0_0 = arith.constant 0 : index
    %c0_1 = arith.constant 0 : index
    %0 = vector.load %arg1[%c0, %c0_0, %c0_1] : memref<1x328x128xf32, #tpu.memory_space<vmem>>, vector<1x328x128xf32>
    %1 = vector.shape_cast %0 : vector<1x328x128xf32> to vector<328x128xf32>
    %c0_2 = arith.constant 0 : index
    %c0_3 = arith.constant 0 : index
    %2 = vector.load %arg2[%c0_2, %c0_3] : memref<328x1xf32, #tpu.memory_space<vmem>>, vector<328x1xf32>
    %3 = vector.broadcast %2 : vector<328x1xf32> to vector<328x128xf32>
    %4 = arith.mulf %1, %3 : vector<328x128xf32>
    %cst = arith.constant dense<0.000000e+00> : vector<128xf32>
    %5 = vector.multi_reduction <add>, %4, %cst [0] : vector<328x128xf32> to vector<128xf32>
    %6 = vector.shape_cast %5 : vector<128xf32> to vector<1x128xf32>
    %7 = arith.mulf %4, %4 : vector<328x128xf32>
    %cst_4 = arith.constant dense<0.000000e+00> : vector<128xf32>
    %8 = vector.multi_reduction <add>, %7, %cst_4 [0] : vector<328x128xf32> to vector<128xf32>
    %9 = vector.shape_cast %8 : vector<128xf32> to vector<1x128xf32>
    %c0_5 = arith.constant 0 : index
    %c0_6 = arith.constant 0 : index
    %10 = vector.load %arg5[%c0_5, %c0_6] : memref<128x128xf32, #tpu.memory_space<vmem>>, vector<128x128xf32>
    %cst_7 = arith.constant dense<0.000000e+00> : vector<1x128xf32>
    %11 = tpu.matmul %6, %10, %cst_7 {dimension_numbers = #tpu.dot_dimension_numbers<[1], [0], [0], [1], [0, 0, 1, 1], [], []>, precision = #tpu.contract_precision<fp32>} : vector<1x128xf32>, vector<128x128xf32>, vector<1x128xf32> -> vector<1x128xf32>
    %c0_8 = arith.constant 0 : index
    %c0_9 = arith.constant 0 : index
    %12 = vector.load %arg5[%c0_8, %c0_9] : memref<128x128xf32, #tpu.memory_space<vmem>>, vector<128x128xf32>
    %cst_10 = arith.constant dense<0.000000e+00> : vector<1x128xf32>
    %13 = tpu.matmul %9, %12, %cst_10 {dimension_numbers = #tpu.dot_dimension_numbers<[1], [0], [0], [1], [0, 0, 1, 1], [], []>, precision = #tpu.contract_precision<fp32>} : vector<1x128xf32>, vector<128x128xf32>, vector<1x128xf32> -> vector<1x128xf32>
    %14 = arith.mulf %11, %11 : vector<1x128xf32>
    %15 = arith.subf %13, %14 : vector<1x128xf32>
    %cst_11 = arith.constant 9.99999997E-7 : f32
    %16 = vector.broadcast %cst_11 : f32 to vector<1x128xf32>
    %17 = arith.addf %15, %16 : vector<1x128xf32>
    %18 = math.rsqrt %17 : vector<1x128xf32>
    %19 = vector.broadcast %11 : vector<1x128xf32> to vector<328x128xf32>
    %20 = arith.subf %1, %19 : vector<328x128xf32>
    %c0_12 = arith.constant 0 : index
    %c0_13 = arith.constant 0 : index
    %21 = vector.load %arg3[%c0_12, %c0_13] : memref<1x128xf32, #tpu.memory_space<vmem>>, vector<1x128xf32>
    %22 = arith.mulf %18, %21 : vector<1x128xf32>
    %23 = vector.broadcast %22 : vector<1x128xf32> to vector<328x128xf32>
    %24 = arith.mulf %20, %23 : vector<328x128xf32>
    %c0_14 = arith.constant 0 : index
    %c0_15 = arith.constant 0 : index
    %25 = vector.load %arg4[%c0_14, %c0_15] : memref<1x128xf32, #tpu.memory_space<vmem>>, vector<1x128xf32>
    %26 = vector.broadcast %25 : vector<1x128xf32> to vector<328x128xf32>
    %27 = arith.addf %24, %26 : vector<328x128xf32>
    %cst_16 = arith.constant 0.000000e+00 : f32
    %28 = vector.broadcast %cst_16 : f32 to vector<328x128xf32>
    %29 = arith.subf %28, %27 : vector<328x128xf32>
    %30 = math.exp %29 : vector<328x128xf32>
    %cst_17 = arith.constant 1.000000e+00 : f32
    %31 = vector.broadcast %cst_17 : f32 to vector<328x128xf32>
    %32 = arith.addf %31, %30 : vector<328x128xf32>
    %cst_18 = arith.constant 1.000000e+00 : f32
    %33 = vector.broadcast %cst_18 : f32 to vector<328x128xf32>
    %34 = arith.divf %33, %32 : vector<328x128xf32>
    %35 = arith.mulf %27, %34 : vector<328x128xf32>
    %36 = vector.broadcast %2 : vector<328x1xf32> to vector<328x128xf32>
    %37 = arith.mulf %35, %36 : vector<328x128xf32>
    %c0_19 = arith.constant 0 : index
    %c0_20 = arith.constant 0 : index
    %c0_21 = arith.constant 0 : index
    %38 = vector.load %arg6[%c0_19, %c0_20, %c0_21] : memref<1x328x128xf32, #tpu.memory_space<vmem>>, vector<1x328x128xf32>
    %39 = vector.shape_cast %38 : vector<1x328x128xf32> to vector<328x128xf32>
    %40 = vector.shape_cast %37 : vector<328x128xf32> to vector<1x328x128xf32>
    tpu.vector_store %arg6[%c0_19, %c0_20, %c0_21], %40 {strides = array<i32>} : memref<1x328x128xf32, #tpu.memory_space<vmem>>, vector<1x328x128xf32>,
    return
  }
  func.func @transform_0(%arg0: i32) -> (i32, i32, i32) {
    %c0_i32 = arith.constant 0 : i32
    %c0_i32_0 = arith.constant 0 : i32
    %c0_i32_1 = arith.constant 0 : i32
    return %arg0, %c0_i32, %c0_i32_0 : i32, i32, i32
  }
  func.func @transform_1(%arg0: i32) -> (i32, i32) {
    %c0_i32 = arith.constant 0 : i32
    %c0_i32_0 = arith.constant 0 : i32
    %c0_i32_1 = arith.constant 0 : i32
    return %c0_i32, %c0_i32_0 : i32, i32
  }
  func.func @transform_2(%arg0: i32) -> (i32, i32) {
    %c0_i32 = arith.constant 0 : i32
    %c0_i32_0 = arith.constant 0 : i32
    %c0_i32_1 = arith.constant 0 : i32
    return %c0_i32, %c0_i32_0 : i32, i32
  }
  func.func @transform_3(%arg0: i32) -> (i32, i32) {
    %c0_i32 = arith.constant 0 : i32
    %c0_i32_0 = arith.constant 0 : i32
    %c0_i32_1 = arith.constant 0 : i32
    return %c0_i32, %c0_i32_0 : i32, i32
  }
  func.func @transform_4(%arg0: i32) -> (i32, i32) {
    %c0_i32 = arith.constant 0 : i32
    %c0_i32_0 = arith.constant 0 : i32
    %c0_i32_1 = arith.constant 0 : i32
    return %c0_i32, %c0_i32_0 : i32, i32
  }
  func.func @transform_5(%arg0: i32) -> (i32, i32, i32) {
    %c0_i32 = arith.constant 0 : i32
    %c0_i32_0 = arith.constant 0 : i32
    %c0_i32_1 = arith.constant 0 : i32
    return %arg0, %c0_i32, %c0_i32_0 : i32, i32, i32
  }
}

module attributes {stable_mosaic.version = 11 : i64} {
  func.func @_conv3x3_res_kernel(%arg0: i32, %arg1: i32, %arg2: memref<1x328x128xf32, #tpu.memory_space<vmem>>, %arg3: memref<9x128x128xbf16, #tpu.memory_space<vmem>>, %arg4: memref<1x128xf32, #tpu.memory_space<vmem>>, %arg5: memref<1x328x64xf32, #tpu.memory_space<vmem>>, %arg6: memref<64x128xbf16, #tpu.memory_space<vmem>>, %arg7: memref<1x128xf32, #tpu.memory_space<vmem>>, %arg8: memref<1x288x128xf32, #tpu.memory_space<vmem>>) attributes {dimension_semantics = [#tpu.dimension_semantics<parallel>, #tpu.dimension_semantics<parallel>], iteration_bounds = array<i64: 2, 1>, scalar_prefetch = 0 : i64, scratch_operands = 0 : i64, tpu.core_type = #tpu.core_type<tc>, window_params = [{transform_indices = @transform_0, window_bounds = array<i64: 1, 328, 128>}, {transform_indices = @transform_1, window_bounds = array<i64: 9, 128, 128>}, {transform_indices = @transform_2, window_bounds = array<i64: 1, 128>}, {transform_indices = @transform_3, window_bounds = array<i64: 1, 328, 64>}, {transform_indices = @transform_4, window_bounds = array<i64: 64, 128>}, {transform_indices = @transform_5, window_bounds = array<i64: 1, 128>}, {transform_indices = @transform_6, window_bounds = array<i64: 1, 288, 128>}]} {
    %cst = arith.constant 0.000000e+00 : f32
    %0 = vector.broadcast %cst : f32 to vector<288x128xf32>
    %c0 = arith.constant 0 : index
    %c0_0 = arith.constant 0 : index
    %c0_1 = arith.constant 0 : index
    %1 = vector.load %arg2[%c0, %c0_0, %c0_1] : memref<1x328x128xf32, #tpu.memory_space<vmem>>, vector<1x288x128xf32>
    %2 = vector.shape_cast %1 : vector<1x288x128xf32> to vector<288x128xf32>
    %3 = arith.truncf %2 : vector<288x128xf32> to vector<288x128xbf16>
    %c0_2 = arith.constant 0 : index
    %c0_3 = arith.constant 0 : index
    %c0_4 = arith.constant 0 : index
    %4 = vector.load %arg3[%c0_2, %c0_3, %c0_4] : memref<9x128x128xbf16, #tpu.memory_space<vmem>>, vector<1x128x128xbf16>
    %5 = vector.shape_cast %4 : vector<1x128x128xbf16> to vector<128x128xbf16>
    %cst_5 = arith.constant dense<0.000000e+00> : vector<288x128xf32>
    %6 = tpu.matmul %3, %5, %cst_5 {dimension_numbers = #tpu.dot_dimension_numbers<[1], [0], [0], [1], [0, 0, 1, 1], [], []>} : vector<288x128xbf16>, vector<128x128xbf16>, vector<288x128xf32> -> vector<288x128xf32>
    %7 = arith.addf %0, %6 : vector<288x128xf32>
    %c0_6 = arith.constant 0 : index
    %c1 = arith.constant 1 : index
    %c0_7 = arith.constant 0 : index
    %8 = vector.load %arg2[%c0_6, %c1, %c0_7] : memref<1x328x128xf32, #tpu.memory_space<vmem>>, vector<1x288x128xf32>
    %9 = vector.shape_cast %8 : vector<1x288x128xf32> to vector<288x128xf32>
    %10 = arith.truncf %9 : vector<288x128xf32> to vector<288x128xbf16>
    %c1_8 = arith.constant 1 : index
    %c0_9 = arith.constant 0 : index
    %c0_10 = arith.constant 0 : index
    %11 = vector.load %arg3[%c1_8, %c0_9, %c0_10] : memref<9x128x128xbf16, #tpu.memory_space<vmem>>, vector<1x128x128xbf16>
    %12 = vector.shape_cast %11 : vector<1x128x128xbf16> to vector<128x128xbf16>
    %cst_11 = arith.constant dense<0.000000e+00> : vector<288x128xf32>
    %13 = tpu.matmul %10, %12, %cst_11 {dimension_numbers = #tpu.dot_dimension_numbers<[1], [0], [0], [1], [0, 0, 1, 1], [], []>} : vector<288x128xbf16>, vector<128x128xbf16>, vector<288x128xf32> -> vector<288x128xf32>
    %14 = arith.addf %7, %13 : vector<288x128xf32>
    %c0_12 = arith.constant 0 : index
    %c2 = arith.constant 2 : index
    %c0_13 = arith.constant 0 : index
    %15 = vector.load %arg2[%c0_12, %c2, %c0_13] : memref<1x328x128xf32, #tpu.memory_space<vmem>>, vector<1x288x128xf32>
    %16 = vector.shape_cast %15 : vector<1x288x128xf32> to vector<288x128xf32>
    %17 = arith.truncf %16 : vector<288x128xf32> to vector<288x128xbf16>
    %c2_14 = arith.constant 2 : index
    %c0_15 = arith.constant 0 : index
    %c0_16 = arith.constant 0 : index
    %18 = vector.load %arg3[%c2_14, %c0_15, %c0_16] : memref<9x128x128xbf16, #tpu.memory_space<vmem>>, vector<1x128x128xbf16>
    %19 = vector.shape_cast %18 : vector<1x128x128xbf16> to vector<128x128xbf16>
    %cst_17 = arith.constant dense<0.000000e+00> : vector<288x128xf32>
    %20 = tpu.matmul %17, %19, %cst_17 {dimension_numbers = #tpu.dot_dimension_numbers<[1], [0], [0], [1], [0, 0, 1, 1], [], []>} : vector<288x128xbf16>, vector<128x128xbf16>, vector<288x128xf32> -> vector<288x128xf32>
    %21 = arith.addf %14, %20 : vector<288x128xf32>
    %c0_18 = arith.constant 0 : index
    %c18 = arith.constant 18 : index
    %c0_19 = arith.constant 0 : index
    %22 = vector.load %arg2[%c0_18, %c18, %c0_19] : memref<1x328x128xf32, #tpu.memory_space<vmem>>, vector<1x288x128xf32>
    %23 = vector.shape_cast %22 : vector<1x288x128xf32> to vector<288x128xf32>
    %24 = arith.truncf %23 : vector<288x128xf32> to vector<288x128xbf16>
    %c3 = arith.constant 3 : index
    %c0_20 = arith.constant 0 : index
    %c0_21 = arith.constant 0 : index
    %25 = vector.load %arg3[%c3, %c0_20, %c0_21] : memref<9x128x128xbf16, #tpu.memory_space<vmem>>, vector<1x128x128xbf16>
    %26 = vector.shape_cast %25 : vector<1x128x128xbf16> to vector<128x128xbf16>
    %cst_22 = arith.constant dense<0.000000e+00> : vector<288x128xf32>
    %27 = tpu.matmul %24, %26, %cst_22 {dimension_numbers = #tpu.dot_dimension_numbers<[1], [0], [0], [1], [0, 0, 1, 1], [], []>} : vector<288x128xbf16>, vector<128x128xbf16>, vector<288x128xf32> -> vector<288x128xf32>
    %28 = arith.addf %21, %27 : vector<288x128xf32>
    %c0_23 = arith.constant 0 : index
    %c19 = arith.constant 19 : index
    %c0_24 = arith.constant 0 : index
    %29 = vector.load %arg2[%c0_23, %c19, %c0_24] : memref<1x328x128xf32, #tpu.memory_space<vmem>>, vector<1x288x128xf32>
    %30 = vector.shape_cast %29 : vector<1x288x128xf32> to vector<288x128xf32>
    %31 = arith.truncf %30 : vector<288x128xf32> to vector<288x128xbf16>
    %c4 = arith.constant 4 : index
    %c0_25 = arith.constant 0 : index
    %c0_26 = arith.constant 0 : index
    %32 = vector.load %arg3[%c4, %c0_25, %c0_26] : memref<9x128x128xbf16, #tpu.memory_space<vmem>>, vector<1x128x128xbf16>
    %33 = vector.shape_cast %32 : vector<1x128x128xbf16> to vector<128x128xbf16>
    %cst_27 = arith.constant dense<0.000000e+00> : vector<288x128xf32>
    %34 = tpu.matmul %31, %33, %cst_27 {dimension_numbers = #tpu.dot_dimension_numbers<[1], [0], [0], [1], [0, 0, 1, 1], [], []>} : vector<288x128xbf16>, vector<128x128xbf16>, vector<288x128xf32> -> vector<288x128xf32>
    %35 = arith.addf %28, %34 : vector<288x128xf32>
    %c0_28 = arith.constant 0 : index
    %c20 = arith.constant 20 : index
    %c0_29 = arith.constant 0 : index
    %36 = vector.load %arg2[%c0_28, %c20, %c0_29] : memref<1x328x128xf32, #tpu.memory_space<vmem>>, vector<1x288x128xf32>
    %37 = vector.shape_cast %36 : vector<1x288x128xf32> to vector<288x128xf32>
    %38 = arith.truncf %37 : vector<288x128xf32> to vector<288x128xbf16>
    %c5 = arith.constant 5 : index
    %c0_30 = arith.constant 0 : index
    %c0_31 = arith.constant 0 : index
    %39 = vector.load %arg3[%c5, %c0_30, %c0_31] : memref<9x128x128xbf16, #tpu.memory_space<vmem>>, vector<1x128x128xbf16>
    %40 = vector.shape_cast %39 : vector<1x128x128xbf16> to vector<128x128xbf16>
    %cst_32 = arith.constant dense<0.000000e+00> : vector<288x128xf32>
    %41 = tpu.matmul %38, %40, %cst_32 {dimension_numbers = #tpu.dot_dimension_numbers<[1], [0], [0], [1], [0, 0, 1, 1], [], []>} : vector<288x128xbf16>, vector<128x128xbf16>, vector<288x128xf32> -> vector<288x128xf32>
    %42 = arith.addf %35, %41 : vector<288x128xf32>
    %c0_33 = arith.constant 0 : index
    %c36 = arith.constant 36 : index
    %c0_34 = arith.constant 0 : index
    %43 = vector.load %arg2[%c0_33, %c36, %c0_34] : memref<1x328x128xf32, #tpu.memory_space<vmem>>, vector<1x288x128xf32>
    %44 = vector.shape_cast %43 : vector<1x288x128xf32> to vector<288x128xf32>
    %45 = arith.truncf %44 : vector<288x128xf32> to vector<288x128xbf16>
    %c6 = arith.constant 6 : index
    %c0_35 = arith.constant 0 : index
    %c0_36 = arith.constant 0 : index
    %46 = vector.load %arg3[%c6, %c0_35, %c0_36] : memref<9x128x128xbf16, #tpu.memory_space<vmem>>, vector<1x128x128xbf16>
    %47 = vector.shape_cast %46 : vector<1x128x128xbf16> to vector<128x128xbf16>
    %cst_37 = arith.constant dense<0.000000e+00> : vector<288x128xf32>
    %48 = tpu.matmul %45, %47, %cst_37 {dimension_numbers = #tpu.dot_dimension_numbers<[1], [0], [0], [1], [0, 0, 1, 1], [], []>} : vector<288x128xbf16>, vector<128x128xbf16>, vector<288x128xf32> -> vector<288x128xf32>
    %49 = arith.addf %42, %48 : vector<288x128xf32>
    %c0_38 = arith.constant 0 : index
    %c37 = arith.constant 37 : index
    %c0_39 = arith.constant 0 : index
    %50 = vector.load %arg2[%c0_38, %c37, %c0_39] : memref<1x328x128xf32, #tpu.memory_space<vmem>>, vector<1x288x128xf32>
    %51 = vector.shape_cast %50 : vector<1x288x128xf32> to vector<288x128xf32>
    %52 = arith.truncf %51 : vector<288x128xf32> to vector<288x128xbf16>
    %c7 = arith.constant 7 : index
    %c0_40 = arith.constant 0 : index
    %c0_41 = arith.constant 0 : index
    %53 = vector.load %arg3[%c7, %c0_40, %c0_41] : memref<9x128x128xbf16, #tpu.memory_space<vmem>>, vector<1x128x128xbf16>
    %54 = vector.shape_cast %53 : vector<1x128x128xbf16> to vector<128x128xbf16>
    %cst_42 = arith.constant dense<0.000000e+00> : vector<288x128xf32>
    %55 = tpu.matmul %52, %54, %cst_42 {dimension_numbers = #tpu.dot_dimension_numbers<[1], [0], [0], [1], [0, 0, 1, 1], [], []>} : vector<288x128xbf16>, vector<128x128xbf16>, vector<288x128xf32> -> vector<288x128xf32>
    %56 = arith.addf %49, %55 : vector<288x128xf32>
    %c0_43 = arith.constant 0 : index
    %c38 = arith.constant 38 : index
    %c0_44 = arith.constant 0 : index
    %57 = vector.load %arg2[%c0_43, %c38, %c0_44] : memref<1x328x128xf32, #tpu.memory_space<vmem>>, vector<1x288x128xf32>
    %58 = vector.shape_cast %57 : vector<1x288x128xf32> to vector<288x128xf32>
    %59 = arith.truncf %58 : vector<288x128xf32> to vector<288x128xbf16>
    %c8 = arith.constant 8 : index
    %c0_45 = arith.constant 0 : index
    %c0_46 = arith.constant 0 : index
    %60 = vector.load %arg3[%c8, %c0_45, %c0_46] : memref<9x128x128xbf16, #tpu.memory_space<vmem>>, vector<1x128x128xbf16>
    %61 = vector.shape_cast %60 : vector<1x128x128xbf16> to vector<128x128xbf16>
    %cst_47 = arith.constant dense<0.000000e+00> : vector<288x128xf32>
    %62 = tpu.matmul %59, %61, %cst_47 {dimension_numbers = #tpu.dot_dimension_numbers<[1], [0], [0], [1], [0, 0, 1, 1], [], []>} : vector<288x128xbf16>, vector<128x128xbf16>, vector<288x128xf32> -> vector<288x128xf32>
    %63 = arith.addf %56, %62 : vector<288x128xf32>
    %c0_48 = arith.constant 0 : index
    %c0_49 = arith.constant 0 : index
    %64 = vector.load %arg4[%c0_48, %c0_49] : memref<1x128xf32, #tpu.memory_space<vmem>>, vector<1x128xf32>
    %65 = vector.broadcast %64 : vector<1x128xf32> to vector<288x128xf32>
    %66 = arith.addf %63, %65 : vector<288x128xf32>
    %c0_50 = arith.constant 0 : index
    %c19_51 = arith.constant 19 : index
    %c0_52 = arith.constant 0 : index
    %67 = vector.load %arg5[%c0_50, %c19_51, %c0_52] : memref<1x328x64xf32, #tpu.memory_space<vmem>>, vector<1x288x64xf32>
    %68 = vector.shape_cast %67 : vector<1x288x64xf32> to vector<288x64xf32>
    %69 = arith.truncf %68 : vector<288x64xf32> to vector<288x64xbf16>
    %c0_53 = arith.constant 0 : index
    %c0_54 = arith.constant 0 : index
    %70 = vector.load %arg6[%c0_53, %c0_54] : memref<64x128xbf16, #tpu.memory_space<vmem>>, vector<64x128xbf16>
    %cst_55 = arith.constant dense<0.000000e+00> : vector<288x128xf32>
    %71 = tpu.matmul %69, %70, %cst_55 {dimension_numbers = #tpu.dot_dimension_numbers<[1], [0], [0], [1], [0, 0, 1, 1], [], []>} : vector<288x64xbf16>, vector<64x128xbf16>, vector<288x128xf32> -> vector<288x128xf32>
    %72 = arith.addf %66, %71 : vector<288x128xf32>
    %c0_56 = arith.constant 0 : index
    %c0_57 = arith.constant 0 : index
    %73 = vector.load %arg7[%c0_56, %c0_57] : memref<1x128xf32, #tpu.memory_space<vmem>>, vector<1x128xf32>
    %74 = vector.broadcast %73 : vector<1x128xf32> to vector<288x128xf32>
    %75 = arith.addf %72, %74 : vector<288x128xf32>
    %c0_58 = arith.constant 0 : index
    %c0_59 = arith.constant 0 : index
    %c0_60 = arith.constant 0 : index
    %76 = vector.load %arg8[%c0_58, %c0_59, %c0_60] : memref<1x288x128xf32, #tpu.memory_space<vmem>>, vector<1x288x128xf32>
    %77 = vector.shape_cast %76 : vector<1x288x128xf32> to vector<288x128xf32>
    %78 = vector.shape_cast %75 : vector<288x128xf32> to vector<1x288x128xf32>
    tpu.vector_store %arg8[%c0_58, %c0_59, %c0_60], %78 {strides = array<i32>} : memref<1x288x128xf32, #tpu.memory_space<vmem>>, vector<1x288x128xf32>,
    return
  }
  func.func @transform_0(%arg0: i32, %arg1: i32) -> (i32, i32, i32) {
    %c0_i32 = arith.constant 0 : i32
    %c0_i32_0 = arith.constant 0 : i32
    %c0_i32_1 = arith.constant 0 : i32
    return %arg0, %c0_i32, %c0_i32_0 : i32, i32, i32
  }
  func.func @transform_1(%arg0: i32, %arg1: i32) -> (i32, i32, i32) {
    %c0_i32 = arith.constant 0 : i32
    %c0_i32_0 = arith.constant 0 : i32
    %c0_i32_1 = arith.constant 0 : i32
    return %c0_i32, %c0_i32_0, %arg1 : i32, i32, i32
  }
  func.func @transform_2(%arg0: i32, %arg1: i32) -> (i32, i32) {
    %c0_i32 = arith.constant 0 : i32
    %c0_i32_0 = arith.constant 0 : i32
    return %c0_i32, %arg1 : i32, i32
  }
  func.func @transform_3(%arg0: i32, %arg1: i32) -> (i32, i32, i32) {
    %c0_i32 = arith.constant 0 : i32
    %c0_i32_0 = arith.constant 0 : i32
    %c0_i32_1 = arith.constant 0 : i32
    return %arg0, %c0_i32, %c0_i32_0 : i32, i32, i32
  }
  func.func @transform_4(%arg0: i32, %arg1: i32) -> (i32, i32) {
    %c0_i32 = arith.constant 0 : i32
    %c0_i32_0 = arith.constant 0 : i32
    return %c0_i32, %arg1 : i32, i32
  }
  func.func @transform_5(%arg0: i32, %arg1: i32) -> (i32, i32) {
    %c0_i32 = arith.constant 0 : i32
    %c0_i32_0 = arith.constant 0 : i32
    return %c0_i32, %arg1 : i32, i32
  }
  func.func @transform_6(%arg0: i32, %arg1: i32) -> (i32, i32, i32) {
    %c0_i32 = arith.constant 0 : i32
    %c0_i32_0 = arith.constant 0 : i32
    return %arg0, %c0_i32, %arg1 : i32, i32, i32
  }
}

</mosaic_0001>

<bundles_post_ra>
// kernel: resnet_block_forward.6
= control target key start
LH: loop header
LB: loop body
LE: loop exit
PB: predicated region body
PF: predicated region fallthrough
CT: control target
= control target key end

     0   :  { %s660_s1 = inlined_call_operand.vmem [shape: bf16[512,128], index: 1, kind: input, shape index: {}]   ;;  %s661_s0 = inlined_call_operand.vmem [shape: f32[2,512], index: 0, kind: input, shape index: {}]   ;;  %s662_s2 = inlined_call_operand.vmem [shape: f32[1,128], index: 2, kind: input, shape index: {}]   ;;  %s663_s3 = inlined_call_operand.vmem [shape: f32[2,128], index: 3, kind: output, shape index: {}]  }
   0x1   :  { %v501_v0 = vld [vmem:[%s660_s1 + $0x38] sm:$0xff]  ;;  %v500_v4 = vld [vmem:[%s660_s1 + $0x30] sm:$0xff]  ;;  %v499_v8 = vld [vmem:[%s660_s1 + $0x28] sm:$0xff] }
   0x2   :  { %v509_v1 = vld [vmem:[%s660_s1 + $0x78] sm:$0xff]  ;;  %309 = vmatpush.bf16.msra.mxu0 %v501_v0  ;;  %v508_v5 = vld [vmem:[%s660_s1 + $0x70] sm:$0xff]  ;;  %v507_v9 = vld [vmem:[%s660_s1 + $0x68] sm:$0xff] }
   0x3   :  { %v517_v2 = vld [vmem:[%s660_s1 + $0xb8] sm:$0xff]  ;;  %322 = vmatpush.bf16.msra.mxu1 %v509_v1  ;;  %v516_v6 = vld [vmem:[%s660_s1 + $0xb0] sm:$0xff]  ;;  %v515_v10 = vld [vmem:[%s660_s1 + $0xa8] sm:$0xff] }
   0x4   :  { %v525_v3 = vld [vmem:[%s660_s1 + $0xf8] sm:$0xff]  ;;  %335 = vmatpush.bf16.msra.mxu2 %v517_v2  ;;  %v524_v7 = vld [vmem:[%s660_s1 + $0xf0] sm:$0xff]  ;;  %v523_v11 = vld [vmem:[%s660_s1 + $0xe8] sm:$0xff] }
   0x5   :  { %348 = vmatpush.bf16.msra.mxu3 %v525_v3  ;;  %v498_v12 = vld [vmem:[%s660_s1 + $0x20] sm:$0xff]  ;;  %v497_v19 = vld [vmem:[%s660_s1 + $0x18] sm:$0xff]  ;;  %v496_v23 = vld [vmem:[%s660_s1 + $0x10] sm:$0xff] }
   0x6   :  { %310 = vmatpush.bf16.msra.mxu0 %v500_v4  ;;  %v506_v13 = vld [vmem:[%s660_s1 + $0x60] sm:$0xff]  ;;  %v505_v20 = vld [vmem:[%s660_s1 + $0x58] sm:$0xff]  ;;  %v504_v24 = vld [vmem:[%s660_s1 + $0x50] sm:$0xff] }
   0x7   :  { %323 = vmatpush.bf16.msra.mxu1 %v508_v5  ;;  %v596_v14 = vld [vmem:[%s661_s0] sm:$0xff]  ;;  %v513_v21 = vld [vmem:[%s660_s1 + $0x98] sm:$0xff]  ;;  %v512_v25 = vld [vmem:[%s660_s1 + $0x90] sm:$0xff] }
   0x8   :  { %336 = vmatpush.bf16.msra.mxu2 %v516_v6  ;;  %v514_v15 = vld [vmem:[%s660_s1 + $0xa0] sm:$0xff]  ;;  %v15_v17 = vsub.f32 0.0, %v596_v14  ;;  %v521_v22 = vld [vmem:[%s660_s1 + $0xd8] sm:$0xff]  ;;  %v520_v26 = vld [vmem:[%s660_s1 + $0xd0] sm:$0xff] }
   0x9   :  { %349 = vmatpush.bf16.msra.mxu3 %v524_v7  ;;  %v522_v16 = vld [vmem:[%s660_s1 + $0xe0] sm:$0xff]  ;;  %v495_v28 = vld [vmem:[%s660_s1 + $0x8] sm:$0xff] }
   0xa   :  { %311 = vmatpush.bf16.msra.mxu0 %v499_v8  ;;  %v16_v18 = vmul.f32 1.442695, %v15_v17  ;;  %v503_v29 = vld [vmem:[%s660_s1 + $0x48] sm:$0xff]  ;;  %v494_v33 = vld [vmem:[%s660_s1] sm:$0xff] }
   0xb   :  { %324 = vmatpush.bf16.msra.mxu1 %v507_v9  ;;  %v511_v31 = vld [vmem:[%s660_s1 + $0x88] sm:$0xff]  ;;  %v502_v34 = vld [vmem:[%s660_s1 + $0x40] sm:$0xff] }
   0xc   :  { %337 = vmatpush.bf16.msra.mxu2 %v515_v10  ;;  %527 = vpow2.f32 %v16_v18  ;;  %v519_v32 = vld [vmem:[%s660_s1 + $0xc8] sm:$0xff]  ;;  %v510_v35 = vld [vmem:[%s660_s1 + $0x80] sm:$0xff] }
   0xd   :  { %350 = vmatpush.bf16.msra.mxu3 %v523_v11  ;;  %v518_v36 = vld [vmem:[%s660_s1 + $0xc0] sm:$0xff] }
   0xe   :  { %312 = vmatpush.bf16.msra.mxu0 %v498_v12  ;;  %v526_v56 = vld [vmem:[%s662_s2] ss:$0 sm:$0xff] }
   0xf   :  { %325 = vmatpush.bf16.msra.mxu1 %v506_v13 }
  0x10   :  { %338 = vmatpush.bf16.msra.mxu2 %v514_v15 }
  0x11   :  { %351 = vmatpush.bf16.msra.mxu3 %v522_v16 }
  0x12   :  { %313 = vmatpush.bf16.msra.mxu0 %v497_v19  ;;  %v528_v27 = vpop.eup %527 }
  0x13   :  { %326 = vmatpush.bf16.msra.mxu1 %v505_v20  ;;  %v18_v30 = vadd.f32 1.0, %v528_v27 }
  0x14   :  { %339 = vmatpush.bf16.msra.mxu2 %v513_v21 }
  0x15   :  { %352 = vmatpush.bf16.msra.mxu3 %v521_v22  ;;  %529 = vrcp.f32 %v18_v30  ;;  %v30_v39 = vand.u32 2147483648, %v18_v30  ;;  %vm24_vm0 = vweird.f32 %v18_v30  ;;  %v28_v41 = vand.u32 2147483647, %v18_v30 }
  0x16   :  { %314 = vmatpush.bf16.msra.mxu0 %v496_v23 }
  0x17   :  { %327 = vmatpush.bf16.msra.mxu1 %v504_v24  ;;  %v31_v43 = vor.u32 1.1754944e-38, %v30_v39  ;;  %vm29_vm3 = vcmp.eq.f32.partialorder %v28_v41, 8.507059e+37 }
  0x18   :  { %340 = vmatpush.bf16.msra.mxu2 %v512_v25 }
  0x19   :  { %353 = vmatpush.bf16.msra.mxu3 %v520_v26 }
  0x1a   :  { %315 = vmatpush.bf16.msra.mxu0 %v495_v28 }
  0x1b   :  { %328 = vmatpush.bf16.msra.mxu1 %v503_v29  ;;  %v530_v37 = vpop.eup %529 }
  0x1c   :  { %341 = vmatpush.bf16.msra.mxu2 %v511_v31  ;;  %v20_v38 = vmul.f32 %v530_v37, %v18_v30  ;;  %vm25_vm1 = vweird.f32 %v530_v37 }
  0x1d   :  { %354 = vmatpush.bf16.msra.mxu3 %v519_v32  ;;  %vm26_vm2 = vmor %vm24_vm0, %vm25_vm1 }
  0x1e   :  { %316 = vmatpush.bf16.msra.mxu0 %v494_v33  ;;  %v21_v40 = vsub.f32 1.0, %v20_v38 }
  0x1f   :  { %329 = vmatpush.bf16.msra.mxu1 %v502_v34 }
  0x20   :  { %342 = vmatpush.bf16.msra.mxu2 %v510_v35  ;;  %v22_v42 = vmul.f32 %v530_v37, %v21_v40 }
  0x21   :  { %355 = vmatpush.bf16.msra.mxu3 %v518_v36 }
  0x22   :  { %v23_v44 = vadd.f32 %v530_v37, %v22_v42 }
  0x24   :  { %v27_v45 = vsel %vm26_vm2, %v530_v37, %v23_v44 }
  0x25   :  { %v32_v46 = vsel %vm29_vm3, %v31_v43, %v27_v45 }
  0x26   :  { %v34_v47 = vmul.f32 %v32_v46, %v596_v14 }
  0x28   :  { %36 = vst [vmem:[#allocation1] ss:$4 sm:$0xff] %v34_v47 }
  0x2f   :  { %v37_v48 = vld.sshfl [vmem:[#allocation1] sm:$0xff pattern:$0x73625140]  ;;  %v38_v49 = vld.sshfl [vmem:[#allocation1 + $0x8] sm:$0xff pattern:$0x73625140] }
  0x30   :  { %v45_v50 = vpack.c.bf16 %v37_v48, %v37_v48  ;;  %v46_v51 = vpack.c.bf16 %v38_v49, %v38_v49  ;;  %v39_v52 = vld.sshfl [vmem:[#allocation1 + $0x10] sm:$0xff pattern:$0x73625140]  ;;  %v40_v53 = vld.sshfl [vmem:[#allocation1 + $0x18] sm:$0xff pattern:$0x73625140] }
  0x31   :  { %v47_v54 = vpack.c.bf16 %v39_v52, %v39_v52  ;;  %v48_v55 = vpack.c.bf16 %v40_v53, %v40_v53 }
  0x32   :  { %317 = vmatmul.bf16.vlgmr.msra.gmra.mxu0 %v45_v50  ;;  %330 = vmatmul.bf16.vlgmr.msra.gmra.mxu1 %v46_v51 }
  0x33   :  { %343 = vmatmul.bf16.vlgmr.msra.gmra.mxu2 %v47_v54  ;;  %356 = vmatmul.bf16.vlgmr.msra.gmra.mxu3 %v48_v55 }
  0xaf   :  { %v318_v57 = vpop.f32.mrf.mxu0  ;;  %v331_v58 = vpop.f32.mrf.mxu1 }
  0xb0   :  { %v319_v59 = vadd.f32 %v526_v56, %v318_v57 }
  0xb2   :  { %v332_v60 = vadd.f32 %v331_v58, %v319_v59 }
  0xb6   :  { %v344_v61 = vpop.f32.mrf.mxu2  ;;  %v357_v62 = vpop.f32.mrf.mxu3 }
  0xb7   :  { %v345_v63 = vadd.f32 %v344_v61, %v332_v60  ;;  %v320_v0 = vpop.f32.mrf.mxu0  ;;  %v333_v1 = vpop.f32.mrf.mxu1 }
  0xb9   :  { %v358_v2 = vadd.f32 %v357_v62, %v345_v63 }
  0xbb   :  { %361 = vst [vmem:[%s663_s3] sm:$0x3] %v358_v2 }
  0xbe   :  { %v346_v3 = vpop.f32.mrf.mxu2  ;;  %v359_v4 = vpop.f32.mrf.mxu3 }

// kernel: resnet_block_forward.5
= control target key start
LH: loop header
LB: loop body
LE: loop exit
PB: predicated region body
PF: predicated region fallthrough
CT: control target
= control target key end

     0   :  { %s2595_s18 = smov 0   ;;  %s5213_s0 = inlined_call_operand.vmem [shape: f32[2,328,64], index: 0, kind: input, shape index: {}]   ;;  %s5214_s1 = inlined_call_operand.vmem [shape: f32[328,1], index: 1, kind: input, shape index: {}]   ;;  %s5215_s2 = inlined_call_operand.vmem [shape: f32[1,64], index: 2, kind: input, shape index: {}]   ;;  %s5216_s3 = inlined_call_operand.vmem [shape: f32[1,64], index: 3, kind: input, shape index: {}]   ;;  %s5217_s4 = inlined_call_operand.vmem [shape: f32[64,64], index: 4, kind: input, shape index: {}]   ;;  %s5218_s5 = inlined_call_operand.vmem [shape: f32[2,328,64], index: 5, kind: output, shape index: {}]  }
   0x1 LB: > { %s2358_s19 = sadd.s32 4294967295, %s2562_s18   ;;  %p2362_p0 = scmp.ge.s32.totalorder %s2562_s18, 1  ;;  %s2562_s18 = sphi %s2595_s18, %s15_s18  }
   0x2   : > { %p187_p1 = scmp.lt.s32.totalorder %s2562_s18, 3 }
   0x4   : > { %p188_p2 = pnand %p2362_p0, %p187_p1 }
   0x6   : > { %191 = sbr.rel (%p188_p2) target bundleno = 668 (0x29c), region = 40 }
   0xb   : > { %v270_v0 = vld [vmem:[%s5214_s1 + $0x20] sm:$0xff]  ;;  %v268_v1 = vld [vmem:[%s5214_s1 + $0x10] sm:$0xff]  ;;  %v2564_v3 = vmov 0   ;;  %v271_v4 = vld [vmem:[%s5214_s1 + $0x28] sm:$0xff]  ;;  %p215_p3 = scmp.lt.s32.totalorder %s2358_s19, 1  ;;  %vm5338_vm0 = vcmask 523264  }
   0xc   : > { %v266_v2 = vld [vmem:[%s5214_s1] sm:$0xff]  ;;  %2379 = vset.pattern.permute.xlu2 %v2564_v3  ;;  %2378 = vset.pattern.permute.xlu1 %v2564_v3  ;;  %v269_v5 = vld [vmem:[%s5214_s1 + $0x18] sm:$0xff]  ;;  %v267_v6 = vld [vmem:[%s5214_s1 + $0x8] sm:$0xff] }
   0xd   : > { %2377 = vset.pattern.permute.xlu0 %v2564_v3  ;;  %329 = vperm.xlu2 %2379, %v270_v0   ;;  %v274_v7 = vld [vmem:[%s5214_s1 + $0x40] sm:$0xff]  ;;  %v273_v8 = vld [vmem:[%s5214_s1 + $0x38] sm:$0xff]  ;;  %v272_v9 = vld [vmem:[%s5214_s1 + $0x30] sm:$0xff]  ;;  %s5806_s19 = smov (!%p215_p3, %s2358_s19), 1 }
   0xe   : > { %319 = vperm.xlu1 %2378, %v268_v1   ;;  %309 = vperm.xlu0 %2377, %v266_v2   ;;  %v277_v10 = vld [vmem:[%s5214_s1 + $0x58] sm:$0xff]  ;;  %v276_v11 = vld [vmem:[%s5214_s1 + $0x50] sm:$0xff]  ;;  %v275_v12 = vld [vmem:[%s5214_s1 + $0x48] sm:$0xff]  ;;  %s2367_s8 = smul.u32 328, %s5806_s19 }
   0xf   : > { %v280_v13 = vld [vmem:[%s5214_s1 + $0x70] sm:$0xff]  ;;  %v279_v14 = vld [vmem:[%s5214_s1 + $0x68] sm:$0xff]  ;;  %v278_v15 = vld [vmem:[%s5214_s1 + $0x60] sm:$0xff] }
  0x10   : > { %v283_v16 = vld [vmem:[%s5214_s1 + $0x88] sm:$0xff]  ;;  %v282_v17 = vld [vmem:[%s5214_s1 + $0x80] sm:$0xff]  ;;  %v281_v18 = vld [vmem:[%s5214_s1 + $0x78] sm:$0xff]  ;;  %s2744_s11 = scalar_lea.vmem %s5213_s0, %s2367_s8  ;;  %s4813_s12 = scalar_lea.vmem %s5218_s5, %s2367_s8 }
  0x11   : > { %v286_v19 = vld [vmem:[%s5214_s1 + $0xa0] sm:$0xff]  ;;  %v285_v20 = vld [vmem:[%s5214_s1 + $0x98] sm:$0xff]  ;;  %v284_v21 = vld [vmem:[%s5214_s1 + $0x90] sm:$0xff] }
  0x12   : > { %v289_v22 = vld [vmem:[%s5214_s1 + $0xb8] sm:$0xff]  ;;  %v288_v23 = vld [vmem:[%s5214_s1 + $0xb0] sm:$0xff]  ;;  %v287_v24 = vld [vmem:[%s5214_s1 + $0xa8] sm:$0xff] }
  0x13   : > { %v292_v25 = vld [vmem:[%s5214_s1 + $0xd0] sm:$0xff]  ;;  %v291_v26 = vld [vmem:[%s5214_s1 + $0xc8] sm:$0xff]  ;;  %v290_v27 = vld [vmem:[%s5214_s1 + $0xc0] sm:$0xff] }
  0x14   : > { %v295_v28 = vld [vmem:[%s5214_s1 + $0xe8] sm:$0xff]  ;;  %v294_v29 = vld [vmem:[%s5214_s1 + $0xe0] sm:$0xff]  ;;  %v293_v30 = vld [vmem:[%s5214_s1 + $0xd8] sm:$0xff] }
  0x15   : > { %334 = vperm.xlu2 %2379, %v271_v4   ;;  %v298_v31 = vld [vmem:[%s5214_s1 + $0x100] sm:$0xff]  ;;  %v297_v32 = vld [vmem:[%s5214_s1 + $0xf8] sm:$0xff]  ;;  %v296_v33 = vld [vmem:[%s5214_s1 + $0xf0] sm:$0xff] }
  0x16   : > { %324 = vperm.xlu1 %2378, %v269_v5   ;;  %314 = vperm.xlu0 %2377, %v267_v6   ;;  %v301_v34 = vld [vmem:[%s5214_s1 + $0x118] sm:$0xff]  ;;  %v300_v35 = vld [vmem:[%s5214_s1 + $0x110] sm:$0xff]  ;;  %v299_v36 = vld [vmem:[%s5214_s1 + $0x108] sm:$0xff] }
  0x17   : > { %v304_v38 = vld [vmem:[%s5214_s1 + $0x130] sm:$0xff]  ;;  %v303_v39 = vld [vmem:[%s5214_s1 + $0x128] sm:$0xff]  ;;  %v302_v40 = vld [vmem:[%s5214_s1 + $0x120] sm:$0xff] }
  0x18   : > { %v306_v42 = vld [vmem:[%s5214_s1 + $0x140] sm:$0xff]  ;;  %v305_v43 = vld [vmem:[%s5214_s1 + $0x138] sm:$0xff]  ;;  %v227_v49 = vld [vmem:[%s2744_s11 + $0x10] sm:$0xff] }
  0x19   : > { %v225_v47 = vld [vmem:[%s2744_s11] sm:$0xff]  ;;  %v228_v51 = vld [vmem:[%s2744_s11 + $0x18] sm:$0xff]  ;;  %v226_v52 = vld [vmem:[%s2744_s11 + $0x8] sm:$0xff] }
  0x1a   : > { %v229_v53 = vld [vmem:[%s2744_s11 + $0x20] sm:$0xff]  ;;  %v230_v57 = vld [vmem:[%s2744_s11 + $0x28] sm:$0xff] }
  0x1d   : > { %349 = vperm.xlu2 %2379, %v274_v7  }
  0x1e   : > { %344 = vperm.xlu1 %2378, %v273_v8   ;;  %339 = vperm.xlu0 %2377, %v272_v9  }
  0x25   : > { %364 = vperm.xlu2 %2379, %v277_v10  }
  0x26   : > { %359 = vperm.xlu1 %2378, %v276_v11   ;;  %354 = vperm.xlu0 %2377, %v275_v12   ;;  %v232_v11 = vld [vmem:[%s2744_s11 + $0x38] sm:$0xff]  ;;  %v231_v12 = vld [vmem:[%s2744_s11 + $0x30] sm:$0xff] }
  0x2d   : > { %379 = vperm.xlu2 %2379, %v280_v13  }
  0x2e   : > { %374 = vperm.xlu1 %2378, %v279_v14   ;;  %369 = vperm.xlu0 %2377, %v278_v15   ;;  %v233_v14 = vld [vmem:[%s2744_s11 + $0x40] sm:$0xff] }
  0x35   : > { %394 = vperm.xlu2 %2379, %v283_v16  }
  0x36   : > { %389 = vperm.xlu1 %2378, %v282_v17   ;;  %384 = vperm.xlu0 %2377, %v281_v18  }
  0x3d   : > { %409 = vperm.xlu2 %2379, %v286_v19  }
  0x3e   : > { %404 = vperm.xlu1 %2378, %v285_v20   ;;  %399 = vperm.xlu0 %2377, %v284_v21  }
  0x45   : > { %424 = vperm.xlu2 %2379, %v289_v22  }
  0x46   : > { %419 = vperm.xlu1 %2378, %v288_v23   ;;  %414 = vperm.xlu0 %2377, %v287_v24  }
  0x4d   : > { %439 = vperm.xlu2 %2379, %v292_v25  }
  0x4e   : > { %434 = vperm.xlu1 %2378, %v291_v26   ;;  %429 = vperm.xlu0 %2377, %v290_v27  }
  0x55   : > { %454 = vperm.xlu2 %2379, %v295_v28  }
  0x56   : > { %449 = vperm.xlu1 %2378, %v294_v29   ;;  %444 = vperm.xlu0 %2377, %v293_v30  }
  0x5d   : > { %469 = vperm.xlu2 %2379, %v298_v31  }
  0x5e   : > { %464 = vperm.xlu1 %2378, %v297_v32   ;;  %459 = vperm.xlu0 %2377, %v296_v33  }
  0x65   : > { %484 = vperm.xlu2 %2379, %v301_v34  }
  0x66   : > { %479 = vperm.xlu1 %2378, %v300_v35   ;;  %474 = vperm.xlu0 %2377, %v299_v36  }
  0x67   : > { %v2711_v37 = vpop.permute.xlu2 %329 }
  0x68   : > { %5339 = vst [vmem:[#allocation2_spill] sm:$0xff] %v2711_v37  ;;  %v516_v61 = vmul.f32 %v2711_v37, %v229_v53 }
  0x6a   : > { %v645_v13 = vmul.f32 %v516_v61, %v516_v61  ;;  %v561_v17 = vsel %vm5338_vm0, %v516_v61, 0.0 }
  0x6c   : > { %v689_v29 = vsel %vm5338_vm0, %v645_v13, 0.0  ;;  %v2826_v13 = vld [vmem:[%s2744_s11 + $0x60] sm:$0xff] }
  0x6d   : > { %499 = vperm.xlu2 %2379, %v304_v38  }
  0x6e   : > { %494 = vperm.xlu1 %2378, %v303_v39   ;;  %489 = vperm.xlu0 %2377, %v302_v40  }
  0x6f   : > { %v2722_v41 = vpop.permute.xlu2 %334 }
  0x70   : > { %5340 = vst [vmem:[#allocation3_spill] sm:$0xff] %v2722_v41  ;;  %v517_v2 = vmul.f32 %v2722_v41, %v230_v57 }
  0x72   : > { %v646_v22 = vmul.f32 %v517_v2, %v517_v2  ;;  %v563_v30 = vsel %vm5338_vm0, %v517_v2, 0.0 }
  0x74   : > { %v691_v34 = vsel %vm5338_vm0, %v646_v22, 0.0 }
  0x76   : > { %509 = vperm.xlu1 %2378, %v306_v42   ;;  %504 = vperm.xlu0 %2377, %v305_v43   ;;  %v2794_v42 = vld [vmem:[%s2744_s11 + $0x50] sm:$0xff]  ;;  %v2797_v43 = vld [vmem:[%s2744_s11 + $0x48] sm:$0xff] }
  0x77   : > { %v2736_v44 = vpop.permute.xlu2 %349 }
  0x78   : > { %5341 = vst [vmem:[#allocation4_spill] sm:$0xff] %v2736_v44  ;;  %v520_v26 = vmul.f32 %v2736_v44, %v233_v14 }
  0x7a   : > { %v649_v38 = vmul.f32 %v520_v26, %v520_v26 }
  0x7f   : > { %v2751_v48 = vpop.permute.xlu2 %364 }
  0x80   : > { %v2746_v45 = vpop.permute.xlu1 %319  ;;  %v2748_v46 = vpop.permute.xlu0 %309  ;;  %5344 = vst [vmem:[#allocation7_spill] sm:$0xff] %v2751_v48 }
  0x81   : > { %5342 = vst [vmem:[#allocation5_spill] sm:$0xff] %v2746_v45  ;;  %v512_v50 = vmul.f32 %v2748_v46, %v225_v47  ;;  %v514_v54 = vmul.f32 %v2746_v45, %v227_v49 }
  0x82   : > { %5343 = vst [vmem:[#allocation6_spill] sm:$0xff] %v2748_v46  ;;  %v3117_v46 = vld [vmem:[%s2744_s11 + $0xf0] sm:$0xff] }
  0x83   : > { %v641_v58 = vmul.f32 %v512_v50, %v512_v50  ;;  %v643_v62 = vmul.f32 %v514_v54, %v514_v54  ;;  %v554_v63 = vsel %vm5338_vm0, %v512_v50, 0.0  ;;  %v557_v4 = vsel %vm5338_vm0, %v514_v54, 0.0  ;;  %5376 = vst [vmem:[#allocation39_spill] sm:$0xff] %v3117_v46 }
  0x85   : > { %v682_v5 = vsel %vm5338_vm0, %v641_v58, 0.0  ;;  %v685_v15 = vsel %vm5338_vm0, %v643_v62, 0.0  ;;  %v569_v58 = vsel %vm5338_vm0, %v520_v26, 0.0  ;;  %v697_v62 = vsel %vm5338_vm0, %v649_v38, 0.0 }
  0x87   : > { %v2772_v6 = vpop.permute.xlu2 %379 }
  0x88   : > { %v2759_v55 = vpop.permute.xlu1 %324  ;;  %v2761_v56 = vpop.permute.xlu0 %314  ;;  %5347 = vst [vmem:[#allocation10_spill] sm:$0xff] %v2772_v6 }
  0x89   : > { %5345 = vst [vmem:[#allocation8_spill] sm:$0xff] %v2759_v55  ;;  %v515_v59 = vmul.f32 %v2759_v55, %v228_v51  ;;  %v513_v60 = vmul.f32 %v2761_v56, %v226_v52  ;;  %v2804_v51 = vld [vmem:[%s2744_s11 + $0x58] sm:$0xff] }
  0x8a   : > { %5346 = vst [vmem:[#allocation9_spill] sm:$0xff] %v2761_v56 }
  0x8b   : > { %v555_v0 = vsel %vm5338_vm0, %v513_v60, 0.0  ;;  %v642_v1 = vmul.f32 %v513_v60, %v513_v60  ;;  %v644_v7 = vmul.f32 %v515_v59, %v515_v59  ;;  %v559_v16 = vsel %vm5338_vm0, %v515_v59, 0.0 }
  0x8c   : > { %v556_v3 = vadd.f32 %v555_v0, %v554_v63 }
  0x8d   : > { %v683_v8 = vsel %vm5338_vm0, %v642_v1, 0.0  ;;  %v687_v23 = vsel %vm5338_vm0, %v644_v7, 0.0  ;;  %v523_v1 = vmul.f32 %v2751_v48, %v2804_v51 }
  0x8e   : > { %v558_v9 = vadd.f32 %v557_v4, %v556_v3  ;;  %v684_v10 = vadd.f32 %v683_v8, %v682_v5 }
  0x8f   : > { %v2799_v47 = vpop.permute.xlu2 %394  ;;  %v652_v14 = vmul.f32 %v523_v1, %v523_v1  ;;  %v575_v22 = vsel %vm5338_vm0, %v523_v1, 0.0 }
  0x90   : > { %v560_v18 = vadd.f32 %v559_v16, %v558_v9  ;;  %v686_v19 = vadd.f32 %v685_v15, %v684_v10  ;;  %v2781_v20 = vpop.permute.xlu1 %344  ;;  %v2783_v21 = vpop.permute.xlu0 %339  ;;  %5350 = vst [vmem:[#allocation13_spill] sm:$0xff] %v2799_v47  ;;  %v2829_v15 = vld [vmem:[%s2744_s11 + $0x70] sm:$0xff] }
  0x91   : > { %5348 = vst [vmem:[#allocation11_spill] sm:$0xff] %v2781_v20  ;;  %v519_v24 = vmul.f32 %v2781_v20, %v232_v11  ;;  %v518_v25 = vmul.f32 %v2783_v21, %v231_v12  ;;  %v2823_v12 = vld [vmem:[%s2744_s11 + $0x68] sm:$0xff]  ;;  %v526_v26 = vmul.f32 %v2772_v6, %v2829_v15 }
  0x92   : > { %5349 = vst [vmem:[#allocation12_spill] sm:$0xff] %v2783_v21  ;;  %v688_v27 = vadd.f32 %v687_v23, %v686_v19  ;;  %v562_v28 = vadd.f32 %v561_v17, %v560_v18 }
  0x93   : > { %v647_v31 = vmul.f32 %v518_v25, %v518_v25  ;;  %v648_v35 = vmul.f32 %v519_v24, %v519_v24  ;;  %v565_v36 = vsel %vm5338_vm0, %v518_v25, 0.0  ;;  %v567_v49 = vsel %vm5338_vm0, %v519_v24, 0.0 }
  0x94   : > { %v564_v32 = vadd.f32 %v563_v30, %v562_v28  ;;  %v690_v33 = vadd.f32 %v689_v29, %v688_v27  ;;  %v703_v28 = vsel %vm5338_vm0, %v652_v14, 0.0 }
  0x95   : > { %v693_v50 = vsel %vm5338_vm0, %v647_v31, 0.0  ;;  %v695_v59 = vsel %vm5338_vm0, %v648_v35, 0.0 }
  0x96   : > { %v566_v39 = vadd.f32 %v565_v36, %v564_v32  ;;  %v692_v40 = vadd.f32 %v691_v34, %v690_v33  ;;  %v655_v36 = vmul.f32 %v526_v26, %v526_v26 }
  0x97   : > { %v2837_v23 = vpop.permute.xlu2 %409 }
  0x98   : > { %v568_v52 = vadd.f32 %v567_v49, %v566_v39  ;;  %v694_v53 = vadd.f32 %v693_v50, %v692_v40  ;;  %v2806_v54 = vpop.permute.xlu1 %359  ;;  %v2808_v57 = vpop.permute.xlu0 %354  ;;  %5355 = vst [vmem:[#allocation18_spill] sm:$0xff] %v2837_v23  ;;  %v2850_v40 = vld [vmem:[%s2744_s11 + $0x80] sm:$0xff]  ;;  %v2853_v49 = vld [vmem:[%s2744_s11 + $0x78] sm:$0xff] }
  0x99   : > { %5351 = vst [vmem:[#allocation14_spill] sm:$0xff] %v2806_v54  ;;  %v522_v60 = vmul.f32 %v2806_v54, %v2794_v42  ;;  %v521_v61 = vmul.f32 %v2808_v57, %v2797_v43 }
  0x9a   : > { %5352 = vst [vmem:[#allocation15_spill] sm:$0xff] %v2808_v57  ;;  %v696_v63 = vadd.f32 %v695_v59, %v694_v53  ;;  %v570_v0 = vadd.f32 %v569_v58, %v568_v52  ;;  %v2857_v52 = vld [vmem:[%s2744_s11 + $0x88] sm:$0xff] }
  0x9b   : > { %v651_v2 = vmul.f32 %v522_v60, %v522_v60  ;;  %v571_v3 = vsel %vm5338_vm0, %v521_v61, 0.0  ;;  %v650_v4 = vmul.f32 %v521_v61, %v521_v61  ;;  %v573_v8 = vsel %vm5338_vm0, %v522_v60, 0.0 }
  0x9c   : > { %v572_v5 = vadd.f32 %v571_v3, %v570_v0  ;;  %v698_v7 = vadd.f32 %v697_v62, %v696_v63  ;;  %v581_v60 = vsel %vm5338_vm0, %v526_v26, 0.0  ;;  %v709_v63 = vsel %vm5338_vm0, %v655_v36, 0.0 }
  0x9d   : > { %v699_v9 = vsel %vm5338_vm0, %v650_v4, 0.0  ;;  %v701_v16 = vsel %vm5338_vm0, %v651_v2, 0.0  ;;  %v529_v1 = vmul.f32 %v2799_v47, %v2857_v52 }
  0x9e   : > { %v574_v10 = vadd.f32 %v573_v8, %v572_v5  ;;  %v700_v11 = vadd.f32 %v699_v9, %v698_v7 }
  0x9f   : > { %v2871_v2 = vpop.permute.xlu2 %424 }
  0xa0   : > { %v702_v17 = vadd.f32 %v701_v16, %v700_v11  ;;  %v2832_v18 = vpop.permute.xlu1 %374  ;;  %v2834_v19 = vpop.permute.xlu0 %369  ;;  %v576_v27 = vadd.f32 %v575_v22, %v574_v10  ;;  %5358 = vst [vmem:[#allocation21_spill] sm:$0xff] %v2871_v2  ;;  %v2877_v16 = vld [vmem:[%s2744_s11 + $0x98] sm:$0xff]  ;;  %v658_v22 = vmul.f32 %v529_v1, %v529_v1 }
  0xa1   : > { %5353 = vst [vmem:[#allocation16_spill] sm:$0xff] %v2832_v18  ;;  %v525_v24 = vmul.f32 %v2832_v18, %v2823_v12  ;;  %v524_v25 = vmul.f32 %v2834_v19, %v2826_v13 }
  0xa2   : > { %5354 = vst [vmem:[#allocation17_spill] sm:$0xff] %v2834_v19  ;;  %v704_v33 = vadd.f32 %v703_v28, %v702_v17  ;;  %v2880_v17 = vld [vmem:[%s2744_s11 + $0x90] sm:$0xff]  ;;  %v3046_v19 = vld [vmem:[%s2744_s11 + $0xe0] sm:$0xff] }
  0xa3   : > { %v654_v29 = vmul.f32 %v525_v24, %v525_v24  ;;  %v577_v30 = vsel %vm5338_vm0, %v524_v25, 0.0  ;;  %v653_v31 = vmul.f32 %v524_v25, %v524_v25  ;;  %v579_v34 = vsel %vm5338_vm0, %v525_v24, 0.0  ;;  %v2883_v24 = vld [vmem:[%s2744_s11 + $0xa0] sm:$0xff]  ;;  %5370 = vst [vmem:[#allocation33_spill] sm:$0xff] %v3046_v19 }
  0xa4   : > { %v578_v32 = vadd.f32 %v577_v30, %v576_v27 }
  0xa5   : > { %v705_v35 = vsel %vm5338_vm0, %v653_v31, 0.0  ;;  %v707_v50 = vsel %vm5338_vm0, %v654_v29, 0.0  ;;  %v587_v29 = vsel %vm5338_vm0, %v529_v1, 0.0 }
  0xa6   : > { %v580_v38 = vadd.f32 %v579_v34, %v578_v32  ;;  %v706_v39 = vadd.f32 %v705_v35, %v704_v33  ;;  %v532_v32 = vmul.f32 %v2837_v23, %v2883_v24  ;;  %v715_v34 = vsel %vm5338_vm0, %v658_v22, 0.0 }
  0xa8   : > { %v708_v53 = vadd.f32 %v707_v50, %v706_v39  ;;  %v2859_v58 = vpop.permute.xlu1 %389  ;;  %v2861_v59 = vpop.permute.xlu0 %384  ;;  %v582_v0 = vadd.f32 %v581_v60, %v580_v38  ;;  %v2900_v39 = vld [vmem:[%s2744_s11 + $0xb8] sm:$0xff]  ;;  %v593_v22 = vsel %vm5338_vm0, %v532_v32, 0.0 }
  0xa9   : > { %5356 = vst [vmem:[#allocation19_spill] sm:$0xff] %v2859_v58  ;;  %v528_v61 = vmul.f32 %v2859_v58, %v2850_v40  ;;  %v527_v62 = vmul.f32 %v2861_v59, %v2853_v49  ;;  %v2902_v60 = vpop.permute.xlu2 %439 }
  0xaa   : > { %5357 = vst [vmem:[#allocation20_spill] sm:$0xff] %v2861_v59  ;;  %v710_v8 = vadd.f32 %v709_v63, %v708_v53  ;;  %v661_v63 = vmul.f32 %v532_v32, %v532_v32 }
  0xab   : > { %v657_v3 = vmul.f32 %v528_v61, %v528_v61  ;;  %v583_v4 = vsel %vm5338_vm0, %v527_v62, 0.0  ;;  %v656_v5 = vmul.f32 %v527_v62, %v527_v62  ;;  %v585_v9 = vsel %vm5338_vm0, %v528_v61, 0.0  ;;  %5361 = vst [vmem:[#allocation24_spill] sm:$0xff] %v2902_v60 }
  0xac   : > { %v584_v7 = vadd.f32 %v583_v4, %v582_v0  ;;  %v2910_v4 = vld [vmem:[%s2744_s11 + $0xa8] sm:$0xff] }
  0xad   : > { %v711_v10 = vsel %vm5338_vm0, %v656_v5, 0.0  ;;  %v713_v25 = vsel %vm5338_vm0, %v657_v3, 0.0  ;;  %v2907_v3 = vld [vmem:[%s2744_s11 + $0xb0] sm:$0xff]  ;;  %v535_v5 = vmul.f32 %v2871_v2, %v2900_v39 }
  0xae   : > { %v586_v11 = vadd.f32 %v585_v9, %v584_v7  ;;  %v712_v14 = vadd.f32 %v711_v10, %v710_v8  ;;  %v776_v8 = vld [vmem:[%s5217_s4 + $0x38] sm:$0xff] }
  0xaf   : > { %v664_v32 = vmul.f32 %v535_v5, %v535_v5 }
  0xb0   : > { %v714_v26 = vadd.f32 %v713_v25, %v712_v14  ;;  %v2886_v27 = vpop.permute.xlu1 %404  ;;  %v2888_v28 = vpop.permute.xlu0 %399  ;;  %v588_v33 = vadd.f32 %v587_v29, %v586_v11  ;;  %v2922_v14 = vand.u32 4294901760, %v776_v8  ;;  %v775_v29 = vld [vmem:[%s5217_s4 + $0x30] sm:$0xff] }
  0xb1   : > { %5359 = vst [vmem:[#allocation22_spill] sm:$0xff] %v2886_v27  ;;  %v531_v30 = vmul.f32 %v2886_v27, %v2877_v16  ;;  %v530_v31 = vmul.f32 %v2888_v28, %v2880_v17 }
  0xb2   : > { %5360 = vst [vmem:[#allocation23_spill] sm:$0xff] %v2888_v28  ;;  %v716_v53 = vadd.f32 %v715_v34, %v714_v26  ;;  %v2937_v34 = vsub.f32 %v776_v8, %v2922_v14  ;;  %921 = vmatpush.msra.mxu3 %v2922_v14  ;;  %789 = vmatpush.msra.mxu0 %v2922_v14 }
  0xb3   : > { %v660_v35 = vmul.f32 %v531_v30, %v531_v30  ;;  %v589_v36 = vsel %vm5338_vm0, %v530_v31, 0.0  ;;  %v659_v38 = vmul.f32 %v530_v31, %v530_v31  ;;  %v591_v61 = vsel %vm5338_vm0, %v531_v30, 0.0  ;;  %v2934_v31 = vld [vmem:[%s2744_s11 + $0xd0] sm:$0xff] }
  0xb4   : > { %v590_v50 = vadd.f32 %v589_v36, %v588_v33  ;;  %v721_v30 = vsel %vm5338_vm0, %v661_v63, 0.0  ;;  %5364 = vst [vmem:[#allocation27_spill] sm:$0xff] %v2934_v31  ;;  %v2948_v63 = vand.u32 4294901760, %v775_v29  ;;  %884 = vmatpush.msra.mxu2 %v2937_v34 }
  0xb5   : > { %v717_v62 = vsel %vm5338_vm0, %v659_v38, 0.0  ;;  %v719_v7 = vsel %vm5338_vm0, %v660_v35, 0.0 }
  0xb6   : > { %v592_v0 = vadd.f32 %v591_v61, %v590_v50  ;;  %v718_v1 = vadd.f32 %v717_v62, %v716_v53  ;;  %v774_v50 = vld [vmem:[%s5217_s4 + $0x28] sm:$0xff]  ;;  %v2946_v62 = vand.u32 4294901760, %v2937_v34  ;;  %923 = vmatpush.msra.mxu3 %v2948_v63  ;;  %791 = vmatpush.msra.mxu0 %v2948_v63 }
  0xb7   : > { %v2957_v8 = vand.u32 4294901760, %v774_v50 }
  0xb8   : > { %v720_v9 = vadd.f32 %v719_v7, %v718_v1  ;;  %v2918_v10 = vpop.permute.xlu1 %419  ;;  %v2920_v11 = vpop.permute.xlu0 %414  ;;  %v594_v33 = vadd.f32 %v593_v22, %v592_v0  ;;  %v2953_v0 = vmul.f32 %v2902_v60, %v2934_v31 }
  0xb9   : > { %5362 = vst [vmem:[#allocation25_spill] sm:$0xff] %v2918_v10  ;;  %v534_v25 = vmul.f32 %v2918_v10, %v2907_v3  ;;  %v533_v26 = vmul.f32 %v2920_v11, %v2910_v4  ;;  %v2978_v2 = vsub.f32 %v774_v50, %v2957_v8  ;;  %925 = vmatpush.msra.mxu3 %v2957_v8 }
  0xba   : > { %5363 = vst [vmem:[#allocation26_spill] sm:$0xff] %v2920_v11  ;;  %v722_v61 = vadd.f32 %v721_v30, %v720_v9  ;;  %v773_v9 = vld [vmem:[%s5217_s4 + $0x20] sm:$0xff]  ;;  %v2963_v30 = vld [vmem:[%s2744_s11 + $0xc8] sm:$0xff]  ;;  %793 = vmatpush.msra.mxu0 %v2957_v8 }
  0xbb   : > { %v663_v35 = vmul.f32 %v534_v25, %v534_v25  ;;  %v595_v36 = vsel %vm5338_vm0, %v533_v26, 0.0  ;;  %v662_v38 = vmul.f32 %v533_v26, %v533_v26  ;;  %v597_v1 = vsel %vm5338_vm0, %v534_v25, 0.0  ;;  %5365 = vst [vmem:[#allocation28_spill] sm:$0xff] %v2963_v30 }
  0xbc   : > { %v596_v53 = vadd.f32 %v595_v36, %v594_v33  ;;  %v2966_v33 = vld [vmem:[%s2744_s11 + $0xc0] sm:$0xff]  ;;  %v824_v36 = vsub.f32 %v2937_v34, %v2946_v62  ;;  %v2971_v25 = vsub.f32 %v775_v29, %v2948_v63 }
  0xbd   : > { %v723_v7 = vsel %vm5338_vm0, %v662_v38, 0.0  ;;  %v2974_v38 = vpop.permute.xlu2 %454  ;;  %v725_v60 = vsel %vm5338_vm0, %v663_v35, 0.0 }
  0xbe   : > { %v598_v22 = vadd.f32 %v597_v1, %v596_v53  ;;  %v724_v26 = vadd.f32 %v723_v7, %v722_v61  ;;  %5366 = vst [vmem:[#allocation29_spill] sm:$0xff] %v2974_v38  ;;  %v2980_v53 = vand.u32 4294901760, %v773_v9  ;;  %v599_v61 = vsel %vm5338_vm0, %v535_v5, 0.0  ;;  %v2985_v1 = vld [vmem:[%s2744_s11 + $0xe8] sm:$0xff]  ;;  %887 = vmatpush.msra.mxu2 %v2971_v25 }
  0xbf   : > { %5367 = vst [vmem:[#allocation30_spill] sm:$0xff] %v2985_v1  ;;  %v2991_v11 = vand.u32 4294901760, %v824_v36  ;;  %v3000_v5 = vand.u32 4294901760, %v2971_v25  ;;  %v667_v36 = vmul.f32 %v2953_v0, %v2953_v0  ;;  %v3019_v27 = vmul.f32 %v2974_v38, %v2985_v1 }
  0xc0   : > { %v726_v7 = vadd.f32 %v725_v60, %v724_v26  ;;  %v2987_v29 = vpop.permute.xlu1 %434  ;;  %v2989_v10 = vpop.permute.xlu0 %429  ;;  %v3003_v60 = vand.u32 4294901760, %v2978_v2  ;;  %v727_v26 = vsel %vm5338_vm0, %v664_v32, 0.0  ;;  %v600_v23 = vadd.f32 %v599_v61, %v598_v22  ;;  %890 = vmatpush.msra.mxu2 %v2978_v2  ;;  %927 = vmatpush.msra.mxu3 %v2980_v53 }
  0xc1   : > { %5368 = vst [vmem:[#allocation31_spill] sm:$0xff] %v2987_v29  ;;  %v537_v35 = vmul.f32 %v2987_v29, %v2963_v30  ;;  %v536_v50 = vmul.f32 %v2989_v10, %v2966_v33  ;;  %826 = vmatpush.msra.mxu1 %v2991_v11  ;;  %v3011_v29 = vsub.f32 %v773_v9, %v2980_v53 }
  0xc2   : > { %5369 = vst [vmem:[#allocation32_spill] sm:$0xff] %v2989_v10  ;;  %v772_v10 = vld [vmem:[%s5217_s4 + $0x18] sm:$0xff]  ;;  %795 = vmatpush.msra.mxu0 %v2980_v53  ;;  %v728_v22 = vadd.f32 %v727_v26, %v726_v7  ;;  %v830_v61 = vsub.f32 %v2971_v25, %v3000_v5  ;;  %v836_v58 = vsub.f32 %v2978_v2, %v3003_v60  ;;  %v769_v7 = vld [vmem:[%s5217_s4] sm:$0xff] }
  0xc3   : > { %v666_v32 = vmul.f32 %v537_v35, %v537_v35  ;;  %v601_v28 = vsel %vm5338_vm0, %v536_v50, 0.0  ;;  %v665_v47 = vmul.f32 %v536_v50, %v536_v50  ;;  %893 = vmatpush.msra.mxu2 %v3011_v29  ;;  %v771_v50 = vld [vmem:[%s5217_s4 + $0x10] sm:$0xff]  ;;  %v603_v38 = vsel %vm5338_vm0, %v537_v35, 0.0  ;;  %v3049_v35 = vld [vmem:[%s2744_s11 + $0xd8] sm:$0xff] }
  0xc4   : > { %v602_v9 = vadd.f32 %v601_v28, %v600_v23  ;;  %v3035_v6 = vand.u32 4294901760, %v3011_v29  ;;  %v3037_v23 = vand.u32 4294901760, %v772_v10  ;;  %v770_v28 = vld [vmem:[%s5217_s4 + $0x8] sm:$0xff]  ;;  %5371 = vst [vmem:[#allocation34_spill] sm:$0xff] %v3049_v35  ;;  %v3051_v48 = vand.u32 4294901760, %v836_v58 }
  0xc5   : > { %v729_v59 = vsel %vm5338_vm0, %v665_v47, 0.0  ;;  %v831_v47 = vand.u32 4294901760, %v830_v61  ;;  %v731_v54 = vsel %vm5338_vm0, %v666_v32, 0.0  ;;  %v3059_v20 = vand.u32 4294901760, %v771_v50 }
  0xc6   : > { %v604_v26 = vadd.f32 %v603_v38, %v602_v9  ;;  %v730_v18 = vadd.f32 %v729_v59, %v728_v22  ;;  %v842_v57 = vsub.f32 %v3011_v29, %v3035_v6  ;;  %v3057_v44 = vsub.f32 %v772_v10, %v3037_v23  ;;  %929 = vmatpush.msra.mxu3 %v3037_v23 }
  0xc7   : > { %797 = vmatpush.msra.mxu0 %v3037_v23  ;;  %v605_v59 = vsel %vm5338_vm0, %v2953_v0, 0.0  ;;  %832 = vmatpush.msra.mxu1 %v831_v47  ;;  %v3069_v32 = vand.u32 4294901760, %v770_v28  ;;  %v3071_v22 = vand.u32 4294901760, %v769_v7  ;;  %v3087_v41 = vsub.f32 %v771_v50, %v3059_v20 }
  0xc8   : > { %v732_v38 = vadd.f32 %v731_v54, %v730_v18  ;;  %v3065_v58 = vpop.permute.xlu1 %449  ;;  %v3067_v9 = vpop.permute.xlu0 %444  ;;  %v3077_v21 = vand.u32 4294901760, %v842_v57  ;;  %v3080_v0 = vand.u32 4294901760, %v3057_v44  ;;  %896 = vmatpush.msra.mxu2 %v3057_v44  ;;  %931 = vmatpush.msra.mxu3 %v3059_v20  ;;  %v733_v54 = vsel %vm5338_vm0, %v667_v36, 0.0 }
  0xc9   : > { %5372 = vst [vmem:[#allocation35_spill] sm:$0xff] %v3065_v58  ;;  %v540_v10 = vmul.f32 %v3065_v58, %v3046_v19  ;;  %v539_v61 = vmul.f32 %v3067_v9, %v3049_v35  ;;  %v606_v18 = vadd.f32 %v605_v59, %v604_v26  ;;  %838 = vmatpush.msra.mxu1 %v3051_v48  ;;  %v3092_v58 = vpop.permute.xlu2 %469  ;;  %v3100_v59 = vand.u32 4294901760, %v3087_v41 }
  0xca   : > { %5373 = vst [vmem:[#allocation36_spill] sm:$0xff] %v3067_v9  ;;  %799 = vmatpush.msra.mxu0 %v3059_v20  ;;  %v670_v57 = vmul.f32 %v3019_v27, %v3019_v27  ;;  %933 = vmatpush.msra.mxu3 %v3069_v32  ;;  %v734_v26 = vadd.f32 %v733_v54, %v732_v38 }
  0xcb   : > { %5374 = vst [vmem:[#allocation37_spill] sm:$0xff] %v3092_v58  ;;  %v669_v9 = vmul.f32 %v540_v10, %v540_v10  ;;  %v607_v37 = vsel %vm5338_vm0, %v539_v61, 0.0  ;;  %v668_v55 = vmul.f32 %v539_v61, %v539_v61  ;;  %844 = vmatpush.msra.mxu1 %v3077_v21  ;;  %v848_v50 = vsub.f32 %v3057_v44, %v3080_v0 }
  0xcc   : > { %v608_v36 = vadd.f32 %v607_v37, %v606_v18  ;;  %899 = vmatpush.msra.mxu2 %v3087_v41  ;;  %v609_v45 = vsel %vm5338_vm0, %v540_v10, 0.0  ;;  %v3106_v56 = vsub.f32 %v770_v28, %v3069_v32  ;;  %v3109_v37 = vsub.f32 %v769_v7, %v3071_v22  ;;  %935 = vmatpush.msra.mxu3 %v3071_v22  ;;  %v3114_v18 = vld [vmem:[%s2744_s11 + $0xf8] sm:$0xff] }
  0xcd   : > { %v735_v61 = vsel %vm5338_vm0, %v668_v55, 0.0  ;;  %801 = vmatpush.msra.mxu0 %v3069_v32  ;;  %5375 = vst [vmem:[#allocation38_spill] sm:$0xff] %v3114_v18  ;;  %v849_v10 = vand.u32 4294901760, %v848_v50  ;;  %v854_v55 = vsub.f32 %v3087_v41, %v3100_v59  ;;  %v737_v28 = vsel %vm5338_vm0, %v669_v9, 0.0 }
  0xce   : > { %v610_v38 = vadd.f32 %v609_v45, %v608_v36  ;;  %v736_v54 = vadd.f32 %v735_v61, %v734_v26  ;;  %1066 = vmatpush.msrb.mxu3 %v2991_v11  ;;  %v3124_v7 = vand.u32 4294901760, %v3106_v56  ;;  %v3127_v1 = vand.u32 4294901760, %v3109_v37  ;;  %902 = vmatpush.msra.mxu2 %v3106_v56  ;;  %v3134_v36 = vld [vmem:[%s2744_s11 + $0x100] sm:$0xff] }
  0xcf   : > { %803 = vmatpush.msra.mxu0 %v3071_v22  ;;  %v611_v45 = vsel %vm5338_vm0, %v3019_v27, 0.0  ;;  %5377 = vst [vmem:[#allocation40_spill] sm:$0xff] %v3134_v36  ;;  %850 = vmatpush.msra.mxu1 %v849_v10  ;;  %v855_v9 = vand.u32 4294901760, %v854_v55 }
  0xd0   : > { %v738_v26 = vadd.f32 %v737_v28, %v736_v54  ;;  %v3136_v50 = vpop.permute.xlu1 %464  ;;  %v3138_v11 = vpop.permute.xlu0 %459  ;;  %1072 = vmatpush.msrb.mxu3 %v831_v47  ;;  %v860_v35 = vsub.f32 %v3106_v56, %v3124_v7  ;;  %v866_v27 = vsub.f32 %v3109_v37, %v3127_v1  ;;  %905 = vmatpush.msra.mxu2 %v3109_v37  ;;  %v739_v54 = vsel %vm5338_vm0, %v670_v57, 0.0 }
  0xd1   : > { %5378 = vst [vmem:[#allocation41_spill] sm:$0xff] %v3136_v50  ;;  %v543_v61 = vmul.f32 %v3136_v50, %v3114_v18  ;;  %v542_v19 = vmul.f32 %v3138_v11, %v3117_v46  ;;  %v612_v28 = vadd.f32 %v611_v45, %v610_v38  ;;  %856 = vmatpush.msra.mxu1 %v855_v9  ;;  %v3157_v45 = vpop.permute.xlu2 %484 }
  0xd2   : > { %5379 = vst [vmem:[#allocation42_spill] sm:$0xff] %v3138_v11  ;;  %1029 = vmatpush.msrb.mxu2 %v2922_v14  ;;  %v544_v47 = vmul.f32 %v3092_v58, %v3134_v36  ;;  %954 = vmatpush.msrb.mxu0 %v2946_v62  ;;  %v740_v46 = vadd.f32 %v739_v54, %v738_v26  ;;  %v861_v57 = vand.u32 4294901760, %v860_v35  ;;  %v867_v38 = vand.u32 4294901760, %v866_v27  ;;  %v3167_v26 = vld [vmem:[%s2744_s11 + $0x108] sm:$0xff] }
  0xd3   : > { %v672_v55 = vmul.f32 %v543_v61, %v543_v61  ;;  %v613_v50 = vsel %vm5338_vm0, %v542_v19, 0.0  ;;  %v671_v11 = vmul.f32 %v542_v19, %v542_v19  ;;  %1078 = vmatpush.msrb.mxu3 %v3051_v48  ;;  %5380 = vst [vmem:[#allocation43_spill] sm:$0xff] %v3157_v45  ;;  %v615_v58 = vsel %vm5338_vm0, %v543_v61, 0.0  ;;  %v3164_v48 = vld [vmem:[%s2744_s11 + $0x110] sm:$0xff] }
  0xd4   : > { %v614_v18 = vadd.f32 %v613_v50, %v612_v28  ;;  %1031 = vmatpush.msrb.mxu2 %v2948_v63  ;;  %958 = vmatpush.msrb.mxu0 %v3000_v5  ;;  %5381 = vst [vmem:[#allocation44_spill] sm:$0xff] %v3164_v48  ;;  %v673_v35 = vmul.f32 %v544_v47, %v544_v47  ;;  %v3171_v50 = vld [vmem:[%s2744_s11 + $0x118] sm:$0xff] }
  0xd5   : > { %v741_v36 = vsel %vm5338_vm0, %v671_v11, 0.0  ;;  %1084 = vmatpush.msrb.mxu3 %v3077_v21  ;;  %5382 = vst [vmem:[#allocation45_spill] sm:$0xff] %v3167_v26  ;;  %862 = vmatpush.msra.mxu1 %v861_v57  ;;  %v743_v61 = vsel %vm5338_vm0, %v672_v55, 0.0 }
  0xd6   : > { %v616_v19 = vadd.f32 %v615_v58, %v614_v18  ;;  %v742_v31 = vadd.f32 %v741_v36, %v740_v46  ;;  %1033 = vmatpush.msrb.mxu2 %v2957_v8  ;;  %5383 = vst [vmem:[#allocation46_spill] sm:$0xff] %v3171_v50  ;;  %962 = vmatpush.msrb.mxu0 %v3003_v60  ;;  %v617_v46 = vsel %vm5338_vm0, %v544_v47, 0.0  ;;  %v745_v36 = vsel %vm5338_vm0, %v673_v35, 0.0 }
  0xd7   : > { %1090 = vmatpush.msrb.mxu3 %v849_v10  ;;  %868 = vmatpush.msra.mxu1 %v867_v38 }
  0xd8   : > { %v744_v11 = vadd.f32 %v743_v61, %v742_v31  ;;  %v3175_v27 = vpop.permute.xlu1 %479  ;;  %v3177_v21 = vpop.permute.xlu0 %474  ;;  %1035 = vmatpush.msrb.mxu2 %v2980_v53  ;;  %966 = vmatpush.msrb.mxu0 %v3035_v6  ;;  %v547_v31 = vmul.f32 %v3157_v45, %v3171_v50  ;;  %v618_v10 = vadd.f32 %v617_v46, %v616_v19  ;;  %v3200_v45 = vld [vmem:[%s2744_s11 + $0x128] sm:$0xff] }
  0xd9   : > { %5384 = vst [vmem:[#allocation47_spill] sm:$0xff] %v3175_v27  ;;  %v546_v58 = vmul.f32 %v3175_v27, %v3164_v48  ;;  %v545_v18 = vmul.f32 %v3177_v21, %v3167_v26  ;;  %997 = vmatpush.msrb.mxu1 %v2922_v14  ;;  %1096 = vmatpush.msrb.mxu3 %v855_v9  ;;  %v3203_v27 = vld [vmem:[%s2744_s11 + $0x120] sm:$0xff] }
  0xda   : > { %5385 = vst [vmem:[#allocation48_spill] sm:$0xff] %v3177_v21  ;;  %1037 = vmatpush.msrb.mxu2 %v3037_v23  ;;  %970 = vmatpush.msrb.mxu0 %v3080_v0  ;;  %v746_v61 = vadd.f32 %v745_v36, %v744_v11  ;;  %v676_v35 = vmul.f32 %v547_v31, %v547_v31 }
  0xdb   : > { %v675_v54 = vmul.f32 %v546_v58, %v546_v58  ;;  %v619_v28 = vsel %vm5338_vm0, %v545_v18, 0.0  ;;  %v674_v47 = vmul.f32 %v545_v18, %v545_v18  ;;  %999 = vmatpush.msrb.mxu1 %v2948_v63  ;;  %1102 = vmatpush.msrb.mxu3 %v861_v57  ;;  %v621_v9 = vsel %vm5338_vm0, %v546_v58, 0.0  ;;  %5386 = vst [vmem:[#allocation49_spill] sm:$0xff] %v3200_v45  ;;  %v3206_v57 = vpop.permute.xlu2 %499  ;;  %v3212_v58 = vld [vmem:[%s2744_s11 + $0x130] sm:$0xff] }
  0xdc   : > { %v620_v55 = vadd.f32 %v619_v28, %v618_v10  ;;  %1039 = vmatpush.msrb.mxu2 %v3059_v20  ;;  %974 = vmatpush.msrb.mxu0 %v3100_v59  ;;  %5387 = vst [vmem:[#allocation50_spill] sm:$0xff] %v3203_v27 }
  0xdd   : > { %v747_v19 = vsel %vm5338_vm0, %v674_v47, 0.0  ;;  %1001 = vmatpush.msrb.mxu1 %v2957_v8  ;;  %1108 = vmatpush.msrb.mxu3 %v867_v38  ;;  %5388 = vst [vmem:[#allocation51_spill] sm:$0xff] %v3206_v57  ;;  %v749_v11 = vsel %vm5338_vm0, %v675_v54, 0.0  ;;  %v623_v47 = vsel %vm5338_vm0, %v547_v31, 0.0 }
  0xde   : > { %v622_v46 = vadd.f32 %v621_v9, %v620_v55  ;;  %v748_v18 = vadd.f32 %v747_v19, %v746_v61  ;;  %1041 = vmatpush.msrb.mxu2 %v3069_v32  ;;  %978 = vmatpush.msrb.mxu0 %v3124_v7  ;;  %5389 = vst [vmem:[#allocation52_spill] sm:$0xff] %v3212_v58  ;;  %v751_v55 = vsel %vm5338_vm0, %v676_v35, 0.0 }
  0xdf   : > { %1003 = vmatpush.msrb.mxu1 %v2980_v53  ;;  %v550_v9 = vmul.f32 %v3206_v57, %v3212_v58 }
  0xe0   : > { %v750_v10 = vadd.f32 %v749_v11, %v748_v18  ;;  %v3214_v36 = vpop.permute.xlu1 %494  ;;  %v3216_v28 = vpop.permute.xlu0 %489  ;;  %1043 = vmatpush.msrb.mxu2 %v3071_v22  ;;  %982 = vmatpush.msrb.mxu0 %v3127_v1  ;;  %v624_v61 = vadd.f32 %v623_v47, %v622_v46  ;;  %v3235_v46 = vld [vmem:[%s2744_s11 + $0x140] sm:$0xff]  ;;  %v3238_v47 = vld [vmem:[%s2744_s11 + $0x138] sm:$0xff] }
  0xe1   : > { %5390 = vst [vmem:[#allocation53_spill] sm:$0xff] %v3214_v36  ;;  %v549_v38 = vmul.f32 %v3214_v36, %v3200_v45  ;;  %v548_v54 = vmul.f32 %v3216_v28, %v3203_v27  ;;  %1005 = vmatpush.msrb.mxu1 %v3037_v23  ;;  %v679_v57 = vmul.f32 %v550_v9, %v550_v9 }
  0xe2   : > { %5391 = vst [vmem:[#allocation54_spill] sm:$0xff] %v3216_v28  ;;  %v752_v36 = vadd.f32 %v751_v55, %v750_v10 }
  0xe3   : > { %v678_v19 = vmul.f32 %v549_v38, %v549_v38  ;;  %v625_v31 = vsel %vm5338_vm0, %v548_v54, 0.0  ;;  %v677_v18 = vmul.f32 %v548_v54, %v548_v54  ;;  %1007 = vmatpush.msrb.mxu1 %v3059_v20  ;;  %v627_v28 = vsel %vm5338_vm0, %v549_v38, 0.0  ;;  %5392 = vst [vmem:[#allocation55_spill] sm:$0xff] %v3235_v46 }
  0xe4   : > { %v626_v11 = vadd.f32 %v625_v31, %v624_v61  ;;  %5393 = vst [vmem:[#allocation56_spill] sm:$0xff] %v3238_v47  ;;  %v629_v38 = vsel %vm5338_vm0, %v550_v9, 0.0  ;;  %v757_v55 = vsel %vm5338_vm0, %v679_v57, 0.0 }
  0xe5   : > { %v753_v21 = vsel %vm5338_vm0, %v677_v18, 0.0  ;;  %1009 = vmatpush.msrb.mxu1 %v3069_v32  ;;  %v755_v58 = vsel %vm5338_vm0, %v678_v19, 0.0 }
  0xe6   : > { %v628_v45 = vadd.f32 %v627_v28, %v626_v11  ;;  %v754_v35 = vadd.f32 %v753_v21, %v752_v36 }
  0xe7   : > { %1011 = vmatpush.msrb.mxu1 %v3071_v22 }
  0xe8   : > { %v756_v54 = vadd.f32 %v755_v58, %v754_v35  ;;  %v3242_v61 = vpop.permute.xlu1 %509  ;;  %v3244_v10 = vpop.permute.xlu0 %504  ;;  %v630_v36 = vadd.f32 %v629_v38, %v628_v45 }
  0xe9   : > { %5394 = vst [vmem:[#allocation57_spill] sm:$0xff] %v3242_v61  ;;  %v552_v28 = vmul.f32 %v3242_v61, %v3235_v46  ;;  %v551_v21 = vmul.f32 %v3244_v10, %v3238_v47 }
  0xea   : > { %5395 = vst [vmem:[#allocation58_spill] sm:$0xff] %v3244_v10  ;;  %v758_v11 = vadd.f32 %v757_v55, %v756_v54 }
  0xeb   : > { %v681_v31 = vmul.f32 %v552_v28, %v552_v28  ;;  %v631_v19 = vsel %vm5338_vm0, %v551_v21, 0.0  ;;  %v680_v18 = vmul.f32 %v551_v21, %v551_v21  ;;  %v633_v35 = vsel %vm5338_vm0, %v552_v28, 0.0 }
  0xec   : > { %v632_v58 = vadd.f32 %v631_v19, %v630_v36 }
  0xed   : > { %v759_v27 = vsel %vm5338_vm0, %v680_v18, 0.0  ;;  %v761_v61 = vsel %vm5338_vm0, %v681_v31, 0.0 }
  0xee   : > { %v634_v9 = vadd.f32 %v633_v35, %v632_v58  ;;  %v760_v50 = vadd.f32 %v759_v27, %v758_v11 }
  0xf0   : > { %v635_v46 = vrot.slane %v634_v9, 4  ;;  %v762_v48 = vadd.f32 %v761_v61, %v760_v50 }
  0xf2   : > { %v636_v10 = vadd.f32 %v635_v46, %v634_v9  ;;  %v763_v45 = vrot.slane %v762_v48, 4 }
  0xf4   : > { %v637_v38 = vrot.slane %v636_v10, 2  ;;  %v764_v57 = vadd.f32 %v763_v45, %v762_v48 }
  0xf6   : > { %v638_v47 = vadd.f32 %v637_v38, %v636_v10  ;;  %v765_v26 = vrot.slane %v764_v57, 2 }
  0xf8   : > { %v639_v30 = vrot.slane %v638_v47, 1  ;;  %v766_v21 = vadd.f32 %v765_v26, %v764_v57 }
  0xfa   : > { %v767_v36 = vrot.slane %v766_v21, 1  ;;  %v640_v54 = vadd.f32 %v639_v30, %v638_v47 }
  0xfc   : > { %v778_v28 = vsel %vm5338_vm0, %v640_v54, 0  ;;  %v768_v55 = vadd.f32 %v767_v36, %v766_v21  ;;  %v2547_v36 = vld [vmem:[%s2744_s11] sm:$0xff]  ;;  %v5410_v21 = vld [vmem:[#allocation49_spill] sm:$0xff] }
  0xfd   : > { %v804_v19 = vand.u32 4294901760, %v778_v28 }
  0xfe   : > { %v1018_v27 = vsel %vm5338_vm0, %v768_v55, 0 }
  0xff   : > { %870 = vmatmul.f32.vlgmr.msra.gmra.mxu1 %v804_v19  ;;  %v805_v31 = vsub.f32 %v778_v28, %v804_v19  ;;  %v1044_v18 = vand.u32 4294901760, %v1018_v27  ;;  %v2548_v28 = vld [vmem:[%s2744_s11 + $0x8] sm:$0xff] }
 0x100   : > { %1161 = vmatpush.msra.mxu1 %v2922_v14 }
 0x101   : > { %908 = vmatmul.f32.vlgmr.msra.gmra.mxu2 %v805_v31  ;;  %v806_v50 = vand.u32 4294901760, %v805_v31  ;;  %v1045_v48 = vsub.f32 %v1018_v27, %v1044_v18  ;;  %v1312_v27 = vld [vmem:[%s5215_s2] sm:$0x1] }
 0x102   : > { %1163 = vmatpush.msra.mxu1 %v2948_v63  ;;  %1194 = vmatpush.msra.mxu2 %v2946_v62 }
 0x103   : > { %939 = vmatmul.f32.vlgmr.msra.gmra.mxu3 %v806_v50  ;;  %v807_v30 = vsub.f32 %v805_v31, %v806_v50  ;;  %v1046_v26 = vand.u32 4294901760, %v1045_v48  ;;  %v2549_v31 = vld [vmem:[%s2744_s11 + $0x10] sm:$0xff]  ;;  %v2550_v50 = vld [vmem:[%s2744_s11 + $0x18] sm:$0xff] }
 0x104   : > { %1165 = vmatpush.msra.mxu1 %v2957_v8  ;;  %1198 = vmatpush.msra.mxu2 %v3000_v5 }
 0x105   : > { %1237 = vmatpush.msra.mxu3 %v2922_v14  ;;  %v808_v46 = vand.u32 4294901760, %v807_v30  ;;  %v1047_v47 = vsub.f32 %v1045_v48, %v1046_v26  ;;  %v2551_v30 = vld [vmem:[%s2744_s11 + $0x20] sm:$0xff] }
 0x106   : > { %1167 = vmatpush.msra.mxu1 %v2980_v53  ;;  %1202 = vmatpush.msra.mxu2 %v3003_v60 }
 0x107   : > { %1239 = vmatpush.msra.mxu3 %v2948_v63  ;;  %809 = vmatmul.f32.vlgmr.msra.gmra.mxu0 %v808_v46  ;;  %v1048_v61 = vand.u32 4294901760, %v1047_v47  ;;  %v2552_v46 = vld [vmem:[%s2744_s11 + $0x28] sm:$0xff] }
 0x108   : > { %1013 = vmatmul.f32.vlgmr.msrb.gmra.mxu1 %v804_v19  ;;  %1124 = vmatpush.msra.mxu0 %v2937_v34 }
 0x109   : > { %1169 = vmatpush.msra.mxu1 %v3037_v23  ;;  %1206 = vmatpush.msra.mxu2 %v3035_v6 }
 0x10a   : > { %1241 = vmatpush.msra.mxu3 %v2957_v8  ;;  %1049 = vmatmul.f32.vlgmr.msrb.gmra.mxu2 %v1048_v61  ;;  %v2553_v61 = vld [vmem:[%s2744_s11 + $0x30] sm:$0xff] }
 0x10b   : > { %1127 = vmatpush.msra.mxu0 %v2971_v25  ;;  %1171 = vmatpush.msra.mxu1 %v3059_v20 }
 0x10c   : > { %1210 = vmatpush.msra.mxu2 %v3080_v0  ;;  %1243 = vmatpush.msra.mxu3 %v2980_v53 }
 0x10d   : > { %1110 = vmatmul.f32.vlgmr.msrb.gmra.mxu3 %v1044_v18  ;;  %1130 = vmatpush.msra.mxu0 %v2978_v2 }
 0x10e   : > { %1173 = vmatpush.msra.mxu1 %v3069_v32  ;;  %1214 = vmatpush.msra.mxu2 %v3100_v59 }
 0x10f   : > { %1245 = vmatpush.msra.mxu3 %v3037_v23  ;;  %1133 = vmatpush.msra.mxu0 %v3011_v29 }
 0x110   : > { %1175 = vmatpush.msra.mxu1 %v3071_v22  ;;  %1218 = vmatpush.msra.mxu2 %v3124_v7 }
 0x111   : > { %1247 = vmatpush.msra.mxu3 %v3059_v20  ;;  %984 = vmatmul.f32.vlgmr.msrb.gmra.mxu0 %v804_v19 }
 0x112   : > { %1179 = vmatmul.f32.vlgmr.msra.gmra.mxu1 %v1046_v26  ;;  %1136 = vmatpush.msra.mxu0 %v3057_v44 }
 0x113   : > { %1222 = vmatpush.msra.mxu2 %v3127_v1  ;;  %1249 = vmatpush.msra.mxu3 %v3069_v32 }
 0x114   : > { %1224 = vmatmul.f32.vlgmr.msra.gmra.mxu2 %v1044_v18  ;;  %1139 = vmatpush.msra.mxu0 %v3087_v41 }
 0x115   : > { %1251 = vmatpush.msra.mxu3 %v3071_v22 }
 0x116   : > { %1253 = vmatmul.f32.vlgmr.msra.gmra.mxu3 %v1044_v18  ;;  %1142 = vmatpush.msra.mxu0 %v3106_v56 }
 0x118   : > { %1145 = vmatpush.msra.mxu0 %v3109_v37 }
 0x119   : > { %1148 = vmatmul.f32.vlgmr.msra.gmra.mxu0 %v1045_v48 }
 0x17c   : > { %v871_v20 = vpop.f32.mrf.mxu1 }
 0x184   : > { %v810_v6 = vpop.f32.mrf.mxu0  ;;  %v909_v14 = vpop.f32.mrf.mxu2 }
 0x185   : > { %v1014_v34 = vpop.f32.mrf.mxu1  ;;  %v872_v63 = vadd.f32 %v871_v20, %v810_v6  ;;  %v2554_v20 = vld [vmem:[%s2744_s11 + $0x38] sm:$0xff] }
 0x186   : > { %v940_v2 = vpop.f32.mrf.mxu3 }
 0x187   : > { %v910_v41 = vadd.f32 %v909_v14, %v872_v63  ;;  %v2555_v14 = vld [vmem:[%s2744_s11 + $0x40] sm:$0xff] }
 0x189   : > { %v941_v5 = vadd.f32 %v940_v2, %v910_v41 }
 0x18d   : > { %v1050_v8 = vpop.f32.mrf.mxu2 }
 0x18e   : > { %v985_v44 = vpop.f32.mrf.mxu0 }
 0x18f   : > { %v1180_v29 = vpop.f32.mrf.mxu1  ;;  %v986_v56 = vadd.f32 %v985_v44, %v941_v5 }
 0x190   : > { %v1111_v62 = vpop.f32.mrf.mxu3 }
 0x191   : > { %v1112_v53 = vadd.f32 %v1111_v62, %v1050_v8  ;;  %v1015_v22 = vadd.f32 %v1014_v34, %v986_v56 }
 0x193   : > { %v1257_v37 = vmul.f32 %v1015_v22, %v1015_v22  ;;  %v3290_v38 = vperm.slane %v1015_v22, 0 }
 0x195   : > { %v1271_v54 = vsub.f32 %v2547_v36, %v3290_v38  ;;  %v1272_v55 = vsub.f32 %v2548_v28, %v3290_v38  ;;  %v1273_v18 = vsub.f32 %v2549_v31, %v3290_v38  ;;  %v1274_v48 = vsub.f32 %v2550_v50, %v3290_v38  ;;  %v5411_v28 = vld [vmem:[#allocation52_spill] sm:$0xff]  ;;  %v5413_v50 = vld [vmem:[#allocation55_spill] sm:$0xff] }
 0x196   : > { %v1149_v25 = vpop.f32.mrf.mxu0  ;;  %v1275_v26 = vsub.f32 %v2551_v30, %v3290_v38  ;;  %v1276_v47 = vsub.f32 %v2552_v46, %v3290_v38  ;;  %v1277_v6 = vsub.f32 %v2553_v61, %v3290_v38  ;;  %v1278_v2 = vsub.f32 %v2554_v20, %v3290_v38 }
 0x197   : > { %v1150_v1 = vadd.f32 %v1149_v25, %v1112_v53  ;;  %v1225_v23 = vpop.f32.mrf.mxu2  ;;  %v1279_v44 = vsub.f32 %v2555_v14, %v3290_v38  ;;  %v1280_v34 = vsub.f32 %v2797_v43, %v3290_v38  ;;  %v1281_v62 = vsub.f32 %v2794_v42, %v3290_v38 }
 0x198   : > { %v1282_v63 = vsub.f32 %v2804_v51, %v3290_v38  ;;  %v1283_v8 = vsub.f32 %v2826_v13, %v3290_v38  ;;  %v1284_v53 = vsub.f32 %v2823_v12, %v3290_v38  ;;  %v1285_v41 = vsub.f32 %v2829_v15, %v3290_v38 }
 0x199   : > { %v1181_v60 = vadd.f32 %v1180_v29, %v1150_v1  ;;  %v1254_v0 = vpop.f32.mrf.mxu3  ;;  %v1286_v1 = vsub.f32 %v2853_v49, %v3290_v38  ;;  %v1287_v43 = vsub.f32 %v2850_v40, %v3290_v38  ;;  %v1288_v42 = vsub.f32 %v2857_v52, %v3290_v38 }
 0x19a   : > { %v1289_v51 = vsub.f32 %v2880_v17, %v3290_v38  ;;  %v1290_v13 = vsub.f32 %v2877_v16, %v3290_v38  ;;  %v1291_v12 = vsub.f32 %v2883_v24, %v3290_v38  ;;  %v1292_v15 = vsub.f32 %v2910_v4, %v3290_v38  ;;  %v5398_v17 = vld [vmem:[#allocation28_spill] sm:$0xff]  ;;  %v5399_v16 = vld [vmem:[#allocation27_spill] sm:$0xff]  ;;  %v5400_v24 = vld [vmem:[#allocation34_spill] sm:$0xff] }
 0x19b   : > { %v1226_v32 = vadd.f32 %v1225_v23, %v1181_v60  ;;  %v1293_v49 = vsub.f32 %v2907_v3, %v3290_v38  ;;  %v1294_v40 = vsub.f32 %v2900_v39, %v3290_v38  ;;  %v1295_v52 = vsub.f32 %v2966_v33, %v3290_v38  ;;  %v5401_v4 = vld [vmem:[#allocation33_spill] sm:$0xff]  ;;  %v5402_v3 = vld [vmem:[#allocation30_spill] sm:$0xff]  ;;  %v5403_v39 = vld [vmem:[#allocation39_spill] sm:$0xff] }
 0x19c   : > { %v1296_v29 = vsub.f32 %v5398_v17, %v3290_v38  ;;  %v1297_v5 = vsub.f32 %v5399_v16, %v3290_v38  ;;  %v1298_v60 = vsub.f32 %v5400_v24, %v3290_v38  ;;  %v1299_v23 = vsub.f32 %v5401_v4, %v3290_v38  ;;  %v5404_v33 = vld [vmem:[#allocation38_spill] sm:$0xff] }
 0x19d   : > { %v1255_v59 = vadd.f32 %v1254_v0, %v1226_v32  ;;  %v1300_v32 = vsub.f32 %v5402_v3, %v3290_v38  ;;  %v1301_v22 = vsub.f32 %v5403_v39, %v3290_v38  ;;  %v1302_v0 = vsub.f32 %v5404_v33, %v3290_v38 }
 0x19e   : > { %v1308_v36 = vsub.f32 %v5410_v21, %v3290_v38  ;;  %v1311_v30 = vsub.f32 %v5413_v50, %v3290_v38 }
 0x19f   : > { %v1258_v7 = vsub.f32 %v1255_v59, %v1257_v37  ;;  %v5405_v59 = vld [vmem:[#allocation40_spill] sm:$0xff] }
 0x1a0   : > { %v1303_v37 = vsub.f32 %v5405_v59, %v3290_v38 }
 0x1a1   : > { %v1259_v10 = vadd.f32 1e-06, %v1258_v7  ;;  %v5406_v7 = vld [vmem:[#allocation45_spill] sm:$0xff] }
 0x1a3   : > { %2381 = vrsqrt.f32 %v1259_v10  ;;  %vm1266_vm2 = vweird.f32 %v1259_v10 }
 0x1a9   : > { %v2382_v58 = vpop.eup %2381 }
 0x1aa   : > { %v1261_v11 = vmul.f32 %v2382_v58, %v1259_v10  ;;  %vm1267_vm1 = vweird.f32 %v2382_v58  ;;  %v1304_v10 = vsub.f32 %v5406_v7, %v3290_v38 }
 0x1ab   : > { %vm3292_vm3 = vmor %vm1266_vm2, %vm1267_vm1 }
 0x1ac   : > { %v1262_v35 = vmul.f32 %v2382_v58, %v1261_v11 }
 0x1ae   : > { %v1263_v9 = vmul.f32 0.5, %v1262_v35  ;;  %v5408_v35 = vld [vmem:[#allocation46_spill] sm:$0xff] }
 0x1b0   : > { %v1264_v45 = vsub.f32 1.5, %v1263_v9  ;;  %v1306_v9 = vsub.f32 %v5408_v35, %v3290_v38 }
 0x1b2   : > { %v1265_v57 = vmul.f32 %v2382_v58, %v1264_v45  ;;  %v5409_v45 = vld [vmem:[#allocation50_spill] sm:$0xff] }
 0x1b4   : > { %v1269_v19 = vsel %vm3292_vm3, %v2382_v58, %v1265_v57  ;;  %v5407_v58 = vld [vmem:[#allocation44_spill] sm:$0xff]  ;;  %v1307_v57 = vsub.f32 %v5409_v45, %v3290_v38 }
 0x1b5   : > { %v1313_v25 = vmul.f32 %v1312_v27, %v1269_v19  ;;  %v1305_v11 = vsub.f32 %v5407_v58, %v3290_v38  ;;  %v1309_v19 = vsub.f32 %v5411_v28, %v3290_v38  ;;  %v5412_v27 = vld [vmem:[#allocation56_spill] sm:$0xff] }
 0x1b6   : > { %v1310_v31 = vsub.f32 %v5412_v27, %v3290_v38 }
 0x1b7   : > { %v1314_v56 = vperm.slane %v1313_v25, 0 }
 0x1b9   : > { %v1315_v46 = vmul.f32 %v1314_v56, %v1271_v54  ;;  %v1316_v61 = vmul.f32 %v1314_v56, %v1272_v55  ;;  %v1317_v20 = vmul.f32 %v1314_v56, %v1273_v18  ;;  %v1318_v14 = vmul.f32 %v1314_v56, %v1274_v48  ;;  %v3386_v48 = vld [vmem:[%s5216_s3] ss:$0 sm:$0xff] }
 0x1ba   : > { %v1319_v25 = vmul.f32 %v1314_v56, %v1275_v26  ;;  %v1320_v17 = vmul.f32 %v1314_v56, %v1276_v47  ;;  %v1321_v16 = vmul.f32 %v1314_v56, %v1277_v6  ;;  %v1322_v24 = vmul.f32 %v1314_v56, %v1278_v2 }
 0x1bb   : > { %v1323_v4 = vmul.f32 %v1314_v56, %v1279_v44  ;;  %v1324_v3 = vmul.f32 %v1314_v56, %v1280_v34  ;;  %v1325_v39 = vmul.f32 %v1314_v56, %v1281_v62  ;;  %v1326_v33 = vmul.f32 %v1314_v56, %v1282_v63 }
 0x1bc   : > { %v1327_v59 = vmul.f32 %v1314_v56, %v1283_v8  ;;  %v1328_v7 = vmul.f32 %v1314_v56, %v1284_v53  ;;  %v1329_v58 = vmul.f32 %v1314_v56, %v1285_v41  ;;  %v1330_v35 = vmul.f32 %v1314_v56, %v1286_v1 }
 0x1bd   : > { %v1331_v45 = vmul.f32 %v1314_v56, %v1287_v43  ;;  %v1332_v21 = vmul.f32 %v1314_v56, %v1288_v42  ;;  %v1333_v28 = vmul.f32 %v1314_v56, %v1289_v51  ;;  %v1334_v38 = vmul.f32 %v1314_v56, %v1290_v13 }
 0x1be   : > { %v1335_v54 = vmul.f32 %v1314_v56, %v1291_v12  ;;  %v1336_v55 = vmul.f32 %v1314_v56, %v1292_v15  ;;  %v1337_v18 = vmul.f32 %v1314_v56, %v1293_v49  ;;  %v1338_v26 = vmul.f32 %v1314_v56, %v1294_v40 }
 0x1bf   : > { %v1339_v47 = vmul.f32 %v1314_v56, %v1295_v52  ;;  %v1340_v6 = vmul.f32 %v1314_v56, %v1296_v29  ;;  %v1341_v2 = vmul.f32 %v1314_v56, %v1297_v5  ;;  %v1342_v44 = vmul.f32 %v1314_v56, %v1298_v60 }
 0x1c0   : > { %v1343_v34 = vmul.f32 %v1314_v56, %v1299_v23  ;;  %v1344_v62 = vmul.f32 %v1314_v56, %v1300_v32  ;;  %v1345_v63 = vmul.f32 %v1314_v56, %v1301_v22  ;;  %v1346_v8 = vmul.f32 %v1314_v56, %v1302_v0 }
 0x1c1   : > { %v1347_v53 = vmul.f32 %v1314_v56, %v1303_v37  ;;  %v1348_v41 = vmul.f32 %v1314_v56, %v1304_v10  ;;  %v3388_v1 = vmul.f32 %v1314_v56, %v1305_v11  ;;  %v3390_v43 = vmul.f32 %v1314_v56, %v1306_v9 }
 0x1c2   : > { %v3392_v42 = vmul.f32 %v1314_v56, %v1307_v57  ;;  %v3394_v51 = vmul.f32 %v1314_v56, %v1308_v36  ;;  %v3397_v13 = vadd.f32 %v3386_v48, %v1315_v46  ;;  %v3399_v12 = vmul.f32 %v1314_v56, %v1309_v19 }
 0x1c3   : > { %v3401_v15 = vmul.f32 %v1314_v56, %v1310_v31  ;;  %v3403_v49 = vmul.f32 %v1314_v56, %v1311_v30  ;;  %v3406_v40 = vadd.f32 %v3386_v48, %v1316_v61  ;;  %v3409_v52 = vadd.f32 %v3386_v48, %v1317_v20 }
 0x1c4   : > { %5414 = vst [vmem:[#allocation28_spill] sm:$0xff] %v3397_v13  ;;  %v3412_v29 = vadd.f32 %v3386_v48, %v1318_v14  ;;  %v3415_v5 = vadd.f32 %v3386_v48, %v1319_v25  ;;  %v3418_v60 = vadd.f32 %v3386_v48, %v1320_v17  ;;  %v3421_v23 = vadd.f32 %v3386_v48, %v1321_v16 }
 0x1c5   : > { %5415 = vst [vmem:[#allocation27_spill] sm:$0xff] %v3406_v40  ;;  %v3424_v56 = vadd.f32 %v3386_v48, %v1322_v24  ;;  %v3427_v32 = vadd.f32 %v3386_v48, %v1323_v4  ;;  %v3430_v22 = vadd.f32 %v3386_v48, %v1324_v3  ;;  %v3433_v0 = vadd.f32 %v3386_v48, %v1325_v39 }
 0x1c6   : > { %5416 = vst [vmem:[#allocation34_spill] sm:$0xff] %v3409_v52  ;;  %v3436_v37 = vadd.f32 %v3386_v48, %v1326_v33  ;;  %v3439_v10 = vadd.f32 %v3386_v48, %v1327_v59  ;;  %v1401_v11 = vsub.f32 0.0, %v3397_v13  ;;  %v3443_v9 = vadd.f32 %v3386_v48, %v1328_v7 }
 0x1c7   : > { %5417 = vst [vmem:[#allocation33_spill] sm:$0xff] %v3412_v29  ;;  %v3446_v57 = vadd.f32 %v3386_v48, %v1329_v58  ;;  %v3449_v36 = vadd.f32 %v3386_v48, %v1330_v35  ;;  %v1402_v19 = vsub.f32 0.0, %v3406_v40  ;;  %v3453_v27 = vadd.f32 %v3386_v48, %v1331_v45 }
 0x1c8   : > { %5418 = vst [vmem:[#allocation30_spill] sm:$0xff] %v3415_v5  ;;  %v3456_v31 = vadd.f32 %v3386_v48, %v1332_v21  ;;  %v3459_v50 = vadd.f32 %v3386_v48, %v1333_v28  ;;  %v1403_v30 = vsub.f32 0.0, %v3409_v52  ;;  %v3463_v46 = vadd.f32 %v3386_v48, %v1334_v38 }
 0x1c9   : > { %5419 = vst [vmem:[#allocation39_spill] sm:$0xff] %v3418_v60  ;;  %v3466_v61 = vadd.f32 %v3386_v48, %v1335_v54  ;;  %v3469_v20 = vadd.f32 %v3386_v48, %v1336_v55  ;;  %v1404_v14 = vsub.f32 0.0, %v3412_v29  ;;  %v3473_v25 = vadd.f32 %v3386_v48, %v1337_v18 }
 0x1ca   : > { %5420 = vst [vmem:[#allocation38_spill] sm:$0xff] %v3421_v23  ;;  %v3476_v17 = vadd.f32 %v3386_v48, %v1338_v26  ;;  %v1405_v16 = vsub.f32 0.0, %v3415_v5  ;;  %v1442_v24 = vmul.f32 1.442695, %v1401_v11  ;;  %v3480_v4 = vadd.f32 %v3386_v48, %v1339_v47 }
 0x1cb   : > { %5421 = vst [vmem:[#allocation40_spill] sm:$0xff] %v3424_v56  ;;  %v3483_v3 = vadd.f32 %v3386_v48, %v1340_v6  ;;  %v1406_v39 = vsub.f32 0.0, %v3418_v60  ;;  %v1444_v33 = vmul.f32 1.442695, %v1402_v19  ;;  %v3487_v59 = vadd.f32 %v3386_v48, %v1341_v2 }
 0x1cc   : > { %5422 = vst [vmem:[#allocation45_spill] sm:$0xff] %v3427_v32  ;;  %v3490_v7 = vadd.f32 %v3386_v48, %v1342_v44  ;;  %v1407_v58 = vsub.f32 0.0, %v3421_v23  ;;  %v1446_v35 = vmul.f32 1.442695, %v1403_v30  ;;  %v3494_v45 = vadd.f32 %v3386_v48, %v1343_v34 }
 0x1cd   : > { %5423 = vst [vmem:[#allocation44_spill] sm:$0xff] %v3430_v22  ;;  %v3497_v21 = vadd.f32 %v3386_v48, %v1344_v62  ;;  %v1408_v28 = vsub.f32 0.0, %v3424_v56  ;;  %v1448_v38 = vmul.f32 1.442695, %v1404_v14  ;;  %v3501_v54 = vadd.f32 %v3386_v48, %v1345_v63 }
 0x1ce   : > { %5424 = vst [vmem:[#allocation46_spill] sm:$0xff] %v3433_v0  ;;  %v1409_v55 = vsub.f32 0.0, %v3427_v32  ;;  %2383 = vpow2.f32 %v1442_v24  ;;  %v1450_v18 = vmul.f32 1.442695, %v1405_v16  ;;  %v3505_v26 = vadd.f32 %v3386_v48, %v1346_v8 }
 0x1cf   : > { %5425 = vst [vmem:[#allocation50_spill] sm:$0xff] %v3436_v37  ;;  %v1410_v47 = vsub.f32 0.0, %v3430_v22  ;;  %2385 = vpow2.f32 %v1444_v33  ;;  %v1452_v6 = vmul.f32 1.442695, %v1406_v39  ;;  %v3509_v2 = vadd.f32 %v3386_v48, %v1347_v53 }
 0x1d0   : > { %5426 = vst [vmem:[#allocation49_spill] sm:$0xff] %v3439_v10  ;;  %v1411_v44 = vsub.f32 0.0, %v3433_v0  ;;  %2387 = vpow2.f32 %v1446_v35  ;;  %v1454_v34 = vmul.f32 1.442695, %v1407_v58  ;;  %v3513_v62 = vadd.f32 %v3386_v48, %v1348_v41 }
 0x1d1   : > { %5427 = vst [vmem:[#allocation52_spill] sm:$0xff] %v3443_v9  ;;  %v1412_v63 = vsub.f32 0.0, %v3436_v37  ;;  %2389 = vpow2.f32 %v1448_v38  ;;  %v1456_v11 = vmul.f32 1.442695, %v1408_v28  ;;  %v3518_v8 = vadd.f32 %v3386_v48, %v3388_v1 }
 0x1d2   : > { %5428 = vst [vmem:[#allocation56_spill] sm:$0xff] %v3446_v57  ;;  %v1413_v19 = vsub.f32 0.0, %v3439_v10  ;;  %2391 = vpow2.f32 %v1450_v18  ;;  %v1458_v53 = vmul.f32 1.442695, %v1409_v55  ;;  %v3523_v30 = vadd.f32 %v3386_v48, %v3390_v43 }
 0x1d3   : > { %5429 = vst [vmem:[#allocation55_spill] sm:$0xff] %v3449_v36  ;;  %v1414_v14 = vsub.f32 0.0, %v3443_v9  ;;  %2393 = vpow2.f32 %v1452_v6  ;;  %v1460_v41 = vmul.f32 1.442695, %v1410_v47  ;;  %v3530_v24 = vadd.f32 %v3386_v48, %v3392_v42 }
 0x1d4   : > { %5430 = vst [vmem:[#allocation59_spill] sm:$0xff] %v3453_v27  ;;  %v3526_v16 = vpop.eup %2383  ;;  %v1415_v1 = vsub.f32 0.0, %v3446_v57  ;;  %2395 = vpow2.f32 %v1454_v34  ;;  %v1462_v39 = vmul.f32 1.442695, %v1411_v44  ;;  %v3537_v43 = vadd.f32 %v3386_v48, %v3394_v51 }
 0x1d5   : > { %5431 = vst [vmem:[#allocation60_spill] sm:$0xff] %v3456_v31  ;;  %v3533_v33 = vpop.eup %2385  ;;  %v1416_v58 = vsub.f32 0.0, %v3449_v36  ;;  %2397 = vpow2.f32 %v1456_v11  ;;  %v1464_v35 = vmul.f32 1.442695, %v1412_v63  ;;  %v3544_v42 = vadd.f32 %v3386_v48, %v3399_v12 }
 0x1d6   : > { %5432 = vst [vmem:[#allocation61_spill] sm:$0xff] %v3459_v50  ;;  %v3540_v28 = vpop.eup %2387  ;;  %v1417_v38 = vsub.f32 0.0, %v3453_v27  ;;  %2399 = vpow2.f32 %v1458_v53  ;;  %v1466_v55 = vmul.f32 1.442695, %v1413_v19  ;;  %v3551_v51 = vadd.f32 %v3386_v48, %v3401_v15 }
 0x1d7   : > { %5433 = vst [vmem:[#allocation62_spill] sm:$0xff] %v3463_v46  ;;  %v3547_v18 = vpop.eup %2389  ;;  %v1418_v47 = vsub.f32 0.0, %v3456_v31  ;;  %2401 = vpow2.f32 %v1460_v41  ;;  %v1468_v6 = vmul.f32 1.442695, %v1414_v14  ;;  %v3558_v12 = vadd.f32 %v3386_v48, %v3403_v49 }
 0x1d8   : > { %5434 = vst [vmem:[#allocation63_spill] sm:$0xff] %v3466_v61  ;;  %v3554_v44 = vpop.eup %2391  ;;  %v1419_v34 = vsub.f32 0.0, %v3459_v50  ;;  %2403 = vpow2.f32 %v1462_v39  ;;  %v1470_v63 = vmul.f32 1.442695, %v1415_v1  ;;  %v1420_v19 = vsub.f32 0.0, %v3463_v46 }
 0x1d9   : > { %5435 = vst [vmem:[#allocation64_spill] sm:$0xff] %v3469_v20  ;;  %v3561_v11 = vpop.eup %2393  ;;  %v1421_v15 = vsub.f32 0.0, %v3466_v61  ;;  %2405 = vpow2.f32 %v1464_v35  ;;  %v1472_v53 = vmul.f32 1.442695, %v1416_v58  ;;  %v1422_v14 = vsub.f32 0.0, %v3469_v20 }
 0x1da   : > { %5436 = vst [vmem:[#allocation65_spill] sm:$0xff] %v3473_v25  ;;  %v3565_v41 = vpop.eup %2395  ;;  %v1423_v31 = vsub.f32 0.0, %v3473_v25  ;;  %2407 = vpow2.f32 %v1466_v55  ;;  %v1474_v48 = vmul.f32 1.442695, %v1417_v38  ;;  %v1424_v1 = vsub.f32 0.0, %v3476_v17 }
 0x1db   : > { %5437 = vst [vmem:[#allocation66_spill] sm:$0xff] %v3476_v17  ;;  %v3569_v49 = vpop.eup %2397  ;;  %v1425_v39 = vsub.f32 0.0, %v3480_v4  ;;  %2409 = vpow2.f32 %v1468_v6  ;;  %v1476_v46 = vmul.f32 1.442695, %v1418_v47  ;;  %v1426_v58 = vsub.f32 0.0, %v3483_v3 }
 0x1dc   : > { %5438 = vst [vmem:[#allocation67_spill] sm:$0xff] %v3480_v4  ;;  %v3573_v50 = vpop.eup %2399  ;;  %v1427_v35 = vsub.f32 0.0, %v3487_v59  ;;  %2411 = vpow2.f32 %v1470_v63  ;;  %v1478_v20 = vmul.f32 1.442695, %v1419_v34  ;;  %v1428_v38 = vsub.f32 0.0, %v3490_v7 }
 0x1dd   : > { %5439 = vst [vmem:[#allocation68_spill] sm:$0xff] %v3483_v3  ;;  %v3577_v61 = vpop.eup %2401  ;;  %v1429_v55 = vsub.f32 0.0, %v3494_v45  ;;  %2413 = vpow2.f32 %v1472_v53  ;;  %v1480_v17 = vmul.f32 1.442695, %v1420_v19  ;;  %v1430_v47 = vsub.f32 0.0, %v3497_v21 }
 0x1de   : > { %5440 = vst [vmem:[#allocation69_spill] sm:$0xff] %v3487_v59  ;;  %v3581_v25 = vpop.eup %2403  ;;  %v1431_v6 = vsub.f32 0.0, %v3501_v54  ;;  %2415 = vpow2.f32 %v1474_v48  ;;  %v1482_v3 = vmul.f32 1.442695, %v1421_v15  ;;  %v1432_v34 = vsub.f32 0.0, %v3505_v26 }
 0x1df   : > { %5441 = vst [vmem:[#allocation70_spill] sm:$0xff] %v3490_v7  ;;  %v3585_v4 = vpop.eup %2405  ;;  %v1433_v63 = vsub.f32 0.0, %v3509_v2  ;;  %2417 = vpow2.f32 %v1476_v46  ;;  %v1484_v7 = vmul.f32 1.442695, %v1422_v14  ;;  %v1434_v19 = vsub.f32 0.0, %v3513_v62 }
 0x1e0   : > { %5442 = vst [vmem:[#allocation71_spill] sm:$0xff] %v3494_v45  ;;  %v3589_v59 = vpop.eup %2407  ;;  %v1435_v53 = vsub.f32 0.0, %v3518_v8  ;;  %2419 = vpow2.f32 %v1478_v20  ;;  %v1436_v15 = vsub.f32 0.0, %v3523_v30  ;;  %v1437_v48 = vsub.f32 0.0, %v3530_v24 }
 0x1e1   : > { %5443 = vst [vmem:[#allocation72_spill] sm:$0xff] %v3497_v21  ;;  %v1486_v21 = vmul.f32 1.442695, %v1423_v31  ;;  %v3593_v45 = vpop.eup %2409  ;;  %2421 = vpow2.f32 %v1480_v17  ;;  %v1438_v46 = vsub.f32 0.0, %v3537_v43  ;;  %v1439_v14 = vsub.f32 0.0, %v3544_v42 }
 0x1e2   : > { %5444 = vst [vmem:[#allocation73_spill] sm:$0xff] %v3501_v54  ;;  %v3597_v54 = vpop.eup %2411  ;;  %2423 = vpow2.f32 %v1482_v3  ;;  %v1440_v31 = vsub.f32 0.0, %v3551_v51  ;;  %v1441_v20 = vsub.f32 0.0, %v3558_v12  ;;  %v1494_v17 = vmul.f32 1.442695, %v1427_v35 }
 0x1e3   : > { %5445 = vst [vmem:[#allocation74_spill] sm:$0xff] %v3505_v26  ;;  %v1488_v26 = vmul.f32 1.442695, %v1424_v1  ;;  %2425 = vpow2.f32 %v1484_v7  ;;  %v1496_v1 = vmul.f32 1.442695, %v1428_v38 }
 0x1e4   : > { %5446 = vst [vmem:[#allocation75_spill] sm:$0xff] %v3509_v2  ;;  %v3601_v2 = vpop.eup %2413  ;;  %2427 = vpow2.f32 %v1486_v21  ;;  %v1504_v3 = vmul.f32 1.442695, %v1432_v34  ;;  %v1506_v36 = vmul.f32 1.442695, %v1433_v63  ;;  %v3610_v21 = vadd.f32 1.0, %v3526_v16 }
 0x1e5   : > { %5447 = vst [vmem:[#allocation76_spill] sm:$0xff] %v3513_v62  ;;  %v1490_v62 = vmul.f32 1.442695, %v1425_v39  ;;  %2429 = vpow2.f32 %v1488_v26  ;;  %v1508_v57 = vmul.f32 1.442695, %v1434_v19  ;;  %v3627_v34 = vadd.f32 1.0, %v3547_v18 }
 0x1e6   : > { %5448 = vst [vmem:[#allocation77_spill] sm:$0xff] %v3518_v8  ;;  %v3605_v8 = vpop.eup %2415  ;;  %v1512_v7 = vmul.f32 1.442695, %v1436_v15  ;;  %v3612_v38 = vmul.f32 1.442695, %v1438_v46  ;;  %v3630_v63 = vadd.f32 1.0, %v3554_v44  ;;  %vm1570_vm4 = vweird.f32 %v3610_v21 }
 0x1e7   : > { %5449 = vst [vmem:[#allocation78_spill] sm:$0xff] %v3523_v30  ;;  %v1492_v30 = vmul.f32 1.442695, %v1426_v58  ;;  %v2418_v27 = vpop.eup %2417  ;;  %2431 = vpow2.f32 %v1490_v62  ;;  %v3607_v58 = vmul.f32 1.442695, %v1437_v48  ;;  %v3639_v15 = vadd.f32 1.0, %v3569_v49 }
 0x1e8   : > { %5450 = vst [vmem:[#allocation79_spill] sm:$0xff] %v3530_v24  ;;  %v1498_v24 = vmul.f32 1.442695, %v1429_v55  ;;  %v2420_v39 = vpop.eup %2419  ;;  %v3614_v26 = vmul.f32 1.442695, %v1439_v14  ;;  %v3617_v55 = vadd.f32 1.0, %v3533_v33  ;;  %vm1615_vm9 = vweird.f32 %v3627_v34 }
 0x1e9   : > { %5451 = vst [vmem:[#allocation80_spill] sm:$0xff] %v3537_v43  ;;  %v1500_v43 = vmul.f32 1.442695, %v1430_v47  ;;  %v2422_v9 = vpop.eup %2421  ;;  %2433 = vpow2.f32 %v1492_v30  ;;  %v3619_v47 = vmul.f32 1.442695, %v1440_v31  ;;  %v3633_v33 = vadd.f32 1.0, %v3561_v11 }
 0x1ea   : > { %5452 = vst [vmem:[#allocation81_spill] sm:$0xff] %v3544_v42  ;;  %v1502_v42 = vmul.f32 1.442695, %v1431_v6  ;;  %v2424_v35 = vpop.eup %2423  ;;  %2435 = vpow2.f32 %v1494_v17  ;;  %v3621_v30 = vmul.f32 1.442695, %v1441_v20  ;;  %v3624_v6 = vadd.f32 1.0, %v3540_v28 }
 0x1eb   : > { %5453 = vst [vmem:[#allocation82_spill] sm:$0xff] %v3551_v51  ;;  %v1510_v51 = vmul.f32 1.442695, %v1435_v53  ;;  %v2426_v62 = vpop.eup %2425  ;;  %2437 = vpow2.f32 %v1496_v1  ;;  %v3636_v53 = vadd.f32 1.0, %v3565_v41  ;;  %v1576_v28 = vand.u32 2147483648, %v3610_v21 }
 0x1ec   : > { %5454 = vst [vmem:[#allocation83_spill] sm:$0xff] %v3558_v12  ;;  %v2428_v16 = vpop.eup %2427  ;;  %2439 = vpow2.f32 %v1498_v24  ;;  %v3643_v18 = vadd.f32 1.0, %v3573_v50  ;;  %v3646_v44 = vadd.f32 1.0, %v3577_v61  ;;  %v1591_v11 = vand.u32 2147483648, %v3617_v55 }
 0x1ed   : > { %v2430_v19 = vpop.eup %2429  ;;  %2441 = vpow2.f32 %v1500_v43  ;;  %v3650_v43 = vadd.f32 1.0, %v3581_v25  ;;  %v3653_v41 = vadd.f32 1.0, %v3585_v4  ;;  %v3657_v50 = vadd.f32 1.0, %v3589_v59 }
 0x1ee   : > { %v2432_v24 = vpop.eup %2431  ;;  %2443 = vpow2.f32 %v1502_v42  ;;  %v3660_v61 = vadd.f32 1.0, %v3593_v45  ;;  %v3664_v25 = vadd.f32 1.0, %v3597_v54  ;;  %v3666_v31 = vor.u32 1.1754944e-38, %v1576_v28 }
 0x1ef   : > { %v2434_v48 = vpop.eup %2433  ;;  %2445 = vpow2.f32 %v1504_v3  ;;  %v1606_v4 = vand.u32 2147483648, %v3624_v6  ;;  %v3673_v59 = vor.u32 1.1754944e-38, %v1591_v11  ;;  %v1621_v45 = vand.u32 2147483648, %v3627_v34 }
 0x1f0   : > { %v2436_v46 = vpop.eup %2435  ;;  %2447 = vpow2.f32 %v1506_v36  ;;  %v3670_v36 = vadd.f32 1.0, %v3601_v2  ;;  %v3679_v54 = vadd.f32 1.0, %v2418_v27  ;;  %v3683_v2 = vadd.f32 1.0, %v2420_v39 }
 0x1f1   : > { %v2438_v14 = vpop.eup %2437  ;;  %2449 = vpow2.f32 %v1508_v57  ;;  %v3677_v57 = vadd.f32 1.0, %v3605_v8  ;;  %v1636_v11 = vand.u32 2147483648, %v3630_v63  ;;  %v3687_v49 = vadd.f32 1.0, %v2422_v9 }
 0x1f2   : > { %v2440_v20 = vpop.eup %2439  ;;  %2451 = vrcp.f32 %v3610_v21  ;;  %v3689_v8 = vadd.f32 1.0, %v2424_v35  ;;  %v3691_v27 = vor.u32 1.1754944e-38, %v1606_v4  ;;  %v3694_v1 = vor.u32 1.1754944e-38, %v1621_v45 }
 0x1f3   : > { %v2442_v17 = vpop.eup %2441  ;;  %2453 = vrcp.f32 %v3617_v55  ;;  %v1651_v39 = vand.u32 2147483648, %v3633_v33  ;;  %v3698_v10 = vadd.f32 1.0, %v2426_v62  ;;  %v3700_v37 = vadd.f32 1.0, %v2428_v16 }
 0x1f4   : > { %v2444_v3 = vpop.eup %2443  ;;  %2455 = vpow2.f32 %v1510_v51  ;;  %5455 = vst [vmem:[#allocation84_spill] sm:$0xff] %v3689_v8  ;;  %v3706_v35 = vadd.f32 1.0, %v2430_v19  ;;  %v3709_v4 = vor.u32 1.1754944e-38, %v1636_v11  ;;  %v1666_v45 = vand.u32 2147483648, %v3636_v53 }
 0x1f5   : > { %v2446_v42 = vpop.eup %2445  ;;  %2457 = vpow2.f32 %v1512_v7  ;;  %5456 = vst [vmem:[#allocation85_spill] sm:$0xff] %v3698_v10  ;;  %v3715_v62 = vadd.f32 1.0, %v2432_v24  ;;  %v3717_v16 = vadd.f32 1.0, %v2434_v48  ;;  %v1681_v9 = vand.u32 2147483648, %v3639_v15 }
 0x1f6   : > { %v2448_v12 = vpop.eup %2447  ;;  %2459 = vrcp.f32 %v3624_v6  ;;  %5457 = vst [vmem:[#allocation86_spill] sm:$0xff] %v3700_v37  ;;  %v3721_v19 = vadd.f32 1.0, %v2436_v46  ;;  %v3723_v22 = vor.u32 1.1754944e-38, %v1651_v39  ;;  %v3727_v56 = vadd.f32 1.0, %v2438_v14 }
 0x1f7   : > { %v2450_v28 = vpop.eup %2449  ;;  %2461 = vrcp.f32 %v3627_v34  ;;  %5458 = vst [vmem:[#allocation87_spill] sm:$0xff] %v3706_v35  ;;  %v3739_v39 = vor.u32 1.1754944e-38, %v1666_v45  ;;  %v3745_v14 = vadd.f32 1.0, %v2444_v3  ;;  %v3753_v23 = vadd.f32 1.0, %v2446_v42 }
 0x1f8   : > { %v3704_v7 = vpop.eup %2451  ;;  %2463 = vrcp.f32 %v3630_v63  ;;  %5459 = vst [vmem:[#allocation88_spill] sm:$0xff] %v3715_v62  ;;  %v1696_v45 = vand.u32 2147483648, %v3643_v18  ;;  %v3757_v29 = vadd.f32 1.0, %v2448_v12  ;;  %v1711_v3 = vand.u32 2147483648, %v3646_v44 }
 0x1f9   : > { %v3712_v51 = vpop.eup %2453  ;;  %2465 = vpow2.f32 %v3607_v58  ;;  %5460 = vst [vmem:[#allocation89_spill] sm:$0xff] %v3717_v16  ;;  %v3729_v58 = vadd.f32 1.0, %v2440_v20  ;;  %v3748_v20 = vor.u32 1.1754944e-38, %v1681_v9  ;;  %v3765_v40 = vadd.f32 1.0, %v2450_v28 }
 0x1fa   : > { %v2456_v0 = vpop.eup %2455  ;;  %2467 = vpow2.f32 %v3612_v38  ;;  %5461 = vst [vmem:[#allocation90_spill] sm:$0xff] %v3721_v19  ;;  %v1566_v38 = vmul.f32 %v3704_v7, %v3610_v21  ;;  %v1581_v46 = vmul.f32 %v3712_v51, %v3617_v55  ;;  %v1726_v28 = vand.u32 2147483648, %v3650_v43 }
 0x1fb   : > { %v2458_v32 = vpop.eup %2457  ;;  %2469 = vpow2.f32 %v3614_v26  ;;  %5462 = vst [vmem:[#allocation91_spill] sm:$0xff] %v3727_v56  ;;  %v3743_v26 = vadd.f32 1.0, %v2442_v17  ;;  %vm1585_vm5 = vweird.f32 %v3617_v55  ;;  %vm1600_vm6 = vweird.f32 %v3624_v6 }
 0x1fc   : > { %5463 = vst [vmem:[#allocation92_spill] sm:$0xff] %v3729_v58  ;;  %v3732_v48 = vpop.eup %2459  ;;  %2471 = vrcp.f32 %v3633_v33  ;;  %v1567_v52 = vsub.f32 1.0, %v1566_v38  ;;  %vm1571_vm7 = vweird.f32 %v3704_v7  ;;  %vm1586_vm8 = vweird.f32 %v3712_v51 }
 0x1fd   : > { %v3741_v11 = vpop.eup %2461  ;;  %5464 = vst [vmem:[#allocation93_spill] sm:$0xff] %v3743_v26  ;;  %2473 = vrcp.f32 %v3636_v53  ;;  %v1596_v42 = vmul.f32 %v3732_v48, %v3624_v6  ;;  %vm1630_vm12 = vweird.f32 %v3630_v63  ;;  %vm3856_vm14 = vmor %vm1570_vm4, %vm1571_vm7  ;;  %vm1601_vm15 = vweird.f32 %v3732_v48 }
 0x1fe   : > { %5465 = vst [vmem:[#allocation94_spill] sm:$0xff] %v3745_v14  ;;  %v3750_v24 = vpop.eup %2463  ;;  %2475 = vpow2.f32 %v3619_v47  ;;  %v1582_v47 = vsub.f32 1.0, %v1581_v46  ;;  %v1611_v12 = vmul.f32 %v3741_v11, %v3627_v34  ;;  %v3783_v46 = vadd.f32 1.0, %v2458_v32  ;;  %vm3873_vm3 = vmor %vm1585_vm5, %vm1586_vm8 }
 0x1ff   : > { %5466 = vst [vmem:[#allocation95_spill] sm:$0xff] %v3753_v23  ;;  %v2466_v5 = vpop.eup %2465  ;;  %2477 = vrcp.f32 %v3639_v15  ;;  %v1626_v13 = vmul.f32 %v3750_v24, %v3630_v63  ;;  %v3788_v23 = vor.u32 1.1754944e-38, %v1711_v3  ;;  %v1597_v58 = vsub.f32 1.0, %v1596_v42 }
 0x200   : > { %5467 = vst [vmem:[#allocation96_spill] sm:$0xff] %v3757_v29  ;;  %v2468_v9 = vpop.eup %2467  ;;  %2479 = vpow2.f32 %v3621_v30  ;;  %v3774_v29 = vadd.f32 1.0, %v2456_v0  ;;  %v3777_v30 = vor.u32 1.1754944e-38, %v1696_v45  ;;  %v1568_v45 = vmul.f32 %v3704_v7, %v1567_v52 }
 0x201   : > { %v2470_v60 = vpop.eup %2469  ;;  %5468 = vst [vmem:[#allocation97_spill] sm:$0xff] %v3765_v40  ;;  %2481 = vrcp.f32 %v3643_v18  ;;  %v3785_v40 = vadd.f32 1.0, %v2466_v5  ;;  %v3791_v14 = vadd.f32 1.0, %v2468_v9  ;;  %v1583_v26 = vmul.f32 %v3712_v51, %v1582_v47 }
 0x202   : > { %v3772_v17 = vpop.eup %2471  ;;  %5469 = vst [vmem:[#allocation98_spill] sm:$0xff] %v3774_v29  ;;  %2483 = vrcp.f32 %v3646_v44  ;;  %v1612_v32 = vsub.f32 1.0, %v1611_v12  ;;  %v3805_v9 = vor.u32 1.1754944e-38, %v1726_v28  ;;  %v1569_v0 = vadd.f32 %v3704_v7, %v1568_v45 }
 0x203   : > { %v3781_v38 = vpop.eup %2473  ;;  %5470 = vst [vmem:[#allocation99_spill] sm:$0xff] %v3783_v46  ;;  %v1627_v46 = vsub.f32 1.0, %v1626_v13  ;;  %v1641_v5 = vmul.f32 %v3772_v17, %v3633_v33  ;;  %2485 = vrcp.f32 %v3650_v43  ;;  %v5475_v28 = vand.u32 2147483647, %v3610_v21 }
 0x204   : > { %5471 = vst [vmem:[#allocation100_spill] sm:$0xff] %v3785_v40  ;;  %v2476_v29 = vpop.eup %2475  ;;  %v3800_v40 = vadd.f32 1.0, %v2470_v60  ;;  %v1656_v52 = vmul.f32 %v3781_v38, %v3636_v53  ;;  %v1741_v60 = vand.u32 2147483648, %v3653_v41  ;;  %2487 = vrcp.f32 %v3653_v41 }
 0x205   : > { %5472 = vst [vmem:[#allocation101_spill] sm:$0xff] %v3791_v14  ;;  %v3795_v56 = vpop.eup %2477  ;;  %v3810_v13 = vadd.f32 1.0, %v2476_v29  ;;  %vm3821_vm10 = vcmp.eq.f32.partialorder %v5475_v28, 8.507059e+37  ;;  %v1584_v29 = vadd.f32 %v3712_v51, %v1583_v26  ;;  %v1598_v14 = vmul.f32 %v3732_v48, %v1597_v58 }
 0x206   : > { %v2480_v3 = vpop.eup %2479  ;;  %5473 = vst [vmem:[#allocation102_spill] sm:$0xff] %v3800_v40  ;;  %v1671_v45 = vmul.f32 %v3795_v56, %v3639_v15  ;;  %v1613_v28 = vmul.f32 %v3741_v11, %v1612_v32  ;;  %v1628_v19 = vmul.f32 %v3750_v24, %v1627_v46  ;;  %v1642_v16 = vsub.f32 1.0, %v1641_v5 }
 0x207   : > { %v3808_v42 = vpop.eup %2481  ;;  %5474 = vst [vmem:[#allocation103_spill] sm:$0xff] %v3810_v13  ;;  %v5478_v13 = vand.u32 2147483647, %v3617_v55  ;;  %v3839_v26 = vadd.f32 1.0, %v2480_v3  ;;  %v1657_v58 = vsub.f32 1.0, %v1656_v52  ;;  %2489 = vrcp.f32 %v3657_v50 }
 0x208   : > { %v3816_v12 = vpop.eup %2483  ;;  %v1686_v35 = vmul.f32 %v3808_v42, %v3643_v18  ;;  %vm1616_vm1 = vweird.f32 %v3741_v11  ;;  %vm1645_vm2 = vweird.f32 %v3633_v33  ;;  %2491 = vrcp.f32 %v3660_v61 }
 0x209   : > { %vm3828_vm11 = vcmp.eq.f32.partialorder %v5478_v13, 8.507059e+37  ;;  %5481 = vst [vmem:[#allocation104_spill] sm:$0xff] %v3839_v26  ;;  %v5482_v13 = vand.u32 2147483647, %v3624_v6  ;;  %v3850_v32 = vpop.eup %2485  ;;  %v1701_v5 = vmul.f32 %v3816_v12, %v3646_v44  ;;  %v1573_v3 = vsel %vm3856_vm14, %v3704_v7, %v1569_v0 }
 0x20a   : > { %v1599_v52 = vadd.f32 %v3732_v48, %v1598_v14  ;;  %vm1631_vm7 = vweird.f32 %v3750_v24  ;;  %v5492_v7 = vand.u32 2147483647, %v3630_v63  ;;  %vm1660_vm5 = vweird.f32 %v3636_v53 }
 0x20b   : > { %vm3843_vm13 = vcmp.eq.f32.partialorder %v5482_v13, 8.507059e+37  ;;  %v5489_v13 = vand.u32 2147483647, %v3627_v34  ;;  %v1672_v55 = vsub.f32 1.0, %v1671_v45  ;;  %v1588_v14 = vsel %vm3873_vm3, %v3712_v51, %v1584_v29  ;;  %v3903_v45 = vpop.eup %2487  ;;  %vm3909_vm3 = vmor %vm1600_vm6, %vm1601_vm15 }
 0x20c   : > { %vm3887_vm14 = vcmp.eq.f32.partialorder %v5492_v7, 8.507059e+37  ;;  %v1614_v46 = vadd.f32 %v3741_v11, %v1613_v28  ;;  %v1643_v37 = vmul.f32 %v3772_v17, %v1642_v16  ;;  %v1658_v10 = vmul.f32 %v3781_v38, %v1657_v58  ;;  %vm3926_vm6 = vmor %vm1615_vm9, %vm1616_vm1 }
 0x20d   : > { %vm3880_vm4 = vcmp.eq.f32.partialorder %v5489_v13, 8.507059e+37  ;;  %v1629_v13 = vadd.f32 %v3750_v24, %v1628_v19  ;;  %v1687_v7 = vsub.f32 1.0, %v1686_v35  ;;  %v1716_v8 = vmul.f32 %v3850_v32, %v3650_v43  ;;  %v3917_v28 = vpop.eup %2489  ;;  %vm3965_vm1 = vmor %vm1630_vm12, %vm1631_vm7 }
 0x20e   : > { %2493 = vrcp.f32 %v3664_v25  ;;  %v1702_v16 = vsub.f32 1.0, %v1701_v5  ;;  %v3913_v19 = vor.u32 1.1754944e-38, %v1741_v60  ;;  %v1754_v35 = vand.u32 2147483647, %v3657_v50 }
 0x20f   : > { %v1756_v29 = vand.u32 2147483648, %v3657_v50  ;;  %v1603_v58 = vsel %vm3909_vm3, %v3732_v48, %v1599_v52  ;;  %vm1646_vm15 = vweird.f32 %v3772_v17  ;;  %v5499_v60 = vand.u32 2147483647, %v3633_v33  ;;  %v3946_v52 = vpop.eup %2491 }
 0x210   : > { %vm1661_vm8 = vweird.f32 %v3781_v38  ;;  %v5502_v48 = vand.u32 2147483647, %v3636_v53  ;;  %v1673_v34 = vmul.f32 %v3795_v56, %v1672_v55  ;;  %vm1690_vm9 = vweird.f32 %v3643_v18  ;;  %vm3997_vm7 = vmor %vm1645_vm2, %vm1646_vm15 }
 0x211   : > { %vm3933_vm0 = vcmp.eq.f32.partialorder %v5499_v60, 8.507059e+37  ;;  %v3951_v51 = vsel %vm3821_vm10, %v3666_v31, %v1573_v3  ;;  %v3956_v60 = vsel %vm3828_vm11, %v3673_v59, %v1588_v14  ;;  %v1644_v31 = vadd.f32 %v3772_v17, %v1643_v37  ;;  %vm4031_vm2 = vmor %vm1660_vm5, %vm1661_vm8 }
 0x212   : > { %vm3940_vm3 = vcmp.eq.f32.partialorder %v5502_v48, 8.507059e+37  ;;  %v1618_v48 = vsel %vm3926_vm6, %v3741_v11, %v1614_v46  ;;  %vm1705_vm10 = vweird.f32 %v3646_v44  ;;  %v1633_v40 = vsel %vm3965_vm1, %v3750_v24, %v1629_v13 }
 0x213   : > { %v1659_v59 = vadd.f32 %v3781_v38, %v1658_v10  ;;  %v5507_v11 = vand.u32 2147483647, %v3639_v15  ;;  %v1688_v63 = vmul.f32 %v3808_v42, %v1687_v7  ;;  %v1717_v3 = vsub.f32 1.0, %v1716_v8 }
 0x214   : > { %v3985_v37 = vsel %vm3843_vm13, %v3691_v27, %v1603_v58  ;;  %vm1676_vm12 = vweird.f32 %v3795_v56  ;;  %v1703_v24 = vmul.f32 %v3816_v12, %v1702_v16  ;;  %v1731_v10 = vmul.f32 %v3903_v45, %v3653_v41  ;;  %v3991_v14 = vpop.eup %2493 }
 0x215   : > { %vm3977_vm11 = vcmp.eq.f32.partialorder %v5507_v11, 8.507059e+37  ;;  %v1674_v27 = vadd.f32 %v3795_v56, %v1673_v34  ;;  %v5512_v62 = vand.u32 2147483647, %v3643_v18  ;;  %vm1720_vm6 = vweird.f32 %v3650_v43 }
 0x216   : > { %v1746_v13 = vmul.f32 %v3917_v28, %v3657_v50  ;;  %v1761_v33 = vmul.f32 %v3946_v52, %v3660_v61  ;;  %2495 = vrcp.f32 %v3670_v36  ;;  %v4017_v7 = vsel %vm3880_vm4, %v3694_v1, %v1618_v48 }
 0x217   : > { %vm4004_vm13 = vcmp.eq.f32.partialorder %v5512_v62, 8.507059e+37  ;;  %v4022_v16 = vsel %vm3887_vm14, %v3709_v4, %v1633_v40  ;;  %v1648_v58 = vsel %vm3997_vm7, %v3772_v17, %v1644_v31  ;;  %v5517_v1 = vand.u32 2147483647, %v3646_v44 }
 0x218   : > { %2497 = vrcp.f32 %v3677_v57  ;;  %v1663_v4 = vsel %vm4031_vm2, %v3781_v38, %v1659_v59  ;;  %v1689_v17 = vadd.f32 %v3808_v42, %v1688_v63  ;;  %vm1691_vm14 = vweird.f32 %v3808_v42 }
 0x219   : > { %vm4037_vm4 = vcmp.eq.f32.partialorder %v5517_v1, 8.507059e+37  ;;  %v1718_v53 = vmul.f32 %v3850_v32, %v1717_v3  ;;  %vm5520_vm5 = vweird.f32 %v3639_v15  ;;  %v1704_v34 = vadd.f32 %v3816_v12, %v1703_v24  ;;  %vm4085_vm7 = vmor %vm1690_vm9, %vm1691_vm14 }
 0x21a   : > { %vm4052_vm8 = vmor %vm5520_vm5, %vm1676_vm12  ;;  %vm1706_vm15 = vweird.f32 %v3816_v12  ;;  %v1732_v48 = vsub.f32 1.0, %v1731_v10  ;;  %v1776_v38 = vmul.f32 %v3991_v14, %v3664_v25  ;;  %v5523_v31 = vand.u32 2147483647, %v3650_v43 }
 0x21b   : > { %v1678_v55 = vsel %vm4052_vm8, %v3795_v56, %v1674_v27  ;;  %vm1735_vm12 = vweird.f32 %v3653_v41  ;;  %v1747_v40 = vsub.f32 1.0, %v1746_v13  ;;  %v1762_v59 = vsub.f32 1.0, %v1761_v33 }
 0x21c   : > { %vm4065_vm1 = vcmp.eq.f32.partialorder %v5523_v31, 8.507059e+37  ;;  %v1771_v11 = vand.u32 2147483648, %v3660_v61  ;;  %v4074_v63 = vsel %vm3933_vm0, %v3723_v22, %v1648_v58  ;;  %v4079_v56 = vsel %vm3940_vm3, %v3739_v39, %v1663_v4  ;;  %v4093_v22 = vpop.eup %2495  ;;  %vm4102_vm0 = vmor %vm1705_vm10, %vm1706_vm15 }
 0x21d   : > { %vm1721_vm2 = vweird.f32 %v3850_v32  ;;  %vm1750_vm5 = vweird.f32 %v3657_v50  ;;  %v4091_v5 = vor.u32 1.1754944e-38, %v1756_v29  ;;  %v1693_v39 = vsel %vm4085_vm7, %v3808_v42, %v1689_v17 }
 0x21e   : > { %v1719_v21 = vadd.f32 %v3850_v32, %v1718_v53  ;;  %vm1765_vm3 = vweird.f32 %v3660_v61  ;;  %v1769_v29 = vand.u32 2147483647, %v3660_v61  ;;  %2499 = vrcp.f32 %v3679_v54  ;;  %v4110_v24 = vpop.eup %2497  ;;  %vm4133_vm9 = vmor %vm1720_vm6, %vm1721_vm2 }
 0x21f   : > { %v4115_v42 = vsel %vm3977_vm11, %v3748_v20, %v1678_v55  ;;  %v1708_v44 = vsel %vm4102_vm0, %v3816_v12, %v1704_v34  ;;  %v1733_v10 = vmul.f32 %v3903_v45, %v1732_v48  ;;  %v1777_v8 = vsub.f32 1.0, %v1776_v38 }
 0x220   : > { %v1748_v27 = vmul.f32 %v3917_v28, %v1747_v40  ;;  %v1763_v62 = vmul.f32 %v3946_v52, %v1762_v59  ;;  %v1772_v13 = vor.u32 1.1754944e-38, %v1771_v11  ;;  %2501 = vrcp.f32 %v3683_v2 }
 0x221   : > { %v4127_v47 = vsel %vm4004_vm13, %v3777_v30, %v1693_v39  ;;  %v5532_v12 = vand.u32 2147483647, %v3653_v41  ;;  %vm1780_vm11 = vweird.f32 %v3664_v25  ;;  %v1784_v46 = vand.u32 2147483647, %v3664_v25  ;;  %v5547_v39 = vld [vmem:[#allocation84_spill] sm:$0xff] }
 0x222   : > { %v1791_v30 = vmul.f32 %v4093_v22, %v3670_v36  ;;  %v4150_v43 = vsel %vm4037_vm4, %v3788_v23, %v1708_v44  ;;  %v1723_v58 = vsel %vm4133_vm9, %v3850_v32, %v1719_v21  ;;  %vm1736_vm13 = vweird.f32 %v3903_v45  ;;  %v5548_v21 = vld [vmem:[#allocation85_spill] sm:$0xff] }
 0x223   : > { %vm4139_vm10 = vcmp.eq.f32.partialorder %v5532_v12, 8.507059e+37  ;;  %vm4158_vm6 = vcmp.eq.f32.partialorder %v1754_v35, 8.507059e+37  ;;  %vm4162_vm14 = vcmp.eq.f32.partialorder %v1769_v29, 8.507059e+37  ;;  %v1806_v23 = vmul.f32 %v4110_v24, %v3677_v57  ;;  %vm4185_vm15 = vmor %vm1735_vm12, %vm1736_vm13 }
 0x224   : > { %v1734_v26 = vadd.f32 %v3903_v45, %v1733_v10  ;;  %vm1751_vm4 = vweird.f32 %v3917_v28  ;;  %v1778_v32 = vmul.f32 %v3991_v14, %v1777_v8  ;;  %2503 = vrcp.f32 %v3687_v49  ;;  %v4172_v4 = vpop.eup %2499 }
 0x225   : > { %v1749_v35 = vadd.f32 %v3917_v28, %v1748_v27  ;;  %v1764_v17 = vadd.f32 %v3946_v52, %v1763_v62  ;;  %vm1766_vm8 = vweird.f32 %v3946_v52  ;;  %v1786_v53 = vand.u32 2147483648, %v3664_v25  ;;  %vm4198_vm0 = vmor %vm1750_vm5, %vm1751_vm4 }
 0x226   : > { %v4181_v0 = vsel %vm4065_vm1, %v3805_v9, %v1723_v58  ;;  %vm1781_vm7 = vweird.f32 %v3991_v14  ;;  %vm4190_vm2 = vcmp.eq.f32.partialorder %v1784_v46, 8.507059e+37  ;;  %v1792_v38 = vsub.f32 1.0, %v1791_v30  ;;  %v4194_v55 = vpop.eup %2501  ;;  %vm4210_vm1 = vmor %vm1765_vm3, %vm1766_vm8 }
 0x227   : > { %v1799_v41 = vand.u32 2147483647, %v3670_v36  ;;  %v1801_v31 = vand.u32 2147483648, %v3670_v36  ;;  %v1807_v15 = vsub.f32 1.0, %v1806_v23  ;;  %v1814_v40 = vand.u32 2147483647, %v3677_v57  ;;  %vm4241_vm5 = vmor %vm1780_vm11, %vm1781_vm7 }
 0x228   : > { %v1738_v59 = vsel %vm4185_vm15, %v3903_v45, %v1734_v26  ;;  %v1779_v50 = vadd.f32 %v3991_v14, %v1778_v32  ;;  %v1821_v3 = vmul.f32 %v4172_v4, %v3679_v54  ;;  %2505 = vrcp.f32 %v5547_v39  ;;  %v5555_v23 = vld [vmem:[#allocation86_spill] sm:$0xff] }
 0x229   : > { %v1753_v18 = vsel %vm4198_vm0, %v3917_v28, %v1749_v35  ;;  %v1768_v45 = vsel %vm4210_vm1, %v3946_v52, %v1764_v17  ;;  %v1816_v61 = vand.u32 2147483648, %v3677_v57  ;;  %2507 = vrcp.f32 %v5548_v21 }
 0x22a   : > { %v4226_v29 = vpop.eup %2503  ;;  %v1787_v44 = vor.u32 1.1754944e-38, %v1786_v53  ;;  %v1793_v10 = vmul.f32 %v4093_v22, %v1792_v38  ;;  %vm1795_vm12 = vweird.f32 %v3670_v36  ;;  %v1836_v8 = vmul.f32 %v4194_v55, %v3683_v2  ;;  %v5556_v38 = vld [vmem:[#allocation87_spill] sm:$0xff] }
 0x22b   : > { %v4235_v28 = vsel %vm4139_vm10, %v3913_v19, %v1738_v59  ;;  %v1802_v27 = vor.u32 1.1754944e-38, %v1801_v31  ;;  %v1808_v62 = vmul.f32 %v4110_v24, %v1807_v15  ;;  %vm1810_vm3 = vweird.f32 %v3677_v57 }
 0x22c   : > { %v4250_v20 = vsel %vm4158_vm6, %v4091_v5, %v1753_v18  ;;  %v4254_v19 = vsel %vm4162_vm14, %v1772_v13, %v1768_v45  ;;  %v1783_v25 = vsel %vm4241_vm5, %v3991_v14, %v1779_v50  ;;  %vm4259_vm9 = vcmp.eq.f32.partialorder %v1799_v41, 8.507059e+37  ;;  %v5563_v50 = vld [vmem:[#allocation88_spill] sm:$0xff] }
 0x22d   : > { %v1822_v33 = vsub.f32 1.0, %v1821_v3  ;;  %vm1796_vm10 = vweird.f32 %v4093_v22  ;;  %vm4264_vm11 = vcmp.eq.f32.partialorder %v1814_v40, 8.507059e+37  ;;  %v1817_v5 = vor.u32 1.1754944e-38, %v1816_v61 }
 0x22e   : > { %v1831_v30 = vand.u32 2147483648, %v3679_v54  ;;  %v1851_v13 = vmul.f32 %v4226_v29, %v3687_v49  ;;  %v4271_v58 = vpop.eup %2505  ;;  %v1794_v14 = vadd.f32 %v4093_v22, %v1793_v10  ;;  %v1829_v6 = vand.u32 2147483647, %v3679_v54  ;;  %vm4293_vm14 = vmor %vm1795_vm12, %vm1796_vm10 }
 0x22f   : > { %v1837_v1 = vsub.f32 1.0, %v1836_v8  ;;  %2509 = vrcp.f32 %v5555_v23  ;;  %v4276_v26 = vpop.eup %2507  ;;  %v4280_v32 = vsel %vm4190_vm2, %v1787_v44, %v1783_v25  ;;  %v1809_v35 = vadd.f32 %v4110_v24, %v1808_v62 }
 0x230   : > { %vm1811_vm13 = vweird.f32 %v4110_v24  ;;  %vm1825_vm6 = vweird.f32 %v3679_v54  ;;  %v1823_v17 = vmul.f32 %v4172_v4, %v1822_v33  ;;  %v1844_v53 = vand.u32 2147483647, %v3683_v2 }
 0x231   : > { %v1846_v34 = vand.u32 2147483648, %v3683_v2  ;;  %2511 = vrcp.f32 %v5556_v38  ;;  %v1832_v9 = vor.u32 1.1754944e-38, %v1831_v30  ;;  %vm1840_vm4 = vweird.f32 %v3683_v2  ;;  %vm4305_vm8 = vmor %vm1810_vm3, %vm1811_vm13 }
 0x232   : > { %v1852_v41 = vsub.f32 1.0, %v1851_v13  ;;  %v1866_v31 = vmul.f32 %v4271_v58, %v5547_v39  ;;  %v1798_v15 = vsel %vm4293_vm14, %v4093_v22, %v1794_v14  ;;  %vm4309_vm15 = vcmp.eq.f32.partialorder %v1829_v6, 8.507059e+37  ;;  %v5570_v14 = vld [vmem:[#allocation89_spill] sm:$0xff] }
 0x233   : > { %v1838_v59 = vmul.f32 %v4194_v55, %v1837_v1  ;;  %v1881_v11 = vmul.f32 %v4276_v26, %v5548_v21  ;;  %2513 = vrcp.f32 %v5563_v50  ;;  %v1813_v22 = vsel %vm4305_vm8, %v4110_v24, %v1809_v35 }
 0x234   : > { %vm1826_vm7 = vweird.f32 %v4172_v4  ;;  %v1859_v57 = vand.u32 2147483647, %v3687_v49  ;;  %v1861_v3 = vand.u32 2147483648, %v3687_v49  ;;  %v1824_v45 = vadd.f32 %v4172_v4, %v1823_v17 }
 0x235   : > { %v4323_v18 = vpop.eup %2509  ;;  %vm4326_vm2 = vcmp.eq.f32.partialorder %v1844_v53, 8.507059e+37  ;;  %v1847_v44 = vor.u32 1.1754944e-38, %v1846_v34  ;;  %v1876_v10 = vand.u32 2147483648, %v5547_v39  ;;  %v4333_v24 = vsel %vm4259_vm9, %v1802_v27, %v1798_v15  ;;  %vm4349_vm12 = vmor %vm1825_vm6, %vm1826_vm7  ;;  %v5573_v15 = vld [vmem:[#allocation90_spill] sm:$0xff] }
 0x236   : > { %v1853_v8 = vmul.f32 %v4226_v29, %v1852_v41  ;;  %vm1855_vm0 = vweird.f32 %v3687_v49  ;;  %v1867_v52 = vsub.f32 1.0, %v1866_v31  ;;  %v4341_v25 = vsel %vm4264_vm11, %v1817_v5, %v1813_v22 }
 0x237   : > { %v4337_v62 = vpop.eup %2511  ;;  %v1839_v33 = vadd.f32 %v4194_v55, %v1838_v59  ;;  %vm1841_vm1 = vweird.f32 %v4194_v55  ;;  %v1882_v30 = vsub.f32 1.0, %v1881_v11  ;;  %vm4353_vm5 = vcmp.eq.f32.partialorder %v1859_v57, 8.507059e+37  ;;  %v5578_v57 = vld [vmem:[#allocation91_spill] sm:$0xff] }
 0x238   : > { %v1862_v46 = vor.u32 1.1754944e-38, %v1861_v3  ;;  %vm1870_vm3 = vweird.f32 %v5547_v39  ;;  %v1874_v5 = vand.u32 2147483647, %v5547_v39  ;;  %v1896_v13 = vmul.f32 %v4323_v18, %v5555_v23  ;;  %vm4371_vm10 = vmor %vm1840_vm4, %vm1841_vm1  ;;  %v5594_v59 = vld [vmem:[#allocation95_spill] sm:$0xff] }
 0x239   : > { %2515 = vrcp.f32 %v5570_v14  ;;  %v4362_v6 = vpop.eup %2513  ;;  %v1828_v54 = vsel %vm4349_vm12, %v4172_v4, %v1824_v45  ;;  %vm1856_vm9 = vweird.f32 %v4226_v29  ;;  %v1877_v1 = vor.u32 1.1754944e-38, %v1876_v10 }
 0x23a   : > { %v1891_v35 = vand.u32 2147483648, %v5548_v21  ;;  %v1854_v53 = vadd.f32 %v4226_v29, %v1853_v8  ;;  %v1868_v34 = vmul.f32 %v4271_v58, %v1867_v52  ;;  %v1889_v48 = vand.u32 2147483647, %v5548_v21  ;;  %vm4401_vm6 = vmor %vm1855_vm0, %vm1856_vm9 }
 0x23b   : > { %v1911_v4 = vmul.f32 %v4337_v62, %v5556_v38  ;;  %v1843_v41 = vsel %vm4371_vm10, %v4194_v55, %v1839_v33  ;;  %v1883_v31 = vmul.f32 %v4276_v26, %v1882_v30  ;;  %v1906_v2 = vand.u32 2147483648, %v5555_v23 }
 0x23c   : > { %2517 = vrcp.f32 %v5573_v15  ;;  %v4388_v40 = vsel %vm4309_vm15, %v1832_v9, %v1828_v54  ;;  %vm4390_vm11 = vcmp.eq.f32.partialorder %v1874_v5, 8.507059e+37  ;;  %vm1885_vm13 = vweird.f32 %v5548_v21  ;;  %v5581_v5 = vld [vmem:[#allocation92_spill] sm:$0xff] }
 0x23d   : > { %v1897_v11 = vsub.f32 1.0, %v1896_v13  ;;  %v1926_v55 = vmul.f32 %v4362_v6, %v5563_v50  ;;  %vm1871_vm14 = vweird.f32 %v4271_v58  ;;  %v1892_v9 = vor.u32 1.1754944e-38, %v1891_v35 }
 0x23e   : > { %v1904_v36 = vand.u32 2147483647, %v5555_v23  ;;  %2519 = vrcp.f32 %v5578_v57  ;;  %v4412_v45 = vsel %vm4326_vm2, %v1847_v44, %v1843_v41  ;;  %v1858_v49 = vsel %vm4401_vm6, %v4226_v29, %v1854_v53  ;;  %vm4439_vm7 = vmor %vm1870_vm3, %vm1871_vm14  ;;  %v5584_v53 = vld [vmem:[#allocation93_spill] sm:$0xff] }
 0x23f   : > { %v4408_v3 = vpop.eup %2515  ;;  %v1869_v10 = vadd.f32 %v4271_v58, %v1868_v34  ;;  %vm4418_vm4 = vcmp.eq.f32.partialorder %v1889_v48, 8.507059e+37  ;;  %vm1900_vm8 = vweird.f32 %v5555_v23  ;;  %v1912_v52 = vsub.f32 1.0, %v1911_v4 }
 0x240   : > { %v1884_v33 = vadd.f32 %v4276_v26, %v1883_v31  ;;  %vm1886_vm15 = vweird.f32 %v4276_v26  ;;  %v1907_v61 = vor.u32 1.1754944e-38, %v1906_v2  ;;  %v1921_v44 = vand.u32 2147483648, %v5556_v38 }
 0x241   : > { %v1898_v30 = vmul.f32 %v4323_v18, %v1897_v11  ;;  %v1919_v29 = vand.u32 2147483647, %v5556_v38  ;;  %v1927_v27 = vsub.f32 1.0, %v1926_v55  ;;  %2521 = vrcp.f32 %v5581_v5  ;;  %vm4452_vm0 = vmor %vm1885_vm13, %vm1886_vm15 }
 0x242   : > { %v4429_v13 = vpop.eup %2517  ;;  %v4433_v54 = vsel %vm4353_vm5, %v1862_v46, %v1858_v49  ;;  %vm1915_vm2 = vweird.f32 %v5556_v38  ;;  %v1941_v17 = vmul.f32 %v4408_v3, %v5570_v14  ;;  %2523 = vrcp.f32 %v5584_v53 }
 0x243   : > { %v1873_v12 = vsel %vm4439_vm7, %v4271_v58, %v1869_v10  ;;  %vm4456_vm1 = vcmp.eq.f32.partialorder %v1904_v36, 8.507059e+37  ;;  %v1913_v34 = vmul.f32 %v4337_v62, %v1912_v52  ;;  %v1934_v48 = vand.u32 2147483647, %v5563_v50  ;;  %v5591_v36 = vld [vmem:[#allocation94_spill] sm:$0xff] }
 0x244   : > { %v1936_v4 = vand.u32 2147483648, %v5563_v50  ;;  %v4463_v41 = vpop.eup %2519  ;;  %v1888_v21 = vsel %vm4452_vm0, %v4276_v26, %v1884_v33  ;;  %vm1901_vm12 = vweird.f32 %v4323_v18  ;;  %v1922_v58 = vor.u32 1.1754944e-38, %v1921_v44 }
 0x245   : > { %v1951_v31 = vand.u32 2147483648, %v5570_v14  ;;  %v1899_v2 = vadd.f32 %v4323_v18, %v1898_v30  ;;  %vm4471_vm5 = vcmp.eq.f32.partialorder %v1919_v29, 8.507059e+37  ;;  %v1928_v55 = vmul.f32 %v4362_v6, %v1927_v27 }
 0x246   : > { %v1956_v22 = vmul.f32 %v4429_v13, %v5573_v15  ;;  %2525 = vrcp.f32 %v5591_v36  ;;  %v4481_v26 = vsel %vm4390_vm11, %v1877_v1, %v1873_v12  ;;  %vm1916_vm3 = vweird.f32 %v4337_v62  ;;  %vm4505_vm11 = vmor %vm1900_vm8, %vm1901_vm12 }
 0x247   : > { %vm1930_vm9 = vweird.f32 %v5563_v50  ;;  %v1942_v49 = vsub.f32 1.0, %v1941_v17  ;;  %v4485_v10 = vpop.eup %2521  ;;  %v1914_v52 = vadd.f32 %v4337_v62, %v1913_v34  ;;  %vm4488_vm10 = vcmp.eq.f32.partialorder %v1934_v48, 8.507059e+37  ;;  %vm4520_vm14 = vmor %vm1915_vm2, %vm1916_vm3 }
 0x248   : > { %v1937_v44 = vor.u32 1.1754944e-38, %v1936_v4  ;;  %v1971_v30 = vmul.f32 %v4463_v41, %v5578_v57  ;;  %2527 = vrcp.f32 %v5594_v59  ;;  %v4495_v1 = vpop.eup %2523  ;;  %v4499_v29 = vsel %vm4418_vm4, %v1892_v9, %v1888_v21 }
 0x249   : > { %vm1931_vm13 = vweird.f32 %v4362_v6  ;;  %vm1945_vm6 = vweird.f32 %v5570_v14  ;;  %v1949_v35 = vand.u32 2147483647, %v5570_v14  ;;  %v1903_v8 = vsel %vm4505_vm11, %v4323_v18, %v1899_v2  ;;  %v5599_v2 = vld [vmem:[#allocation96_spill] sm:$0xff] }
 0x24a   : > { %v1929_v9 = vadd.f32 %v4362_v6, %v1928_v55  ;;  %v1952_v17 = vor.u32 1.1754944e-38, %v1951_v31  ;;  %v1957_v12 = vsub.f32 1.0, %v1956_v22  ;;  %v1943_v46 = vmul.f32 %v4408_v3, %v1942_v49  ;;  %vm4545_vm4 = vmor %vm1930_vm9, %vm1931_vm13 }
 0x24b   : > { %v1964_v34 = vand.u32 2147483647, %v5573_v15  ;;  %v1966_v48 = vand.u32 2147483648, %v5573_v15  ;;  %v1986_v18 = vmul.f32 %v4485_v10, %v5581_v5  ;;  %v1918_v21 = vsel %vm4520_vm14, %v4337_v62, %v1914_v52 }
 0x24c   : > { %v4529_v4 = vpop.eup %2525  ;;  %v1972_v38 = vsub.f32 1.0, %v1971_v30  ;;  %v2001_v31 = vmul.f32 %v4495_v1, %v5584_v53  ;;  %2529 = vrcp.f32 %v5599_v2  ;;  %v4539_v55 = vsel %vm4456_vm1, %v1907_v61, %v1903_v8 }
 0x24d   : > { %5600 = vst [vmem:[#allocation84_spill] sm:$0xff] %v4539_v55  ;;  %vm4549_vm8 = vcmp.eq.f32.partialorder %v1949_v35, 8.507059e+37  ;;  %vm1960_vm15 = vweird.f32 %v5573_v15  ;;  %v1979_v49 = vand.u32 2147483647, %v5578_v57  ;;  %v1981_v39 = vand.u32 2147483648, %v5578_v57 }
 0x24e   : > { %v4556_v61 = vpop.eup %2527  ;;  %v1933_v50 = vsel %vm4545_vm4, %v4362_v6, %v1929_v9  ;;  %vm1946_vm7 = vweird.f32 %v4408_v3  ;;  %v1958_v52 = vmul.f32 %v4429_v13, %v1957_v12  ;;  %vm1975_vm2 = vweird.f32 %v5578_v57 }
 0x24f   : > { %v1996_v30 = vand.u32 2147483648, %v5581_v5  ;;  %v4567_v27 = vsel %vm4471_vm5, %v1922_v58, %v1918_v21  ;;  %v1944_v35 = vadd.f32 %v4408_v3, %v1943_v46  ;;  %v1987_v8 = vsub.f32 1.0, %v1986_v18  ;;  %vm4592_vm5 = vmor %vm1945_vm6, %vm1946_vm7 }
 0x250   : > { %v2016_v23 = vmul.f32 %v4529_v4, %v5591_v36  ;;  %vm4572_vm0 = vcmp.eq.f32.partialorder %v1964_v34, 8.507059e+37  ;;  %v1967_v9 = vor.u32 1.1754944e-38, %v1966_v48  ;;  %v1973_v12 = vmul.f32 %v4463_v41, %v1972_v38 }
 0x251   : > { %v1994_v22 = vand.u32 2147483647, %v5581_v5  ;;  %v2002_v55 = vsub.f32 1.0, %v2001_v31  ;;  %v4580_v58 = vsel %vm4488_vm10, %v1937_v44, %v1933_v50  ;;  %vm1961_vm1 = vweird.f32 %v4429_v13 }
 0x252   : > { %v1982_v11 = vor.u32 1.1754944e-38, %v1981_v39  ;;  %vm1990_vm12 = vweird.f32 %v5581_v5  ;;  %v2031_v46 = vmul.f32 %v4556_v61, %v5594_v59  ;;  %v4586_v34 = vpop.eup %2529  ;;  %v1959_v33 = vadd.f32 %v4429_v13, %v1958_v52  ;;  %v5611_v39 = vld [vmem:[#allocation97_spill] sm:$0xff]  ;;  %vm4616_vm11 = vmor %vm1960_vm15, %vm1961_vm1 }
 0x253   : > { %vm4597_vm3 = vcmp.eq.f32.partialorder %v1979_v49, 8.507059e+37  ;;  %v1997_v18 = vor.u32 1.1754944e-38, %v1996_v30  ;;  %vm2005_vm9 = vweird.f32 %v5584_v53  ;;  %v2009_v21 = vand.u32 2147483647, %v5584_v53 }
 0x254   : > { %v1948_v38 = vsel %vm4592_vm5, %v4408_v3, %v1944_v35  ;;  %v1988_v14 = vmul.f32 %v4485_v10, %v1987_v8  ;;  %v2017_v31 = vsub.f32 1.0, %v2016_v23  ;;  %2531 = vrcp.f32 %v5611_v39  ;;  %v5616_v23 = vld [vmem:[#allocation98_spill] sm:$0xff] }
 0x255   : > { %v1974_v50 = vadd.f32 %v4463_v41, %v1973_v12  ;;  %vm1976_vm10 = vweird.f32 %v4463_v41  ;;  %v2003_v49 = vmul.f32 %v4495_v1, %v2002_v55  ;;  %v2011_v52 = vand.u32 2147483648, %v5584_v53 }
 0x256   : > { %vm4620_vm13 = vcmp.eq.f32.partialorder %v1994_v22, 8.507059e+37  ;;  %vm2020_vm6 = vweird.f32 %v5591_v36  ;;  %v2024_v35 = vand.u32 2147483647, %v5591_v36  ;;  %v2032_v8 = vsub.f32 1.0, %v2031_v46  ;;  %vm4640_vm4 = vmor %vm1975_vm2, %vm1976_vm10 }
 0x257   : > { %v2046_v55 = vmul.f32 %v4586_v34, %v5599_v2  ;;  %2533 = vrcp.f32 %v5616_v23  ;;  %v4631_v15 = vsel %vm4549_vm8, %v1952_v17, %v1948_v38  ;;  %v1963_v12 = vsel %vm4616_vm11, %v4429_v13, %v1959_v33 }
 0x258   : > { %5617 = vst [vmem:[#allocation85_spill] sm:$0xff] %v4631_v15  ;;  %vm1991_vm14 = vweird.f32 %v4485_v10  ;;  %v2026_v22 = vand.u32 2147483648, %v5591_v36  ;;  %v1989_v48 = vadd.f32 %v4485_v10, %v1988_v14  ;;  %vm2006_vm15 = vweird.f32 %v4495_v1 }
 0x259   : > { %vm4646_vm8 = vcmp.eq.f32.partialorder %v2009_v21, 8.507059e+37  ;;  %v2018_v13 = vmul.f32 %v4529_v4, %v2017_v31  ;;  %v1978_v62 = vsel %vm4640_vm4, %v4463_v41, %v1974_v50  ;;  %v2004_v57 = vadd.f32 %v4495_v1, %v2003_v49  ;;  %vm4671_vm2 = vmor %vm1990_vm12, %vm1991_vm14 }
 0x25a   : > { %v2012_v33 = vor.u32 1.1754944e-38, %v2011_v52  ;;  %v2039_v38 = vand.u32 2147483647, %v5594_v59  ;;  %v4656_v30 = vpop.eup %2531  ;;  %v4660_v14 = vsel %vm4572_vm0, %v1967_v9, %v1963_v12  ;;  %vm4662_vm7 = vcmp.eq.f32.partialorder %v2024_v35, 8.507059e+37  ;;  %vm4691_vm12 = vmor %vm2005_vm9, %vm2006_vm15 }
 0x25b   : > { %v2033_v31 = vmul.f32 %v4556_v61, %v2032_v8  ;;  %v2047_v15 = vsub.f32 1.0, %v2046_v55  ;;  %vm2021_vm1 = vweird.f32 %v4529_v4  ;;  %v2027_v6 = vor.u32 1.1754944e-38, %v2026_v22  ;;  %v5642_v22 = vld [vmem:[#allocation27_spill] sm:$0xff] }
 0x25c   : > { %vm2035_vm0 = vweird.f32 %v5594_v59  ;;  %v2041_v9 = vand.u32 2147483648, %v5594_v59  ;;  %v4682_v49 = vsel %vm4597_vm3, %v1982_v11, %v1978_v62  ;;  %v1993_v5 = vsel %vm4671_vm2, %v4485_v10, %v1989_v48  ;;  %vm4719_vm10 = vmor %vm2020_vm6, %vm2021_vm1  ;;  %v5633_v62 = vld [vmem:[#allocation100_spill] sm:$0xff] }
 0x25d   : > { %v4678_v50 = vpop.eup %2533  ;;  %v2019_v35 = vadd.f32 %v4529_v4, %v2018_v13  ;;  %vm2050_vm5 = vweird.f32 %v5599_v2  ;;  %v2008_v11 = vsel %vm4691_vm12, %v4495_v1, %v2004_v57  ;;  %vm4700_vm3 = vcmp.eq.f32.partialorder %v2039_v38, 8.507059e+37  ;;  %v5632_v13 = vld [vmem:[#allocation99_spill] sm:$0xff] }
 0x25e   : > { %v2054_v10 = vand.u32 2147483647, %v5599_v2  ;;  %v2061_v53 = vmul.f32 %v4656_v30, %v5611_v39  ;;  %v2034_v8 = vadd.f32 %v4556_v61, %v2033_v31  ;;  %vm2036_vm9 = vweird.f32 %v4556_v61 }
 0x25f   : > { %v2048_v55 = vmul.f32 %v4586_v34, %v2047_v15  ;;  %v2056_v12 = vand.u32 2147483648, %v5599_v2  ;;  %v4713_v1 = vsel %vm4620_vm13, %v1997_v18, %v1993_v5  ;;  %v2042_v46 = vor.u32 1.1754944e-38, %v2041_v9  ;;  %vm4738_vm11 = vmor %vm2035_vm0, %vm2036_vm9  ;;  %v5641_v2 = vld [vmem:[#allocation28_spill] sm:$0xff] }
 0x260   : > { %v2076_v48 = vmul.f32 %v4678_v50, %v5616_v23  ;;  %2535 = vrcp.f32 %v5632_v13  ;;  %v2023_v3 = vsel %vm4719_vm10, %v4529_v4, %v2019_v35  ;;  %v2071_v18 = vand.u32 2147483648, %v5611_v39 }
 0x261   : > { %v2086_v15 = vand.u32 2147483648, %v5616_v23  ;;  %2537 = vrcp.f32 %v5633_v62  ;;  %v4734_v36 = vsel %vm4646_vm8, %v2012_v33, %v2008_v11  ;;  %vm4742_vm13 = vcmp.eq.f32.partialorder %v2054_v10, 8.507059e+37 }
 0x262   : > { %v2062_v4 = vsub.f32 1.0, %v2061_v53  ;;  %v2101_v31 = vand.u32 2147483648, %v5632_v13  ;;  %v2038_v41 = vsel %vm4738_vm11, %v4556_v61, %v2034_v8  ;;  %v2049_v17 = vadd.f32 %v4586_v34, %v2048_v55 }
 0x263   : > { %vm2051_vm6 = vweird.f32 %v4586_v34  ;;  %v2057_v59 = vor.u32 1.1754944e-38, %v2056_v12  ;;  %v4754_v33 = vsel %vm4662_vm7, %v2027_v6, %v2023_v3  ;;  %v2069_v9 = vand.u32 2147483647, %v5611_v39  ;;  %v5652_v6 = vld [vmem:[#allocation39_spill] sm:$0xff] }
 0x264   : > { %v2077_v5 = vsub.f32 1.0, %v2076_v48  ;;  %v2084_v52 = vand.u32 2147483647, %v5616_v23  ;;  %vm2065_vm14 = vweird.f32 %v5611_v39  ;;  %vm2066_vm4 = vweird.f32 %v4656_v30  ;;  %vm4773_vm15 = vmor %vm2050_vm5, %vm2051_vm6  ;;  %v5643_v48 = vld [vmem:[#allocation34_spill] sm:$0xff] }
 0x265   : > { %v4760_v35 = vor.u32 1.1754944e-38, %v2071_v18  ;;  %v4762_v61 = vor.u32 1.1754944e-38, %v2086_v15  ;;  %v4769_v21 = vsel %vm4700_vm3, %v2042_v46, %v2038_v41  ;;  %v2063_v53 = vmul.f32 %v4656_v30, %v2062_v4  ;;  %v5644_v4 = vld [vmem:[#allocation33_spill] sm:$0xff]  ;;  %v5648_v41 = vld [vmem:[#allocation30_spill] sm:$0xff]  ;;  %v5658_v15 = vld [vmem:[#allocation40_spill] sm:$0xff] }
 0x266   : > { %v4765_v10 = vpop.eup %2535  ;;  %5638 = vst [vmem:[#allocation86_spill] sm:$0xff] %v4769_v21  ;;  %vm2080_vm8 = vweird.f32 %v5616_v23  ;;  %vm2081_vm7 = vweird.f32 %v4678_v50  ;;  %v4780_v8 = vor.u32 1.1754944e-38, %v2101_v31  ;;  %v2053_v44 = vsel %vm4773_vm15, %v4586_v34, %v2049_v17  ;;  %vm4848_vm12 = vmor %vm2065_vm14, %vm2066_vm4 }
 0x267   : > { %v4782_v55 = vpop.eup %2537  ;;  %v2180_v12 = vmul.f32 %v3951_v51, %v5641_v2  ;;  %v2181_v46 = vmul.f32 %v3956_v60, %v5642_v22  ;;  %v2182_v3 = vmul.f32 %v3985_v37, %v5643_v48  ;;  %v2078_v18 = vmul.f32 %v4678_v50, %v2077_v5  ;;  %v5647_v60 = vld [vmem:[#allocation101_spill] sm:$0xff]  ;;  %v5653_v22 = vld [vmem:[#allocation38_spill] sm:$0xff]  ;;  %vm4868_vm9 = vmor %vm2080_vm8, %vm2081_vm7 }
 0x268   : > { %v2116_v57 = vand.u32 2147483648, %v5633_v62  ;;  %v2183_v31 = vmul.f32 %v4017_v7, %v5644_v4  ;;  %vm4798_vm2 = vcmp.eq.f32.partialorder %v2069_v9, 8.507059e+37  ;;  %v2091_v51 = vmul.f32 %v4765_v10, %v5632_v13  ;;  %v5654_v4 = vld [vmem:[#allocation6_spill] sm:$0xff] }
 0x269   : > { %2539 = vrcp.f32 %v5647_v60  ;;  %v2184_v17 = vmul.f32 %v4022_v16, %v5648_v41  ;;  %v4817_v7 = vsel %vm4742_vm13, %v2057_v59, %v2053_v44  ;;  %v2064_v9 = vadd.f32 %v4656_v30, %v2063_v53  ;;  %v5655_v59 = vld [vmem:[#allocation9_spill] sm:$0xff]  ;;  %v5657_v37 = vld [vmem:[#allocation102_spill] sm:$0xff] }
 0x26a   : > { %5649 = vst [vmem:[#allocation87_spill] sm:$0xff] %v4817_v7  ;;  %vm4820_vm1 = vcmp.eq.f32.partialorder %v2084_v52, 8.507059e+37  ;;  %v2106_v16 = vmul.f32 %v4782_v55, %v5633_v62  ;;  %v2185_v2 = vmul.f32 %v4074_v63, %v5652_v6  ;;  %v2186_v48 = vmul.f32 %v4079_v56, %v5653_v22  ;;  %v5656_v41 = vld [vmem:[#allocation5_spill] sm:$0xff]  ;;  %v5659_v7 = vld [vmem:[#allocation8_spill] sm:$0xff]  ;;  %v5660_v6 = vld [vmem:[#allocation103_spill] sm:$0xff] }
 0x26b   : > { %v2221_v38 = vmul.f32 %v2180_v12, %v5654_v4  ;;  %v2222_v44 = vmul.f32 %v2181_v46, %v5655_v59  ;;  %v2223_v53 = vmul.f32 %v2182_v3, %v5656_v41  ;;  %v2079_v52 = vadd.f32 %v4678_v50, %v2078_v18  ;;  %v5661_v56 = vld [vmem:[#allocation45_spill] sm:$0xff]  ;;  %v5662_v46 = vld [vmem:[#allocation2_spill] sm:$0xff]  ;;  %v5667_v18 = vld [vmem:[#allocation44_spill] sm:$0xff] }
 0x26c   : > { %2541 = vrcp.f32 %v5657_v37  ;;  %v2187_v11 = vmul.f32 %v4115_v42, %v5658_v15  ;;  %v2224_v21 = vmul.f32 %v2183_v31, %v5659_v7  ;;  %v2092_v63 = vsub.f32 1.0, %v2091_v51  ;;  %v5666_v42 = vld [vmem:[#allocation104_spill] sm:$0xff]  ;;  %v5668_v15 = vld [vmem:[#allocation3_spill] sm:$0xff]  ;;  %v5672_v7 = vld [vmem:[#allocation46_spill] sm:$0xff] }
 0x26d   : > { %2543 = vrcp.f32 %v5660_v6  ;;  %v2188_v12 = vmul.f32 %v4127_v47, %v5661_v56  ;;  %v2225_v22 = vmul.f32 %v2184_v17, %v5662_v46  ;;  %vm5663_vm0 = vcmask 523264   ;;  %v5673_v4 = vld [vmem:[#allocation12_spill] sm:$0xff] }
 0x26e   : > { %2262 = vst.msk [vmem:[%s4813_s12] sm:$0xff] %vm5663_vm0, %v2221_v38  ;;  %vm2096_vm5 = vweird.f32 %v4765_v10  ;;  %2545 = vrcp.f32 %v5666_v42  ;;  %v2189_v47 = vmul.f32 %v4150_v43, %v5667_v18  ;;  %v2226_v31 = vmul.f32 %v2185_v2, %v5668_v15  ;;  %vm5669_vm3 = vmmov %vm5663_vm0  ;;  %v5684_v46 = vld [vmem:[#allocation56_spill] sm:$0xff]  ;;  %v5688_v15 = vld [vmem:[#allocation7_spill] sm:$0xff] }
 0x26f   : > { %2263 = vst.msk [vmem:[%s4813_s12 + $0x8] sm:$0xff] %vm5669_vm3, %v2222_v44  ;;  %v4859_v51 = vpop.eup %2539  ;;  %v2068_v39 = vsel %vm4848_vm12, %v4656_v30, %v2064_v9  ;;  %v2131_v43 = vand.u32 2147483648, %v5647_v60  ;;  %v2190_v2 = vmul.f32 %v4181_v0, %v5672_v7  ;;  %v2227_v38 = vmul.f32 %v2186_v48, %v5673_v4  ;;  %vm5674_vm10 = vmmov %vm5663_vm0  ;;  %v5675_v9 = vld [vmem:[#allocation50_spill] sm:$0xff]  ;;  %v5676_v44 = vld [vmem:[#allocation11_spill] sm:$0xff] }
 0x270   : > { %2264 = vst.msk [vmem:[%s4813_s12 + $0x10] sm:$0xff] %vm5674_vm10, %v2223_v53  ;;  %v2083_v30 = vsel %vm4868_vm9, %v4678_v50, %v2079_v52  ;;  %vm2095_vm11 = vweird.f32 %v5632_v13  ;;  %v2107_v23 = vsub.f32 1.0, %v2106_v16  ;;  %v2191_v59 = vmul.f32 %v4235_v28, %v5675_v9  ;;  %vm5677_vm13 = vmmov %vm5663_vm0  ;;  %v5678_v48 = vld [vmem:[#allocation49_spill] sm:$0xff]  ;;  %v5679_v50 = vld [vmem:[#allocation4_spill] sm:$0xff] }
 0x271   : > { %v2228_v41 = vmul.f32 %v2187_v11, %v5676_v44  ;;  %2265 = vst.msk [vmem:[%s4813_s12 + $0x18] sm:$0xff] %vm5677_vm13, %v2224_v21  ;;  %v2093_v0 = vmul.f32 %v4765_v10, %v2092_v63  ;;  %vm2111_vm6 = vweird.f32 %v4782_v55  ;;  %v2192_v53 = vmul.f32 %v4250_v20, %v5678_v48  ;;  %vm5680_vm14 = vmmov %vm5663_vm0  ;;  %v5681_v21 = vld [vmem:[#allocation52_spill] sm:$0xff]  ;;  %v5682_v20 = vld [vmem:[#allocation15_spill] sm:$0xff] }
 0x272   : > { %v2229_v52 = vmul.f32 %v2188_v12, %v5679_v50  ;;  %2266 = vst.msk [vmem:[%s4813_s12 + $0x20] sm:$0xff] %vm5680_vm14, %v2225_v22  ;;  %v4894_v16 = vpop.eup %2541  ;;  %v4899_v28 = vsel %vm4798_vm2, %v4760_v35, %v2068_v39  ;;  %vm2110_vm4 = vweird.f32 %v5633_v62  ;;  %v4902_v11 = vor.u32 1.1754944e-38, %v2116_v57  ;;  %vm5683_vm15 = vmmov %vm5663_vm0  ;;  %v5685_v22 = vld [vmem:[#allocation14_spill] sm:$0xff]  ;;  %v5693_v7 = vld [vmem:[#allocation59_spill] sm:$0xff] }
 0x273   : > { %v2193_v63 = vmul.f32 %v4254_v19, %v5681_v21  ;;  %v2230_v56 = vmul.f32 %v2189_v47, %v5682_v20  ;;  %2267 = vst.msk [vmem:[%s4813_s12 + $0x28] sm:$0xff] %vm5683_vm15, %v2226_v31  ;;  %v4909_v12 = vpop.eup %2543  ;;  %v4914_v34 = vsel %vm4820_vm1, %v4762_v61, %v2083_v30  ;;  %v4916_v35 = vor.u32 1.1754944e-38, %v2131_v43  ;;  %vm5686_vm8 = vmmov %vm5663_vm0  ;;  %v5687_v61 = vld [vmem:[#allocation55_spill] sm:$0xff]  ;;  %v5741_v30 = vld [vmem:[#allocation70_spill] sm:$0xff] }
 0x274   : > { %v2194_v57 = vmul.f32 %v4280_v32, %v5684_v46  ;;  %v2231_v3 = vmul.f32 %v2190_v2, %v5685_v22  ;;  %2268 = vst.msk [vmem:[%s4813_s12 + $0x30] sm:$0xff] %vm5686_vm8, %v2227_v38  ;;  %v4923_v19 = vpop.eup %2545  ;;  %v2108_v18 = vmul.f32 %v4782_v55, %v2107_v23  ;;  %v2121_v5 = vmul.f32 %v4859_v51, %v5647_v60  ;;  %vm5689_vm7 = vmmov %vm5663_vm0  ;;  %v5706_v46 = vld [vmem:[#allocation20_spill] sm:$0xff] }
 0x275   : > { %v2195_v47 = vmul.f32 %v4333_v24, %v5687_v61  ;;  %v2232_v31 = vmul.f32 %v2191_v59, %v5688_v15  ;;  %2269 = vst.msk [vmem:[%s4813_s12 + $0x38] sm:$0xff] %vm5689_vm7, %v2228_v41  ;;  %v2094_v32 = vadd.f32 %v4765_v10, %v2093_v0  ;;  %v5690_v39 = vand.u32 2147483647, %v5632_v13  ;;  %v5694_v24 = vld [vmem:[#allocation17_spill] sm:$0xff]  ;;  %vm5695_vm1 = vmmov %vm5663_vm0  ;;  %v5699_v59 = vld [vmem:[#allocation60_spill] sm:$0xff] }
 0x276   : > { %v2136_v43 = vmul.f32 %v4894_v16, %v5657_v37  ;;  %v2196_v2 = vmul.f32 %v4341_v25, %v5693_v7  ;;  %v2233_v4 = vmul.f32 %v2192_v53, %v5694_v24  ;;  %2270 = vst.msk [vmem:[%s4813_s12 + $0x40] sm:$0xff] %vm5695_vm1, %v2229_v52  ;;  %v5696_v38 = vand.u32 2147483647, %v5633_v62  ;;  %v5700_v25 = vld [vmem:[#allocation16_spill] sm:$0xff]  ;;  %vm5701_vm12 = vmmov %vm5695_vm1  ;;  %v5702_v53 = vld [vmem:[#allocation61_spill] sm:$0xff] }
 0x277   : > { %vm4936_vm2 = vcmp.eq.f32.partialorder %v5690_v39, 8.507059e+37  ;;  %v2144_v23 = vand.u32 2147483647, %v5657_v37  ;;  %v2151_v9 = vmul.f32 %v4909_v12, %v5660_v6  ;;  %v2197_v44 = vmul.f32 %v4388_v40, %v5699_v59  ;;  %2271 = vst.msk [vmem:[%s4813_s12 + $0x48] sm:$0xff] %vm5701_vm12, %v2230_v56  ;;  %v5703_v52 = vld [vmem:[#allocation10_spill] sm:$0xff]  ;;  %vm5704_vm3 = vmmov %vm5695_vm1  ;;  %v5713_v15 = vld [vmem:[#allocation64_spill] sm:$0xff] }
 0x278   : > { %vm4949_vm0 = vcmp.eq.f32.partialorder %v5696_v38, 8.507059e+37  ;;  %v2234_v41 = vmul.f32 %v2193_v63, %v5700_v25  ;;  %v2146_v0 = vand.u32 2147483648, %v5657_v37  ;;  %v2166_v48 = vmul.f32 %v4923_v19, %v5666_v42  ;;  %2272 = vst.msk [vmem:[%s4813_s12 + $0x50] sm:$0xff] %vm5704_vm3, %v2231_v3  ;;  %v5705_v63 = vld [vmem:[#allocation62_spill] sm:$0xff]  ;;  %vm5707_vm10 = vmmov %vm5695_vm1  ;;  %v5714_v39 = vld [vmem:[#allocation13_spill] sm:$0xff] }
 0x279   : > { %v2198_v50 = vmul.f32 %v4412_v45, %v5702_v53  ;;  %v2235_v21 = vmul.f32 %v2194_v57, %v5703_v52  ;;  %v2109_v20 = vadd.f32 %v4782_v55, %v2108_v18  ;;  %v2122_v40 = vsub.f32 1.0, %v2121_v5  ;;  %2273 = vst.msk [vmem:[%s4813_s12 + $0x58] sm:$0xff] %vm5707_vm10, %v2232_v31  ;;  %vm4980_vm13 = vmor %vm2095_vm11, %vm2096_vm5  ;;  %v5710_v18 = vld [vmem:[#allocation63_spill] sm:$0xff]  ;;  %v5718_v7 = vld [vmem:[#allocation65_spill] sm:$0xff] }
 0x27a   : > { %vm2126_vm9 = vweird.f32 %v4859_v51  ;;  %v2199_v56 = vmul.f32 %v4433_v54, %v5705_v63  ;;  %v2236_v22 = vmul.f32 %v2195_v47, %v5706_v46  ;;  %v2137_v57 = vsub.f32 1.0, %v2136_v43  ;;  %v5711_v54 = vld [vmem:[#allocation19_spill] sm:$0xff]  ;;  %vm5712_vm14 = vmmov %vm5695_vm1  ;;  %v5726_v53 = vld [vmem:[#allocation18_spill] sm:$0xff] }
 0x27b   : > { %v2159_v3 = vand.u32 2147483647, %v5660_v6  ;;  %v2200_v5 = vmul.f32 %v4481_v26, %v5710_v18  ;;  %v2237_v61 = vmul.f32 %v2196_v2, %v5711_v54  ;;  %2274 = vst.msk [vmem:[%s4813_s12 + $0x60] sm:$0xff] %vm5712_vm14, %v2233_v4  ;;  %v2098_v47 = vsel %vm4980_vm13, %v4765_v10, %v2094_v32  ;;  %vm5715_vm11 = vmmov %vm5695_vm1  ;;  %v5720_v24 = vld [vmem:[#allocation23_spill] sm:$0xff]  ;;  %v5731_v63 = vld [vmem:[#allocation85_spill] sm:$0xff] }
 0x27c   : > { %vm2125_vm5 = vweird.f32 %v5647_v60  ;;  %v2152_v13 = vsub.f32 1.0, %v2151_v9  ;;  %v2201_v31 = vmul.f32 %v4499_v29, %v5713_v15  ;;  %v2238_v43 = vmul.f32 %v2197_v44, %v5714_v39  ;;  %2275 = vst.msk [vmem:[%s4813_s12 + $0x68] sm:$0xff] %vm5715_vm11, %v2234_v41  ;;  %vm5003_vm15 = vmor %vm2110_vm4, %vm2111_vm6  ;;  %v5719_v29 = vld [vmem:[#allocation84_spill] sm:$0xff]  ;;  %v5722_v9 = vld [vmem:[#allocation66_spill] sm:$0xff] }
 0x27d   : > { %vm2140_vm8 = vweird.f32 %v5657_v37  ;;  %v5008_v10 = vor.u32 1.1754944e-38, %v2146_v0  ;;  %v2167_v32 = vsub.f32 1.0, %v2166_v48  ;;  %v2202_v2 = vmul.f32 %v5719_v29, %v5718_v7  ;;  %vm5721_vm7 = vmmov %vm5695_vm1  ;;  %v5723_v44 = vld [vmem:[#allocation22_spill] sm:$0xff]  ;;  %v5725_v48 = vld [vmem:[#allocation67_spill] sm:$0xff]  ;;  %2278 = vst.msk [vmem:[%s4813_s12 + $0x80] sm:$0xff] %vm5695_vm1, %v2237_v61 }
 0x27e   : > { %v2239_v4 = vmul.f32 %v2198_v50, %v5720_v24  ;;  %2276 = vst.msk [vmem:[%s4813_s12 + $0x70] sm:$0xff] %vm5721_vm7, %v2235_v21  ;;  %v2113_v62 = vsel %vm5003_vm15, %v4782_v55, %v2109_v20  ;;  %v2123_v38 = vmul.f32 %v4859_v51, %v2122_v40  ;;  %vm2155_vm6 = vweird.f32 %v5660_v6  ;;  %vm5724_vm4 = vmmov %vm5695_vm1  ;;  %v5730_v40 = vld [vmem:[#allocation68_spill] sm:$0xff]  ;;  %v5736_v45 = vld [vmem:[#allocation69_spill] sm:$0xff] }
 0x27f   : > { %v2203_v59 = vmul.f32 %v4567_v27, %v5722_v9  ;;  %v2240_v25 = vmul.f32 %v2199_v56, %v5723_v44  ;;  %2277 = vst.msk [vmem:[%s4813_s12 + $0x78] sm:$0xff] %vm5724_vm4, %v2236_v22  ;;  %v2138_v41 = vmul.f32 %v4894_v16, %v2137_v57  ;;  %v2161_v0 = vand.u32 2147483648, %v5660_v6  ;;  %v5732_v56 = vld [vmem:[#allocation26_spill] sm:$0xff]  ;;  %vm5733_vm3 = vmmov %vm5695_vm1  ;;  %v5737_v18 = vld [vmem:[#allocation25_spill] sm:$0xff] }
 0x280   : > { %v2204_v55 = vmul.f32 %v4580_v58, %v5725_v48  ;;  %v2241_v50 = vmul.f32 %v2200_v5, %v5726_v53  ;;  %v2103_v27 = vsel %vm4936_vm2, %v4780_v8, %v2098_v47  ;;  %v5727_v52 = vand.u32 2147483647, %v5647_v60  ;;  %2279 = vst.msk [vmem:[%s4813_s12 + $0x88] sm:$0xff] %vm5733_vm3, %v2238_v43  ;;  %vm5738_vm10 = vmmov %vm5695_vm1  ;;  %v5742_v61 = vld [vmem:[#allocation21_spill] sm:$0xff]  ;;  %v5748_v26 = vld [vmem:[#allocation31_spill] sm:$0xff] }
 0x281   : > { %v2153_v20 = vmul.f32 %v4909_v12, %v2152_v13  ;;  %v2205_v58 = vmul.f32 %v5731_v63, %v5730_v40  ;;  %v2242_v46 = vmul.f32 %v2201_v31, %v5732_v56  ;;  %v2118_v8 = vsel %vm4949_vm0, %v4902_v11, %v2113_v62  ;;  %2280 = vst.msk [vmem:[%s4813_s12 + $0x90] sm:$0xff] %vm5738_vm10, %v2239_v4  ;;  %vm5743_vm14 = vmmov %vm5695_vm1  ;;  %v5744_v13 = vld [vmem:[#allocation71_spill] sm:$0xff]  ;;  %v5745_v31 = vld [vmem:[#allocation32_spill] sm:$0xff] }
 0x282   : > { %vm5037_vm12 = vcmp.eq.f32.partialorder %v5727_v52, 8.507059e+37  ;;  %vm5050_vm2 = vcmp.eq.f32.partialorder %v2144_v23, 8.507059e+37  ;;  %v2168_v22 = vmul.f32 %v4923_v19, %v2167_v32  ;;  %v2206_v57 = vmul.f32 %v4660_v14, %v5736_v45  ;;  %2281 = vst.msk [vmem:[%s4813_s12 + $0x98] sm:$0xff] %vm5743_vm14, %v2240_v25  ;;  %vm5746_vm15 = vmmov %vm5695_vm1  ;;  %v5752_v29 = vld [vmem:[#allocation73_spill] sm:$0xff]  ;;  %v5764_v48 = vld [vmem:[#allocation87_spill] sm:$0xff] }
 0x283   : > { %v2243_v5 = vmul.f32 %v2202_v2, %v5737_v18  ;;  %v2124_v54 = vadd.f32 %v4859_v51, %v2123_v38  ;;  %vm2141_vm13 = vweird.f32 %v4894_v16  ;;  %vm5062_vm0 = vcmp.eq.f32.partialorder %v2159_v3, 8.507059e+37  ;;  %2282 = vst.msk [vmem:[%s4813_s12 + $0xa0] sm:$0xff] %vm5746_vm15, %v2241_v50  ;;  %vm5749_vm4 = vmmov %vm5695_vm1  ;;  %v5753_v2 = vld [vmem:[#allocation24_spill] sm:$0xff]  ;;  %v5758_v38 = vld [vmem:[#allocation86_spill] sm:$0xff] }
 0x284   : > { %v2207_v23 = vmul.f32 %v4682_v49, %v5741_v30  ;;  %v2244_v47 = vmul.f32 %v2203_v59, %v5742_v61  ;;  %v2139_v14 = vadd.f32 %v4894_v16, %v2138_v41  ;;  %vm2170_vm11 = vweird.f32 %v5666_v42  ;;  %v5747_v49 = vld [vmem:[#allocation72_spill] sm:$0xff]  ;;  %2283 = vst.msk [vmem:[%s4813_s12 + $0xa8] sm:$0xff] %vm5749_vm4, %v2242_v46  ;;  %vm5089_vm1 = vmor %vm2125_vm5, %vm2126_vm9  ;;  %v5763_v41 = vld [vmem:[#allocation75_spill] sm:$0xff] }
 0x285   : > { %v2208_v15 = vmul.f32 %v4713_v1, %v5744_v13  ;;  %v2245_v3 = vmul.f32 %v2204_v55, %v5745_v31  ;;  %v2154_v39 = vadd.f32 %v4909_v12, %v2153_v20  ;;  %vm2156_vm7 = vweird.f32 %v4909_v12  ;;  %vm5754_vm10 = vmmov %vm5749_vm4  ;;  %v5759_v59 = vld [vmem:[#allocation36_spill] sm:$0xff]  ;;  %v5765_v53 = vld [vmem:[#allocation35_spill] sm:$0xff] }
 0x286   : > { %v2209_v43 = vmul.f32 %v4734_v36, %v5747_v49  ;;  %v2246_v32 = vmul.f32 %v2205_v58, %v5748_v26  ;;  %v2169_v7 = vadd.f32 %v4923_v19, %v2168_v22  ;;  %vm2171_vm3 = vweird.f32 %v4923_v19  ;;  %2284 = vst.msk [vmem:[%s4813_s12 + $0xb0] sm:$0xff] %vm5754_vm10, %v2243_v5  ;;  %vm5107_vm9 = vmor %vm2140_vm8, %vm2141_vm13  ;;  %v5769_v20 = vld [vmem:[#allocation76_spill] sm:$0xff]  ;;  %v5770_v63 = vld [vmem:[#allocation29_spill] sm:$0xff] }
 0x287   : > { %v2210_v36 = vmul.f32 %v4754_v33, %v5752_v29  ;;  %v2247_v24 = vmul.f32 %v2206_v57, %v5753_v2  ;;  %v2128_v60 = vsel %vm5089_vm1, %v4859_v51, %v2124_v54  ;;  %v2176_v62 = vand.u32 2147483648, %v5666_v42  ;;  %v5757_v33 = vld [vmem:[#allocation74_spill] sm:$0xff]  ;;  %vm5760_vm5 = vmmov %vm5749_vm4  ;;  %v5776_v57 = vld [vmem:[#allocation41_spill] sm:$0xff] }
 0x288   : > { %v2211_v9 = vmul.f32 %v5758_v38, %v5757_v33  ;;  %v2248_v44 = vmul.f32 %v2207_v23, %v5759_v59  ;;  %2285 = vst.msk [vmem:[%s4813_s12 + $0xb8] sm:$0xff] %vm5760_vm5, %v2244_v47  ;;  %v2143_v51 = vsel %vm5107_vm9, %v4894_v16, %v2139_v14  ;;  %vm5124_vm8 = vmor %vm2155_vm6, %vm2156_vm7  ;;  %v2174_v25 = vand.u32 2147483647, %v5666_v42  ;;  %v5773_v46 = vld [vmem:[#allocation42_spill] sm:$0xff]  ;;  %v5779_v54 = vld [vmem:[#allocation37_spill] sm:$0xff] }
 0x289   : > { %v2212_v55 = vmul.f32 %v5764_v48, %v5763_v41  ;;  %v2249_v50 = vmul.f32 %v2208_v15, %v5765_v53  ;;  %vm5766_vm13 = vmmov %vm5749_vm4  ;;  %v2158_v16 = vsel %vm5124_vm8, %v4909_v12, %v2154_v39  ;;  %v2162_v6 = vor.u32 1.1754944e-38, %v2161_v0  ;;  %v5772_v0 = vld [vmem:[#allocation77_spill] sm:$0xff]  ;;  %v5775_v21 = vld [vmem:[#allocation78_spill] sm:$0xff] }
 0x28a   : > { %2286 = vst.msk [vmem:[%s4813_s12 + $0xc0] sm:$0xff] %vm5766_vm13, %v2245_v3  ;;  %vm5141_vm6 = vmor %vm2170_vm11, %vm2171_vm3  ;;  %v2213_v40 = vmul.f32 %v4899_v28, %v5769_v20  ;;  %v2250_v58 = vmul.f32 %v2209_v43, %v5770_v63  ;;  %v2133_v12 = vsel %vm5037_vm12, %v4916_v35, %v2128_v60  ;;  %v2214_v56 = vmul.f32 %v4914_v34, %v5772_v0  ;;  %v5781_v17 = vld [vmem:[#allocation80_spill] sm:$0xff]  ;;  %v5784_v11 = vld [vmem:[#allocation81_spill] sm:$0xff] }
 0x28b   : > { %vm5771_vm14 = vmmov %vm5749_vm4  ;;  %v2173_v42 = vsel %vm5141_vm6, %v4923_v19, %v2169_v7  ;;  %v2251_v22 = vmul.f32 %v2210_v36, %v5773_v46  ;;  %v2148_v28 = vsel %vm5050_vm2, %v5008_v10, %v2143_v51  ;;  %v2177_v45 = vor.u32 1.1754944e-38, %v2176_v62  ;;  %v5778_v19 = vld [vmem:[#allocation79_spill] sm:$0xff]  ;;  %v5782_v23 = vld [vmem:[#allocation48_spill] sm:$0xff] }
 0x28c   : > { %2287 = vst.msk [vmem:[%s4813_s12 + $0xc8] sm:$0xff] %vm5771_vm14, %v2246_v32  ;;  %vm5774_vm11 = vmmov %vm5749_vm4  ;;  %v2215_v35 = vmul.f32 %v2103_v27, %v5775_v21  ;;  %v2252_v18 = vmul.f32 %v2211_v9, %v5776_v57  ;;  %v2163_v34 = vsel %vm5062_vm0, %v2162_v6, %v2158_v16  ;;  %vm2175_vm15 = vcmp.eq.f32.partialorder %v2174_v25, 8.507059e+37  ;;  %v5785_v14 = vld [vmem:[#allocation47_spill] sm:$0xff]  ;;  %v5791_v43 = vld [vmem:[#allocation54_spill] sm:$0xff] }
 0x28d   : > { %2288 = vst.msk [vmem:[%s4813_s12 + $0xd0] sm:$0xff] %vm5774_vm11, %v2247_v24  ;;  %vm5777_vm12 = vmmov %vm5749_vm4  ;;  %v2216_v5 = vmul.f32 %v2118_v8, %v5778_v19  ;;  %v2253_v30 = vmul.f32 %v2212_v55, %v5779_v54  ;;  %v2178_v10 = vsel %vm2175_vm15, %v2177_v45, %v2173_v42  ;;  %v2217_v27 = vmul.f32 %v2133_v12, %v5781_v17  ;;  %v5787_v8 = vld [vmem:[#allocation82_spill] sm:$0xff]  ;;  %v5788_v31 = vld [vmem:[#allocation43_spill] sm:$0xff] }
 0x28e   : > { %2289 = vst.msk [vmem:[%s4813_s12 + $0xd8] sm:$0xff] %vm5777_vm12, %v2248_v44  ;;  %vm5780_vm7 = vmmov %vm5749_vm4  ;;  %v2254_v61 = vmul.f32 %v2213_v40, %v5782_v23  ;;  %v2218_v47 = vmul.f32 %v2148_v28, %v5784_v11  ;;  %v2255_v13 = vmul.f32 %v2214_v56, %v5785_v14  ;;  %v2219_v15 = vmul.f32 %v2163_v34, %v5787_v8  ;;  %v5790_v39 = vld [vmem:[#allocation83_spill] sm:$0xff]  ;;  %v5793_v32 = vld [vmem:[#allocation53_spill] sm:$0xff] }
 0x28f   : > { %2290 = vst.msk [vmem:[%s4813_s12 + $0xe0] sm:$0xff] %vm5780_vm7, %v2249_v50  ;;  %vm5783_vm2 = vmmov %vm5749_vm4  ;;  %v2256_v3 = vmul.f32 %v2215_v35, %v5788_v31  ;;  %v2220_v49 = vmul.f32 %v2178_v10, %v5790_v39  ;;  %v2257_v26 = vmul.f32 %v2216_v5, %v5791_v43  ;;  %v2258_v1 = vmul.f32 %v2217_v27, %v5793_v32  ;;  %v5795_v7 = vld [vmem:[#allocation51_spill] sm:$0xff]  ;;  %v5797_v36 = vld [vmem:[#allocation58_spill] sm:$0xff] }
 0x290   : > { %2291 = vst.msk [vmem:[%s4813_s12 + $0xe8] sm:$0xff] %vm5783_vm2, %v2250_v58  ;;  %vm5786_vm0 = vmmov %vm5783_vm2  ;;  %v2259_v29 = vmul.f32 %v2218_v47, %v5795_v7  ;;  %v2260_v2 = vmul.f32 %v2219_v15, %v5797_v36  ;;  %v5799_v24 = vld [vmem:[#allocation57_spill] sm:$0xff] }
 0x291   : > { %2292 = vst.msk [vmem:[%s4813_s12 + $0xf0] sm:$0xff] %vm5786_vm0, %v2251_v22  ;;  %vm5789_vm4 = vmmov %vm5786_vm0  ;;  %v2261_v60 = vmul.f32 %v2220_v49, %v5799_v24 }
 0x292   : > { %2293 = vst.msk [vmem:[%s4813_s12 + $0xf8] sm:$0xff] %vm5789_vm4, %v2252_v18  ;;  %vm5792_vm1 = vmmov %vm5786_vm0 }
 0x293   : > { %2294 = vst.msk [vmem:[%s4813_s12 + $0x100] sm:$0xff] %vm5792_vm1, %v2253_v30  ;;  %vm5794_vm3 = vmmov %vm5786_vm0 }
 0x294   : > { %2295 = vst.msk [vmem:[%s4813_s12 + $0x108] sm:$0xff] %vm5794_vm3, %v2254_v61  ;;  %vm5796_vm10 = vmmov %vm5786_vm0 }
 0x295   : > { %2296 = vst.msk [vmem:[%s4813_s12 + $0x110] sm:$0xff] %vm5796_vm10, %v2255_v13  ;;  %vm5798_vm9 = vmmov %vm5786_vm0 }
 0x296   : > { %2297 = vst.msk [vmem:[%s4813_s12 + $0x118] sm:$0xff] %vm5798_vm9, %v2256_v3  ;;  %vm5800_vm5 = vmmov %vm5786_vm0 }
 0x297   : > { %2298 = vst.msk [vmem:[%s4813_s12 + $0x120] sm:$0xff] %vm5800_vm5, %v2257_v26  ;;  %vm5801_vm8 = vmmov %vm5786_vm0 }
 0x298   : > { %2299 = vst.msk [vmem:[%s4813_s12 + $0x128] sm:$0xff] %vm5801_vm8, %v2258_v1  ;;  %vm5802_vm13 = vmmov %vm5786_vm0 }
 0x299   : > { %2300 = vst.msk [vmem:[%s4813_s12 + $0x130] sm:$0xff] %vm5802_vm13, %v2259_v29  ;;  %vm5803_vm6 = vmmov %vm5786_vm0 }
 0x29a   : > { %2301 = vst.msk [vmem:[%s4813_s12 + $0x138] sm:$0xff] %vm5803_vm6, %v2260_v2  ;;  %vm5804_vm14 = vmmov %vm5786_vm0 }
 0x29b   : > { %2302 = vst.msk [vmem:[%s4813_s12 + $0x140] sm:$0xff] %vm5804_vm14, %v2261_v60 }
 0x29c PF: > { %s15_s18 = sadd.s32 1, %s2562_s18  }
 0x29d   : > { %p12_p4 = scmp.ge.s32.totalorder %s15_s18, 4  }
 0x29f   :  { %14 = sbr.rel (!%p12_p4) target bundleno = 1 (0x1), region = 70 }

// kernel: resnet_block_forward.8
= control target key start
LH: loop header
LB: loop body
LE: loop exit
PB: predicated region body
PF: predicated region fallthrough
CT: control target
= control target key end

     0   :  { %s2728_s18 = smov 0   ;;  %s5445_s0 = inlined_call_operand.vmem [shape: f32[2,328,128], index: 0, kind: input, shape index: {}]   ;;  %s5446_s1 = inlined_call_operand.vmem [shape: f32[328,1], index: 1, kind: input, shape index: {}]   ;;  %s5447_s2 = inlined_call_operand.vmem [shape: f32[1,128], index: 2, kind: input, shape index: {}]   ;;  %s5448_s3 = inlined_call_operand.vmem [shape: f32[1,128], index: 3, kind: input, shape index: {}]   ;;  %s5449_s4 = inlined_call_operand.vmem [shape: f32[128,128], index: 4, kind: input, shape index: {}]   ;;  %s5450_s5 = inlined_call_operand.vmem [shape: f32[2,328,128], index: 5, kind: output, shape index: {}]  }
   0x1 LB: > { %s2485_s19 = sadd.s32 4294967295, %s2695_s18   ;;  %p2489_p0 = scmp.ge.s32.totalorder %s2695_s18, 1  ;;  %s2695_s18 = sphi %s2728_s18, %s15_s18  }
   0x2   : > { %p187_p1 = scmp.lt.s32.totalorder %s2695_s18, 3 }
   0x4   : > { %p188_p2 = pnand %p2489_p0, %p187_p1 }
   0x6   : > { %191 = sbr.rel (%p188_p2) target bundleno = 678 (0x2a6), region = 40 }
   0xb   : > { %v270_v0 = vld [vmem:[%s5446_s1 + $0x20] sm:$0xff]  ;;  %v268_v1 = vld [vmem:[%s5446_s1 + $0x10] sm:$0xff]  ;;  %v2697_v3 = vmov 0   ;;  %v271_v4 = vld [vmem:[%s5446_s1 + $0x28] sm:$0xff]  ;;  %p215_p3 = scmp.lt.s32.totalorder %s2485_s19, 1 }
   0xc   : > { %v266_v2 = vld [vmem:[%s5446_s1] sm:$0xff]  ;;  %2506 = vset.pattern.permute.xlu2 %v2697_v3  ;;  %2505 = vset.pattern.permute.xlu1 %v2697_v3  ;;  %v269_v5 = vld [vmem:[%s5446_s1 + $0x18] sm:$0xff]  ;;  %v267_v6 = vld [vmem:[%s5446_s1 + $0x8] sm:$0xff] }
   0xd   : > { %2504 = vset.pattern.permute.xlu0 %v2697_v3  ;;  %329 = vperm.xlu2 %2506, %v270_v0   ;;  %v274_v7 = vld [vmem:[%s5446_s1 + $0x40] sm:$0xff]  ;;  %v273_v8 = vld [vmem:[%s5446_s1 + $0x38] sm:$0xff]  ;;  %v272_v9 = vld [vmem:[%s5446_s1 + $0x30] sm:$0xff]  ;;  %s6057_s19 = smov (!%p215_p3, %s2485_s19), 1 }
   0xe   : > { %319 = vperm.xlu1 %2505, %v268_v1   ;;  %309 = vperm.xlu0 %2504, %v266_v2   ;;  %v277_v10 = vld [vmem:[%s5446_s1 + $0x58] sm:$0xff]  ;;  %v276_v11 = vld [vmem:[%s5446_s1 + $0x50] sm:$0xff]  ;;  %v275_v12 = vld [vmem:[%s5446_s1 + $0x48] sm:$0xff]  ;;  %s2494_s8 = smul.u32 328, %s6057_s19 }
   0xf   : > { %v280_v13 = vld [vmem:[%s5446_s1 + $0x70] sm:$0xff]  ;;  %v279_v14 = vld [vmem:[%s5446_s1 + $0x68] sm:$0xff]  ;;  %v278_v15 = vld [vmem:[%s5446_s1 + $0x60] sm:$0xff] }
  0x10   : > { %v283_v16 = vld [vmem:[%s5446_s1 + $0x88] sm:$0xff]  ;;  %v282_v17 = vld [vmem:[%s5446_s1 + $0x80] sm:$0xff]  ;;  %v281_v18 = vld [vmem:[%s5446_s1 + $0x78] sm:$0xff]  ;;  %s2881_s11 = scalar_lea.vmem %s5445_s0, %s2494_s8  ;;  %s5086_s30 = scalar_lea.vmem %s5450_s5, %s2494_s8 }
  0x11   : > { %v286_v19 = vld [vmem:[%s5446_s1 + $0xa0] sm:$0xff]  ;;  %v285_v20 = vld [vmem:[%s5446_s1 + $0x98] sm:$0xff]  ;;  %v284_v21 = vld [vmem:[%s5446_s1 + $0x90] sm:$0xff] }
  0x12   : > { %v289_v22 = vld [vmem:[%s5446_s1 + $0xb8] sm:$0xff]  ;;  %v288_v23 = vld [vmem:[%s5446_s1 + $0xb0] sm:$0xff]  ;;  %v287_v24 = vld [vmem:[%s5446_s1 + $0xa8] sm:$0xff] }
  0x13   : > { %v292_v25 = vld [vmem:[%s5446_s1 + $0xd0] sm:$0xff]  ;;  %v291_v26 = vld [vmem:[%s5446_s1 + $0xc8] sm:$0xff]  ;;  %v290_v27 = vld [vmem:[%s5446_s1 + $0xc0] sm:$0xff] }
  0x14   : > { %v295_v28 = vld [vmem:[%s5446_s1 + $0xe8] sm:$0xff]  ;;  %v294_v29 = vld [vmem:[%s5446_s1 + $0xe0] sm:$0xff]  ;;  %v293_v30 = vld [vmem:[%s5446_s1 + $0xd8] sm:$0xff] }
  0x15   : > { %334 = vperm.xlu2 %2506, %v271_v4   ;;  %v298_v31 = vld [vmem:[%s5446_s1 + $0x100] sm:$0xff]  ;;  %v297_v32 = vld [vmem:[%s5446_s1 + $0xf8] sm:$0xff]  ;;  %v296_v33 = vld [vmem:[%s5446_s1 + $0xf0] sm:$0xff] }
  0x16   : > { %324 = vperm.xlu1 %2505, %v269_v5   ;;  %314 = vperm.xlu0 %2504, %v267_v6   ;;  %v301_v34 = vld [vmem:[%s5446_s1 + $0x118] sm:$0xff]  ;;  %v300_v35 = vld [vmem:[%s5446_s1 + $0x110] sm:$0xff]  ;;  %v299_v36 = vld [vmem:[%s5446_s1 + $0x108] sm:$0xff] }
  0x17   : > { %v304_v38 = vld [vmem:[%s5446_s1 + $0x130] sm:$0xff]  ;;  %v303_v39 = vld [vmem:[%s5446_s1 + $0x128] sm:$0xff]  ;;  %v302_v40 = vld [vmem:[%s5446_s1 + $0x120] sm:$0xff] }
  0x18   : > { %v306_v42 = vld [vmem:[%s5446_s1 + $0x140] sm:$0xff]  ;;  %v305_v43 = vld [vmem:[%s5446_s1 + $0x138] sm:$0xff]  ;;  %v227_v48 = vld [vmem:[%s2881_s11 + $0x10] sm:$0xff] }
  0x19   : > { %v225_v47 = vld [vmem:[%s2881_s11] sm:$0xff]  ;;  %v226_v49 = vld [vmem:[%s2881_s11 + $0x8] sm:$0xff]  ;;  %v228_v53 = vld [vmem:[%s2881_s11 + $0x18] sm:$0xff] }
  0x1a   : > { %v229_v57 = vld [vmem:[%s2881_s11 + $0x20] sm:$0xff]  ;;  %v230_v62 = vld [vmem:[%s2881_s11 + $0x28] sm:$0xff]  ;;  %v231_v3 = vld [vmem:[%s2881_s11 + $0x30] sm:$0xff] }
  0x1d   : > { %349 = vperm.xlu2 %2506, %v274_v7  }
  0x1e   : > { %344 = vperm.xlu1 %2505, %v273_v8   ;;  %339 = vperm.xlu0 %2504, %v272_v9   ;;  %v232_v8 = vld [vmem:[%s2881_s11 + $0x38] sm:$0xff] }
  0x25   : > { %364 = vperm.xlu2 %2506, %v277_v10  }
  0x26   : > { %359 = vperm.xlu1 %2505, %v276_v11   ;;  %354 = vperm.xlu0 %2504, %v275_v12   ;;  %v233_v12 = vld [vmem:[%s2881_s11 + $0x40] sm:$0xff] }
  0x2d   : > { %379 = vperm.xlu2 %2506, %v280_v13  }
  0x2e   : > { %374 = vperm.xlu1 %2505, %v279_v14   ;;  %369 = vperm.xlu0 %2504, %v278_v15  }
  0x35   : > { %394 = vperm.xlu2 %2506, %v283_v16  }
  0x36   : > { %389 = vperm.xlu1 %2505, %v282_v17   ;;  %384 = vperm.xlu0 %2504, %v281_v18  }
  0x3d   : > { %409 = vperm.xlu2 %2506, %v286_v19  }
  0x3e   : > { %404 = vperm.xlu1 %2505, %v285_v20   ;;  %399 = vperm.xlu0 %2504, %v284_v21  }
  0x45   : > { %424 = vperm.xlu2 %2506, %v289_v22   ;;  %v701_v22 = vld [vmem:[%s5449_s4 + $0x78] sm:$0xff] }
  0x46   : > { %419 = vperm.xlu1 %2505, %v288_v23   ;;  %414 = vperm.xlu0 %2504, %v287_v24  }
  0x4d   : > { %439 = vperm.xlu2 %2506, %v292_v25  }
  0x4e   : > { %434 = vperm.xlu1 %2505, %v291_v26   ;;  %429 = vperm.xlu0 %2504, %v290_v27   ;;  %v2916_v26 = vand.u32 4294901760, %v701_v22 }
  0x50   : > { %899 = vmatpush.msra.mxu3 %v2916_v26  ;;  %703 = vmatpush.msra.mxu0 %v2916_v26 }
  0x55   : > { %454 = vperm.xlu2 %2506, %v295_v28   ;;  %v235_v28 = vld [vmem:[%s2881_s11 + $0x50] sm:$0xff] }
  0x56   : > { %449 = vperm.xlu1 %2505, %v294_v29   ;;  %444 = vperm.xlu0 %2504, %v293_v30   ;;  %v234_v29 = vld [vmem:[%s2881_s11 + $0x48] sm:$0xff]  ;;  %v700_v30 = vld [vmem:[%s5449_s4 + $0x70] sm:$0xff] }
  0x5d   : > { %469 = vperm.xlu2 %2506, %v298_v31  }
  0x5e   : > { %464 = vperm.xlu1 %2505, %v297_v32   ;;  %459 = vperm.xlu0 %2504, %v296_v33   ;;  %v2924_v33 = vsub.f32 %v701_v22, %v2916_v26 }
  0x60   : > { %5601 = vst [vmem:[#allocation13_spill] sm:$0xff] %v2924_v33  ;;  %846 = vmatpush.msra.mxu2 %v2924_v33 }
  0x65   : > { %484 = vperm.xlu2 %2506, %v301_v34   ;;  %v2926_v34 = vand.u32 4294901760, %v700_v30 }
  0x66   : > { %479 = vperm.xlu1 %2505, %v300_v35   ;;  %474 = vperm.xlu0 %2504, %v299_v36   ;;  %v236_v36 = vld [vmem:[%s2881_s11 + $0x58] sm:$0xff] }
  0x67   : > { %v2844_v37 = vpop.permute.xlu2 %329  ;;  %901 = vmatpush.msra.mxu3 %v2926_v34  ;;  %705 = vmatpush.msra.mxu0 %v2926_v34 }
  0x68   : > { %5590 = vst [vmem:[#allocation2_spill] sm:$0xff] %v2844_v37  ;;  %v516_v63 = vmul.f32 %v2844_v37, %v229_v57 }
  0x6a   : > { %v603_v11 = vmul.f32 %v516_v63, %v516_v63 }
  0x6d   : > { %499 = vperm.xlu2 %2506, %v304_v38  }
  0x6e   : > { %494 = vperm.xlu1 %2505, %v303_v39   ;;  %489 = vperm.xlu0 %2504, %v302_v40   ;;  %v699_v40 = vld [vmem:[%s5449_s4 + $0x68] sm:$0xff] }
  0x6f   : > { %v2855_v41 = vpop.permute.xlu2 %334 }
  0x70   : > { %5591 = vst [vmem:[#allocation3_spill] sm:$0xff] %v2855_v41  ;;  %v517_v4 = vmul.f32 %v2855_v41, %v230_v62 }
  0x72   : > { %v604_v18 = vmul.f32 %v517_v4, %v517_v4 }
  0x76   : > { %509 = vperm.xlu1 %2505, %v306_v42   ;;  %504 = vperm.xlu0 %2504, %v305_v43  }
  0x77   : > { %v2870_v44 = vpop.permute.xlu2 %349 }
  0x78   : > { %5592 = vst [vmem:[#allocation4_spill] sm:$0xff] %v2870_v44  ;;  %v520_v21 = vmul.f32 %v2870_v44, %v233_v12 }
  0x7a   : > { %v607_v35 = vmul.f32 %v520_v21, %v520_v21 }
  0x7f   : > { %v2886_v50 = vpop.permute.xlu2 %364 }
  0x80   : > { %v2872_v45 = vpop.permute.xlu1 %319  ;;  %v2874_v46 = vpop.permute.xlu0 %309  ;;  %5595 = vst [vmem:[#allocation7_spill] sm:$0xff] %v2886_v50 }
  0x81   : > { %5593 = vst [vmem:[#allocation5_spill] sm:$0xff] %v2872_v45  ;;  %v512_v51 = vmul.f32 %v2874_v46, %v225_v47  ;;  %v514_v55 = vmul.f32 %v2872_v45, %v227_v48 }
  0x82   : > { %5594 = vst [vmem:[#allocation6_spill] sm:$0xff] %v2874_v46 }
  0x83   : > { %v599_v58 = vmul.f32 %v512_v51, %v512_v51  ;;  %v601_v0 = vmul.f32 %v514_v55, %v514_v55 }
  0x87   : > { %v2908_v13 = vpop.permute.xlu2 %379 }
  0x88   : > { %v2889_v52 = vpop.permute.xlu1 %324  ;;  %v2892_v54 = vpop.permute.xlu0 %314  ;;  %5600 = vst [vmem:[#allocation12_spill] sm:$0xff] %v2908_v13 }
  0x89   : > { %5596 = vst [vmem:[#allocation8_spill] sm:$0xff] %v2889_v52  ;;  %v513_v56 = vmul.f32 %v2892_v54, %v226_v49  ;;  %v515_v59 = vmul.f32 %v2889_v52, %v228_v53  ;;  %v2942_v49 = vand.u32 4294901760, %v2924_v33  ;;  %v2947_v53 = vand.u32 4294901760, %v699_v40 }
  0x8a   : > { %5597 = vst [vmem:[#allocation9_spill] sm:$0xff] %v2892_v54 }
  0x8b   : > { %v553_v60 = vadd.f32 %v513_v56, %v512_v51  ;;  %v600_v61 = vmul.f32 %v513_v56, %v513_v56  ;;  %v602_v5 = vmul.f32 %v515_v59, %v515_v59  ;;  %v2945_v51 = vsub.f32 %v700_v30, %v2926_v34  ;;  %903 = vmatpush.msra.mxu3 %v2947_v53 }
  0x8c   : > { %v523_v56 = vmul.f32 %v2886_v50, %v236_v36  ;;  %707 = vmatpush.msra.mxu0 %v2947_v53 }
  0x8d   : > { %v554_v1 = vadd.f32 %v553_v60, %v514_v55  ;;  %v640_v2 = vadd.f32 %v600_v61, %v599_v58  ;;  %5604 = vst [vmem:[#allocation16_spill] sm:$0xff] %v2945_v51  ;;  %v698_v55 = vld [vmem:[%s5449_s4 + $0x60] sm:$0xff]  ;;  %v746_v61 = vsub.f32 %v2924_v33, %v2942_v49  ;;  %v2960_v62 = vand.u32 4294901760, %v2945_v51  ;;  %849 = vmatpush.msra.mxu2 %v2945_v51 }
  0x8f   : > { %v555_v6 = vadd.f32 %v554_v1, %v515_v59  ;;  %v641_v7 = vadd.f32 %v640_v2, %v601_v0  ;;  %v2955_v57 = vpop.permute.xlu2 %394  ;;  %v2966_v0 = vand.u32 4294901760, %v698_v55  ;;  %v697_v1 = vld [vmem:[%s5449_s4 + $0x58] sm:$0xff]  ;;  %v239_v2 = vld [vmem:[%s2881_s11 + $0x70] sm:$0xff]  ;;  %v752_v12 = vsub.f32 %v2945_v51, %v2960_v62 }
  0x90   : > { %v2903_v9 = vpop.permute.xlu1 %344  ;;  %v2905_v10 = vpop.permute.xlu0 %339  ;;  %5605 = vst [vmem:[#allocation17_spill] sm:$0xff] %v2955_v57 }
  0x91   : > { %5598 = vst [vmem:[#allocation10_spill] sm:$0xff] %v2903_v9  ;;  %v642_v14 = vadd.f32 %v641_v7, %v602_v5  ;;  %v518_v15 = vmul.f32 %v2905_v10, %v231_v3  ;;  %v556_v16 = vadd.f32 %v555_v6, %v516_v63  ;;  %v519_v17 = vmul.f32 %v2903_v9, %v232_v8  ;;  %v238_v7 = vld [vmem:[%s2881_s11 + $0x68] sm:$0xff]  ;;  %v237_v8 = vld [vmem:[%s2881_s11 + $0x60] sm:$0xff] }
  0x92   : > { %5599 = vst [vmem:[#allocation11_spill] sm:$0xff] %v2905_v10  ;;  %v2963_v63 = vsub.f32 %v699_v40, %v2947_v53  ;;  %v2973_v6 = vand.u32 4294901760, %v697_v1  ;;  %905 = vmatpush.msra.mxu3 %v2966_v0  ;;  %709 = vmatpush.msra.mxu0 %v2966_v0 }
  0x93   : > { %v557_v19 = vadd.f32 %v556_v16, %v517_v4  ;;  %v643_v20 = vadd.f32 %v642_v14, %v603_v11  ;;  %v605_v24 = vmul.f32 %v518_v15, %v518_v15  ;;  %v606_v27 = vmul.f32 %v519_v17, %v519_v17  ;;  %v696_v16 = vld [vmem:[%s5449_s4 + $0x50] sm:$0xff] }
  0x94   : > { %5606 = vst [vmem:[#allocation18_spill] sm:$0xff] %v2963_v63  ;;  %v2978_v11 = vand.u32 4294901760, %v746_v61  ;;  %v2983_v14 = vand.u32 4294901760, %v2963_v63  ;;  %852 = vmatpush.msra.mxu2 %v2963_v63  ;;  %907 = vmatpush.msra.mxu3 %v2973_v6 }
  0x95   : > { %v558_v23 = vadd.f32 %v557_v19, %v518_v15  ;;  %v644_v25 = vadd.f32 %v643_v20, %v604_v18  ;;  %v2986_v15 = vsub.f32 %v698_v55, %v2966_v0  ;;  %v2994_v19 = vsub.f32 %v697_v1, %v2973_v6  ;;  %711 = vmatpush.msra.mxu0 %v2973_v6  ;;  %v693_v1 = vld [vmem:[%s5449_s4 + $0x38] sm:$0xff] }
  0x96   : > { %v2996_v20 = vand.u32 4294901760, %v696_v16  ;;  %748 = vmatpush.msra.mxu1 %v2978_v11 }
  0x97   : > { %v559_v31 = vadd.f32 %v558_v23, %v519_v17  ;;  %v645_v32 = vadd.f32 %v644_v25, %v605_v24  ;;  %5607 = vst [vmem:[#allocation19_spill] sm:$0xff] %v2986_v15  ;;  %v610_v17 = vmul.f32 %v523_v56, %v523_v56  ;;  %v3007_v24 = vand.u32 4294901760, %v752_v12  ;;  %855 = vmatpush.msra.mxu2 %v2986_v15  ;;  %v3065_v12 = vld [vmem:[%s2881_s11 + $0x78] sm:$0xff] }
  0x98   : > { %v2931_v38 = vpop.permute.xlu1 %359  ;;  %v2933_v39 = vpop.permute.xlu0 %354  ;;  %5608 = vst [vmem:[#allocation20_spill] sm:$0xff] %v2994_v19  ;;  %v758_v25 = vsub.f32 %v2963_v63, %v2983_v14  ;;  %909 = vmatpush.msra.mxu3 %v2996_v20  ;;  %713 = vmatpush.msra.mxu0 %v2996_v20 }
  0x99   : > { %5602 = vst [vmem:[#allocation14_spill] sm:$0xff] %v2931_v38  ;;  %v646_v42 = vadd.f32 %v645_v32, %v606_v27  ;;  %v522_v43 = vmul.f32 %v2931_v38, %v235_v28  ;;  %v521_v47 = vmul.f32 %v2933_v39, %v234_v29  ;;  %v560_v48 = vadd.f32 %v559_v31, %v520_v21  ;;  %v695_v32 = vld [vmem:[%s5449_s4 + $0x48] sm:$0xff] }
  0x9a   : > { %5603 = vst [vmem:[#allocation15_spill] sm:$0xff] %v2933_v39  ;;  %v3000_v21 = vmul.f32 %v2908_v13, %v239_v2  ;;  %v3012_v27 = vand.u32 4294901760, %v2986_v15  ;;  %v3018_v31 = vand.u32 4294901760, %v2994_v19  ;;  %754 = vmatpush.msra.mxu1 %v3007_v24  ;;  %v3026_v36 = vand.u32 4294901760, %v758_v25  ;;  %858 = vmatpush.msra.mxu2 %v2994_v19  ;;  %v3054_v2 = vpop.permute.xlu2 %409  ;;  %v692_v25 = vld [vmem:[%s5449_s4 + $0x30] sm:$0xff] }
  0x9b   : > { %v561_v58 = vadd.f32 %v560_v48, %v521_v47  ;;  %v608_v59 = vmul.f32 %v521_v47, %v521_v47  ;;  %v647_v60 = vadd.f32 %v646_v42, %v607_v35  ;;  %v609_v3 = vmul.f32 %v522_v43, %v522_v43  ;;  %5612 = vst [vmem:[#allocation24_spill] sm:$0xff] %v3054_v2 }
  0x9c   : > { %v764_v40 = vsub.f32 %v2986_v15, %v3012_v27  ;;  %v3031_v42 = vsub.f32 %v696_v16, %v2996_v20  ;;  %760 = vmatpush.msra.mxu1 %v3026_v36  ;;  %5614 = vst [vmem:[#allocation26_spill] sm:$0xff] %v3065_v12 }
  0x9d   : > { %v562_v4 = vadd.f32 %v561_v58, %v522_v43  ;;  %v648_v5 = vadd.f32 %v647_v60, %v608_v59  ;;  %v694_v43 = vld [vmem:[%s5449_s4 + $0x40] sm:$0xff]  ;;  %v3046_v60 = vand.u32 4294901760, %v695_v32 }
  0x9e   : > { %5611 = vst [vmem:[#allocation23_spill] sm:$0xff] %v3031_v42  ;;  %v3041_v58 = vand.u32 4294901760, %v764_v40  ;;  %v3044_v59 = vand.u32 4294901760, %v3031_v42  ;;  %861 = vmatpush.msra.mxu2 %v3031_v42  ;;  %v3049_v61 = vand.u32 4294901760, %v694_v43 }
  0x9f   : > { %v649_v18 = vadd.f32 %v648_v5, %v609_v3  ;;  %v563_v30 = vadd.f32 %v562_v4, %v523_v56  ;;  %v770_v56 = vsub.f32 %v2994_v19, %v3018_v31  ;;  %911 = vmatpush.msra.mxu3 %v3046_v60  ;;  %715 = vmatpush.msra.mxu0 %v3046_v60 }
  0xa0   : > { %v3002_v22 = vpop.permute.xlu1 %374  ;;  %v3004_v23 = vpop.permute.xlu0 %369  ;;  %766 = vmatpush.msra.mxu1 %v3041_v58  ;;  %v776_v16 = vsub.f32 %v3031_v42, %v3044_v59 }
  0xa1   : > { %5609 = vst [vmem:[#allocation21_spill] sm:$0xff] %v3002_v22  ;;  %v525_v28 = vmul.f32 %v3002_v22, %v238_v7  ;;  %v524_v29 = vmul.f32 %v3004_v23, %v237_v8  ;;  %v650_v35 = vadd.f32 %v649_v18, %v610_v17  ;;  %v3056_v5 = vand.u32 4294901760, %v770_v56  ;;  %v3062_v8 = vld [vmem:[%s2881_s11 + $0x80] sm:$0xff]  ;;  %v691_v56 = vld [vmem:[%s5449_s4 + $0x28] sm:$0xff]  ;;  %913 = vmatpush.msra.mxu3 %v3049_v61 }
  0xa2   : > { %5610 = vst [vmem:[#allocation22_spill] sm:$0xff] %v3004_v23  ;;  %v3058_v7 = vand.u32 4294901760, %v693_v1  ;;  %v3071_v17 = vsub.f32 %v695_v32, %v3046_v60  ;;  %v3074_v18 = vsub.f32 %v694_v43, %v3049_v61  ;;  %v3094_v43 = vand.u32 4294901760, %v776_v16  ;;  %717 = vmatpush.msra.mxu0 %v3049_v61 }
  0xa3   : > { %v612_v47 = vmul.f32 %v525_v28, %v525_v28  ;;  %v564_v48 = vadd.f32 %v563_v30, %v524_v29  ;;  %v611_v55 = vmul.f32 %v524_v29, %v524_v29  ;;  %5613 = vst [vmem:[#allocation25_spill] sm:$0xff] %v3062_v8  ;;  %v3083_v29 = vld [vmem:[%s2881_s11 + $0x88] sm:$0xff]  ;;  %772 = vmatpush.msra.mxu1 %v3056_v5 }
  0xa4   : > { %5615 = vst [vmem:[#allocation27_spill] sm:$0xff] %v3071_v17  ;;  %864 = vmatpush.msra.mxu2 %v3071_v17  ;;  %v529_v22 = vmul.f32 %v2955_v57, %v3083_v29  ;;  %915 = vmatpush.msra.mxu3 %v3058_v7 }
  0xa5   : > { %v565_v3 = vadd.f32 %v564_v48, %v525_v28  ;;  %v651_v4 = vadd.f32 %v650_v35, %v611_v55  ;;  %5616 = vst [vmem:[#allocation28_spill] sm:$0xff] %v3074_v18  ;;  %v613_v28 = vmul.f32 %v3000_v21, %v3000_v21  ;;  %v3086_v35 = vsub.f32 %v693_v1, %v3058_v7 }
  0xa6   : > { %5617 = vst [vmem:[#allocation29_spill] sm:$0xff] %v3083_v29  ;;  %v3097_v48 = vand.u32 4294901760, %v3071_v17  ;;  %v3100_v55 = vand.u32 4294901760, %v3074_v18  ;;  %778 = vmatpush.msra.mxu1 %v3094_v43  ;;  %867 = vmatpush.msra.mxu2 %v3074_v18  ;;  %v616_v45 = vmul.f32 %v529_v22, %v529_v22 }
  0xa7   : > { %v652_v30 = vadd.f32 %v651_v4, %v612_v47  ;;  %5618 = vst [vmem:[#allocation30_spill] sm:$0xff] %v3086_v35  ;;  %v3103_v47 = vand.u32 4294901760, %v692_v25  ;;  %v566_v16 = vadd.f32 %v565_v3, %v3000_v21  ;;  %v3114_v13 = vand.u32 4294901760, %v3086_v35  ;;  %v690_v3 = vld [vmem:[%s5449_s4 + $0x20] sm:$0xff]  ;;  %719 = vmatpush.msra.mxu0 %v3058_v7 }
  0xa8   : > { %v3089_v32 = vpop.permute.xlu1 %389  ;;  %v3091_v40 = vpop.permute.xlu0 %384  ;;  %v3126_v21 = vand.u32 4294901760, %v691_v56  ;;  %870 = vmatpush.msra.mxu2 %v3086_v35 }
  0xa9   : > { %5619 = vst [vmem:[#allocation31_spill] sm:$0xff] %v3089_v32  ;;  %v528_v1 = vmul.f32 %v3089_v32, %v3062_v8  ;;  %v527_v4 = vmul.f32 %v3091_v40, %v3065_v12  ;;  %v782_v32 = vsub.f32 %v3071_v17, %v3097_v48  ;;  %v653_v57 = vadd.f32 %v652_v30, %v613_v28  ;;  %v689_v28 = vld [vmem:[%s5449_s4 + $0x18] sm:$0xff]  ;;  %v3244_v17 = vld [vmem:[%s2881_s11 + $0xa8] sm:$0xff] }
  0xaa   : > { %5620 = vst [vmem:[#allocation32_spill] sm:$0xff] %v3091_v40  ;;  %v788_v40 = vsub.f32 %v3074_v18, %v3100_v55  ;;  %v794_v38 = vsub.f32 %v3086_v35, %v3114_v13  ;;  %v3139_v9 = vsub.f32 %v692_v25, %v3103_v47  ;;  %v3143_v10 = vsub.f32 %v691_v56, %v3126_v21  ;;  %v3156_v25 = vld [vmem:[%s2881_s11 + $0x90] sm:$0xff] }
  0xab   : > { %v567_v23 = vadd.f32 %v566_v16, %v527_v4  ;;  %v614_v50 = vmul.f32 %v527_v4, %v527_v4  ;;  %v3134_v39 = vand.u32 4294901760, %v782_v32  ;;  %v615_v30 = vmul.f32 %v528_v1, %v528_v1  ;;  %917 = vmatpush.msra.mxu3 %v3103_v47  ;;  %5624 = vst [vmem:[#allocation36_spill] sm:$0xff] %v3156_v25 }
  0xac   : > { %v3136_v44 = vand.u32 4294901760, %v788_v40  ;;  %5621 = vst [vmem:[#allocation33_spill] sm:$0xff] %v3139_v9  ;;  %v3150_v40 = vld [vmem:[%s2881_s11 + $0x98] sm:$0xff]  ;;  %v3152_v16 = vand.u32 4294901760, %v690_v3  ;;  %v3159_v56 = vand.u32 4294901760, %v794_v38  ;;  %v3162_v41 = vand.u32 4294901760, %v3139_v9  ;;  %873 = vmatpush.msra.mxu2 %v3139_v9  ;;  %721 = vmatpush.msra.mxu0 %v3103_v47 }
  0xad   : > { %5622 = vst [vmem:[#allocation34_spill] sm:$0xff] %v3143_v10  ;;  %v568_v32 = vadd.f32 %v567_v23, %v528_v1  ;;  %v654_v4 = vadd.f32 %v653_v57, %v614_v50  ;;  %784 = vmatpush.msra.mxu1 %v3134_v39  ;;  %v3165_v37 = vand.u32 4294901760, %v3143_v10  ;;  %v3168_v50 = vand.u32 4294901760, %v689_v28  ;;  %v688_v57 = vld [vmem:[%s5449_s4 + $0x10] sm:$0xff]  ;;  %v3174_v23 = vld [vmem:[%s2881_s11 + $0xa0] sm:$0xff]  ;;  %v3176_v1 = vpop.permute.xlu2 %424  ;;  %919 = vmatpush.msra.mxu3 %v3126_v21 }
  0xae   : > { %5623 = vst [vmem:[#allocation35_spill] sm:$0xff] %v3150_v40  ;;  %v3179_v52 = vsub.f32 %v690_v3, %v3152_v16  ;;  %v800_v29 = vsub.f32 %v3139_v9, %v3162_v41  ;;  %876 = vmatpush.msra.mxu2 %v3143_v10  ;;  %v3193_v3 = vand.u32 4294901760, %v688_v57  ;;  %723 = vmatpush.msra.mxu0 %v3126_v21 }
  0xaf   : > { %5625 = vst [vmem:[#allocation37_spill] sm:$0xff] %v3174_v23  ;;  %v655_v38 = vadd.f32 %v654_v4, %v615_v30  ;;  %790 = vmatpush.msra.mxu1 %v3136_v44  ;;  %v806_v30 = vsub.f32 %v3143_v10, %v3165_v37  ;;  %v569_v12 = vadd.f32 %v568_v32, %v529_v22  ;;  %v687_v10 = vld [vmem:[%s5449_s4 + $0x8] sm:$0xff]  ;;  %v686_v32 = vld [vmem:[%s5449_s4] sm:$0xff] }
  0xb0   : > { %5626 = vst [vmem:[#allocation38_spill] sm:$0xff] %v3176_v1  ;;  %v3183_v54 = vpop.permute.xlu1 %404  ;;  %v3185_v46 = vpop.permute.xlu0 %399  ;;  %v3200_v35 = vand.u32 4294901760, %v3179_v52  ;;  %921 = vmatpush.msra.mxu3 %v3152_v16  ;;  %v532_v9 = vmul.f32 %v3054_v2, %v3174_v23  ;;  %v3215_v22 = vsub.f32 %v689_v28, %v3168_v50  ;;  %879 = vmatpush.msra.mxu2 %v3179_v52 }
  0xb1   : > { %5627 = vst [vmem:[#allocation39_spill] sm:$0xff] %v3179_v52  ;;  %v531_v4 = vmul.f32 %v3183_v54, %v3150_v40  ;;  %v530_v8 = vmul.f32 %v3185_v46, %v3156_v25  ;;  %796 = vmatpush.msra.mxu1 %v3159_v56  ;;  %v656_v18 = vadd.f32 %v655_v38, %v616_v45 }
  0xb2   : > { %5628 = vst [vmem:[#allocation40_spill] sm:$0xff] %v3183_v54  ;;  %v3210_v54 = vand.u32 4294901760, %v800_v29  ;;  %v812_v29 = vsub.f32 %v3179_v52, %v3200_v35  ;;  %923 = vmatpush.msra.mxu3 %v3168_v50  ;;  %v3226_v28 = vand.u32 4294901760, %v3215_v22  ;;  %882 = vmatpush.msra.mxu2 %v3215_v22  ;;  %v3241_v52 = vld [vmem:[%s2881_s11 + $0xb0] sm:$0xff] }
  0xb3   : > { %5629 = vst [vmem:[#allocation41_spill] sm:$0xff] %v3185_v46  ;;  %v3212_v46 = vand.u32 4294901760, %v806_v30  ;;  %v570_v40 = vadd.f32 %v569_v12, %v530_v8  ;;  %v617_v25 = vmul.f32 %v530_v8, %v530_v8  ;;  %v3229_v30 = vsub.f32 %v688_v57, %v3193_v3  ;;  %725 = vmatpush.msra.mxu0 %v3152_v16 }
  0xb4   : > { %5630 = vst [vmem:[#allocation42_spill] sm:$0xff] %v3215_v22  ;;  %802 = vmatpush.msra.mxu1 %v3210_v54  ;;  %v3232_v12 = vand.u32 4294901760, %v687_v10  ;;  %v3234_v8 = vand.u32 4294901760, %v686_v32  ;;  %v618_v45 = vmul.f32 %v531_v4, %v531_v4  ;;  %v3236_v23 = vand.u32 4294901760, %v812_v29  ;;  %925 = vmatpush.msra.mxu3 %v3193_v3 }
  0xb5   : > { %5631 = vst [vmem:[#allocation43_spill] sm:$0xff] %v3229_v30  ;;  %v571_v38 = vadd.f32 %v570_v40, %v531_v4  ;;  %v657_v2 = vadd.f32 %v656_v18, %v617_v25  ;;  %v818_v57 = vsub.f32 %v3215_v22, %v3226_v28  ;;  %v3250_v42 = vand.u32 4294901760, %v3229_v30  ;;  %885 = vmatpush.msra.mxu2 %v3229_v30 }
  0xb6   : > { %5632 = vst [vmem:[#allocation44_spill] sm:$0xff] %v3241_v52  ;;  %808 = vmatpush.msra.mxu1 %v3212_v46  ;;  %v3253_v18 = vsub.f32 %v687_v10, %v3232_v12  ;;  %v3257_v40 = vsub.f32 %v686_v32, %v3234_v8  ;;  %727 = vmatpush.msra.mxu0 %v3168_v50 }
  0xb7   : > { %5633 = vst [vmem:[#allocation45_spill] sm:$0xff] %v3244_v17  ;;  %v658_v25 = vadd.f32 %v657_v2, %v618_v45  ;;  %927 = vmatpush.msra.mxu3 %v3232_v12  ;;  %v619_v4 = vmul.f32 %v532_v9, %v532_v9  ;;  %v3266_v19 = vand.u32 4294901760, %v818_v57  ;;  %v824_v10 = vsub.f32 %v3229_v30, %v3250_v42  ;;  %v3275_v2 = vld [vmem:[%s2881_s11 + $0xb8] sm:$0xff]  ;;  %v3277_v45 = vpop.permute.xlu2 %439 }
  0xb8   : > { %5634 = vst [vmem:[#allocation46_spill] sm:$0xff] %v3253_v18  ;;  %v3261_v29 = vpop.permute.xlu1 %419  ;;  %v3263_v22 = vpop.permute.xlu0 %414  ;;  %814 = vmatpush.msra.mxu1 %v3236_v23  ;;  %v3271_v32 = vand.u32 4294901760, %v3253_v18  ;;  %888 = vmatpush.msra.mxu2 %v3253_v18  ;;  %v572_v57 = vadd.f32 %v571_v38, %v532_v9  ;;  %v3284_v51 = vand.u32 4294901760, %v3257_v40 }
  0xb9   : > { %5635 = vst [vmem:[#allocation47_spill] sm:$0xff] %v3261_v29  ;;  %v534_v15 = vmul.f32 %v3261_v29, %v3241_v52  ;;  %v533_v63 = vmul.f32 %v3263_v22, %v3244_v17  ;;  %729 = vmatpush.msra.mxu0 %v3193_v3  ;;  %929 = vmatpush.msra.mxu3 %v3234_v8  ;;  %v3289_v30 = vand.u32 4294901760, %v824_v10 }
  0xba   : > { %5636 = vst [vmem:[#allocation48_spill] sm:$0xff] %v3263_v22  ;;  %820 = vmatpush.msra.mxu1 %v3266_v19  ;;  %v830_v33 = vsub.f32 %v3253_v18, %v3271_v32  ;;  %891 = vmatpush.msra.mxu2 %v3257_v40  ;;  %v659_v38 = vadd.f32 %v658_v25, %v619_v4  ;;  %v3308_v25 = vld [vmem:[%s2881_s11 + $0xc8] sm:$0xff]  ;;  %v3311_v4 = vld [vmem:[%s2881_s11 + $0xc0] sm:$0xff] }
  0xbb   : > { %5637 = vst [vmem:[#allocation49_spill] sm:$0xff] %v3275_v2  ;;  %v573_v29 = vadd.f32 %v572_v57, %v533_v63  ;;  %v620_v9 = vmul.f32 %v533_v63, %v533_v63  ;;  %v836_v22 = vsub.f32 %v3257_v40, %v3284_v51  ;;  %v535_v52 = vmul.f32 %v3176_v1, %v3275_v2 }
  0xbc   : > { %5638 = vst [vmem:[#allocation50_spill] sm:$0xff] %v3277_v45  ;;  %1044 = vmatpush.msrb.mxu2 %v2916_v26  ;;  %826 = vmatpush.msra.mxu1 %v3289_v30  ;;  %v3300_v10 = vand.u32 4294901760, %v830_v33  ;;  %v621_v17 = vmul.f32 %v534_v15, %v534_v15 }
  0xbd   : > { %1089 = vmatpush.msrb.mxu3 %v2978_v11  ;;  %v574_v18 = vadd.f32 %v573_v29, %v534_v15  ;;  %v660_v57 = vadd.f32 %v659_v38, %v620_v9  ;;  %v3303_v63 = vand.u32 4294901760, %v836_v22  ;;  %731 = vmatpush.msra.mxu0 %v3232_v12  ;;  %v622_v11 = vmul.f32 %v535_v52, %v535_v52  ;;  %v3324_v29 = vld [vmem:[%s2881_s11 + $0xd0] sm:$0xff] }
  0xbe   : > { %1046 = vmatpush.msrb.mxu2 %v2926_v34  ;;  %832 = vmatpush.msra.mxu1 %v3300_v10 }
  0xbf   : > { %1095 = vmatpush.msrb.mxu3 %v3007_v24  ;;  %v661_v33 = vadd.f32 %v660_v57, %v621_v17  ;;  %733 = vmatpush.msra.mxu0 %v3234_v8  ;;  %v575_v17 = vadd.f32 %v574_v18, %v535_v52  ;;  %v3334_v38 = vpop.permute.xlu2 %454  ;;  %v538_v52 = vmul.f32 %v3277_v45, %v3324_v29 }
  0xc0   : > { %1048 = vmatpush.msrb.mxu2 %v2947_v53  ;;  %v3317_v15 = vpop.permute.xlu1 %434  ;;  %v3319_v22 = vpop.permute.xlu0 %429  ;;  %838 = vmatpush.msra.mxu1 %v3303_v63  ;;  %5641 = vst [vmem:[#allocation53_spill] sm:$0xff] %v3334_v38 }
  0xc1   : > { %5639 = vst [vmem:[#allocation51_spill] sm:$0xff] %v3317_v15  ;;  %940 = vmatpush.msrb.mxu0 %v2942_v49  ;;  %v537_v9 = vmul.f32 %v3317_v15, %v3308_v25  ;;  %v536_v24 = vmul.f32 %v3319_v22, %v3311_v4  ;;  %1101 = vmatpush.msrb.mxu3 %v3026_v36 }
  0xc2   : > { %5640 = vst [vmem:[#allocation52_spill] sm:$0xff] %v3319_v22  ;;  %1007 = vmatpush.msrb.mxu1 %v2916_v26  ;;  %1050 = vmatpush.msrb.mxu2 %v2966_v0  ;;  %v662_v2 = vadd.f32 %v661_v33, %v622_v11  ;;  %v3345_v33 = vld [vmem:[%s2881_s11 + $0xe0] sm:$0xff]  ;;  %v3348_v11 = vld [vmem:[%s2881_s11 + $0xd8] sm:$0xff] }
  0xc3   : > { %944 = vmatpush.msrb.mxu0 %v2960_v62  ;;  %v576_v57 = vadd.f32 %v575_v17, %v536_v24  ;;  %v623_v1 = vmul.f32 %v536_v24, %v536_v24  ;;  %1107 = vmatpush.msrb.mxu3 %v3041_v58  ;;  %v624_v36 = vmul.f32 %v537_v9, %v537_v9 }
  0xc4   : > { %1009 = vmatpush.msrb.mxu1 %v2926_v34  ;;  %1052 = vmatpush.msrb.mxu2 %v2973_v6  ;;  %5642 = vst [vmem:[#allocation54_spill] sm:$0xff] %v3345_v33  ;;  %v625_v58 = vmul.f32 %v538_v52, %v538_v52 }
  0xc5   : > { %948 = vmatpush.msrb.mxu0 %v2983_v14  ;;  %v577_v18 = vadd.f32 %v576_v57, %v537_v9  ;;  %v663_v15 = vadd.f32 %v662_v2, %v623_v1  ;;  %1113 = vmatpush.msrb.mxu3 %v3056_v5  ;;  %v3361_v2 = vld [vmem:[%s2881_s11 + $0xe8] sm:$0xff] }
  0xc6   : > { %1011 = vmatpush.msrb.mxu1 %v2947_v53  ;;  %1054 = vmatpush.msrb.mxu2 %v2996_v20  ;;  %5645 = vst [vmem:[#allocation57_spill] sm:$0xff] %v3361_v2 }
  0xc7   : > { %952 = vmatpush.msrb.mxu0 %v3012_v27  ;;  %v664_v24 = vadd.f32 %v663_v15, %v624_v36  ;;  %1119 = vmatpush.msrb.mxu3 %v3094_v43  ;;  %v578_v17 = vadd.f32 %v577_v18, %v538_v52  ;;  %v541_v52 = vmul.f32 %v3334_v38, %v3361_v2  ;;  %v3377_v18 = vpop.permute.xlu2 %469 }
  0xc8   : > { %1013 = vmatpush.msrb.mxu1 %v2966_v0  ;;  %1056 = vmatpush.msrb.mxu2 %v3046_v60  ;;  %v3354_v9 = vpop.permute.xlu1 %449  ;;  %v3356_v1 = vpop.permute.xlu0 %444  ;;  %5646 = vst [vmem:[#allocation58_spill] sm:$0xff] %v3377_v18 }
  0xc9   : > { %5643 = vst [vmem:[#allocation55_spill] sm:$0xff] %v3354_v9  ;;  %956 = vmatpush.msrb.mxu0 %v3018_v31  ;;  %v540_v5 = vmul.f32 %v3354_v9, %v3345_v33  ;;  %v539_v15 = vmul.f32 %v3356_v1, %v3348_v11  ;;  %1125 = vmatpush.msrb.mxu3 %v3134_v39 }
  0xca   : > { %5644 = vst [vmem:[#allocation56_spill] sm:$0xff] %v3356_v1  ;;  %1015 = vmatpush.msrb.mxu1 %v2973_v6  ;;  %1058 = vmatpush.msrb.mxu2 %v3049_v61  ;;  %v665_v36 = vadd.f32 %v664_v24, %v625_v58  ;;  %v3382_v24 = vld [vmem:[%s2881_s11 + $0xf8] sm:$0xff]  ;;  %v3385_v58 = vld [vmem:[%s2881_s11 + $0xf0] sm:$0xff] }
  0xcb   : > { %960 = vmatpush.msrb.mxu0 %v3044_v59  ;;  %v579_v43 = vadd.f32 %v578_v17, %v539_v15  ;;  %v626_v57 = vmul.f32 %v539_v15, %v539_v15  ;;  %1131 = vmatpush.msrb.mxu3 %v3136_v44  ;;  %v627_v39 = vmul.f32 %v540_v5, %v540_v5 }
  0xcc   : > { %1017 = vmatpush.msrb.mxu1 %v2996_v20  ;;  %1060 = vmatpush.msrb.mxu2 %v3058_v7  ;;  %5647 = vst [vmem:[#allocation59_spill] sm:$0xff] %v3382_v24 }
  0xcd   : > { %964 = vmatpush.msrb.mxu0 %v3097_v48  ;;  %v580_v9 = vadd.f32 %v579_v43, %v540_v5  ;;  %v666_v1 = vadd.f32 %v665_v36, %v626_v57  ;;  %5648 = vst [vmem:[#allocation60_spill] sm:$0xff] %v3385_v58  ;;  %1137 = vmatpush.msrb.mxu3 %v3159_v56  ;;  %v3398_v43 = vld [vmem:[%s2881_s11 + $0x100] sm:$0xff] }
  0xce   : > { %1019 = vmatpush.msrb.mxu1 %v3046_v60  ;;  %1062 = vmatpush.msrb.mxu2 %v3103_v47  ;;  %v628_v5 = vmul.f32 %v541_v52, %v541_v52  ;;  %5651 = vst [vmem:[#allocation63_spill] sm:$0xff] %v3398_v43 }
  0xcf   : > { %968 = vmatpush.msrb.mxu0 %v3100_v55  ;;  %v667_v44 = vadd.f32 %v666_v1, %v627_v39  ;;  %1143 = vmatpush.msrb.mxu3 %v3210_v54  ;;  %v581_v57 = vadd.f32 %v580_v9, %v541_v52  ;;  %v544_v9 = vmul.f32 %v3377_v18, %v3398_v43 }
  0xd0   : > { %1021 = vmatpush.msrb.mxu1 %v3049_v61  ;;  %1064 = vmatpush.msrb.mxu2 %v3126_v21  ;;  %v3391_v15 = vpop.permute.xlu1 %464  ;;  %v3393_v17 = vpop.permute.xlu0 %459 }
  0xd1   : > { %5649 = vst [vmem:[#allocation61_spill] sm:$0xff] %v3391_v15  ;;  %972 = vmatpush.msrb.mxu0 %v3114_v13  ;;  %v543_v56 = vmul.f32 %v3391_v15, %v3382_v24  ;;  %v542_v1 = vmul.f32 %v3393_v17, %v3385_v58  ;;  %1149 = vmatpush.msrb.mxu3 %v3212_v46 }
  0xd2   : > { %5650 = vst [vmem:[#allocation62_spill] sm:$0xff] %v3393_v17  ;;  %1023 = vmatpush.msrb.mxu1 %v3058_v7  ;;  %1066 = vmatpush.msrb.mxu2 %v3152_v16  ;;  %v668_v39 = vadd.f32 %v667_v44, %v628_v5  ;;  %v3420_v44 = vld [vmem:[%s2881_s11 + $0x108] sm:$0xff]  ;;  %v3424_v5 = vpop.permute.xlu2 %484 }
  0xd3   : > { %976 = vmatpush.msrb.mxu0 %v3162_v41  ;;  %v582_v54 = vadd.f32 %v581_v57, %v542_v1  ;;  %v629_v36 = vmul.f32 %v542_v1, %v542_v1  ;;  %1155 = vmatpush.msrb.mxu3 %v3236_v23  ;;  %v630_v52 = vmul.f32 %v543_v56, %v543_v56  ;;  %v3417_v1 = vld [vmem:[%s2881_s11 + $0x110] sm:$0xff] }
  0xd4   : > { %1025 = vmatpush.msrb.mxu1 %v3103_v47  ;;  %1068 = vmatpush.msrb.mxu2 %v3168_v50  ;;  %5652 = vst [vmem:[#allocation64_spill] sm:$0xff] %v3417_v1 }
  0xd5   : > { %980 = vmatpush.msrb.mxu0 %v3165_v37  ;;  %v583_v15 = vadd.f32 %v582_v54, %v543_v56  ;;  %v669_v46 = vadd.f32 %v668_v39, %v629_v36  ;;  %5653 = vst [vmem:[#allocation65_spill] sm:$0xff] %v3420_v44  ;;  %1161 = vmatpush.msrb.mxu3 %v3266_v19 }
  0xd6   : > { %1027 = vmatpush.msrb.mxu1 %v3126_v21  ;;  %1070 = vmatpush.msrb.mxu2 %v3193_v3  ;;  %5654 = vst [vmem:[#allocation66_spill] sm:$0xff] %v3424_v5  ;;  %v631_v56 = vmul.f32 %v544_v9, %v544_v9 }
  0xd7   : > { %984 = vmatpush.msrb.mxu0 %v3200_v35  ;;  %v670_v23 = vadd.f32 %v669_v46, %v630_v52  ;;  %1167 = vmatpush.msrb.mxu3 %v3289_v30  ;;  %v584_v39 = vadd.f32 %v583_v15, %v544_v9  ;;  %v3441_v52 = vld [vmem:[%s2881_s11 + $0x118] sm:$0xff] }
  0xd8   : > { %1029 = vmatpush.msrb.mxu1 %v3152_v16  ;;  %1072 = vmatpush.msrb.mxu2 %v3232_v12  ;;  %v3428_v57 = vpop.permute.xlu1 %479  ;;  %v3430_v54 = vpop.permute.xlu0 %474  ;;  %5657 = vst [vmem:[#allocation69_spill] sm:$0xff] %v3441_v52  ;;  %v547_v15 = vmul.f32 %v3424_v5, %v3441_v52  ;;  %v3470_v5 = vld [vmem:[%s2881_s11 + $0x130] sm:$0xff] }
  0xd9   : > { %5655 = vst [vmem:[#allocation67_spill] sm:$0xff] %v3428_v57  ;;  %988 = vmatpush.msrb.mxu0 %v3226_v28  ;;  %v546_v19 = vmul.f32 %v3428_v57, %v3417_v1  ;;  %v545_v36 = vmul.f32 %v3430_v54, %v3420_v44  ;;  %1173 = vmatpush.msrb.mxu3 %v3300_v10  ;;  %v3452_v10 = vld [vmem:[%s2881_s11 + $0x128] sm:$0xff]  ;;  %v3475_v1 = vld [vmem:[%s2881_s11 + $0x140] sm:$0xff] }
  0xda   : > { %5656 = vst [vmem:[#allocation68_spill] sm:$0xff] %v3430_v54  ;;  %1031 = vmatpush.msrb.mxu1 %v3168_v50  ;;  %1074 = vmatpush.msrb.mxu2 %v3234_v8  ;;  %v671_v18 = vadd.f32 %v670_v23, %v631_v56 }
  0xdb   : > { %992 = vmatpush.msrb.mxu0 %v3250_v42  ;;  %v585_v30 = vadd.f32 %v584_v39, %v545_v36  ;;  %v632_v46 = vmul.f32 %v545_v36, %v545_v36  ;;  %1179 = vmatpush.msrb.mxu3 %v3303_v63  ;;  %v633_v9 = vmul.f32 %v546_v19, %v546_v19  ;;  %v3455_v39 = vld [vmem:[%s2881_s11 + $0x120] sm:$0xff] }
  0xdc   : > { %1033 = vmatpush.msrb.mxu1 %v3193_v3  ;;  %5658 = vst [vmem:[#allocation70_spill] sm:$0xff] %v3452_v10  ;;  %v634_v36 = vmul.f32 %v547_v15, %v547_v15 }
  0xdd   : > { %996 = vmatpush.msrb.mxu0 %v3271_v32  ;;  %v586_v57 = vadd.f32 %v585_v30, %v546_v19  ;;  %v672_v54 = vadd.f32 %v671_v18, %v632_v46  ;;  %5659 = vst [vmem:[#allocation71_spill] sm:$0xff] %v3455_v39  ;;  %v3467_v46 = vpop.permute.xlu2 %499 }
  0xde   : > { %1035 = vmatpush.msrb.mxu1 %v3232_v12  ;;  %5662 = vst [vmem:[#allocation74_spill] sm:$0xff] %v3467_v46  ;;  %v550_v38 = vmul.f32 %v3467_v46, %v3470_v5 }
  0xdf   : > { %1000 = vmatpush.msrb.mxu0 %v3284_v51  ;;  %v673_v23 = vadd.f32 %v672_v54, %v633_v9  ;;  %v587_v30 = vadd.f32 %v586_v57, %v547_v15  ;;  %5663 = vst [vmem:[#allocation75_spill] sm:$0xff] %v3470_v5 }
  0xe0   : > { %1037 = vmatpush.msrb.mxu1 %v3234_v8  ;;  %v3459_v63 = vpop.permute.xlu1 %494  ;;  %v3461_v56 = vpop.permute.xlu0 %489  ;;  %5664 = vst [vmem:[#allocation76_spill] sm:$0xff] %v3475_v1  ;;  %v637_v15 = vmul.f32 %v550_v38, %v550_v38 }
  0xe1   : > { %5660 = vst [vmem:[#allocation72_spill] sm:$0xff] %v3459_v63  ;;  %v549_v18 = vmul.f32 %v3459_v63, %v3452_v10  ;;  %v548_v19 = vmul.f32 %v3461_v56, %v3455_v39  ;;  %v674_v17 = vadd.f32 %v673_v23, %v634_v36  ;;  %v3478_v63 = vld [vmem:[%s2881_s11 + $0x138] sm:$0xff] }
  0xe2   : > { %5661 = vst [vmem:[#allocation73_spill] sm:$0xff] %v3461_v56 }
  0xe3   : > { %v588_v54 = vadd.f32 %v587_v30, %v548_v19  ;;  %v635_v9 = vmul.f32 %v548_v19, %v548_v19  ;;  %v636_v45 = vmul.f32 %v549_v18, %v549_v18 }
  0xe5   : > { %v589_v22 = vadd.f32 %v588_v54, %v549_v18  ;;  %v675_v52 = vadd.f32 %v674_v17, %v635_v9 }
  0xe7   : > { %v676_v10 = vadd.f32 %v675_v52, %v636_v45  ;;  %v590_v36 = vadd.f32 %v589_v22, %v550_v38 }
  0xe8   : > { %v3480_v56 = vpop.permute.xlu1 %509  ;;  %v3482_v57 = vpop.permute.xlu0 %504 }
  0xe9   : > { %5665 = vst [vmem:[#allocation77_spill] sm:$0xff] %v3480_v56  ;;  %v552_v19 = vmul.f32 %v3480_v56, %v3475_v1  ;;  %v551_v23 = vmul.f32 %v3482_v57, %v3478_v63  ;;  %v677_v17 = vadd.f32 %v676_v10, %v637_v15 }
  0xea   : > { %5666 = vst [vmem:[#allocation78_spill] sm:$0xff] %v3482_v57 }
  0xeb   : > { %v591_v30 = vadd.f32 %v590_v36, %v551_v23  ;;  %v638_v18 = vmul.f32 %v551_v23, %v551_v23  ;;  %v639_v54 = vmul.f32 %v552_v19, %v552_v19 }
  0xed   : > { %v592_v9 = vadd.f32 %v591_v30, %v552_v19  ;;  %v678_v46 = vadd.f32 %v677_v17, %v638_v18 }
  0xef   : > { %v593_v5 = vrot.slane %v592_v9, 4  ;;  %v679_v45 = vadd.f32 %v678_v46, %v639_v54 }
  0xf1   : > { %v594_v52 = vadd.f32 %v593_v5, %v592_v9  ;;  %v680_v39 = vrot.slane %v679_v45, 4 }
  0xf3   : > { %v595_v44 = vrot.slane %v594_v52, 2  ;;  %v681_v43 = vadd.f32 %v680_v39, %v679_v45 }
  0xf5   : > { %v596_v24 = vadd.f32 %v595_v44, %v594_v52  ;;  %v682_v58 = vrot.slane %v681_v43, 2  ;;  %v2674_v52 = vld [vmem:[%s2881_s11] sm:$0xff] }
  0xf7   : > { %v597_v2 = vrot.slane %v596_v24, 1  ;;  %v683_v56 = vadd.f32 %v682_v58, %v681_v43  ;;  %v5667_v43 = vld [vmem:[#allocation13_spill] sm:$0xff] }
  0xf9   : > { %v684_v1 = vrot.slane %v683_v56, 1  ;;  %v598_v33 = vadd.f32 %v597_v2, %v596_v24 }
  0xfb   : > { %v734_v57 = vand.u32 4294901760, %v598_v33  ;;  %v685_v22 = vadd.f32 %v684_v1, %v683_v56 }
  0xfd   : > { %840 = vmatmul.f32.vlgmr.msra.gmra.mxu1 %v734_v57  ;;  %v735_v38 = vsub.f32 %v598_v33, %v734_v57  ;;  %v3488_v10 = vand.u32 4294901760, %v685_v22 }
  0xfe   : > { %1240 = vmatpush.msra.mxu1 %v2916_v26 }
  0xff   : > { %894 = vmatmul.f32.vlgmr.msra.gmra.mxu2 %v735_v38  ;;  %v736_v46 = vand.u32 4294901760, %v735_v38  ;;  %v3492_v5 = vsub.f32 %v685_v22, %v3488_v10 }
 0x100   : > { %1242 = vmatpush.msra.mxu1 %v2926_v34  ;;  %1281 = vmatpush.msra.mxu2 %v2942_v49 }
 0x101   : > { %933 = vmatmul.f32.vlgmr.msra.gmra.mxu3 %v736_v46  ;;  %v737_v58 = vsub.f32 %v735_v38, %v736_v46  ;;  %v1077_v2 = vand.u32 4294901760, %v3492_v5  ;;  %v2675_v38 = vld [vmem:[%s2881_s11 + $0x8] sm:$0xff] }
 0x102   : > { %1244 = vmatpush.msra.mxu1 %v2947_v53  ;;  %1285 = vmatpush.msra.mxu2 %v2960_v62  ;;  %v5671_v62 = vld [vmem:[#allocation20_spill] sm:$0xff] }
 0x103   : > { %1348 = vmatpush.msra.mxu3 %v2916_v26  ;;  %v738_v33 = vand.u32 4294901760, %v737_v58  ;;  %v1078_v24 = vsub.f32 %v3492_v5, %v1077_v2  ;;  %v5668_v26 = vld [vmem:[#allocation16_spill] sm:$0xff] }
 0x104   : > { %1246 = vmatpush.msra.mxu1 %v2966_v0  ;;  %1289 = vmatpush.msra.mxu2 %v2983_v14  ;;  %v5674_v14 = vld [vmem:[#allocation28_spill] sm:$0xff] }
 0x105   : > { %1350 = vmatpush.msra.mxu3 %v2926_v34  ;;  %739 = vmatmul.f32.vlgmr.msra.gmra.mxu0 %v738_v33  ;;  %v1079_v49 = vand.u32 4294901760, %v1078_v24  ;;  %v5669_v34 = vld [vmem:[#allocation18_spill] sm:$0xff]  ;;  %v2676_v58 = vld [vmem:[%s2881_s11 + $0x10] sm:$0xff]  ;;  %v2677_v33 = vld [vmem:[%s2881_s11 + $0x18] sm:$0xff] }
 0x106   : > { %1039 = vmatmul.f32.vlgmr.msrb.gmra.mxu1 %v734_v57  ;;  %1187 = vmatpush.msra.mxu0 %v5667_v43 }
 0x107   : > { %1248 = vmatpush.msra.mxu1 %v2973_v6  ;;  %1293 = vmatpush.msra.mxu2 %v3012_v27  ;;  %v5679_v27 = vld [vmem:[#allocation42_spill] sm:$0xff] }
 0x108   : > { %1352 = vmatpush.msra.mxu3 %v2947_v53  ;;  %1080 = vmatmul.f32.vlgmr.msrb.gmra.mxu2 %v1079_v49  ;;  %v5670_v53 = vld [vmem:[#allocation19_spill] sm:$0xff]  ;;  %v2678_v49 = vld [vmem:[%s2881_s11 + $0x20] sm:$0xff] }
 0x109   : > { %1190 = vmatpush.msra.mxu0 %v5668_v26  ;;  %1250 = vmatpush.msra.mxu1 %v2996_v20  ;;  %v2679_v26 = vld [vmem:[%s2881_s11 + $0x28] sm:$0xff] }
 0x10a   : > { %1297 = vmatpush.msra.mxu2 %v3018_v31  ;;  %1354 = vmatpush.msra.mxu3 %v2966_v0  ;;  %v5672_v0 = vld [vmem:[#allocation23_spill] sm:$0xff] }
 0x10b   : > { %1181 = vmatmul.f32.vlgmr.msrb.gmra.mxu3 %v3488_v10  ;;  %1193 = vmatpush.msra.mxu0 %v5669_v34  ;;  %v5680_v31 = vld [vmem:[#allocation43_spill] sm:$0xff] }
 0x10c   : > { %1252 = vmatpush.msra.mxu1 %v3046_v60  ;;  %1301 = vmatpush.msra.mxu2 %v3044_v59 }
 0x10d   : > { %1356 = vmatpush.msra.mxu3 %v2973_v6  ;;  %1196 = vmatpush.msra.mxu0 %v5670_v53  ;;  %v5673_v6 = vld [vmem:[#allocation27_spill] sm:$0xff]  ;;  %v2680_v53 = vld [vmem:[%s2881_s11 + $0x30] sm:$0xff] }
 0x10e   : > { %1254 = vmatpush.msra.mxu1 %v3049_v61  ;;  %1305 = vmatpush.msra.mxu2 %v3097_v48 }
 0x10f   : > { %1358 = vmatpush.msra.mxu3 %v2996_v20  ;;  %1002 = vmatmul.f32.vlgmr.msrb.gmra.mxu0 %v734_v57  ;;  %v5675_v20 = vld [vmem:[#allocation30_spill] sm:$0xff] }
 0x110   : > { %1199 = vmatpush.msra.mxu0 %v5671_v62  ;;  %1256 = vmatpush.msra.mxu1 %v3058_v7 }
 0x111   : > { %1309 = vmatpush.msra.mxu2 %v3100_v55  ;;  %1360 = vmatpush.msra.mxu3 %v3046_v60 }
 0x112   : > { %1202 = vmatpush.msra.mxu0 %v5672_v0  ;;  %1258 = vmatpush.msra.mxu1 %v3103_v47  ;;  %v2681_v0 = vld [vmem:[%s2881_s11 + $0x38] sm:$0xff] }
 0x113   : > { %1313 = vmatpush.msra.mxu2 %v3114_v13  ;;  %1362 = vmatpush.msra.mxu3 %v3049_v61  ;;  %v5676_v13 = vld [vmem:[#allocation33_spill] sm:$0xff] }
 0x114   : > { %1205 = vmatpush.msra.mxu0 %v5673_v6  ;;  %1260 = vmatpush.msra.mxu1 %v3126_v21 }
 0x115   : > { %1317 = vmatpush.msra.mxu2 %v3162_v41  ;;  %1364 = vmatpush.msra.mxu3 %v3058_v7  ;;  %v5677_v41 = vld [vmem:[#allocation34_spill] sm:$0xff] }
 0x116   : > { %1208 = vmatpush.msra.mxu0 %v5674_v14  ;;  %1262 = vmatpush.msra.mxu1 %v3152_v16  ;;  %v2682_v14 = vld [vmem:[%s2881_s11 + $0x40] sm:$0xff] }
 0x117   : > { %1321 = vmatpush.msra.mxu2 %v3165_v37  ;;  %1366 = vmatpush.msra.mxu3 %v3103_v47  ;;  %v5678_v37 = vld [vmem:[#allocation39_spill] sm:$0xff] }
 0x118   : > { %1211 = vmatpush.msra.mxu0 %v5675_v20  ;;  %1264 = vmatpush.msra.mxu1 %v3168_v50 }
 0x119   : > { %1325 = vmatpush.msra.mxu2 %v3200_v35  ;;  %1368 = vmatpush.msra.mxu3 %v3126_v21 }
 0x11a   : > { %1214 = vmatpush.msra.mxu0 %v5676_v13  ;;  %1266 = vmatpush.msra.mxu1 %v3193_v3  ;;  %v2683_v13 = vld [vmem:[%s2881_s11 + $0x48] sm:$0xff] }
 0x11b   : > { %1329 = vmatpush.msra.mxu2 %v3226_v28  ;;  %1370 = vmatpush.msra.mxu3 %v3152_v16 }
 0x11c   : > { %1217 = vmatpush.msra.mxu0 %v5677_v41  ;;  %1268 = vmatpush.msra.mxu1 %v3232_v12 }
 0x11d   : > { %1333 = vmatpush.msra.mxu2 %v3250_v42  ;;  %1372 = vmatpush.msra.mxu3 %v3168_v50  ;;  %v5681_v42 = vld [vmem:[#allocation46_spill] sm:$0xff] }
 0x11e   : > { %1220 = vmatpush.msra.mxu0 %v5678_v37  ;;  %1270 = vmatpush.msra.mxu1 %v3234_v8  ;;  %v2684_v37 = vld [vmem:[%s2881_s11 + $0x50] sm:$0xff] }
 0x11f   : > { %1337 = vmatpush.msra.mxu2 %v3271_v32  ;;  %1374 = vmatpush.msra.mxu3 %v3193_v3 }
 0x120   : > { %1274 = vmatmul.f32.vlgmr.msra.gmra.mxu1 %v1077_v2  ;;  %1223 = vmatpush.msra.mxu0 %v5679_v27 }
 0x121   : > { %1341 = vmatpush.msra.mxu2 %v3284_v51  ;;  %1376 = vmatpush.msra.mxu3 %v3232_v12 }
 0x122   : > { %1343 = vmatmul.f32.vlgmr.msra.gmra.mxu2 %v3488_v10  ;;  %1226 = vmatpush.msra.mxu0 %v5680_v31  ;;  %v2685_v31 = vld [vmem:[%s2881_s11 + $0x58] sm:$0xff] }
 0x123   : > { %1378 = vmatpush.msra.mxu3 %v3234_v8 }
 0x124   : > { %1380 = vmatmul.f32.vlgmr.msra.gmra.mxu3 %v3488_v10  ;;  %1229 = vmatpush.msra.mxu0 %v5681_v42 }
 0x126   : > { %1232 = vmatpush.msra.mxu0 %v3257_v40 }
 0x127   : > { %1235 = vmatmul.f32.vlgmr.msra.gmra.mxu0 %v3492_v5  ;;  %v1439_v5 = vld [vmem:[%s5447_s2] sm:$0x1] }
 0x17a   : > { %v841_v60 = vpop.f32.mrf.mxu1 }
 0x182   : > { %v740_v59 = vpop.f32.mrf.mxu0  ;;  %v895_v51 = vpop.f32.mrf.mxu2 }
 0x183   : > { %v1040_v35 = vpop.f32.mrf.mxu1  ;;  %v842_v55 = vadd.f32 %v841_v60, %v740_v59  ;;  %v2686_v59 = vld [vmem:[%s2881_s11 + $0x60] sm:$0xff] }
 0x184   : > { %v934_v61 = vpop.f32.mrf.mxu3 }
 0x185   : > { %v896_v50 = vadd.f32 %v895_v51, %v842_v55  ;;  %v2687_v51 = vld [vmem:[%s2881_s11 + $0x68] sm:$0xff]  ;;  %v5684_v55 = vld [vmem:[#allocation26_spill] sm:$0xff] }
 0x187   : > { %v935_v12 = vadd.f32 %v934_v61, %v896_v50  ;;  %v5686_v50 = vld [vmem:[#allocation29_spill] sm:$0xff] }
 0x18b   : > { %v1081_v47 = vpop.f32.mrf.mxu2 }
 0x18c   : > { %v1003_v7 = vpop.f32.mrf.mxu0 }
 0x18d   : > { %v1004_v32 = vadd.f32 %v1003_v7, %v935_v12 }
 0x18e   : > { %v1182_v48 = vpop.f32.mrf.mxu3 }
 0x18f   : > { %v1183_v16 = vadd.f32 %v1182_v48, %v1081_v47  ;;  %v1041_v44 = vadd.f32 %v1040_v35, %v1004_v32  ;;  %v2688_v35 = vld [vmem:[%s2881_s11 + $0x70] sm:$0xff] }
 0x191   : > { %v1384_v57 = vmul.f32 %v1041_v44, %v1041_v44  ;;  %v3563_v54 = vperm.slane %v1041_v44, 0  ;;  %v5690_v44 = vld [vmem:[#allocation45_spill] sm:$0xff] }
 0x193   : > { %v1398_v22 = vsub.f32 %v2674_v52, %v3563_v54  ;;  %v1399_v10 = vsub.f32 %v2675_v38, %v3563_v54  ;;  %v1400_v2 = vsub.f32 %v2676_v58, %v3563_v54  ;;  %v1401_v24 = vsub.f32 %v2677_v33, %v3563_v54  ;;  %v5694_v52 = vld [vmem:[#allocation57_spill] sm:$0xff] }
 0x194   : > { %v1402_v43 = vsub.f32 %v2678_v49, %v3563_v54  ;;  %v1403_v34 = vsub.f32 %v2679_v26, %v3563_v54  ;;  %v1404_v62 = vsub.f32 %v2680_v53, %v3563_v54  ;;  %v1405_v6 = vsub.f32 %v2681_v0, %v3563_v54  ;;  %v5700_v53 = vld [vmem:[#allocation69_spill] sm:$0xff] }
 0x195   : > { %v1406_v20 = vsub.f32 %v2682_v14, %v3563_v54  ;;  %v1407_v41 = vsub.f32 %v2683_v13, %v3563_v54  ;;  %v1408_v27 = vsub.f32 %v2684_v37, %v3563_v54  ;;  %v1409_v42 = vsub.f32 %v2685_v31, %v3563_v54  ;;  %v5701_v14 = vld [vmem:[#allocation71_spill] sm:$0xff]  ;;  %v5702_v37 = vld [vmem:[#allocation70_spill] sm:$0xff] }
 0x196   : > { %v1410_v60 = vsub.f32 %v2686_v59, %v3563_v54  ;;  %v1411_v7 = vsub.f32 %v2687_v51, %v3563_v54  ;;  %v1412_v48 = vsub.f32 %v2688_v35, %v3563_v54  ;;  %v1413_v47 = vsub.f32 %v5684_v55, %v3563_v54  ;;  %v5703_v59 = vld [vmem:[#allocation75_spill] sm:$0xff]  ;;  %v5704_v35 = vld [vmem:[#allocation76_spill] sm:$0xff] }
 0x197   : > { %v1427_v38 = vsub.f32 %v5694_v52, %v3563_v54  ;;  %v1433_v0 = vsub.f32 %v5700_v53, %v3563_v54  ;;  %v1434_v13 = vsub.f32 %v5701_v14, %v3563_v54  ;;  %v1435_v31 = vsub.f32 %v5702_v37, %v3563_v54 }
 0x198   : > { %v1437_v51 = vsub.f32 %v3478_v63, %v3563_v54  ;;  %v1438_v55 = vsub.f32 %v5704_v35, %v3563_v54 }
 0x19d   : > { %v1275_v28 = vpop.f32.mrf.mxu1 }
 0x1a4   : > { %v1236_v21 = vpop.f32.mrf.mxu0 }
 0x1a5   : > { %v1237_v3 = vadd.f32 %v1236_v21, %v1183_v16  ;;  %v1344_v40 = vpop.f32.mrf.mxu2  ;;  %v5685_v21 = vld [vmem:[#allocation25_spill] sm:$0xff] }
 0x1a6   : > { %v1414_v16 = vsub.f32 %v5685_v21, %v3563_v54 }
 0x1a7   : > { %v1276_v8 = vadd.f32 %v1275_v28, %v1237_v3  ;;  %v1381_v39 = vpop.f32.mrf.mxu3  ;;  %v1415_v3 = vsub.f32 %v5686_v50, %v3563_v54  ;;  %v5687_v28 = vld [vmem:[#allocation36_spill] sm:$0xff] }
 0x1a8   : > { %v1416_v12 = vsub.f32 %v5687_v28, %v3563_v54 }
 0x1a9   : > { %v1345_v1 = vadd.f32 %v1344_v40, %v1276_v8  ;;  %v5688_v8 = vld [vmem:[#allocation35_spill] sm:$0xff]  ;;  %v5689_v40 = vld [vmem:[#allocation37_spill] sm:$0xff] }
 0x1aa   : > { %v1417_v32 = vsub.f32 %v5688_v8, %v3563_v54 }
 0x1ab   : > { %v1382_v56 = vadd.f32 %v1381_v39, %v1345_v1  ;;  %v1418_v1 = vsub.f32 %v5689_v40, %v3563_v54  ;;  %v1419_v39 = vsub.f32 %v5690_v44, %v3563_v54 }
 0x1ad   : > { %v1385_v15 = vsub.f32 %v1382_v56, %v1384_v57  ;;  %v5691_v56 = vld [vmem:[#allocation44_spill] sm:$0xff] }
 0x1ae   : > { %v1420_v57 = vsub.f32 %v5691_v56, %v3563_v54 }
 0x1af   : > { %v1386_v19 = vadd.f32 1e-06, %v1385_v15  ;;  %v5692_v15 = vld [vmem:[#allocation49_spill] sm:$0xff] }
 0x1b1   : > { %2508 = vrsqrt.f32 %v1386_v19  ;;  %vm1393_vm1 = vweird.f32 %v1386_v19 }
 0x1b7   : > { %v2509_v23 = vpop.eup %2508 }
 0x1b8   : > { %v1388_v36 = vmul.f32 %v2509_v23, %v1386_v19  ;;  %vm1394_vm0 = vweird.f32 %v2509_v23  ;;  %v1421_v19 = vsub.f32 %v5692_v15, %v3563_v54 }
 0x1b9   : > { %vm3565_vm2 = vmor %vm1393_vm1, %vm1394_vm0 }
 0x1ba   : > { %v1389_v30 = vmul.f32 %v2509_v23, %v1388_v36  ;;  %v1423_v36 = vsub.f32 %v3308_v25, %v3563_v54  ;;  %v5697_v25 = vld [vmem:[#allocation63_spill] sm:$0xff] }
 0x1bb   : > { %v1430_v33 = vsub.f32 %v5697_v25, %v3563_v54 }
 0x1bc   : > { %v1390_v18 = vmul.f32 0.5, %v1389_v30  ;;  %v1424_v30 = vsub.f32 %v3324_v29, %v3563_v54  ;;  %v5698_v29 = vld [vmem:[#allocation65_spill] sm:$0xff] }
 0x1bd   : > { %v1431_v49 = vsub.f32 %v5698_v29, %v3563_v54 }
 0x1be   : > { %v1391_v17 = vsub.f32 1.5, %v1390_v18  ;;  %v1425_v18 = vsub.f32 %v3348_v11, %v3563_v54  ;;  %v5699_v11 = vld [vmem:[#allocation64_spill] sm:$0xff] }
 0x1bf   : > { %v1432_v26 = vsub.f32 %v5699_v11, %v3563_v54 }
 0x1c0   : > { %v1392_v9 = vmul.f32 %v2509_v23, %v1391_v17 }
 0x1c2   : > { %v1396_v46 = vsel %vm3565_vm2, %v2509_v23, %v1392_v9  ;;  %v1422_v23 = vsub.f32 %v3311_v4, %v3563_v54  ;;  %v5693_v9 = vld [vmem:[#allocation54_spill] sm:$0xff]  ;;  %v5696_v4 = vld [vmem:[#allocation59_spill] sm:$0xff] }
 0x1c3   : > { %v1440_v61 = vmul.f32 %v1439_v5, %v1396_v46  ;;  %v1426_v45 = vsub.f32 %v5693_v9, %v3563_v54  ;;  %v5695_v46 = vld [vmem:[#allocation60_spill] sm:$0xff]  ;;  %v1429_v58 = vsub.f32 %v5696_v4, %v3563_v54 }
 0x1c4   : > { %v1428_v5 = vsub.f32 %v5695_v46, %v3563_v54 }
 0x1c5   : > { %v1441_v17 = vperm.slane %v1440_v61, 0  ;;  %v1436_v61 = vsub.f32 %v5703_v59, %v3563_v54 }
 0x1c7   : > { %v1442_v21 = vmul.f32 %v1441_v17, %v1398_v22  ;;  %v1443_v50 = vmul.f32 %v1441_v17, %v1399_v10  ;;  %v1444_v28 = vmul.f32 %v1441_v17, %v1400_v2  ;;  %v1445_v8 = vmul.f32 %v1441_v17, %v1401_v24  ;;  %v3659_v24 = vld [vmem:[%s5448_s3] ss:$0 sm:$0xff] }
 0x1c8   : > { %v1446_v40 = vmul.f32 %v1441_v17, %v1402_v43  ;;  %v1447_v44 = vmul.f32 %v1441_v17, %v1403_v34  ;;  %v1448_v56 = vmul.f32 %v1441_v17, %v1404_v62  ;;  %v1449_v15 = vmul.f32 %v1441_v17, %v1405_v6 }
 0x1c9   : > { %v1450_v9 = vmul.f32 %v1441_v17, %v1406_v20  ;;  %v1451_v52 = vmul.f32 %v1441_v17, %v1407_v41  ;;  %v1452_v46 = vmul.f32 %v1441_v17, %v1408_v27  ;;  %v1453_v4 = vmul.f32 %v1441_v17, %v1409_v42 }
 0x1ca   : > { %v1454_v25 = vmul.f32 %v1441_v17, %v1410_v60  ;;  %v1455_v29 = vmul.f32 %v1441_v17, %v1411_v7  ;;  %v1456_v11 = vmul.f32 %v1441_v17, %v1412_v48  ;;  %v1457_v53 = vmul.f32 %v1441_v17, %v1413_v47 }
 0x1cb   : > { %v1458_v63 = vmul.f32 %v1441_v17, %v1414_v16  ;;  %v1459_v14 = vmul.f32 %v1441_v17, %v1415_v3  ;;  %v1460_v37 = vmul.f32 %v1441_v17, %v1416_v12  ;;  %v1461_v54 = vmul.f32 %v1441_v17, %v1417_v32 }
 0x1cc   : > { %v1462_v22 = vmul.f32 %v1441_v17, %v1418_v1  ;;  %v1463_v10 = vmul.f32 %v1441_v17, %v1419_v39  ;;  %v1464_v2 = vmul.f32 %v1441_v17, %v1420_v57  ;;  %v1465_v43 = vmul.f32 %v1441_v17, %v1421_v19 }
 0x1cd   : > { %v1466_v34 = vmul.f32 %v1441_v17, %v1422_v23  ;;  %v1467_v62 = vmul.f32 %v1441_v17, %v1423_v36  ;;  %v1468_v6 = vmul.f32 %v1441_v17, %v1424_v30  ;;  %v1469_v20 = vmul.f32 %v1441_v17, %v1425_v18 }
 0x1ce   : > { %v1470_v41 = vmul.f32 %v1441_v17, %v1426_v45  ;;  %v1471_v27 = vmul.f32 %v1441_v17, %v1427_v38  ;;  %v1472_v42 = vmul.f32 %v1441_v17, %v1428_v5  ;;  %v1473_v60 = vmul.f32 %v1441_v17, %v1429_v58 }
 0x1cf   : > { %v1474_v7 = vmul.f32 %v1441_v17, %v1430_v33  ;;  %v1475_v48 = vmul.f32 %v1441_v17, %v1431_v49  ;;  %v3661_v47 = vmul.f32 %v1441_v17, %v1432_v26  ;;  %v3663_v16 = vmul.f32 %v1441_v17, %v1433_v0 }
 0x1d0   : > { %v3665_v3 = vmul.f32 %v1441_v17, %v1434_v13  ;;  %v3667_v12 = vmul.f32 %v1441_v17, %v1435_v31  ;;  %v3670_v32 = vadd.f32 %v3659_v24, %v1442_v21  ;;  %v3672_v1 = vmul.f32 %v1441_v17, %v1436_v61 }
 0x1d1   : > { %v3674_v39 = vmul.f32 %v1441_v17, %v1437_v51  ;;  %v3676_v57 = vmul.f32 %v1441_v17, %v1438_v55  ;;  %v3679_v19 = vadd.f32 %v3659_v24, %v1443_v50  ;;  %v3682_v23 = vadd.f32 %v3659_v24, %v1444_v28 }
 0x1d2   : > { %5705 = vst [vmem:[#allocation13_spill] sm:$0xff] %v3670_v32  ;;  %v3685_v36 = vadd.f32 %v3659_v24, %v1445_v8  ;;  %v3688_v30 = vadd.f32 %v3659_v24, %v1446_v40  ;;  %v3691_v18 = vadd.f32 %v3659_v24, %v1447_v44  ;;  %v3694_v45 = vadd.f32 %v3659_v24, %v1448_v56 }
 0x1d3   : > { %5706 = vst [vmem:[#allocation16_spill] sm:$0xff] %v3679_v19  ;;  %v3697_v17 = vadd.f32 %v3659_v24, %v1449_v15  ;;  %v3700_v38 = vadd.f32 %v3659_v24, %v1450_v9  ;;  %v3703_v5 = vadd.f32 %v3659_v24, %v1451_v52  ;;  %v3706_v58 = vadd.f32 %v3659_v24, %v1452_v46 }
 0x1d4   : > { %5707 = vst [vmem:[#allocation18_spill] sm:$0xff] %v3682_v23  ;;  %v3709_v33 = vadd.f32 %v3659_v24, %v1453_v4  ;;  %v3712_v49 = vadd.f32 %v3659_v24, %v1454_v25  ;;  %v1528_v26 = vsub.f32 0.0, %v3670_v32  ;;  %v3716_v0 = vadd.f32 %v3659_v24, %v1455_v29 }
 0x1d5   : > { %5708 = vst [vmem:[#allocation19_spill] sm:$0xff] %v3685_v36  ;;  %v3719_v13 = vadd.f32 %v3659_v24, %v1456_v11  ;;  %v3722_v31 = vadd.f32 %v3659_v24, %v1457_v53  ;;  %v1529_v59 = vsub.f32 0.0, %v3679_v19  ;;  %v3726_v61 = vadd.f32 %v3659_v24, %v1458_v63 }
 0x1d6   : > { %5709 = vst [vmem:[#allocation20_spill] sm:$0xff] %v3688_v30  ;;  %v3729_v51 = vadd.f32 %v3659_v24, %v1459_v14  ;;  %v3732_v35 = vadd.f32 %v3659_v24, %v1460_v37  ;;  %v1530_v55 = vsub.f32 0.0, %v3682_v23  ;;  %v3736_v21 = vadd.f32 %v3659_v24, %v1461_v54 }
 0x1d7   : > { %5710 = vst [vmem:[#allocation23_spill] sm:$0xff] %v3691_v18  ;;  %v3739_v50 = vadd.f32 %v3659_v24, %v1462_v22  ;;  %v3742_v28 = vadd.f32 %v3659_v24, %v1463_v10  ;;  %v1531_v8 = vsub.f32 0.0, %v3685_v36  ;;  %v3746_v40 = vadd.f32 %v3659_v24, %v1464_v2 }
 0x1d8   : > { %5711 = vst [vmem:[#allocation27_spill] sm:$0xff] %v3694_v45  ;;  %v3749_v44 = vadd.f32 %v3659_v24, %v1465_v43  ;;  %v1532_v56 = vsub.f32 0.0, %v3688_v30  ;;  %v1569_v15 = vmul.f32 1.442695, %v1528_v26  ;;  %v3753_v9 = vadd.f32 %v3659_v24, %v1466_v34 }
 0x1d9   : > { %5712 = vst [vmem:[#allocation28_spill] sm:$0xff] %v3697_v17  ;;  %v3756_v52 = vadd.f32 %v3659_v24, %v1467_v62  ;;  %v1533_v46 = vsub.f32 0.0, %v3691_v18  ;;  %v1571_v4 = vmul.f32 1.442695, %v1529_v59  ;;  %v3760_v25 = vadd.f32 %v3659_v24, %v1468_v6 }
 0x1da   : > { %5713 = vst [vmem:[#allocation30_spill] sm:$0xff] %v3700_v38  ;;  %v3763_v29 = vadd.f32 %v3659_v24, %v1469_v20  ;;  %v1534_v11 = vsub.f32 0.0, %v3694_v45  ;;  %v1573_v53 = vmul.f32 1.442695, %v1530_v55  ;;  %v3767_v63 = vadd.f32 %v3659_v24, %v1470_v41 }
 0x1db   : > { %5714 = vst [vmem:[#allocation33_spill] sm:$0xff] %v3703_v5  ;;  %v3770_v14 = vadd.f32 %v3659_v24, %v1471_v27  ;;  %v1535_v37 = vsub.f32 0.0, %v3697_v17  ;;  %v1575_v54 = vmul.f32 1.442695, %v1531_v8  ;;  %v3774_v22 = vadd.f32 %v3659_v24, %v1472_v42 }
 0x1dc   : > { %5715 = vst [vmem:[#allocation34_spill] sm:$0xff] %v3706_v58  ;;  %v1536_v10 = vsub.f32 0.0, %v3700_v38  ;;  %2510 = vpow2.f32 %v1569_v15  ;;  %v1577_v2 = vmul.f32 1.442695, %v1532_v56  ;;  %v3778_v43 = vadd.f32 %v3659_v24, %v1473_v60 }
 0x1dd   : > { %5716 = vst [vmem:[#allocation39_spill] sm:$0xff] %v3709_v33  ;;  %v1537_v34 = vsub.f32 0.0, %v3703_v5  ;;  %2512 = vpow2.f32 %v1571_v4  ;;  %v1579_v62 = vmul.f32 1.442695, %v1533_v46  ;;  %v3782_v6 = vadd.f32 %v3659_v24, %v1474_v7 }
 0x1de   : > { %5717 = vst [vmem:[#allocation42_spill] sm:$0xff] %v3712_v49  ;;  %v1538_v20 = vsub.f32 0.0, %v3706_v58  ;;  %2514 = vpow2.f32 %v1573_v53  ;;  %v1581_v41 = vmul.f32 1.442695, %v1534_v11  ;;  %v3786_v27 = vadd.f32 %v3659_v24, %v1475_v48 }
 0x1df   : > { %5718 = vst [vmem:[#allocation43_spill] sm:$0xff] %v3716_v0  ;;  %v1539_v42 = vsub.f32 0.0, %v3709_v33  ;;  %2516 = vpow2.f32 %v1575_v54  ;;  %v1583_v26 = vmul.f32 1.442695, %v1535_v37  ;;  %v3791_v60 = vadd.f32 %v3659_v24, %v3661_v47 }
 0x1e0   : > { %5719 = vst [vmem:[#allocation46_spill] sm:$0xff] %v3719_v13  ;;  %v1540_v59 = vsub.f32 0.0, %v3712_v49  ;;  %2518 = vpow2.f32 %v1577_v2  ;;  %v1585_v7 = vmul.f32 1.442695, %v1536_v10  ;;  %v3796_v55 = vadd.f32 %v3659_v24, %v3663_v16 }
 0x1e1   : > { %5720 = vst [vmem:[#allocation26_spill] sm:$0xff] %v3722_v31  ;;  %v1541_v8 = vsub.f32 0.0, %v3716_v0  ;;  %2520 = vpow2.f32 %v1579_v62  ;;  %v1587_v48 = vmul.f32 1.442695, %v1537_v34  ;;  %v3803_v15 = vadd.f32 %v3659_v24, %v3665_v3 }
 0x1e2   : > { %5721 = vst [vmem:[#allocation25_spill] sm:$0xff] %v3726_v61  ;;  %v3799_v56 = vpop.eup %2510  ;;  %v1542_v47 = vsub.f32 0.0, %v3719_v13  ;;  %2522 = vpow2.f32 %v1581_v41  ;;  %v1589_v46 = vmul.f32 1.442695, %v1538_v20  ;;  %v3810_v16 = vadd.f32 %v3659_v24, %v3667_v12 }
 0x1e3   : > { %5722 = vst [vmem:[#allocation29_spill] sm:$0xff] %v3729_v51  ;;  %v3806_v4 = vpop.eup %2512  ;;  %v1543_v11 = vsub.f32 0.0, %v3722_v31  ;;  %2524 = vpow2.f32 %v1583_v26  ;;  %v1591_v53 = vmul.f32 1.442695, %v1539_v42  ;;  %v3817_v3 = vadd.f32 %v3659_v24, %v3672_v1 }
 0x1e4   : > { %5723 = vst [vmem:[#allocation36_spill] sm:$0xff] %v3732_v35  ;;  %v3813_v37 = vpop.eup %2514  ;;  %v1544_v54 = vsub.f32 0.0, %v3726_v61  ;;  %2526 = vpow2.f32 %v1585_v7  ;;  %v1593_v10 = vmul.f32 1.442695, %v1540_v59  ;;  %v3824_v12 = vadd.f32 %v3659_v24, %v3674_v39 }
 0x1e5   : > { %5724 = vst [vmem:[#allocation35_spill] sm:$0xff] %v3736_v21  ;;  %v3820_v2 = vpop.eup %2516  ;;  %v1545_v34 = vsub.f32 0.0, %v3729_v51  ;;  %2528 = vpow2.f32 %v1587_v48  ;;  %v1595_v62 = vmul.f32 1.442695, %v1541_v8  ;;  %v3831_v1 = vadd.f32 %v3659_v24, %v3676_v57 }
 0x1e6   : > { %5725 = vst [vmem:[#allocation37_spill] sm:$0xff] %v3739_v50  ;;  %v3827_v20 = vpop.eup %2518  ;;  %v1546_v41 = vsub.f32 0.0, %v3732_v35  ;;  %2530 = vpow2.f32 %v1589_v46  ;;  %v1597_v42 = vmul.f32 1.442695, %v1542_v47  ;;  %v1547_v59 = vsub.f32 0.0, %v3736_v21 }
 0x1e7   : > { %5726 = vst [vmem:[#allocation45_spill] sm:$0xff] %v3742_v28  ;;  %v3834_v26 = vpop.eup %2520  ;;  %v1548_v39 = vsub.f32 0.0, %v3739_v50  ;;  %2532 = vpow2.f32 %v1591_v53  ;;  %v1599_v7 = vmul.f32 1.442695, %v1543_v11  ;;  %v1549_v8 = vsub.f32 0.0, %v3742_v28 }
 0x1e8   : > { %5727 = vst [vmem:[#allocation44_spill] sm:$0xff] %v3746_v40  ;;  %v3838_v48 = vpop.eup %2522  ;;  %v1550_v51 = vsub.f32 0.0, %v3746_v40  ;;  %2534 = vpow2.f32 %v1593_v10  ;;  %v1601_v24 = vmul.f32 1.442695, %v1544_v54  ;;  %v1551_v47 = vsub.f32 0.0, %v3749_v44 }
 0x1e9   : > { %5728 = vst [vmem:[#allocation49_spill] sm:$0xff] %v3749_v44  ;;  %v3842_v57 = vpop.eup %2524  ;;  %v1552_v46 = vsub.f32 0.0, %v3753_v9  ;;  %2536 = vpow2.f32 %v1595_v62  ;;  %v1603_v21 = vmul.f32 1.442695, %v1545_v34  ;;  %v1553_v11 = vsub.f32 0.0, %v3756_v52 }
 0x1ea   : > { %5729 = vst [vmem:[#allocation54_spill] sm:$0xff] %v3753_v9  ;;  %v3846_v35 = vpop.eup %2526  ;;  %v1554_v53 = vsub.f32 0.0, %v3760_v25  ;;  %2538 = vpow2.f32 %v1597_v42  ;;  %v1605_v28 = vmul.f32 1.442695, %v1546_v41  ;;  %v1555_v54 = vsub.f32 0.0, %v3763_v29 }
 0x1eb   : > { %5730 = vst [vmem:[#allocation57_spill] sm:$0xff] %v3756_v52  ;;  %v3850_v50 = vpop.eup %2528  ;;  %v1556_v10 = vsub.f32 0.0, %v3767_v63  ;;  %2540 = vpow2.f32 %v1599_v7  ;;  %v1607_v44 = vmul.f32 1.442695, %v1547_v59  ;;  %v1557_v34 = vsub.f32 0.0, %v3770_v14 }
 0x1ec   : > { %5731 = vst [vmem:[#allocation60_spill] sm:$0xff] %v3760_v25  ;;  %v3854_v40 = vpop.eup %2530  ;;  %v1558_v62 = vsub.f32 0.0, %v3774_v22  ;;  %2542 = vpow2.f32 %v1601_v24  ;;  %v1609_v52 = vmul.f32 1.442695, %v1548_v39  ;;  %v1559_v41 = vsub.f32 0.0, %v3778_v43 }
 0x1ed   : > { %5732 = vst [vmem:[#allocation59_spill] sm:$0xff] %v3763_v29  ;;  %v3858_v9 = vpop.eup %2532  ;;  %v1560_v42 = vsub.f32 0.0, %v3782_v6  ;;  %2544 = vpow2.f32 %v1603_v21  ;;  %v1611_v29 = vmul.f32 1.442695, %v1549_v8  ;;  %v1561_v59 = vsub.f32 0.0, %v3786_v27 }
 0x1ee   : > { %5733 = vst [vmem:[#allocation63_spill] sm:$0xff] %v3767_v63  ;;  %v3862_v25 = vpop.eup %2534  ;;  %v1562_v7 = vsub.f32 0.0, %v3791_v60  ;;  %2546 = vpow2.f32 %v1605_v28  ;;  %v1563_v39 = vsub.f32 0.0, %v3796_v55  ;;  %v1564_v24 = vsub.f32 0.0, %v3803_v15 }
 0x1ef   : > { %5734 = vst [vmem:[#allocation65_spill] sm:$0xff] %v3770_v14  ;;  %v1613_v14 = vmul.f32 1.442695, %v1550_v51  ;;  %v3866_v63 = vpop.eup %2536  ;;  %2548 = vpow2.f32 %v1607_v44  ;;  %v1565_v21 = vsub.f32 0.0, %v3810_v16  ;;  %v1566_v8 = vsub.f32 0.0, %v3817_v3 }
 0x1f0   : > { %5735 = vst [vmem:[#allocation64_spill] sm:$0xff] %v3774_v22  ;;  %v3870_v22 = vpop.eup %2538  ;;  %2550 = vpow2.f32 %v1609_v52  ;;  %v1567_v51 = vsub.f32 0.0, %v3824_v12  ;;  %v1568_v28 = vsub.f32 0.0, %v3831_v1  ;;  %v1621_v44 = vmul.f32 1.442695, %v1554_v53 }
 0x1f1   : > { %5736 = vst [vmem:[#allocation69_spill] sm:$0xff] %v3778_v43  ;;  %v1615_v43 = vmul.f32 1.442695, %v1551_v47  ;;  %2552 = vpow2.f32 %v1611_v29  ;;  %v1623_v47 = vmul.f32 1.442695, %v1555_v54 }
 0x1f2   : > { %5737 = vst [vmem:[#allocation71_spill] sm:$0xff] %v3782_v6  ;;  %v3874_v6 = vpop.eup %2540  ;;  %2554 = vpow2.f32 %v1613_v14  ;;  %v1631_v52 = vmul.f32 1.442695, %v1559_v41  ;;  %v1633_v31 = vmul.f32 1.442695, %v1560_v42  ;;  %v3883_v14 = vadd.f32 1.0, %v3799_v56 }
 0x1f3   : > { %5738 = vst [vmem:[#allocation70_spill] sm:$0xff] %v3786_v27  ;;  %v1617_v27 = vmul.f32 1.442695, %v1552_v46  ;;  %2556 = vpow2.f32 %v1615_v43  ;;  %v1635_v13 = vmul.f32 1.442695, %v1561_v59  ;;  %v3900_v41 = vadd.f32 1.0, %v3820_v2 }
 0x1f4   : > { %5739 = vst [vmem:[#allocation75_spill] sm:$0xff] %v3791_v60  ;;  %v3878_v60 = vpop.eup %2542  ;;  %v1639_v29 = vmul.f32 1.442695, %v1563_v39  ;;  %v3885_v54 = vmul.f32 1.442695, %v1565_v21  ;;  %v3903_v42 = vadd.f32 1.0, %v3827_v20  ;;  %vm1697_vm3 = vweird.f32 %v3883_v14 }
 0x1f5   : > { %5740 = vst [vmem:[#allocation76_spill] sm:$0xff] %v3796_v55  ;;  %v1619_v55 = vmul.f32 1.442695, %v1553_v11  ;;  %v2545_v61 = vpop.eup %2544  ;;  %2558 = vpow2.f32 %v1617_v27  ;;  %v3880_v11 = vmul.f32 1.442695, %v1564_v24  ;;  %v3912_v39 = vadd.f32 1.0, %v3842_v57 }
 0x1f6   : > { %5741 = vst [vmem:[#allocation79_spill] sm:$0xff] %v3803_v15  ;;  %v1625_v15 = vmul.f32 1.442695, %v1556_v10  ;;  %v2547_v46 = vpop.eup %2546  ;;  %v3887_v43 = vmul.f32 1.442695, %v1566_v8  ;;  %v3890_v10 = vadd.f32 1.0, %v3806_v4  ;;  %vm1742_vm8 = vweird.f32 %v3900_v41 }
 0x1f7   : > { %5742 = vst [vmem:[#allocation80_spill] sm:$0xff] %v3810_v16  ;;  %v1627_v16 = vmul.f32 1.442695, %v1557_v34  ;;  %v2549_v0 = vpop.eup %2548  ;;  %2560 = vpow2.f32 %v1619_v55  ;;  %v3892_v34 = vmul.f32 1.442695, %v1567_v51  ;;  %v3906_v4 = vadd.f32 1.0, %v3834_v26 }
 0x1f8   : > { %5743 = vst [vmem:[#allocation81_spill] sm:$0xff] %v3817_v3  ;;  %v1629_v3 = vmul.f32 1.442695, %v1558_v62  ;;  %v2551_v53 = vpop.eup %2550  ;;  %2562 = vpow2.f32 %v1621_v44  ;;  %v3894_v55 = vmul.f32 1.442695, %v1568_v28  ;;  %v3897_v62 = vadd.f32 1.0, %v3813_v37 }
 0x1f9   : > { %5744 = vst [vmem:[#allocation82_spill] sm:$0xff] %v3824_v12  ;;  %v1637_v12 = vmul.f32 1.442695, %v1562_v7  ;;  %v2553_v27 = vpop.eup %2552  ;;  %2564 = vpow2.f32 %v1623_v47  ;;  %v3909_v7 = vadd.f32 1.0, %v3838_v48  ;;  %v1703_v37 = vand.u32 2147483648, %v3883_v14 }
 0x1fa   : > { %5745 = vst [vmem:[#allocation83_spill] sm:$0xff] %v3831_v1  ;;  %v2555_v56 = vpop.eup %2554  ;;  %2566 = vpow2.f32 %v1625_v15  ;;  %v3916_v2 = vadd.f32 1.0, %v3846_v35  ;;  %v3919_v20 = vadd.f32 1.0, %v3850_v50  ;;  %v1718_v26 = vand.u32 2147483648, %v3890_v10 }
 0x1fb   : > { %v2557_v59 = vpop.eup %2556  ;;  %2568 = vpow2.f32 %v1627_v16  ;;  %v3923_v16 = vadd.f32 1.0, %v3854_v40  ;;  %v3926_v48 = vadd.f32 1.0, %v3858_v9  ;;  %v3930_v35 = vadd.f32 1.0, %v3862_v25 }
 0x1fc   : > { %v2559_v15 = vpop.eup %2558  ;;  %2570 = vpow2.f32 %v1629_v3  ;;  %v3933_v50 = vadd.f32 1.0, %v3866_v63  ;;  %v3937_v40 = vadd.f32 1.0, %v3870_v22  ;;  %v3939_v51 = vor.u32 1.1754944e-38, %v1703_v37 }
 0x1fd   : > { %v2561_v24 = vpop.eup %2560  ;;  %2572 = vpow2.f32 %v1631_v52  ;;  %v1733_v9 = vand.u32 2147483648, %v3897_v62  ;;  %v3946_v25 = vor.u32 1.1754944e-38, %v1718_v26  ;;  %v1748_v63 = vand.u32 2147483648, %v3900_v41 }
 0x1fe   : > { %v2563_v21 = vpop.eup %2562  ;;  %2574 = vpow2.f32 %v1633_v31  ;;  %v3943_v31 = vadd.f32 1.0, %v3874_v6  ;;  %v3952_v22 = vadd.f32 1.0, %v2545_v61  ;;  %v3956_v6 = vadd.f32 1.0, %v2547_v46 }
 0x1ff   : > { %v2565_v8 = vpop.eup %2564  ;;  %2576 = vpow2.f32 %v1635_v13  ;;  %v3950_v13 = vadd.f32 1.0, %v3878_v60  ;;  %v1763_v26 = vand.u32 2147483648, %v3903_v42  ;;  %v3960_v57 = vadd.f32 1.0, %v2549_v0 }
 0x200   : > { %v2567_v28 = vpop.eup %2566  ;;  %2578 = vrcp.f32 %v3883_v14  ;;  %v3962_v60 = vadd.f32 1.0, %v2551_v53  ;;  %v3964_v61 = vor.u32 1.1754944e-38, %v1733_v9  ;;  %v3967_v47 = vor.u32 1.1754944e-38, %v1748_v63 }
 0x201   : > { %v2569_v44 = vpop.eup %2568  ;;  %2580 = vrcp.f32 %v3890_v10  ;;  %v1778_v46 = vand.u32 2147483648, %v3906_v4  ;;  %v3971_v49 = vadd.f32 1.0, %v2553_v27  ;;  %v3973_v33 = vadd.f32 1.0, %v2555_v56 }
 0x202   : > { %v2571_v52 = vpop.eup %2570  ;;  %2582 = vpow2.f32 %v1637_v12  ;;  %5746 = vst [vmem:[#allocation84_spill] sm:$0xff] %v3962_v60  ;;  %v3979_v53 = vadd.f32 1.0, %v2557_v59  ;;  %v3982_v9 = vor.u32 1.1754944e-38, %v1763_v26  ;;  %v1793_v63 = vand.u32 2147483648, %v3909_v7 }
 0x203   : > { %v2573_v3 = vpop.eup %2572  ;;  %2584 = vpow2.f32 %v1639_v29  ;;  %5747 = vst [vmem:[#allocation85_spill] sm:$0xff] %v3971_v49  ;;  %v3988_v27 = vadd.f32 1.0, %v2559_v15  ;;  %v3990_v56 = vadd.f32 1.0, %v2561_v24  ;;  %v1808_v0 = vand.u32 2147483648, %v3912_v39 }
 0x204   : > { %v2575_v1 = vpop.eup %2574  ;;  %2586 = vrcp.f32 %v3897_v62  ;;  %5748 = vst [vmem:[#allocation86_spill] sm:$0xff] %v3973_v33  ;;  %v3994_v59 = vadd.f32 1.0, %v2563_v21  ;;  %v3996_v5 = vor.u32 1.1754944e-38, %v1778_v46  ;;  %v4000_v17 = vadd.f32 1.0, %v2565_v8 }
 0x205   : > { %v2577_v37 = vpop.eup %2576  ;;  %2588 = vrcp.f32 %v3900_v41  ;;  %5749 = vst [vmem:[#allocation87_spill] sm:$0xff] %v3979_v53  ;;  %v4012_v46 = vor.u32 1.1754944e-38, %v1793_v63  ;;  %v4018_v8 = vadd.f32 1.0, %v2571_v52  ;;  %v4026_v45 = vadd.f32 1.0, %v2573_v3 }
 0x206   : > { %v3977_v29 = vpop.eup %2578  ;;  %2590 = vrcp.f32 %v3903_v42  ;;  %5750 = vst [vmem:[#allocation88_spill] sm:$0xff] %v3988_v27  ;;  %v1823_v63 = vand.u32 2147483648, %v3916_v2  ;;  %v4030_v36 = vadd.f32 1.0, %v2575_v1  ;;  %v1838_v52 = vand.u32 2147483648, %v3919_v20 }
 0x207   : > { %v3985_v12 = vpop.eup %2580  ;;  %2592 = vpow2.f32 %v3880_v11  ;;  %5751 = vst [vmem:[#allocation89_spill] sm:$0xff] %v3990_v56  ;;  %v4002_v11 = vadd.f32 1.0, %v2567_v28  ;;  %v4021_v28 = vor.u32 1.1754944e-38, %v1808_v0  ;;  %v4038_v19 = vadd.f32 1.0, %v2577_v37 }
 0x208   : > { %v2583_v58 = vpop.eup %2582  ;;  %2594 = vpow2.f32 %v3885_v54  ;;  %5752 = vst [vmem:[#allocation90_spill] sm:$0xff] %v3994_v59  ;;  %v1693_v54 = vmul.f32 %v3977_v29, %v3883_v14  ;;  %v1708_v21 = vmul.f32 %v3985_v12, %v3890_v10  ;;  %v1853_v37 = vand.u32 2147483648, %v3923_v16 }
 0x209   : > { %v2585_v38 = vpop.eup %2584  ;;  %2596 = vpow2.f32 %v3887_v43  ;;  %5753 = vst [vmem:[#allocation91_spill] sm:$0xff] %v4000_v17  ;;  %v4016_v43 = vadd.f32 1.0, %v2569_v44  ;;  %vm1712_vm4 = vweird.f32 %v3890_v10  ;;  %vm1727_vm5 = vweird.f32 %v3897_v62 }
 0x20a   : > { %5754 = vst [vmem:[#allocation92_spill] sm:$0xff] %v4002_v11  ;;  %v4005_v24 = vpop.eup %2586  ;;  %2598 = vrcp.f32 %v3906_v4  ;;  %v1694_v23 = vsub.f32 1.0, %v1693_v54  ;;  %vm1698_vm6 = vweird.f32 %v3977_v29  ;;  %vm1713_vm7 = vweird.f32 %v3985_v12 }
 0x20b   : > { %v4014_v26 = vpop.eup %2588  ;;  %5755 = vst [vmem:[#allocation93_spill] sm:$0xff] %v4016_v43  ;;  %2600 = vrcp.f32 %v3909_v7  ;;  %v1723_v3 = vmul.f32 %v4005_v24, %v3897_v62  ;;  %vm1757_vm11 = vweird.f32 %v3903_v42  ;;  %vm4129_vm13 = vmor %vm1697_vm3, %vm1698_vm6  ;;  %vm1728_vm14 = vweird.f32 %v4005_v24 }
 0x20c   : > { %5756 = vst [vmem:[#allocation94_spill] sm:$0xff] %v4018_v8  ;;  %v4023_v15 = vpop.eup %2590  ;;  %2602 = vpow2.f32 %v3892_v34  ;;  %v1709_v34 = vsub.f32 1.0, %v1708_v21  ;;  %v1738_v1 = vmul.f32 %v4014_v26, %v3900_v41  ;;  %v4056_v21 = vadd.f32 1.0, %v2585_v38  ;;  %vm4146_vm1 = vmor %vm1712_vm4, %vm1713_vm7 }
 0x20d   : > { %5757 = vst [vmem:[#allocation95_spill] sm:$0xff] %v4026_v45  ;;  %v2593_v30 = vpop.eup %2592  ;;  %2604 = vrcp.f32 %v3912_v39  ;;  %v1753_v32 = vmul.f32 %v4023_v15, %v3903_v42  ;;  %v4061_v45 = vor.u32 1.1754944e-38, %v1838_v52  ;;  %v1724_v11 = vsub.f32 1.0, %v1723_v3 }
 0x20e   : > { %5758 = vst [vmem:[#allocation96_spill] sm:$0xff] %v4030_v36  ;;  %v2595_v0 = vpop.eup %2594  ;;  %2606 = vpow2.f32 %v3894_v55  ;;  %v4047_v36 = vadd.f32 1.0, %v2583_v58  ;;  %v4050_v55 = vor.u32 1.1754944e-38, %v1823_v63  ;;  %v1695_v63 = vmul.f32 %v3977_v29, %v1694_v23 }
 0x20f   : > { %v2597_v18 = vpop.eup %2596  ;;  %5759 = vst [vmem:[#allocation97_spill] sm:$0xff] %v4038_v19  ;;  %2608 = vrcp.f32 %v3916_v2  ;;  %v4058_v19 = vadd.f32 1.0, %v2593_v30  ;;  %v4064_v8 = vadd.f32 1.0, %v2595_v0  ;;  %v1710_v43 = vmul.f32 %v3985_v12, %v1709_v34 }
 0x210   : > { %v4045_v44 = vpop.eup %2598  ;;  %5760 = vst [vmem:[#allocation98_spill] sm:$0xff] %v4047_v36  ;;  %2610 = vrcp.f32 %v3919_v20  ;;  %v1739_v38 = vsub.f32 1.0, %v1738_v1  ;;  %v4078_v0 = vor.u32 1.1754944e-38, %v1853_v37  ;;  %v1696_v58 = vadd.f32 %v3977_v29, %v1695_v63 }
 0x211   : > { %v4054_v54 = vpop.eup %2600  ;;  %5761 = vst [vmem:[#allocation99_spill] sm:$0xff] %v4056_v21  ;;  %v1754_v21 = vsub.f32 1.0, %v1753_v32  ;;  %v1768_v30 = vmul.f32 %v4045_v44, %v3906_v4  ;;  %2612 = vrcp.f32 %v3923_v16  ;;  %v5766_v37 = vand.u32 2147483647, %v3883_v14 }
 0x212   : > { %5762 = vst [vmem:[#allocation100_spill] sm:$0xff] %v4058_v19  ;;  %v2603_v36 = vpop.eup %2602  ;;  %v4073_v19 = vadd.f32 1.0, %v2597_v18  ;;  %v1783_v23 = vmul.f32 %v4054_v54, %v3909_v7  ;;  %v1868_v18 = vand.u32 2147483648, %v3926_v48  ;;  %2614 = vrcp.f32 %v3926_v48 }
 0x213   : > { %5763 = vst [vmem:[#allocation101_spill] sm:$0xff] %v4064_v8  ;;  %v4068_v17 = vpop.eup %2604  ;;  %v4083_v32 = vadd.f32 1.0, %v2603_v36  ;;  %vm4094_vm9 = vcmp.eq.f32.partialorder %v5766_v37, 8.507059e+37  ;;  %v1711_v36 = vadd.f32 %v3985_v12, %v1710_v43  ;;  %v1725_v8 = vmul.f32 %v4005_v24, %v1724_v11 }
 0x214   : > { %v2607_v52 = vpop.eup %2606  ;;  %5764 = vst [vmem:[#allocation102_spill] sm:$0xff] %v4073_v19  ;;  %v1798_v63 = vmul.f32 %v4068_v17, %v3912_v39  ;;  %v1740_v37 = vmul.f32 %v4014_v26, %v1739_v38  ;;  %v1755_v59 = vmul.f32 %v4023_v15, %v1754_v21  ;;  %v1769_v56 = vsub.f32 1.0, %v1768_v30 }
 0x215   : > { %v4081_v3 = vpop.eup %2608  ;;  %5765 = vst [vmem:[#allocation103_spill] sm:$0xff] %v4083_v32  ;;  %v5769_v32 = vand.u32 2147483647, %v3890_v10  ;;  %v4112_v43 = vadd.f32 1.0, %v2607_v52  ;;  %v1784_v11 = vsub.f32 1.0, %v1783_v23  ;;  %2616 = vrcp.f32 %v3930_v35 }
 0x216   : > { %v4089_v1 = vpop.eup %2610  ;;  %v1813_v53 = vmul.f32 %v4081_v3, %v3916_v2  ;;  %vm1743_vm15 = vweird.f32 %v4014_v26  ;;  %vm1772_vm0 = vweird.f32 %v3906_v4  ;;  %2618 = vrcp.f32 %v3933_v50 }
 0x217   : > { %vm4101_vm10 = vcmp.eq.f32.partialorder %v5769_v32, 8.507059e+37  ;;  %5772 = vst [vmem:[#allocation104_spill] sm:$0xff] %v4112_v43  ;;  %v5773_v32 = vand.u32 2147483647, %v3897_v62  ;;  %v4123_v38 = vpop.eup %2612  ;;  %v1828_v30 = vmul.f32 %v4089_v1, %v3919_v20  ;;  %v1700_v52 = vsel %vm4129_vm13, %v3977_v29, %v1696_v58  ;;  %vm4182_vm13 = vmor %vm1727_vm5, %vm1728_vm14 }
 0x218   : > { %v1726_v23 = vadd.f32 %v4005_v24, %v1725_v8  ;;  %vm1758_vm3 = vweird.f32 %v4023_v15  ;;  %v5783_v29 = vand.u32 2147483647, %v3903_v42  ;;  %vm1787_vm4 = vweird.f32 %v3909_v7  ;;  %vm4199_vm5 = vmor %vm1742_vm8, %vm1743_vm15 }
 0x219   : > { %vm4116_vm12 = vcmp.eq.f32.partialorder %v5773_v32, 8.507059e+37  ;;  %v5780_v32 = vand.u32 2147483647, %v3900_v41  ;;  %v1799_v10 = vsub.f32 1.0, %v1798_v63  ;;  %v1715_v8 = vsel %vm4146_vm1, %v3985_v12, %v1711_v36  ;;  %v4176_v63 = vpop.eup %2614  ;;  %vm4238_vm15 = vmor %vm1757_vm11, %vm1758_vm3 }
 0x21a   : > { %vm4160_vm6 = vcmp.eq.f32.partialorder %v5783_v29, 8.507059e+37  ;;  %v1741_v21 = vadd.f32 %v4014_v26, %v1740_v37  ;;  %v1770_v33 = vmul.f32 %v4045_v44, %v1769_v56  ;;  %v1785_v49 = vmul.f32 %v4054_v54, %v1784_v11 }
 0x21b   : > { %vm4153_vm2 = vcmp.eq.f32.partialorder %v5780_v32, 8.507059e+37  ;;  %v1756_v32 = vadd.f32 %v4023_v15, %v1755_v59  ;;  %v1814_v29 = vsub.f32 1.0, %v1813_v53  ;;  %v1843_v60 = vmul.f32 %v4123_v38, %v3923_v16  ;;  %v4190_v37 = vpop.eup %2616 }
 0x21c   : > { %2620 = vrcp.f32 %v3937_v40  ;;  %v1829_v56 = vsub.f32 1.0, %v1828_v30  ;;  %v4186_v59 = vor.u32 1.1754944e-38, %v1868_v18  ;;  %v1881_v53 = vand.u32 2147483647, %v3930_v35 }
 0x21d   : > { %v1883_v36 = vand.u32 2147483648, %v3930_v35  ;;  %v1730_v11 = vsel %vm4182_vm13, %v4005_v24, %v1726_v23  ;;  %vm1773_vm14 = vweird.f32 %v4045_v44  ;;  %v5790_v18 = vand.u32 2147483647, %v3906_v4  ;;  %v4219_v23 = vpop.eup %2618 }
 0x21e   : > { %vm1788_vm7 = vweird.f32 %v4054_v54  ;;  %v5793_v24 = vand.u32 2147483647, %v3909_v7  ;;  %v1800_v41 = vmul.f32 %v4068_v17, %v1799_v10  ;;  %vm1817_vm8 = vweird.f32 %v3916_v2  ;;  %vm4270_vm3 = vmor %vm1772_vm0, %vm1773_vm14 }
 0x21f   : > { %vm4206_vm1 = vcmp.eq.f32.partialorder %v5790_v18, 8.507059e+37  ;;  %v4224_v12 = vsel %vm4094_vm9, %v3939_v51, %v1700_v52  ;;  %v4229_v18 = vsel %vm4101_vm10, %v3946_v25, %v1715_v8  ;;  %v1771_v51 = vadd.f32 %v4045_v44, %v1770_v33  ;;  %vm4304_vm0 = vmor %vm1787_vm4, %vm1788_vm7 }
 0x220   : > { %vm4213_vm13 = vcmp.eq.f32.partialorder %v5793_v24, 8.507059e+37  ;;  %v1745_v24 = vsel %vm4199_vm5, %v4014_v26, %v1741_v21  ;;  %vm1832_vm9 = vweird.f32 %v3919_v20  ;;  %v1760_v19 = vsel %vm4238_vm15, %v4023_v15, %v1756_v32 }
 0x221   : > { %v1786_v25 = vadd.f32 %v4054_v54, %v1785_v49  ;;  %v5798_v26 = vand.u32 2147483647, %v3912_v39  ;;  %v1815_v42 = vmul.f32 %v4081_v3, %v1814_v29  ;;  %v1844_v52 = vsub.f32 1.0, %v1843_v60 }
 0x222   : > { %v4258_v33 = vsel %vm4116_vm12, %v3964_v61, %v1730_v11  ;;  %vm1803_vm11 = vweird.f32 %v4068_v17  ;;  %v1830_v15 = vmul.f32 %v4089_v1, %v1829_v56  ;;  %v1858_v49 = vmul.f32 %v4176_v63, %v3926_v48  ;;  %v4264_v8 = vpop.eup %2620 }
 0x223   : > { %vm4250_vm10 = vcmp.eq.f32.partialorder %v5798_v26, 8.507059e+37  ;;  %v1801_v61 = vadd.f32 %v4068_v17, %v1800_v41  ;;  %v5803_v27 = vand.u32 2147483647, %v3916_v2  ;;  %vm1847_vm5 = vweird.f32 %v3923_v16 }
 0x224   : > { %v1873_v32 = vmul.f32 %v4190_v37, %v3930_v35  ;;  %v1888_v4 = vmul.f32 %v4219_v23, %v3933_v50  ;;  %2622 = vrcp.f32 %v3943_v31  ;;  %v4290_v29 = vsel %vm4153_vm2, %v3967_v47, %v1745_v24 }
 0x225   : > { %vm4277_vm12 = vcmp.eq.f32.partialorder %v5803_v27, 8.507059e+37  ;;  %v4295_v56 = vsel %vm4160_vm6, %v3982_v9, %v1760_v19  ;;  %v1775_v11 = vsel %vm4270_vm3, %v4045_v44, %v1771_v51  ;;  %v5808_v47 = vand.u32 2147483647, %v3919_v20 }
 0x226   : > { %2624 = vrcp.f32 %v3950_v13  ;;  %v1790_v9 = vsel %vm4304_vm0, %v4054_v54, %v1786_v25  ;;  %v1816_v44 = vadd.f32 %v4081_v3, %v1815_v42  ;;  %vm1818_vm6 = vweird.f32 %v4081_v3 }
 0x227   : > { %vm4310_vm2 = vcmp.eq.f32.partialorder %v5808_v47, 8.507059e+37  ;;  %v1845_v7 = vmul.f32 %v4123_v38, %v1844_v52  ;;  %vm5811_vm4 = vweird.f32 %v3912_v39  ;;  %v1831_v41 = vadd.f32 %v4089_v1, %v1830_v15  ;;  %vm4358_vm3 = vmor %vm1817_vm8, %vm1818_vm6 }
 0x228   : > { %vm4325_vm7 = vmor %vm5811_vm4, %vm1803_vm11  ;;  %vm1833_vm14 = vweird.f32 %v4089_v1  ;;  %v1859_v24 = vsub.f32 1.0, %v1858_v49  ;;  %v1903_v54 = vmul.f32 %v4264_v8, %v3937_v40  ;;  %v5814_v51 = vand.u32 2147483647, %v3923_v16 }
 0x229   : > { %v1805_v10 = vsel %vm4325_vm7, %v4068_v17, %v1801_v61  ;;  %vm1862_vm11 = vweird.f32 %v3926_v48  ;;  %v1874_v19 = vsub.f32 1.0, %v1873_v32  ;;  %v1889_v25 = vsub.f32 1.0, %v1888_v4 }
 0x22a   : > { %vm4338_vm15 = vcmp.eq.f32.partialorder %v5814_v51, 8.507059e+37  ;;  %v1898_v26 = vand.u32 2147483648, %v3933_v50  ;;  %v4347_v42 = vsel %vm4206_vm1, %v3996_v5, %v1775_v11  ;;  %v4352_v17 = vsel %vm4213_vm13, %v4012_v46, %v1790_v9  ;;  %v4366_v5 = vpop.eup %2622  ;;  %vm4375_vm1 = vmor %vm1832_vm9, %vm1833_vm14 }
 0x22b   : > { %vm1848_vm0 = vweird.f32 %v4123_v38  ;;  %vm1877_vm4 = vweird.f32 %v3930_v35  ;;  %v4364_v30 = vor.u32 1.1754944e-38, %v1883_v36  ;;  %v1820_v46 = vsel %vm4358_vm3, %v4081_v3, %v1816_v44 }
 0x22c   : > { %v1846_v14 = vadd.f32 %v4123_v38, %v1845_v7  ;;  %vm1892_vm13 = vweird.f32 %v3933_v50  ;;  %v1896_v36 = vand.u32 2147483647, %v3933_v50  ;;  %2626 = vrcp.f32 %v3952_v22  ;;  %v4383_v15 = vpop.eup %2624  ;;  %vm4406_vm8 = vmor %vm1847_vm5, %vm1848_vm0 }
 0x22d   : > { %v4388_v3 = vsel %vm4250_vm10, %v4021_v28, %v1805_v10  ;;  %v1835_v20 = vsel %vm4375_vm1, %v4089_v1, %v1831_v41  ;;  %v1860_v49 = vmul.f32 %v4176_v63, %v1859_v24  ;;  %v1904_v60 = vsub.f32 1.0, %v1903_v54 }
 0x22e   : > { %v1875_v61 = vmul.f32 %v4190_v37, %v1874_v19  ;;  %v1890_v27 = vmul.f32 %v4219_v23, %v1889_v25  ;;  %v1899_v32 = vor.u32 1.1754944e-38, %v1898_v26  ;;  %2628 = vrcp.f32 %v3956_v6 }
 0x22f   : > { %v4400_v34 = vsel %vm4277_vm12, %v4050_v55, %v1820_v46  ;;  %v5823_v1 = vand.u32 2147483647, %v3926_v48  ;;  %vm1907_vm10 = vweird.f32 %v3937_v40  ;;  %v1911_v21 = vand.u32 2147483647, %v3937_v40  ;;  %v5838_v46 = vld [vmem:[#allocation84_spill] sm:$0xff] }
 0x230   : > { %v1918_v55 = vmul.f32 %v4366_v5, %v3943_v31  ;;  %v4423_v16 = vsel %vm4310_vm2, %v4061_v45, %v1835_v20  ;;  %v1850_v11 = vsel %vm4406_vm8, %v4123_v38, %v1846_v14  ;;  %vm1863_vm12 = vweird.f32 %v4176_v63  ;;  %v5839_v14 = vld [vmem:[#allocation85_spill] sm:$0xff] }
 0x231   : > { %vm4412_vm9 = vcmp.eq.f32.partialorder %v5823_v1, 8.507059e+37  ;;  %vm4431_vm5 = vcmp.eq.f32.partialorder %v1881_v53, 8.507059e+37  ;;  %vm4435_vm6 = vcmp.eq.f32.partialorder %v1896_v36, 8.507059e+37  ;;  %v1933_v45 = vmul.f32 %v4383_v15, %v3950_v13  ;;  %vm4458_vm14 = vmor %vm1862_vm11, %vm1863_vm12 }
 0x232   : > { %v1861_v43 = vadd.f32 %v4176_v63, %v1860_v49  ;;  %vm1878_vm2 = vweird.f32 %v4190_v37  ;;  %v1905_v38 = vmul.f32 %v4264_v8, %v1904_v60  ;;  %2630 = vrcp.f32 %v3960_v57  ;;  %v4445_v9 = vpop.eup %2626 }
 0x233   : > { %v1876_v53 = vadd.f32 %v4190_v37, %v1875_v61  ;;  %v1891_v44 = vadd.f32 %v4219_v23, %v1890_v27  ;;  %vm1893_vm7 = vweird.f32 %v4219_v23  ;;  %v1913_v7 = vand.u32 2147483648, %v3937_v40  ;;  %vm4471_vm1 = vmor %vm1877_vm4, %vm1878_vm2 }
 0x234   : > { %v4454_v58 = vsel %vm4338_vm15, %v4078_v0, %v1850_v11  ;;  %vm1908_vm3 = vweird.f32 %v4264_v8  ;;  %vm4463_vm0 = vcmp.eq.f32.partialorder %v1911_v21, 8.507059e+37  ;;  %v1919_v54 = vsub.f32 1.0, %v1918_v55  ;;  %v4467_v10 = vpop.eup %2628  ;;  %vm4483_vm15 = vmor %vm1892_vm13, %vm1893_vm7 }
 0x235   : > { %v1926_v48 = vand.u32 2147483647, %v3943_v31  ;;  %v1928_v51 = vand.u32 2147483648, %v3943_v31  ;;  %v1934_v39 = vsub.f32 1.0, %v1933_v45  ;;  %v1941_v19 = vand.u32 2147483647, %v3950_v13  ;;  %vm4514_vm4 = vmor %vm1907_vm10, %vm1908_vm3 }
 0x236   : > { %v1865_v25 = vsel %vm4458_vm14, %v4176_v63, %v1861_v43  ;;  %v1906_v35 = vadd.f32 %v4264_v8, %v1905_v38  ;;  %v1948_v52 = vmul.f32 %v4445_v9, %v3952_v22  ;;  %2632 = vrcp.f32 %v5838_v46  ;;  %v5846_v45 = vld [vmem:[#allocation86_spill] sm:$0xff] }
 0x237   : > { %v1880_v2 = vsel %vm4471_vm1, %v4190_v37, %v1876_v53  ;;  %v1895_v63 = vsel %vm4483_vm15, %v4219_v23, %v1891_v44  ;;  %v1943_v50 = vand.u32 2147483648, %v3950_v13  ;;  %2634 = vrcp.f32 %v5839_v14 }
 0x238   : > { %v4499_v36 = vpop.eup %2630  ;;  %v1914_v20 = vor.u32 1.1754944e-38, %v1913_v7  ;;  %v1920_v49 = vmul.f32 %v4366_v5, %v1919_v54  ;;  %vm1922_vm11 = vweird.f32 %v3943_v31  ;;  %v1963_v60 = vmul.f32 %v4467_v10, %v3956_v6  ;;  %v5847_v54 = vld [vmem:[#allocation87_spill] sm:$0xff] }
 0x239   : > { %v4508_v37 = vsel %vm4412_vm9, %v4186_v59, %v1865_v25  ;;  %v1929_v61 = vor.u32 1.1754944e-38, %v1928_v51  ;;  %v1935_v27 = vmul.f32 %v4383_v15, %v1934_v39  ;;  %vm1937_vm13 = vweird.f32 %v3950_v13 }
 0x23a   : > { %v4523_v28 = vsel %vm4431_vm5, %v4364_v30, %v1880_v2  ;;  %v4527_v59 = vsel %vm4435_vm6, %v1899_v32, %v1895_v63  ;;  %v1910_v40 = vsel %vm4514_vm4, %v4264_v8, %v1906_v35  ;;  %vm4532_vm8 = vcmp.eq.f32.partialorder %v1926_v48, 8.507059e+37  ;;  %v5854_v35 = vld [vmem:[#allocation88_spill] sm:$0xff] }
 0x23b   : > { %v1949_v4 = vsub.f32 1.0, %v1948_v52  ;;  %vm1923_vm9 = vweird.f32 %v4366_v5  ;;  %vm4537_vm10 = vcmp.eq.f32.partialorder %v1941_v19, 8.507059e+37  ;;  %v1944_v30 = vor.u32 1.1754944e-38, %v1943_v50 }
 0x23c   : > { %v1958_v55 = vand.u32 2147483648, %v3952_v22  ;;  %v1978_v32 = vmul.f32 %v4499_v36, %v3960_v57  ;;  %v4544_v11 = vpop.eup %2632  ;;  %v1921_v8 = vadd.f32 %v4366_v5, %v1920_v49  ;;  %v1956_v62 = vand.u32 2147483647, %v3952_v22  ;;  %vm4566_vm6 = vmor %vm1922_vm11, %vm1923_vm9 }
 0x23d   : > { %v1964_v47 = vsub.f32 1.0, %v1963_v60  ;;  %2636 = vrcp.f32 %v5846_v45  ;;  %v4549_v43 = vpop.eup %2634  ;;  %v4553_v38 = vsel %vm4463_vm0, %v1914_v20, %v1910_v40  ;;  %v1936_v53 = vadd.f32 %v4383_v15, %v1935_v27 }
 0x23e   : > { %vm1938_vm12 = vweird.f32 %v4383_v15  ;;  %vm1952_vm5 = vweird.f32 %v3952_v22  ;;  %v1950_v44 = vmul.f32 %v4445_v9, %v1949_v4  ;;  %v1971_v7 = vand.u32 2147483647, %v3956_v6 }
 0x23f   : > { %v1973_v41 = vand.u32 2147483648, %v3956_v6  ;;  %2638 = vrcp.f32 %v5847_v54  ;;  %v1959_v0 = vor.u32 1.1754944e-38, %v1958_v55  ;;  %vm1967_vm2 = vweird.f32 %v3956_v6  ;;  %vm4578_vm7 = vmor %vm1937_vm13, %vm1938_vm12 }
 0x240   : > { %v1979_v48 = vsub.f32 1.0, %v1978_v32  ;;  %v1993_v51 = vmul.f32 %v4544_v11, %v5838_v46  ;;  %v1925_v39 = vsel %vm4566_vm6, %v4366_v5, %v1921_v8  ;;  %vm4582_vm14 = vcmp.eq.f32.partialorder %v1956_v62, 8.507059e+37  ;;  %v5861_v8 = vld [vmem:[#allocation89_spill] sm:$0xff] }
 0x241   : > { %v1965_v25 = vmul.f32 %v4467_v10, %v1964_v47  ;;  %v2008_v26 = vmul.f32 %v4549_v43, %v5839_v14  ;;  %2640 = vrcp.f32 %v5854_v35  ;;  %v1940_v5 = vsel %vm4578_vm7, %v4383_v15, %v1936_v53 }
 0x242   : > { %vm1953_vm3 = vweird.f32 %v4445_v9  ;;  %v1986_v13 = vand.u32 2147483647, %v3960_v57  ;;  %v1988_v52 = vand.u32 2147483648, %v3960_v57  ;;  %v1951_v63 = vadd.f32 %v4445_v9, %v1950_v44 }
 0x243   : > { %v4596_v2 = vpop.eup %2636  ;;  %vm4599_vm0 = vcmp.eq.f32.partialorder %v1971_v7, 8.507059e+37  ;;  %v1974_v20 = vor.u32 1.1754944e-38, %v1973_v41  ;;  %v2003_v49 = vand.u32 2147483648, %v5838_v46  ;;  %v4606_v15 = vsel %vm4532_vm8, %v1929_v61, %v1925_v39  ;;  %vm4622_vm11 = vmor %vm1952_vm5, %vm1953_vm3  ;;  %v5864_v39 = vld [vmem:[#allocation90_spill] sm:$0xff] }
 0x244   : > { %v1980_v60 = vmul.f32 %v4499_v36, %v1979_v48  ;;  %vm1982_vm1 = vweird.f32 %v3960_v57  ;;  %v1994_v23 = vsub.f32 1.0, %v1993_v51  ;;  %v4614_v40 = vsel %vm4537_vm10, %v1944_v30, %v1940_v5 }
 0x245   : > { %v4610_v27 = vpop.eup %2638  ;;  %v1966_v4 = vadd.f32 %v4467_v10, %v1965_v25  ;;  %vm1968_vm15 = vweird.f32 %v4467_v10  ;;  %v2009_v55 = vsub.f32 1.0, %v2008_v26  ;;  %vm4626_vm4 = vcmp.eq.f32.partialorder %v1986_v13, 8.507059e+37  ;;  %v5869_v13 = vld [vmem:[#allocation91_spill] sm:$0xff] }
 0x246   : > { %v1989_v21 = vor.u32 1.1754944e-38, %v1988_v52  ;;  %vm1997_vm13 = vweird.f32 %v5838_v46  ;;  %v2001_v30 = vand.u32 2147483647, %v5838_v46  ;;  %v2023_v32 = vmul.f32 %v4596_v2, %v5846_v45  ;;  %vm4644_vm9 = vmor %vm1967_vm2, %vm1968_vm15  ;;  %v5885_v25 = vld [vmem:[#allocation95_spill] sm:$0xff] }
 0x247   : > { %2642 = vrcp.f32 %v5861_v8  ;;  %v4635_v62 = vpop.eup %2640  ;;  %v1955_v22 = vsel %vm4622_vm11, %v4445_v9, %v1951_v63  ;;  %vm1983_vm8 = vweird.f32 %v4499_v36  ;;  %v2004_v47 = vor.u32 1.1754944e-38, %v2003_v49 }
 0x248   : > { %v2018_v53 = vand.u32 2147483648, %v5839_v14  ;;  %v1981_v7 = vadd.f32 %v4499_v36, %v1980_v60  ;;  %v1995_v41 = vmul.f32 %v4544_v11, %v1994_v23  ;;  %v2016_v24 = vand.u32 2147483647, %v5839_v14  ;;  %vm4674_vm5 = vmor %vm1982_vm1, %vm1983_vm8 }
 0x249   : > { %v2038_v9 = vmul.f32 %v4610_v27, %v5847_v54  ;;  %v1970_v48 = vsel %vm4644_vm9, %v4467_v10, %v1966_v4  ;;  %v2010_v51 = vmul.f32 %v4549_v43, %v2009_v55  ;;  %v2033_v6 = vand.u32 2147483648, %v5846_v45 }
 0x24a   : > { %2644 = vrcp.f32 %v5864_v39  ;;  %v4661_v19 = vsel %vm4582_vm14, %v1959_v0, %v1955_v22  ;;  %vm4663_vm10 = vcmp.eq.f32.partialorder %v2001_v30, 8.507059e+37  ;;  %vm2012_vm12 = vweird.f32 %v5839_v14  ;;  %v5872_v30 = vld [vmem:[#allocation92_spill] sm:$0xff] }
 0x24b   : > { %v2024_v26 = vsub.f32 1.0, %v2023_v32  ;;  %v2053_v10 = vmul.f32 %v4635_v62, %v5854_v35  ;;  %vm1998_vm6 = vweird.f32 %v4544_v11  ;;  %v2019_v0 = vor.u32 1.1754944e-38, %v2018_v53 }
 0x24c   : > { %v2031_v31 = vand.u32 2147483647, %v5846_v45  ;;  %2646 = vrcp.f32 %v5869_v13  ;;  %v4685_v63 = vsel %vm4599_vm0, %v1974_v20, %v1970_v48  ;;  %v1985_v57 = vsel %vm4674_vm5, %v4499_v36, %v1981_v7  ;;  %vm4712_vm3 = vmor %vm1997_vm13, %vm1998_vm6  ;;  %v5875_v7 = vld [vmem:[#allocation93_spill] sm:$0xff] }
 0x24d   : > { %v4681_v52 = vpop.eup %2642  ;;  %v1996_v49 = vadd.f32 %v4544_v11, %v1995_v41  ;;  %vm4691_vm2 = vcmp.eq.f32.partialorder %v2016_v24, 8.507059e+37  ;;  %vm2027_vm7 = vweird.f32 %v5846_v45  ;;  %v2039_v23 = vsub.f32 1.0, %v2038_v9 }
 0x24e   : > { %v2011_v4 = vadd.f32 %v4549_v43, %v2010_v51  ;;  %vm2013_vm14 = vweird.f32 %v4549_v43  ;;  %v2034_v50 = vor.u32 1.1754944e-38, %v2033_v6  ;;  %v2048_v20 = vand.u32 2147483648, %v5847_v54 }
 0x24f   : > { %v2025_v55 = vmul.f32 %v4596_v2, %v2024_v26  ;;  %v2046_v36 = vand.u32 2147483647, %v5847_v54  ;;  %v2054_v61 = vsub.f32 1.0, %v2053_v10  ;;  %2648 = vrcp.f32 %v5872_v30  ;;  %vm4725_vm1 = vmor %vm2012_vm12, %vm2013_vm14 }
 0x250   : > { %v4702_v32 = vpop.eup %2644  ;;  %v4706_v22 = vsel %vm4626_vm4, %v1989_v21, %v1985_v57  ;;  %vm2042_vm0 = vweird.f32 %v5847_v54  ;;  %v2068_v44 = vmul.f32 %v4681_v52, %v5861_v8  ;;  %2650 = vrcp.f32 %v5875_v7 }
 0x251   : > { %v2000_v1 = vsel %vm4712_vm3, %v4544_v11, %v1996_v49  ;;  %vm4729_vm15 = vcmp.eq.f32.partialorder %v2031_v31, 8.507059e+37  ;;  %v2040_v41 = vmul.f32 %v4610_v27, %v2039_v23  ;;  %v2061_v24 = vand.u32 2147483647, %v5854_v35  ;;  %v5882_v31 = vld [vmem:[#allocation94_spill] sm:$0xff] }
 0x252   : > { %v2063_v9 = vand.u32 2147483648, %v5854_v35  ;;  %v4736_v48 = vpop.eup %2646  ;;  %v2015_v14 = vsel %vm4725_vm1, %v4549_v43, %v2011_v4  ;;  %vm2028_vm11 = vweird.f32 %v4596_v2  ;;  %v2049_v11 = vor.u32 1.1754944e-38, %v2048_v20 }
 0x253   : > { %v2078_v51 = vand.u32 2147483648, %v5861_v8  ;;  %v2026_v6 = vadd.f32 %v4596_v2, %v2025_v55  ;;  %vm4744_vm4 = vcmp.eq.f32.partialorder %v2046_v36, 8.507059e+37  ;;  %v2055_v10 = vmul.f32 %v4635_v62, %v2054_v61 }
 0x254   : > { %v2083_v5 = vmul.f32 %v4702_v32, %v5864_v39  ;;  %2652 = vrcp.f32 %v5882_v31  ;;  %v4754_v43 = vsel %vm4663_vm10, %v2004_v47, %v2000_v1  ;;  %vm2043_vm13 = vweird.f32 %v4610_v27  ;;  %vm4778_vm10 = vmor %vm2027_vm7, %vm2028_vm11 }
 0x255   : > { %vm2057_vm8 = vweird.f32 %v5854_v35  ;;  %v2069_v57 = vsub.f32 1.0, %v2068_v44  ;;  %v4758_v49 = vpop.eup %2648  ;;  %v2041_v23 = vadd.f32 %v4610_v27, %v2040_v41  ;;  %vm4761_vm9 = vcmp.eq.f32.partialorder %v2061_v24, 8.507059e+37  ;;  %vm4793_vm6 = vmor %vm2042_vm0, %vm2043_vm13 }
 0x256   : > { %v2064_v20 = vor.u32 1.1754944e-38, %v2063_v9  ;;  %v2098_v55 = vmul.f32 %v4736_v48, %v5869_v13  ;;  %2654 = vrcp.f32 %v5885_v25  ;;  %v4768_v47 = vpop.eup %2650  ;;  %v4772_v36 = vsel %vm4691_vm2, %v2019_v0, %v2015_v14 }
 0x257   : > { %vm2058_vm12 = vweird.f32 %v4635_v62  ;;  %vm2072_vm5 = vweird.f32 %v5861_v8  ;;  %v2076_v53 = vand.u32 2147483647, %v5861_v8  ;;  %v2030_v60 = vsel %vm4778_vm10, %v4596_v2, %v2026_v6  ;;  %v5890_v6 = vld [vmem:[#allocation96_spill] sm:$0xff] }
 0x258   : > { %v2056_v0 = vadd.f32 %v4635_v62, %v2055_v10  ;;  %v2079_v44 = vor.u32 1.1754944e-38, %v2078_v51  ;;  %v2084_v1 = vsub.f32 1.0, %v2083_v5  ;;  %v2070_v21 = vmul.f32 %v4681_v52, %v2069_v57  ;;  %vm4818_vm2 = vmor %vm2057_vm8, %vm2058_vm12 }
 0x259   : > { %v2091_v41 = vand.u32 2147483647, %v5864_v39  ;;  %v2093_v24 = vand.u32 2147483648, %v5864_v39  ;;  %v2113_v2 = vmul.f32 %v4758_v49, %v5872_v30  ;;  %v2045_v14 = vsel %vm4793_vm6, %v4610_v27, %v2041_v23 }
 0x25a   : > { %v4802_v9 = vpop.eup %2652  ;;  %v2099_v54 = vsub.f32 1.0, %v2098_v55  ;;  %v2128_v51 = vmul.f32 %v4768_v47, %v5875_v7  ;;  %2656 = vrcp.f32 %v5890_v6  ;;  %v4812_v10 = vsel %vm4729_vm15, %v2034_v50, %v2030_v60 }
 0x25b   : > { %5891 = vst [vmem:[#allocation84_spill] sm:$0xff] %v4812_v10  ;;  %vm4822_vm7 = vcmp.eq.f32.partialorder %v2076_v53, 8.507059e+37  ;;  %vm2087_vm14 = vweird.f32 %v5864_v39  ;;  %v2106_v57 = vand.u32 2147483647, %v5869_v13  ;;  %v2108_v46 = vand.u32 2147483648, %v5869_v13 }
 0x25c   : > { %v4829_v50 = vpop.eup %2654  ;;  %v2060_v35 = vsel %vm4818_vm2, %v4635_v62, %v2056_v0  ;;  %vm2073_vm3 = vweird.f32 %v4681_v52  ;;  %v2085_v23 = vmul.f32 %v4702_v32, %v2084_v1  ;;  %vm2102_vm0 = vweird.f32 %v5869_v13 }
 0x25d   : > { %v2123_v55 = vand.u32 2147483648, %v5872_v30  ;;  %v4840_v61 = vsel %vm4744_vm4, %v2049_v11, %v2045_v14  ;;  %v2071_v53 = vadd.f32 %v4681_v52, %v2070_v21  ;;  %v2114_v60 = vsub.f32 1.0, %v2113_v2  ;;  %vm4865_vm4 = vmor %vm2072_vm5, %vm2073_vm3 }
 0x25e   : > { %v2143_v45 = vmul.f32 %v4802_v9, %v5882_v31  ;;  %vm4845_vm1 = vcmp.eq.f32.partialorder %v2091_v41, 8.507059e+37  ;;  %v2094_v0 = vor.u32 1.1754944e-38, %v2093_v24  ;;  %v2100_v1 = vmul.f32 %v4736_v48, %v2099_v54 }
 0x25f   : > { %v2121_v5 = vand.u32 2147483647, %v5872_v30  ;;  %v2129_v10 = vsub.f32 1.0, %v2128_v51  ;;  %v4853_v11 = vsel %vm4761_vm9, %v2064_v20, %v2060_v35  ;;  %vm2088_vm15 = vweird.f32 %v4702_v32 }
 0x260   : > { %v2109_v26 = vor.u32 1.1754944e-38, %v2108_v46  ;;  %vm2117_vm11 = vweird.f32 %v5872_v30  ;;  %v2158_v21 = vmul.f32 %v4829_v50, %v5885_v25  ;;  %v4859_v41 = vpop.eup %2656  ;;  %v2086_v4 = vadd.f32 %v4702_v32, %v2085_v23  ;;  %v5902_v46 = vld [vmem:[#allocation97_spill] sm:$0xff]  ;;  %vm4889_vm10 = vmor %vm2087_vm14, %vm2088_vm15 }
 0x261   : > { %vm4870_vm13 = vcmp.eq.f32.partialorder %v2106_v57, 8.507059e+37  ;;  %v2124_v2 = vor.u32 1.1754944e-38, %v2123_v55  ;;  %vm2132_vm8 = vweird.f32 %v5875_v7  ;;  %v2136_v14 = vand.u32 2147483647, %v5875_v7 }
 0x262   : > { %v2075_v54 = vsel %vm4865_vm4, %v4681_v52, %v2071_v53  ;;  %v2115_v8 = vmul.f32 %v4758_v49, %v2114_v60  ;;  %v2144_v51 = vsub.f32 1.0, %v2143_v45  ;;  %2658 = vrcp.f32 %v5902_v46  ;;  %v5907_v45 = vld [vmem:[#allocation98_spill] sm:$0xff] }
 0x263   : > { %v2101_v35 = vadd.f32 %v4736_v48, %v2100_v1  ;;  %vm2103_vm9 = vweird.f32 %v4736_v48  ;;  %v2130_v57 = vmul.f32 %v4768_v47, %v2129_v10  ;;  %v2138_v23 = vand.u32 2147483648, %v5875_v7 }
 0x264   : > { %vm4893_vm12 = vcmp.eq.f32.partialorder %v2121_v5, 8.507059e+37  ;;  %vm2147_vm5 = vweird.f32 %v5882_v31  ;;  %v2151_v53 = vand.u32 2147483647, %v5882_v31  ;;  %v2159_v60 = vsub.f32 1.0, %v2158_v21  ;;  %vm4913_vm2 = vmor %vm2102_vm0, %vm2103_vm9 }
 0x265   : > { %v2173_v10 = vmul.f32 %v4859_v41, %v5890_v6  ;;  %2660 = vrcp.f32 %v5907_v45  ;;  %v4904_v39 = vsel %vm4822_vm7, %v2079_v44, %v2075_v54  ;;  %v2090_v1 = vsel %vm4889_vm10, %v4702_v32, %v2086_v4 }
 0x266   : > { %5908 = vst [vmem:[#allocation85_spill] sm:$0xff] %v4904_v39  ;;  %vm2118_vm6 = vweird.f32 %v4758_v49  ;;  %v2153_v5 = vand.u32 2147483648, %v5882_v31  ;;  %v2116_v24 = vadd.f32 %v4758_v49, %v2115_v8  ;;  %vm2133_vm14 = vweird.f32 %v4768_v47 }
 0x267   : > { %vm4919_vm7 = vcmp.eq.f32.partialorder %v2136_v14, 8.507059e+37  ;;  %v2145_v32 = vmul.f32 %v4802_v9, %v2144_v51  ;;  %v2105_v27 = vsel %vm4913_vm2, %v4736_v48, %v2101_v35  ;;  %v2131_v13 = vadd.f32 %v4768_v47, %v2130_v57  ;;  %vm4944_vm0 = vmor %vm2117_vm11, %vm2118_vm6 }
 0x268   : > { %v2139_v4 = vor.u32 1.1754944e-38, %v2138_v23  ;;  %v2166_v54 = vand.u32 2147483647, %v5885_v25  ;;  %v4929_v55 = vpop.eup %2658  ;;  %v4933_v8 = vsel %vm4845_vm1, %v2094_v0, %v2090_v1  ;;  %vm4935_vm3 = vcmp.eq.f32.partialorder %v2151_v53, 8.507059e+37  ;;  %vm4964_vm11 = vmor %vm2132_vm8, %vm2133_vm14 }
 0x269   : > { %v2160_v51 = vmul.f32 %v4829_v50, %v2159_v60  ;;  %v2174_v39 = vsub.f32 1.0, %v2173_v10  ;;  %vm2148_vm15 = vweird.f32 %v4802_v9  ;;  %v2154_v62 = vor.u32 1.1754944e-38, %v2153_v5  ;;  %v5933_v5 = vld [vmem:[#allocation16_spill] sm:$0xff] }
 0x26a   : > { %vm2162_vm1 = vweird.f32 %v5885_v25  ;;  %v2168_v0 = vand.u32 2147483648, %v5885_v25  ;;  %v4955_v57 = vsel %vm4870_vm13, %v2109_v26, %v2105_v27  ;;  %v2120_v30 = vsel %vm4944_vm0, %v4758_v49, %v2116_v24  ;;  %vm4992_vm9 = vmor %vm2147_vm5, %vm2148_vm15  ;;  %v5924_v27 = vld [vmem:[#allocation100_spill] sm:$0xff] }
 0x26b   : > { %v4951_v35 = vpop.eup %2660  ;;  %v2146_v53 = vadd.f32 %v4802_v9, %v2145_v32  ;;  %vm2177_vm4 = vweird.f32 %v5890_v6  ;;  %v2135_v26 = vsel %vm4964_vm11, %v4768_v47, %v2131_v13  ;;  %vm4973_vm13 = vcmp.eq.f32.partialorder %v2166_v54, 8.507059e+37  ;;  %v5923_v32 = vld [vmem:[#allocation99_spill] sm:$0xff] }
 0x26c   : > { %v2181_v49 = vand.u32 2147483647, %v5890_v6  ;;  %v2188_v7 = vmul.f32 %v4929_v55, %v5902_v46  ;;  %v2161_v60 = vadd.f32 %v4829_v50, %v2160_v51  ;;  %vm2163_vm8 = vweird.f32 %v4829_v50 }
 0x26d   : > { %v2175_v10 = vmul.f32 %v4859_v41, %v2174_v39  ;;  %v2183_v1 = vand.u32 2147483648, %v5890_v6  ;;  %v4986_v47 = vsel %vm4893_vm12, %v2124_v2, %v2120_v30  ;;  %v2169_v21 = vor.u32 1.1754944e-38, %v2168_v0  ;;  %vm5011_vm10 = vmor %vm2162_vm1, %vm2163_vm8  ;;  %v5932_v6 = vld [vmem:[#allocation13_spill] sm:$0xff] }
 0x26e   : > { %v2203_v24 = vmul.f32 %v4951_v35, %v5907_v45  ;;  %2662 = vrcp.f32 %v5923_v32  ;;  %v2150_v52 = vsel %vm4992_vm9, %v4802_v9, %v2146_v53  ;;  %v2198_v2 = vand.u32 2147483648, %v5902_v46 }
 0x26f   : > { %v2213_v39 = vand.u32 2147483648, %v5907_v45  ;;  %2664 = vrcp.f32 %v5924_v27  ;;  %v5007_v31 = vsel %vm4919_vm7, %v2139_v4, %v2135_v26  ;;  %vm5015_vm12 = vcmp.eq.f32.partialorder %v2181_v49, 8.507059e+37 }
 0x270   : > { %v2189_v9 = vsub.f32 1.0, %v2188_v7  ;;  %v2228_v51 = vand.u32 2147483648, %v5923_v32  ;;  %v2165_v48 = vsel %vm5011_vm10, %v4829_v50, %v2161_v60  ;;  %v2176_v44 = vadd.f32 %v4859_v41, %v2175_v10 }
 0x271   : > { %vm2178_vm5 = vweird.f32 %v4859_v41  ;;  %v2184_v25 = vor.u32 1.1754944e-38, %v2183_v1  ;;  %v5027_v4 = vsel %vm4935_vm3, %v2154_v62, %v2150_v52  ;;  %v2196_v0 = vand.u32 2147483647, %v5902_v46  ;;  %v5943_v62 = vld [vmem:[#allocation23_spill] sm:$0xff] }
 0x272   : > { %v2204_v30 = vsub.f32 1.0, %v2203_v24  ;;  %v2211_v23 = vand.u32 2147483647, %v5907_v45  ;;  %vm2192_vm6 = vweird.f32 %v5902_v46  ;;  %vm2193_vm2 = vweird.f32 %v4929_v55  ;;  %vm5046_vm14 = vmor %vm2177_vm4, %vm2178_vm5  ;;  %v5934_v24 = vld [vmem:[#allocation18_spill] sm:$0xff] }
 0x273   : > { %v5033_v53 = vor.u32 1.1754944e-38, %v2198_v2  ;;  %v5035_v50 = vor.u32 1.1754944e-38, %v2213_v39  ;;  %v5042_v14 = vsel %vm4973_vm13, %v2169_v21, %v2165_v48  ;;  %v2190_v7 = vmul.f32 %v4929_v55, %v2189_v9  ;;  %v5935_v9 = vld [vmem:[#allocation19_spill] sm:$0xff]  ;;  %v5939_v48 = vld [vmem:[#allocation20_spill] sm:$0xff]  ;;  %vm5120_vm1 = vmor %vm2192_vm6, %vm2193_vm2 }
 0x274   : > { %v5038_v49 = vpop.eup %2662  ;;  %5929 = vst [vmem:[#allocation86_spill] sm:$0xff] %v5042_v14  ;;  %vm2207_vm7 = vweird.f32 %v5907_v45  ;;  %vm2208_vm3 = vweird.f32 %v4951_v35  ;;  %v5053_v60 = vor.u32 1.1754944e-38, %v2228_v51  ;;  %v2180_v20 = vsel %vm5046_vm14, %v4859_v41, %v2176_v44  ;;  %v5949_v39 = vld [vmem:[#allocation28_spill] sm:$0xff]  ;;  %v5969_v41 = vld [vmem:[#allocation46_spill] sm:$0xff] }
 0x275   : > { %v5055_v10 = vpop.eup %2664  ;;  %v2307_v1 = vmul.f32 %v4224_v12, %v5932_v6  ;;  %v2308_v21 = vmul.f32 %v4229_v18, %v5933_v5  ;;  %v2309_v52 = vmul.f32 %v4258_v33, %v5934_v24  ;;  %v2205_v2 = vmul.f32 %v4951_v35, %v2204_v30  ;;  %v5938_v18 = vld [vmem:[#allocation101_spill] sm:$0xff]  ;;  %v5944_v5 = vld [vmem:[#allocation27_spill] sm:$0xff]  ;;  %v5948_v33 = vld [vmem:[#allocation102_spill] sm:$0xff] }
 0x276   : > { %v2243_v13 = vand.u32 2147483648, %v5924_v27  ;;  %v2310_v51 = vmul.f32 %v4290_v29, %v5935_v9  ;;  %vm5071_vm0 = vcmp.eq.f32.partialorder %v2196_v0, 8.507059e+37  ;;  %v2218_v12 = vmul.f32 %v5038_v49, %v5923_v32  ;;  %v5945_v9 = vld [vmem:[#allocation6_spill] sm:$0xff]  ;;  %vm5139_vm4 = vmor %vm2207_vm7, %vm2208_vm3 }
 0x277   : > { %2666 = vrcp.f32 %v5938_v18  ;;  %v2311_v44 = vmul.f32 %v4295_v56, %v5939_v48  ;;  %v5090_v29 = vsel %vm5015_vm12, %v2184_v25, %v2180_v20  ;;  %v2191_v0 = vadd.f32 %v4929_v55, %v2190_v7  ;;  %v5946_v25 = vld [vmem:[#allocation9_spill] sm:$0xff]  ;;  %v5971_v30 = vld [vmem:[#allocation26_spill] sm:$0xff] }
 0x278   : > { %5940 = vst [vmem:[#allocation87_spill] sm:$0xff] %v5090_v29  ;;  %vm5093_vm15 = vcmp.eq.f32.partialorder %v2211_v23, 8.507059e+37  ;;  %v2233_v56 = vmul.f32 %v5055_v10, %v5924_v27  ;;  %v2312_v6 = vmul.f32 %v4347_v42, %v5943_v62  ;;  %v2313_v24 = vmul.f32 %v4352_v17, %v5944_v5  ;;  %v5947_v48 = vld [vmem:[#allocation5_spill] sm:$0xff]  ;;  %v5950_v29 = vld [vmem:[#allocation8_spill] sm:$0xff]  ;;  %v5951_v62 = vld [vmem:[#allocation103_spill] sm:$0xff] }
 0x279   : > { %v2348_v54 = vmul.f32 %v2307_v1, %v5945_v9  ;;  %v2349_v20 = vmul.f32 %v2308_v21, %v5946_v25  ;;  %v2350_v7 = vmul.f32 %v2309_v52, %v5947_v48  ;;  %v2206_v23 = vadd.f32 %v4951_v35, %v2205_v2  ;;  %v5952_v17 = vld [vmem:[#allocation30_spill] sm:$0xff]  ;;  %v5957_v2 = vld [vmem:[#allocation33_spill] sm:$0xff]  ;;  %v5962_v9 = vld [vmem:[#allocation11_spill] sm:$0xff] }
 0x27a   : > { %2668 = vrcp.f32 %v5948_v33  ;;  %v2314_v26 = vmul.f32 %v4388_v3, %v5949_v39  ;;  %v2351_v14 = vmul.f32 %v2310_v51, %v5950_v29  ;;  %v2219_v42 = vsub.f32 1.0, %v2218_v12  ;;  %v5953_v21 = vld [vmem:[#allocation2_spill] sm:$0xff]  ;;  %v5956_v3 = vld [vmem:[#allocation104_spill] sm:$0xff] }
 0x27b   : > { %2670 = vrcp.f32 %v5951_v62  ;;  %v2315_v1 = vmul.f32 %v4400_v34, %v5952_v17  ;;  %v2352_v5 = vmul.f32 %v2311_v44, %v5953_v21  ;;  %2389 = vst [vmem:[%s5086_s30] sm:$0xff] %v2348_v54  ;;  %vm2223_vm11 = vweird.f32 %v5038_v49  ;;  %v5958_v34 = vld [vmem:[#allocation3_spill] sm:$0xff]  ;;  %v5961_v29 = vld [vmem:[#allocation34_spill] sm:$0xff] }
 0x27c   : > { %2672 = vrcp.f32 %v5956_v3  ;;  %v2316_v39 = vmul.f32 %v4423_v16, %v5957_v2  ;;  %v2353_v51 = vmul.f32 %v2312_v6, %v5958_v34  ;;  %2390 = vst [vmem:[%s5086_s30 + $0x8] sm:$0xff] %v2349_v20  ;;  %v2195_v46 = vsel %vm5120_vm1, %v4929_v55, %v2191_v0  ;;  %v5963_v0 = vld [vmem:[#allocation39_spill] sm:$0xff]  ;;  %v5964_v20 = vld [vmem:[#allocation10_spill] sm:$0xff] }
 0x27d   : > { %v5130_v12 = vpop.eup %2666  ;;  %v2258_v16 = vand.u32 2147483648, %v5938_v18  ;;  %v2317_v6 = vmul.f32 %v4454_v58, %v5961_v29  ;;  %v2354_v54 = vmul.f32 %v2313_v24, %v5962_v9  ;;  %2391 = vst [vmem:[%s5086_s30 + $0x10] sm:$0xff] %v2350_v7  ;;  %v2210_v55 = vsel %vm5139_vm4, %v4951_v35, %v2206_v23  ;;  %v5965_v58 = vld [vmem:[#allocation42_spill] sm:$0xff]  ;;  %v5966_v7 = vld [vmem:[#allocation4_spill] sm:$0xff]  ;;  %v5972_v34 = vld [vmem:[#allocation7_spill] sm:$0xff] }
 0x27e   : > { %vm2222_vm13 = vweird.f32 %v5923_v32  ;;  %v2234_v45 = vsub.f32 1.0, %v2233_v56  ;;  %v2318_v25 = vmul.f32 %v4508_v37, %v5963_v0  ;;  %v2355_v48 = vmul.f32 %v2314_v26, %v5964_v20  ;;  %2392 = vst [vmem:[%s5086_s30 + $0x18] sm:$0xff] %v2351_v14  ;;  %v5967_v14 = vld [vmem:[#allocation43_spill] sm:$0xff]  ;;  %v5976_v29 = vld [vmem:[#allocation25_spill] sm:$0xff]  ;;  %v5977_v9 = vld [vmem:[#allocation22_spill] sm:$0xff] }
 0x27f   : > { %v2220_v17 = vmul.f32 %v5038_v49, %v2219_v42  ;;  %vm2238_vm8 = vweird.f32 %v5055_v10  ;;  %v2319_v24 = vmul.f32 %v4523_v28, %v5965_v58  ;;  %v2356_v35 = vmul.f32 %v2315_v1, %v5966_v7  ;;  %2393 = vst [vmem:[%s5086_s30 + $0x20] sm:$0xff] %v2352_v5  ;;  %v5968_v42 = vld [vmem:[#allocation15_spill] sm:$0xff]  ;;  %v5970_v5 = vld [vmem:[#allocation14_spill] sm:$0xff]  ;;  %vm5241_vm6 = vmor %vm2222_vm13, %vm2223_vm11 }
 0x280   : > { %v5162_v23 = vpop.eup %2668  ;;  %v5167_v37 = vsel %vm5071_vm0, %v5033_v53, %v2195_v46  ;;  %vm2237_vm9 = vweird.f32 %v5924_v27  ;;  %v5170_v26 = vor.u32 1.1754944e-38, %v2243_v13  ;;  %v2320_v56 = vmul.f32 %v4527_v59, %v5967_v14  ;;  %2394 = vst [vmem:[%s5086_s30 + $0x28] sm:$0xff] %v2353_v51 }
 0x281   : > { %v2357_v28 = vmul.f32 %v2316_v39, %v5968_v42  ;;  %v5176_v1 = vpop.eup %2670  ;;  %v5181_v21 = vsel %vm5093_vm15, %v5035_v50, %v2210_v55  ;;  %v5183_v53 = vor.u32 1.1754944e-38, %v2258_v16  ;;  %v2321_v13 = vmul.f32 %v4553_v38, %v5969_v41  ;;  %2395 = vst [vmem:[%s5086_s30 + $0x30] sm:$0xff] %v2354_v54  ;;  %vm5262_vm14 = vmor %vm2237_vm9, %vm2238_vm8  ;;  %v6014_v55 = vld [vmem:[#allocation59_spill] sm:$0xff] }
 0x282   : > { %v2358_v52 = vmul.f32 %v2317_v6, %v5970_v5  ;;  %v5189_v59 = vpop.eup %2672  ;;  %v2235_v2 = vmul.f32 %v5055_v10, %v2234_v45  ;;  %v2248_v39 = vmul.f32 %v5130_v12, %v5938_v18  ;;  %v2322_v50 = vmul.f32 %v4606_v15, %v5971_v30  ;;  %2396 = vst [vmem:[%s5086_s30 + $0x38] sm:$0xff] %v2355_v48  ;;  %v5982_v48 = vld [vmem:[#allocation21_spill] sm:$0xff]  ;;  %v5990_v30 = vld [vmem:[#allocation31_spill] sm:$0xff] }
 0x283   : > { %v2359_v51 = vmul.f32 %v2318_v25, %v5972_v34  ;;  %v2221_v46 = vadd.f32 %v5038_v49, %v2220_v17  ;;  %v5973_v38 = vand.u32 2147483647, %v5923_v32  ;;  %v2263_v16 = vmul.f32 %v5162_v23, %v5948_v33  ;;  %2397 = vst [vmem:[%s5086_s30 + $0x40] sm:$0xff] %v2356_v35  ;;  %v5981_v25 = vld [vmem:[#allocation29_spill] sm:$0xff]  ;;  %v5984_v35 = vld [vmem:[#allocation12_spill] sm:$0xff] }
 0x284   : > { %v2323_v6 = vmul.f32 %v4614_v40, %v5976_v29  ;;  %v2360_v15 = vmul.f32 %v2319_v24, %v5977_v9  ;;  %v5978_v54 = vand.u32 2147483647, %v5924_v27  ;;  %v2271_v45 = vand.u32 2147483647, %v5948_v33  ;;  %2398 = vst [vmem:[%s5086_s30 + $0x48] sm:$0xff] %v2357_v28  ;;  %v5983_v24 = vld [vmem:[#allocation36_spill] sm:$0xff] }
 0x285   : > { %vm5201_vm10 = vcmp.eq.f32.partialorder %v5973_v38, 8.507059e+37  ;;  %v2278_v0 = vmul.f32 %v5176_v1, %v5951_v62  ;;  %v2324_v20 = vmul.f32 %v4661_v19, %v5981_v25  ;;  %v2361_v40 = vmul.f32 %v2320_v56, %v5982_v48  ;;  %2399 = vst [vmem:[%s5086_s30 + $0x50] sm:$0xff] %v2358_v52  ;;  %v5985_v19 = vld [vmem:[#allocation35_spill] sm:$0xff]  ;;  %v5986_v28 = vld [vmem:[#allocation32_spill] sm:$0xff]  ;;  %v5991_v34 = vld [vmem:[#allocation45_spill] sm:$0xff] }
 0x286   : > { %vm5213_vm12 = vcmp.eq.f32.partialorder %v5978_v54, 8.507059e+37  ;;  %v2273_v17 = vand.u32 2147483648, %v5948_v33  ;;  %v2293_v58 = vmul.f32 %v5189_v59, %v5956_v3  ;;  %v2325_v7 = vmul.f32 %v4685_v63, %v5983_v24  ;;  %2400 = vst [vmem:[%s5086_s30 + $0x58] sm:$0xff] %v2359_v51  ;;  %v5992_v38 = vld [vmem:[#allocation17_spill] sm:$0xff]  ;;  %v5995_v29 = vld [vmem:[#allocation44_spill] sm:$0xff] }
 0x287   : > { %v2362_v14 = vmul.f32 %v2321_v13, %v5984_v35  ;;  %v2236_v42 = vadd.f32 %v5055_v10, %v2235_v2  ;;  %v2249_v41 = vsub.f32 1.0, %v2248_v39  ;;  %vm2253_vm5 = vweird.f32 %v5130_v12  ;;  %v5989_v2 = vld [vmem:[#allocation37_spill] sm:$0xff]  ;;  %2401 = vst [vmem:[%s5086_s30 + $0x60] sm:$0xff] %v2360_v15  ;;  %v6010_v63 = vld [vmem:[#allocation60_spill] sm:$0xff] }
 0x288   : > { %v2326_v56 = vmul.f32 %v4706_v22, %v5985_v19  ;;  %v2363_v5 = vmul.f32 %v2322_v50, %v5986_v28  ;;  %v2264_v13 = vsub.f32 1.0, %v2263_v16  ;;  %v2286_v52 = vand.u32 2147483647, %v5951_v62  ;;  %2402 = vst [vmem:[%s5086_s30 + $0x68] sm:$0xff] %v2361_v40  ;;  %v5997_v9 = vld [vmem:[#allocation41_spill] sm:$0xff] }
 0x289   : > { %v2327_v39 = vmul.f32 %v4754_v43, %v5989_v2  ;;  %v2364_v22 = vmul.f32 %v2323_v6, %v5990_v30  ;;  %v2225_v50 = vsel %vm5241_vm6, %v5038_v49, %v2221_v46  ;;  %vm2252_vm2 = vweird.f32 %v5938_v18  ;;  %v5996_v6 = vld [vmem:[#allocation84_spill] sm:$0xff]  ;;  %2403 = vst [vmem:[%s5086_s30 + $0x70] sm:$0xff] %v2362_v14  ;;  %v6006_v19 = vld [vmem:[#allocation85_spill] sm:$0xff]  ;;  %v6011_v2 = vld [vmem:[#allocation47_spill] sm:$0xff] }
 0x28a   : > { %v2279_v32 = vsub.f32 1.0, %v2278_v0  ;;  %v2328_v51 = vmul.f32 %v4772_v36, %v5991_v34  ;;  %v2365_v16 = vmul.f32 %v2324_v20, %v5992_v38  ;;  %vm2267_vm7 = vweird.f32 %v5948_v33  ;;  %v5998_v0 = vld [vmem:[#allocation49_spill] sm:$0xff]  ;;  %v5999_v20 = vld [vmem:[#allocation40_spill] sm:$0xff]  ;;  %2404 = vst [vmem:[%s5086_s30 + $0x78] sm:$0xff] %v2363_v5  ;;  %v6019_v43 = vld [vmem:[#allocation51_spill] sm:$0xff] }
 0x28b   : > { %v5267_v49 = vor.u32 1.1754944e-38, %v2273_v17  ;;  %v2294_v46 = vsub.f32 1.0, %v2293_v58  ;;  %v2329_v36 = vmul.f32 %v5996_v6, %v5995_v29  ;;  %v2366_v15 = vmul.f32 %v2325_v7, %v5997_v9  ;;  %v6000_v58 = vld [vmem:[#allocation54_spill] sm:$0xff]  ;;  %2405 = vst [vmem:[%s5086_s30 + $0x80] sm:$0xff] %v2364_v22  ;;  %vm5340_vm8 = vmor %vm2252_vm2, %vm2253_vm5  ;;  %v6022_v6 = vld [vmem:[#allocation64_spill] sm:$0xff] }
 0x28c   : > { %v2240_v27 = vsel %vm5262_vm14, %v5055_v10, %v2236_v42  ;;  %v2250_v54 = vmul.f32 %v5130_v12, %v2249_v41  ;;  %vm2282_vm3 = vweird.f32 %v5951_v62  ;;  %v2330_v25 = vmul.f32 %v4840_v61, %v5998_v0  ;;  %v6001_v10 = vld [vmem:[#allocation24_spill] sm:$0xff]  ;;  %v6005_v41 = vld [vmem:[#allocation57_spill] sm:$0xff]  ;;  %2406 = vst [vmem:[%s5086_s30 + $0x88] sm:$0xff] %v2365_v16  ;;  %v6015_v22 = vld [vmem:[#allocation38_spill] sm:$0xff] }
 0x28d   : > { %v2367_v48 = vmul.f32 %v2326_v56, %v5999_v20  ;;  %v2265_v40 = vmul.f32 %v5162_v23, %v2264_v13  ;;  %v2288_v17 = vand.u32 2147483648, %v5951_v62  ;;  %v2331_v24 = vmul.f32 %v4853_v11, %v6000_v58  ;;  %v6007_v11 = vld [vmem:[#allocation48_spill] sm:$0xff]  ;;  %2407 = vst [vmem:[%s5086_s30 + $0x90] sm:$0xff] %v2366_v15  ;;  %v6032_v58 = vld [vmem:[#allocation87_spill] sm:$0xff] }
 0x28e   : > { %v2368_v7 = vmul.f32 %v2327_v39, %v6001_v10  ;;  %v2230_v35 = vsel %vm5201_vm10, %v5053_v60, %v2225_v50  ;;  %v6002_v61 = vand.u32 2147483647, %v5938_v18  ;;  %v2280_v42 = vmul.f32 %v5176_v1, %v2279_v32  ;;  %v6016_v32 = vld [vmem:[#allocation63_spill] sm:$0xff]  ;;  %v6044_v60 = vld [vmem:[#allocation80_spill] sm:$0xff] }
 0x28f   : > { %v2332_v56 = vmul.f32 %v6006_v19, %v6005_v41  ;;  %v2369_v28 = vmul.f32 %v2328_v51, %v6007_v11  ;;  %v2245_v44 = vsel %vm5213_vm12, %v5170_v26, %v2240_v27  ;;  %vm5305_vm15 = vcmp.eq.f32.partialorder %v2271_v45, 8.507059e+37  ;;  %2408 = vst [vmem:[%s5086_s30 + $0x98] sm:$0xff] %v2367_v48  ;;  %v6017_v51 = vld [vmem:[#allocation52_spill] sm:$0xff]  ;;  %v6033_v10 = vld [vmem:[#allocation55_spill] sm:$0xff]  ;;  %v6037_v19 = vld [vmem:[#allocation53_spill] sm:$0xff] }
 0x290   : > { %vm5293_vm0 = vcmp.eq.f32.partialorder %v6002_v61, 8.507059e+37  ;;  %v2295_v5 = vmul.f32 %v5189_v59, %v2294_v46  ;;  %v2333_v13 = vmul.f32 %v4933_v8, %v6010_v63  ;;  %v2370_v39 = vmul.f32 %v2329_v36, %v6011_v2  ;;  %2409 = vst [vmem:[%s5086_s30 + $0xa0] sm:$0xff] %v2368_v7  ;;  %v6047_v26 = vld [vmem:[#allocation67_spill] sm:$0xff] }
 0x291   : > { %v2251_v30 = vadd.f32 %v5130_v12, %v2250_v54  ;;  %vm2268_vm1 = vweird.f32 %v5162_v23  ;;  %vm5316_vm11 = vcmp.eq.f32.partialorder %v2286_v52, 8.507059e+37  ;;  %v2334_v45 = vmul.f32 %v4955_v57, %v6014_v55  ;;  %v6018_v57 = vld [vmem:[#allocation65_spill] sm:$0xff]  ;;  %2410 = vst [vmem:[%s5086_s30 + $0xa8] sm:$0xff] %v2369_v28  ;;  %v6039_v28 = vld [vmem:[#allocation62_spill] sm:$0xff] }
 0x292   : > { %v2371_v50 = vmul.f32 %v2330_v25, %v6015_v22  ;;  %v2266_v8 = vadd.f32 %v5162_v23, %v2265_v40  ;;  %vm2297_vm4 = vweird.f32 %v5956_v3  ;;  %v2335_v34 = vmul.f32 %v4986_v47, %v6016_v32  ;;  %2411 = vst [vmem:[%s5086_s30 + $0xb0] sm:$0xff] %v2370_v39  ;;  %vm5357_vm10 = vmor %vm2267_vm7, %vm2268_vm1  ;;  %v6026_v54 = vld [vmem:[#allocation69_spill] sm:$0xff]  ;;  %v6028_v25 = vld [vmem:[#allocation56_spill] sm:$0xff] }
 0x293   : > { %v2372_v38 = vmul.f32 %v2331_v24, %v6017_v51  ;;  %v2281_v52 = vadd.f32 %v5176_v1, %v2280_v42  ;;  %vm2283_vm13 = vweird.f32 %v5176_v1  ;;  %v2336_v16 = vmul.f32 %v5007_v31, %v6018_v57  ;;  %v6023_v31 = vld [vmem:[#allocation50_spill] sm:$0xff]  ;;  %v6031_v40 = vld [vmem:[#allocation71_spill] sm:$0xff] }
 0x294   : > { %v2373_v46 = vmul.f32 %v2332_v56, %v6019_v43  ;;  %v2296_v29 = vadd.f32 %v5189_v59, %v2295_v5  ;;  %vm2298_vm9 = vweird.f32 %v5189_v59  ;;  %v2337_v36 = vmul.f32 %v5027_v4, %v6022_v6  ;;  %v6027_v4 = vld [vmem:[#allocation86_spill] sm:$0xff]  ;;  %2412 = vst [vmem:[%s5086_s30 + $0xb8] sm:$0xff] %v2371_v50  ;;  %vm5373_vm12 = vmor %vm2282_vm3, %vm2283_vm13  ;;  %v6046_v50 = vld [vmem:[#allocation81_spill] sm:$0xff] }
 0x295   : > { %v2374_v9 = vmul.f32 %v2333_v13, %v6023_v31  ;;  %v2255_v15 = vsel %vm5340_vm8, %v5130_v12, %v2251_v30  ;;  %v2303_v27 = vand.u32 2147483648, %v5956_v3  ;;  %v2338_v0 = vmul.f32 %v6027_v4, %v6026_v54  ;;  %2413 = vst [vmem:[%s5086_s30 + $0xc0] sm:$0xff] %v2372_v38  ;;  %vm5389_vm5 = vmor %vm2297_vm4, %vm2298_vm9  ;;  %v6036_v42 = vld [vmem:[#allocation70_spill] sm:$0xff]  ;;  %v6040_v13 = vld [vmem:[#allocation76_spill] sm:$0xff] }
 0x296   : > { %v2375_v20 = vmul.f32 %v2334_v45, %v6028_v25  ;;  %v2270_v12 = vsel %vm5357_vm10, %v5162_v23, %v2266_v8  ;;  %v2301_v48 = vand.u32 2147483647, %v5956_v3  ;;  %v2339_v24 = vmul.f32 %v6032_v58, %v6031_v40  ;;  %2414 = vst [vmem:[%s5086_s30 + $0xc8] sm:$0xff] %v2373_v46  ;;  %v6038_v3 = vld [vmem:[#allocation75_spill] sm:$0xff]  ;;  %v6043_v30 = vld [vmem:[#allocation58_spill] sm:$0xff]  ;;  %v6052_v46 = vld [vmem:[#allocation72_spill] sm:$0xff] }
 0x297   : > { %v2376_v7 = vmul.f32 %v2335_v34, %v6033_v10  ;;  %v2285_v23 = vsel %vm5373_vm12, %v5176_v1, %v2281_v52  ;;  %v2289_v61 = vor.u32 1.1754944e-38, %v2288_v17  ;;  %v2340_v41 = vmul.f32 %v5167_v37, %v6036_v42  ;;  %2415 = vst [vmem:[%s5086_s30 + $0xd0] sm:$0xff] %v2374_v9  ;;  %v6049_v51 = vld [vmem:[#allocation66_spill] sm:$0xff]  ;;  %v6050_v52 = vld [vmem:[#allocation83_spill] sm:$0xff]  ;;  %v6055_v9 = vld [vmem:[#allocation77_spill] sm:$0xff] }
 0x298   : > { %v2377_v56 = vmul.f32 %v2336_v16, %v6037_v19  ;;  %v2260_v1 = vsel %vm5293_vm0, %v5183_v53, %v2255_v15  ;;  %v2300_v17 = vsel %vm5389_vm5, %v5189_v59, %v2296_v29  ;;  %v2341_v11 = vmul.f32 %v5181_v21, %v6038_v3  ;;  %v6041_v53 = vld [vmem:[#allocation61_spill] sm:$0xff]  ;;  %2416 = vst [vmem:[%s5086_s30 + $0xd8] sm:$0xff] %v2375_v20  ;;  %v6042_v21 = vld [vmem:[#allocation79_spill] sm:$0xff]  ;;  %v6053_v29 = vld [vmem:[#allocation74_spill] sm:$0xff] }
 0x299   : > { %v2378_v5 = vmul.f32 %v2337_v36, %v6039_v28  ;;  %v2275_v37 = vsel %vm5305_vm15, %v5267_v49, %v2270_v12  ;;  %v2304_v63 = vor.u32 1.1754944e-38, %v2303_v27  ;;  %v2342_v14 = vmul.f32 %v2230_v35, %v6040_v13  ;;  %2417 = vst [vmem:[%s5086_s30 + $0xe0] sm:$0xff] %v2376_v7  ;;  %v6045_v35 = vld [vmem:[#allocation68_spill] sm:$0xff]  ;;  %v6051_v16 = vld [vmem:[#allocation73_spill] sm:$0xff]  ;;  %v6054_v36 = vld [vmem:[#allocation78_spill] sm:$0xff] }
 0x29a   : > { %v2379_v2 = vmul.f32 %v2338_v0, %v6041_v53  ;;  %v2290_v59 = vsel %vm5316_vm11, %v2289_v61, %v2285_v23  ;;  %vm2302_vm6 = vcmp.eq.f32.partialorder %v2301_v48, 8.507059e+37  ;;  %v2343_v39 = vmul.f32 %v2245_v44, %v6042_v21  ;;  %2418 = vst [vmem:[%s5086_s30 + $0xe8] sm:$0xff] %v2377_v56  ;;  %v6048_v44 = vld [vmem:[#allocation82_spill] sm:$0xff] }
 0x29b   : > { %v2380_v55 = vmul.f32 %v2339_v24, %v6043_v30  ;;  %v2305_v49 = vsel %vm2302_vm6, %v2304_v63, %v2300_v17  ;;  %v2344_v45 = vmul.f32 %v2260_v1, %v6044_v60  ;;  %v2381_v22 = vmul.f32 %v2340_v41, %v6045_v35  ;;  %2419 = vst [vmem:[%s5086_s30 + $0xf0] sm:$0xff] %v2378_v5 }
 0x29c   : > { %v2345_v8 = vmul.f32 %v2275_v37, %v6046_v50  ;;  %v2382_v32 = vmul.f32 %v2341_v11, %v6047_v26  ;;  %v2346_v34 = vmul.f32 %v2290_v59, %v6048_v44  ;;  %v2383_v38 = vmul.f32 %v2342_v14, %v6049_v51  ;;  %2420 = vst [vmem:[%s5086_s30 + $0xf8] sm:$0xff] %v2379_v2 }
 0x29d   : > { %v2347_v57 = vmul.f32 %v2305_v49, %v6050_v52  ;;  %v2384_v43 = vmul.f32 %v2343_v39, %v6051_v16  ;;  %2421 = vst [vmem:[%s5086_s30 + $0x100] sm:$0xff] %v2380_v55  ;;  %v2385_v47 = vmul.f32 %v2344_v45, %v6052_v46 }
 0x29e   : > { %2422 = vst [vmem:[%s5086_s30 + $0x108] sm:$0xff] %v2381_v22  ;;  %v2386_v6 = vmul.f32 %v2345_v8, %v6053_v29  ;;  %v2387_v31 = vmul.f32 %v2346_v34, %v6054_v36 }
 0x29f   : > { %2423 = vst [vmem:[%s5086_s30 + $0x110] sm:$0xff] %v2382_v32  ;;  %v2388_v15 = vmul.f32 %v2347_v57, %v6055_v9 }
 0x2a0   : > { %2424 = vst [vmem:[%s5086_s30 + $0x118] sm:$0xff] %v2383_v38 }
 0x2a1   : > { %2425 = vst [vmem:[%s5086_s30 + $0x120] sm:$0xff] %v2384_v43 }
 0x2a2   : > { %2426 = vst [vmem:[%s5086_s30 + $0x128] sm:$0xff] %v2385_v47 }
 0x2a3   : > { %2427 = vst [vmem:[%s5086_s30 + $0x130] sm:$0xff] %v2386_v6 }
 0x2a4   : > { %2428 = vst [vmem:[%s5086_s30 + $0x138] sm:$0xff] %v2387_v31 }
 0x2a5   : > { %2429 = vst [vmem:[%s5086_s30 + $0x140] sm:$0xff] %v2388_v15 }
 0x2a6 PF: > { %s15_s18 = sadd.s32 1, %s2695_s18  }
 0x2a7   : > { %p12_p4 = scmp.ge.s32.totalorder %s15_s18, 4  }
 0x2a9   :  { %14 = sbr.rel (!%p12_p4) target bundleno = 1 (0x1), region = 70 }

// kernel: resnet_block_forward.7
= control target key start
LH: loop header
LB: loop body
LE: loop exit
PB: predicated region body
PF: predicated region fallthrough
CT: control target
= control target key end

     0   :  { %s3468_s15 = smov 0   ;;  %s3470_s16 = smov 0   ;;  %s4578_s0 = inlined_call_operand.vmem [shape: f32[2,328,64], index: 0, kind: input, shape index: {}]   ;;  %s4579_s1 = inlined_call_operand.vmem [shape: bf16[9,64,128], index: 1, kind: input, shape index: {}]   ;;  %s4580_s2 = inlined_call_operand.vmem [shape: f32[1,128], index: 2, kind: input, shape index: {}]   ;;  %s4581_s3 = inlined_call_operand.vmem [shape: f32[2,1,128], index: 3, kind: input, shape index: {}]   ;;  %s4582_s4 = inlined_call_operand.vmem [shape: f32[2,328,128], index: 4, kind: output, shape index: {}]  }
   0x1   :  { %s3472_s17 = smov 0  }
   0x2 LB: > { %s26_s18 = sadd.s32 1, %s3436_s16  ;;  %p2967_p0 = scmp.ge.s32.totalorder %s3440_s17, 1  ;;  %s3440_s17 = sphi %s3472_s17, %s14_s17   ;;  %s3436_s16 = sphi %s3470_s16, %s4584_s16   ;;  %s3432_s15 = sphi %s3468_s15, %s4583_s15  }
   0x3   : > { %p28_p1 = scmp.ge.s32.totalorder %s26_s18, 2  ;;  %p206_p2 = scmp.lt.s32.totalorder %s3440_s17, 3 }
   0x5   : > { %s4586_s18 = smov (%p28_p1, %s26_s18), 0  ;;  %p207_p3 = pnand %p2967_p0, %p206_p2 }
   0x6   : > { %p248_p4 = scmp.lt.s32.totalorder (!%p207_p3), %s3432_s15, 1 }
   0x7   : > { %210 = sbr.rel (%p207_p3) target bundleno = 819 (0x333), region = 36 }
   0xc   : > { %v3349_v0 = vld [vmem:[%s4579_s1 + $0x38] sm:$0xff]  ;;  %v3348_v1 = vld [vmem:[%s4579_s1 + $0x30] sm:$0xff]  ;;  %s4588_s15 = smov (!%p248_p4, %s3432_s15), 1  ;;  %v3347_v2 = vld [vmem:[%s4579_s1 + $0x28] sm:$0xff]  ;;  %vm424_vm0 = vcmask 523264  }
   0xd   : > { %3378 = vmatpush.bf16.msra.mxu1 %v3349_v0  ;;  %3379 = vmatpush.bf16.msra.mxu2 %v3349_v0  ;;  %s3390_s23 = smul.u32 328, %s4588_s15  ;;  %v3346_v3 = vld [vmem:[%s4579_s1 + $0x20] sm:$0xff]  ;;  %v3353_v8 = vld [vmem:[%s4579_s1 + $0x58] sm:$0xff]  ;;  %v3352_v18 = vld [vmem:[%s4579_s1 + $0x50] sm:$0xff]  ;;  %s265_s11 = scalar_lea.vmem %s4581_s3, %s4588_s15 }
   0xe   : > { %483 = vmatpush.bf16.msra.mxu0 %v3349_v0  ;;  %3380 = vmatpush.bf16.msra.mxu3 %v3349_v0  ;;  %v3345_v11 = vld [vmem:[%s4579_s1 + $0x18] sm:$0xff]  ;;  %v3344_v19 = vld [vmem:[%s4579_s1 + $0x10] sm:$0xff]  ;;  %v3351_v23 = vld [vmem:[%s4579_s1 + $0x48] sm:$0xff] }
   0xf   : > { %s3503_s28 = scalar_lea.vmem %s4578_s0, %s3390_s23  ;;  %v3361_v12 = vld [vmem:[%s4579_s1 + $0x98] sm:$0xff]  ;;  %v3360_v20 = vld [vmem:[%s4579_s1 + $0x90] sm:$0xff]  ;;  %v3343_v24 = vld [vmem:[%s4579_s1 + $0x8] sm:$0xff]  ;;  %s4166_s14 = scalar_lea.vmem %s4582_s4, %s3390_s23 }
  0x10   : > { %v347_v4 = vld [vmem:[%s3503_s28 + $0x51] sm:$0xff]  ;;  %v348_v5 = vld [vmem:[%s3503_s28 + $0x59] sm:$0xff]  ;;  %v357_v6 = vld [vmem:[%s3503_s28 + $0xa1] sm:$0xff] }
  0x11   : > { %3381 = vmatpush.bf16.msra.mxu1 %v3348_v1  ;;  %3382 = vmatpush.bf16.msra.mxu2 %v3348_v1  ;;  %v358_v7 = vld [vmem:[%s3503_s28 + $0xa9] sm:$0xff]  ;;  %v337_v9 = vld [vmem:[%s3503_s28 + $0x1] sm:$0xff]  ;;  %v378_v13 = vpack.c.bf16 %v348_v5, %v347_v4  ;;  %v367_v16 = vld [vmem:[%s3503_s28 + $0xf1] sm:$0xff] }
  0x12   : > { %484 = vmatpush.bf16.msra.mxu0 %v3348_v1  ;;  %3383 = vmatpush.bf16.msra.mxu3 %v3348_v1  ;;  %v338_v10 = vld [vmem:[%s3503_s28 + $0x9] sm:$0xff]  ;;  %v383_v14 = vpack.c.bf16 %v358_v7, %v357_v6  ;;  %v368_v17 = vld [vmem:[%s3503_s28 + $0xf9] sm:$0xff]  ;;  %v349_v26 = vld [vmem:[%s3503_s28 + $0x61] sm:$0xff] }
  0x13   : > { %v373_v15 = vpack.c.bf16 %v338_v10, %v337_v9  ;;  %v388_v21 = vpack.c.bf16 %v368_v17, %v367_v16  ;;  %v3357_v22 = vld [vmem:[%s4579_s1 + $0x78] sm:$0xff]  ;;  %v3356_v25 = vld [vmem:[%s4579_s1 + $0x70] sm:$0xff]  ;;  %v369_v35 = vld [vmem:[%s3503_s28 + $0x101] sm:$0xff] }
  0x14   : > { %v350_v27 = vld [vmem:[%s3503_s28 + $0x69] sm:$0xff]  ;;  %v359_v28 = vld [vmem:[%s3503_s28 + $0xb1] sm:$0xff]  ;;  %v360_v29 = vld [vmem:[%s3503_s28 + $0xb9] sm:$0xff] }
  0x15   : > { %3384 = vmatpush.bf16.msra.mxu1 %v3347_v2  ;;  %3385 = vmatpush.bf16.msra.mxu2 %v3347_v2  ;;  %v339_v30 = vld [vmem:[%s3503_s28 + $0x11] sm:$0xff]  ;;  %v340_v31 = vld [vmem:[%s3503_s28 + $0x19] sm:$0xff]  ;;  %v379_v32 = vpack.c.bf16 %v350_v27, %v349_v26  ;;  %v384_v33 = vpack.c.bf16 %v360_v29, %v359_v28  ;;  %v370_v36 = vld [vmem:[%s3503_s28 + $0x109] sm:$0xff] }
  0x16   : > { %485 = vmatpush.bf16.msra.mxu0 %v3347_v2  ;;  %3386 = vmatpush.bf16.msra.mxu3 %v3347_v2  ;;  %v374_v34 = vpack.c.bf16 %v340_v31, %v339_v30  ;;  %v389_v37 = vpack.c.bf16 %v370_v36, %v369_v35  ;;  %v3359_v38 = vld [vmem:[%s4579_s1 + $0x88] sm:$0xff]  ;;  %v3350_v40 = vld [vmem:[%s4579_s1 + $0x40] sm:$0xff]  ;;  %v351_v41 = vld [vmem:[%s3503_s28 + $0x71] sm:$0xff] }
  0x17   : > { %v3355_v39 = vld [vmem:[%s4579_s1 + $0x68] sm:$0xff]  ;;  %v352_v42 = vld [vmem:[%s3503_s28 + $0x79] sm:$0xff]  ;;  %v371_v50 = vld [vmem:[%s3503_s28 + $0x111] sm:$0xff] }
  0x18   : > { %v361_v43 = vld [vmem:[%s3503_s28 + $0xc1] sm:$0xff]  ;;  %v362_v44 = vld [vmem:[%s3503_s28 + $0xc9] sm:$0xff]  ;;  %v380_v47 = vpack.c.bf16 %v352_v42, %v351_v41  ;;  %v372_v51 = vld [vmem:[%s3503_s28 + $0x119] sm:$0xff] }
  0x19   : > { %3387 = vmatpush.bf16.msra.mxu1 %v3346_v3  ;;  %3388 = vmatpush.bf16.msra.mxu2 %v3346_v3  ;;  %v341_v45 = vld [vmem:[%s3503_s28 + $0x21] sm:$0xff]  ;;  %v342_v46 = vld [vmem:[%s3503_s28 + $0x29] sm:$0xff]  ;;  %v385_v48 = vpack.c.bf16 %v362_v44, %v361_v43  ;;  %v390_v52 = vpack.c.bf16 %v372_v51, %v371_v50  ;;  %v363_v58 = vld [vmem:[%s3503_s28 + $0xd1] sm:$0xff] }
  0x1a   : > { %486 = vmatpush.bf16.msra.mxu0 %v3346_v3  ;;  %3389 = vmatpush.bf16.msra.mxu3 %v3346_v3  ;;  %v375_v49 = vpack.c.bf16 %v342_v46, %v341_v45  ;;  %v3342_v53 = vld [vmem:[%s4579_s1] sm:$0xff]  ;;  %v354_v57 = vld [vmem:[%s3503_s28 + $0x89] sm:$0xff]  ;;  %v343_v60 = vld [vmem:[%s3503_s28 + $0x31] sm:$0xff] }
  0x1b   : > { %v3354_v54 = vld [vmem:[%s4579_s1 + $0x60] sm:$0xff]  ;;  %v1031_v1 = vld [vmem:[%s3503_s28 + $0x12] sm:$0xff]  ;;  %v280_v42 = vld [vmem:[%s3503_s28 + $0x28] sm:$0xff] }
  0x1c   : > { %2999 = vmatmul.msk.bf16.vlgmr.msra.gmra.mxu1 %vm424_vm0, %v378_v13  ;;  %3004 = vmatmul.msk.bf16.vlgmr.msra.gmra.mxu2 %vm424_vm0, %v383_v14  ;;  %v3358_v55 = vld [vmem:[%s4579_s1 + $0x80] sm:$0xff]  ;;  %v3369_v4 = vld [vmem:[%s4579_s1 + $0xd8] sm:$0xff]  ;;  %v346_v13 = vld [vmem:[%s3503_s28 + $0x49] sm:$0xff] }
  0x1d   : > { %900 = vmatpush.bf16.msrb.mxu2 %v3353_v8  ;;  %660 = vmatpush.bf16.msrb.mxu1 %v3345_v11  ;;  %v353_v56 = vld [vmem:[%s3503_s28 + $0x81] sm:$0xff]  ;;  %v364_v59 = vld [vmem:[%s3503_s28 + $0xd9] sm:$0xff]  ;;  %v355_v8 = vld [vmem:[%s3503_s28 + $0x91] sm:$0xff] }
  0x1e   : > { %1452 = vmatpush.bf16.msrb.mxu0 %v3361_v12  ;;  %3009 = vmatmul.msk.bf16.vlgmr.msra.gmra.mxu3 %vm424_vm0, %v388_v21  ;;  %v344_v61 = vld [vmem:[%s3503_s28 + $0x39] sm:$0xff]  ;;  %v381_v62 = vpack.c.bf16 %v354_v57, %v353_v56  ;;  %v386_v63 = vpack.c.bf16 %v364_v59, %v363_v58  ;;  %v365_v10 = vld [vmem:[%s3503_s28 + $0xe1] sm:$0xff]  ;;  %v366_v11 = vld [vmem:[%s3503_s28 + $0xe9] sm:$0xff] }
  0x1f   : > { %2994 = vmatmul.msk.bf16.vlgmr.msra.gmra.mxu0 %vm424_vm0, %v373_v15  ;;  %1176 = vmatpush.bf16.msrb.mxu3 %v3357_v22  ;;  %v376_v0 = vpack.c.bf16 %v344_v61, %v343_v60  ;;  %v1032_v2 = vld [vmem:[%s3503_s28 + $0x1a] sm:$0xff]  ;;  %v387_v15 = vpack.c.bf16 %v366_v11, %v365_v10  ;;  %v1033_v17 = vld [vmem:[%s3503_s28 + $0x22] sm:$0xff]  ;;  %v1035_v29 = vld [vmem:[%s3503_s28 + $0x32] sm:$0xff] }
  0x20   : > { %v1067_v3 = vpack.c.bf16 %v1032_v2, %v1031_v1  ;;  %v3373_v5 = vld [vmem:[%s4579_s1 + $0xf8] sm:$0xff]  ;;  %v345_v12 = vld [vmem:[%s3503_s28 + $0x41] sm:$0xff]  ;;  %v1310_v35 = vld [vmem:[%s3503_s28 + $0x2b] sm:$0xff] }
  0x21   : > { %901 = vmatpush.bf16.msrb.mxu2 %v3352_v18  ;;  %661 = vmatpush.bf16.msrb.mxu1 %v3344_v19  ;;  %v3365_v6 = vld [vmem:[%s4579_s1 + $0xb8] sm:$0xff]  ;;  %v377_v16 = vpack.c.bf16 %v346_v13, %v345_v12  ;;  %v1034_v18 = vld [vmem:[%s3503_s28 + $0x2a] sm:$0xff]  ;;  %v755_v22 = vld [vmem:[%s3503_s28 + $0x2] sm:$0xff] }
  0x22   : > { %1453 = vmatpush.bf16.msrb.mxu0 %v3360_v20  ;;  %v3377_v7 = vld [vmem:[%s4579_s1 + $0x118] sm:$0xff]  ;;  %v1068_v19 = vpack.c.bf16 %v1034_v18, %v1033_v17  ;;  %v275_v20 = vld [vmem:[%s3503_s28] sm:$0xff]  ;;  %v276_v21 = vld [vmem:[%s3503_s28 + $0x8] sm:$0xff] }
  0x23   : > { %1177 = vmatpush.bf16.msrb.mxu3 %v3356_v25  ;;  %v356_v9 = vld [vmem:[%s3503_s28 + $0x99] sm:$0xff]  ;;  %v311_v26 = vpack.c.bf16 %v276_v21, %v275_v20  ;;  %v3368_v50 = vld [vmem:[%s4579_s1 + $0xd0] sm:$0xff]  ;;  %v1041_v60 = vld [vmem:[%s3503_s28 + $0x62] sm:$0xff] }
  0x24   : > { %v382_v14 = vpack.c.bf16 %v356_v9, %v355_v8  ;;  %v1308_v25 = vld [vmem:[%s3503_s28 + $0x1b] sm:$0xff]  ;;  %v1311_v43 = vld [vmem:[%s3503_s28 + $0x33] sm:$0xff]  ;;  %v1042_v61 = vld [vmem:[%s3503_s28 + $0x6a] sm:$0xff] }
  0x25   : > { %902 = vmatpush.bf16.msrb.mxu2 %v3351_v23  ;;  %662 = vmatpush.bf16.msrb.mxu1 %v3343_v24  ;;  %v756_v23 = vld [vmem:[%s3503_s28 + $0xa] sm:$0xff]  ;;  %v1307_v24 = vld [vmem:[%s3503_s28 + $0x13] sm:$0xff]  ;;  %v279_v41 = vld [vmem:[%s3503_s28 + $0x20] sm:$0xff] }
  0x26   : > { %1454 = vmatpush.bf16.msrb.mxu0 %v3359_v38  ;;  %v791_v27 = vpack.c.bf16 %v756_v23, %v755_v22  ;;  %v1343_v28 = vpack.c.bf16 %v1308_v25, %v1307_v24  ;;  %v1036_v30 = vld [vmem:[%s3503_s28 + $0x3a] sm:$0xff]  ;;  %v1037_v38 = vld [vmem:[%s3503_s28 + $0x42] sm:$0xff]  ;;  %v313_v45 = vpack.c.bf16 %v280_v42, %v279_v41  ;;  %v3372_v51 = vld [vmem:[%s4579_s1 + $0xf0] sm:$0xff] }
  0x27   : > { %1178 = vmatpush.bf16.msrb.mxu3 %v3355_v39  ;;  %v1069_v31 = vpack.c.bf16 %v1036_v30, %v1035_v29  ;;  %v1038_v39 = vld [vmem:[%s3503_s28 + $0x4a] sm:$0xff]  ;;  %v1312_v44 = vld [vmem:[%s3503_s28 + $0x3b] sm:$0xff]  ;;  %v1043_v13 = vld [vmem:[%s3503_s28 + $0x72] sm:$0xff] }
  0x28   : > { %v1345_v46 = vpack.c.bf16 %v1312_v44, %v1311_v43  ;;  %v3364_v56 = vld [vmem:[%s4579_s1 + $0xb0] sm:$0xff]  ;;  %v1316_v8 = vld [vmem:[%s3503_s28 + $0x5b] sm:$0xff]  ;;  %v1317_v24 = vld [vmem:[%s3503_s28 + $0x63] sm:$0xff] }
  0x29   : > { %903 = vmatpush.bf16.msrb.mxu2 %v3350_v40  ;;  %663 = vmatpush.bf16.msrb.mxu1 %v3342_v53  ;;  %v1070_v40 = vpack.c.bf16 %v1038_v39, %v1037_v38  ;;  %v282_v53 = vld [vmem:[%s3503_s28 + $0x38] sm:$0xff]  ;;  %v285_v22 = vld [vmem:[%s3503_s28 + $0x50] sm:$0xff]  ;;  %v1045_v30 = vld [vmem:[%s3503_s28 + $0x82] sm:$0xff] }
  0x2a   : > { %1455 = vmatpush.bf16.msrb.mxu0 %v3358_v55  ;;  %v1314_v55 = vld [vmem:[%s3503_s28 + $0x4b] sm:$0xff]  ;;  %v286_v23 = vld [vmem:[%s3503_s28 + $0x58] sm:$0xff]  ;;  %v287_v39 = vld [vmem:[%s3503_s28 + $0x60] sm:$0xff] }
  0x2b   : > { %1179 = vmatpush.bf16.msrb.mxu3 %v3354_v54  ;;  %v1313_v54 = vld [vmem:[%s3503_s28 + $0x43] sm:$0xff]  ;;  %v1318_v25 = vld [vmem:[%s3503_s28 + $0x6b] sm:$0xff]  ;;  %v1319_v41 = vld [vmem:[%s3503_s28 + $0x73] sm:$0xff] }
  0x2c   : > { %3000 = vmatmul.msk.bf16.gmra.mxu1 %vm424_vm0, %v379_v32  ;;  %3005 = vmatmul.msk.bf16.gmra.mxu2 %vm424_vm0, %v384_v33  ;;  %v277_v32 = vld [vmem:[%s3503_s28 + $0x10] sm:$0xff]  ;;  %v278_v33 = vld [vmem:[%s3503_s28 + $0x18] sm:$0xff]  ;;  %v1346_v59 = vpack.c.bf16 %v1314_v55, %v1313_v54  ;;  %v1348_v29 = vpack.c.bf16 %v1318_v25, %v1317_v24  ;;  %v3363_v24 = vld [vmem:[%s4579_s1 + $0xa8] sm:$0xff] }
  0x2d   : > { %2004 = vmatpush.bf16.msra.mxu2 %v3369_v4  ;;  %1728 = vmatpush.bf16.msra.mxu1 %v3365_v6  ;;  %v312_v36 = vpack.c.bf16 %v278_v33, %v277_v32  ;;  %v284_v6 = vld [vmem:[%s3503_s28 + $0x48] sm:$0xff]  ;;  %v1320_v42 = vld [vmem:[%s3503_s28 + $0x7b] sm:$0xff] }
  0x2e   : > { %3010 = vmatmul.msk.bf16.gmra.mxu3 %vm424_vm0, %v389_v37  ;;  %2556 = vmatpush.bf16.msra.mxu0 %v3377_v7  ;;  %v1315_v7 = vld [vmem:[%s3503_s28 + $0x53] sm:$0xff] }
  0x2f   : > { %2995 = vmatmul.msk.bf16.gmra.mxu0 %vm424_vm0, %v374_v34  ;;  %2280 = vmatpush.bf16.msra.mxu3 %v3373_v5  ;;  %v1309_v34 = vld [vmem:[%s3503_s28 + $0x23] sm:$0xff]  ;;  %v1347_v12 = vpack.c.bf16 %v1316_v8, %v1315_v7 }
  0x30   : > { %v1344_v37 = vpack.c.bf16 %v1310_v35, %v1309_v34  ;;  %v283_v5 = vld [vmem:[%s3503_s28 + $0x40] sm:$0xff]  ;;  %v1050_v7 = vld [vmem:[%s3503_s28 + $0xaa] sm:$0xff] }
  0x31   : > { %2005 = vmatpush.bf16.msra.mxu2 %v3368_v50  ;;  %1729 = vmatpush.bf16.msra.mxu1 %v3364_v56  ;;  %v315_v10 = vpack.c.bf16 %v284_v6, %v283_v5  ;;  %v289_v56 = vld [vmem:[%s3503_s28 + $0x70] sm:$0xff]  ;;  %v1049_v6 = vld [vmem:[%s3503_s28 + $0xa2] sm:$0xff] }
  0x33   : > { %2281 = vmatpush.bf16.msra.mxu3 %v3372_v51 }
  0x35   : > { %1730 = vmatpush.bf16.msra.mxu1 %v3363_v24  ;;  %v294_v24 = vld [vmem:[%s3503_s28 + $0x98] sm:$0xff] }
  0x3c   : > { %3001 = vmatmul.msk.bf16.gmra.mxu1 %vm424_vm0, %v380_v47  ;;  %3006 = vmatmul.msk.bf16.gmra.mxu2 %vm424_vm0, %v385_v48  ;;  %v1039_v47 = vld [vmem:[%s3503_s28 + $0x52] sm:$0xff]  ;;  %v1040_v48 = vld [vmem:[%s3503_s28 + $0x5a] sm:$0xff] }
  0x3e   : > { %3011 = vmatmul.msk.bf16.gmra.mxu3 %vm424_vm0, %v390_v52  ;;  %v281_v52 = vld [vmem:[%s3503_s28 + $0x30] sm:$0xff] }
  0x3f   : > { %2996 = vmatmul.msk.bf16.gmra.mxu0 %vm424_vm0, %v375_v49  ;;  %v3658_v49 = vpack.c.bf16 %v1040_v48, %v1039_v47  ;;  %v314_v57 = vpack.c.bf16 %v282_v53, %v281_v52  ;;  %v1047_v47 = vld [vmem:[%s3503_s28 + $0x92] sm:$0xff]  ;;  %v1048_v48 = vld [vmem:[%s3503_s28 + $0x9a] sm:$0xff] }
  0x40   : > { %v3773_v51 = vpack.c.bf16 %v1048_v48, %v1047_v47  ;;  %v1052_v47 = vld [vmem:[%s3503_s28 + $0xba] sm:$0xff] }
  0x4c   : > { %3002 = vmatmul.msk.bf16.gmra.mxu1 %vm424_vm0, %v381_v62  ;;  %3007 = vmatmul.msk.bf16.gmra.mxu2 %vm424_vm0, %v386_v63  ;;  %v3684_v63 = vpack.c.bf16 %v1042_v61, %v1041_v60  ;;  %v1322_v60 = vld [vmem:[%s3503_s28 + $0x8b] sm:$0xff] }
  0x4e   : > { %3112 = vmatmul.msk.bf16.vlgmr.msrb.gmra.mxu3 %vm424_vm0, %v1067_v3 }
  0x4f   : > { %2997 = vmatmul.msk.bf16.gmra.mxu0 %vm424_vm0, %v376_v0  ;;  %v3376_v0 = vld [vmem:[%s4579_s1 + $0x110] sm:$0xff] }
  0x50   : > { %2557 = vmatpush.bf16.msra.mxu0 %v3376_v0 }
  0x5c   : > { %3003 = vmatmul.msk.bf16.gmra.mxu1 %vm424_vm0, %v382_v14  ;;  %3008 = vmatmul.msk.bf16.gmra.mxu2 %vm424_vm0, %v387_v15  ;;  %v1044_v14 = vld [vmem:[%s3503_s28 + $0x7a] sm:$0xff] }
  0x5d   : > { %v1073_v17 = vpack.c.bf16 %v1044_v14, %v1043_v13  ;;  %v3367_v13 = vld [vmem:[%s4579_s1 + $0xc8] sm:$0xff] }
  0x5e   : > { %3113 = vmatmul.msk.bf16.gmra.mxu3 %vm424_vm0, %v1068_v19  ;;  %v3371_v14 = vld [vmem:[%s4579_s1 + $0xe8] sm:$0xff]  ;;  %2006 = vmatpush.bf16.msra.mxu2 %v3367_v13 }
  0x5f   : > { %2998 = vmatmul.msk.bf16.gmra.mxu0 %vm424_vm0, %v377_v16  ;;  %2282 = vmatpush.bf16.msra.mxu3 %v3371_v14 }
  0x6c   : > { %3028 = vmatmul.msk.bf16.vlgmr.msrb.gmra.mxu1 %vm424_vm0, %v311_v26  ;;  %3070 = vmatmul.msk.bf16.vlgmr.msrb.gmra.mxu2 %vm424_vm0, %v791_v27  ;;  %v316_v27 = vpack.c.bf16 %v286_v23, %v285_v22 }
  0x6e   : > { %3114 = vmatmul.msk.bf16.gmra.mxu3 %vm424_vm0, %v1069_v31 }
  0x6f   : > { %3154 = vmatmul.msk.bf16.vlgmr.msrb.gmra.mxu0 %vm424_vm0, %v1343_v28 }
  0x7c   : > { %3029 = vmatmul.msk.bf16.gmra.mxu1 %vm424_vm0, %v312_v36  ;;  %3071 = vmatmul.msk.bf16.gmra.mxu2 %vm424_vm0, %v1067_v3 }
  0x7e   : > { %3115 = vmatmul.msk.bf16.gmra.mxu3 %vm424_vm0, %v1070_v40 }
  0x7f   : > { %3155 = vmatmul.msk.bf16.gmra.mxu0 %vm424_vm0, %v1344_v37 }
  0x8c   : > { %3030 = vmatmul.msk.bf16.gmra.mxu1 %vm424_vm0, %v313_v45  ;;  %3072 = vmatmul.msk.bf16.gmra.mxu2 %vm424_vm0, %v1068_v19 }
  0x8e   : > { %3116 = vmatmul.msk.bf16.gmra.mxu3 %vm424_vm0, %v3658_v49 }
  0x8f   : > { %3156 = vmatmul.msk.bf16.gmra.mxu0 %vm424_vm0, %v1345_v46  ;;  %v1349_v46 = vpack.c.bf16 %v1320_v42, %v1319_v41 }
  0x99   : > { %v3676_v58 = vpop.f32.mrf.mxu1 }
  0x9c   : > { %v3680_v62 = vpop.f32.mrf.mxu0  ;;  %3031 = vmatmul.msk.bf16.gmra.mxu1 %vm424_vm0, %v314_v57  ;;  %3073 = vmatmul.msk.bf16.gmra.mxu2 %vm424_vm0, %v1069_v31  ;;  %v1046_v31 = vld [vmem:[%s3503_s28 + $0x8a] sm:$0xff]  ;;  %v290_v57 = vld [vmem:[%s3503_s28 + $0x78] sm:$0xff] }
  0x9d   : > { %v3743_v34 = vpack.c.bf16 %v1046_v31, %v1045_v30  ;;  %v292_v30 = vld [vmem:[%s3503_s28 + $0x88] sm:$0xff]  ;;  %v1323_v31 = vld [vmem:[%s3503_s28 + $0x93] sm:$0xff] }
  0x9e   : > { %3117 = vmatmul.msk.bf16.gmra.mxu3 %vm424_vm0, %v3684_v63 }
  0x9f   : > { %3157 = vmatmul.msk.bf16.gmra.mxu0 %vm424_vm0, %v1346_v59  ;;  %v3690_v1 = vpop.f32.mrf.mxu2  ;;  %v1321_v59 = vld [vmem:[%s3503_s28 + $0x83] sm:$0xff] }
  0xa0   : > { %v1350_v5 = vpack.c.bf16 %v1322_v60, %v1321_v59 }
  0xa1   : > { %v3694_v2 = vpop.f32.mrf.mxu1  ;;  %v3698_v4 = vpop.f32.mrf.mxu3 }
  0xa4   : > { %v3696_v3 = vpop.f32.mrf.mxu0 }
  0xa7   : > { %v3704_v9 = vpop.f32.mrf.mxu2 }
  0xa9   : > { %v3706_v11 = vpop.f32.mrf.mxu1  ;;  %v3712_v16 = vpop.f32.mrf.mxu3 }
  0xac   : > { %v3710_v15 = vpop.f32.mrf.mxu0  ;;  %3032 = vmatmul.msk.bf16.gmra.mxu1 %vm424_vm0, %v315_v10  ;;  %3074 = vmatmul.msk.bf16.gmra.mxu2 %vm424_vm0, %v1070_v40  ;;  %v288_v40 = vld [vmem:[%s3503_s28 + $0x68] sm:$0xff] }
  0xad   : > { %v317_v44 = vpack.c.bf16 %v288_v40, %v287_v39  ;;  %v1324_v39 = vld [vmem:[%s3503_s28 + $0x9b] sm:$0xff] }
  0xae   : > { %3118 = vmatmul.msk.bf16.gmra.mxu3 %vm424_vm0, %v1073_v17 }
  0xaf   : > { %3158 = vmatmul.msk.bf16.gmra.mxu0 %vm424_vm0, %v1347_v12  ;;  %v3717_v18 = vpop.f32.mrf.mxu2  ;;  %v3798_v12 = vpack.c.bf16 %v1050_v7, %v1049_v6 }
  0xb1   : > { %v3720_v19 = vpop.f32.mrf.mxu1  ;;  %v3724_v21 = vpop.f32.mrf.mxu3 }
  0xb4   : > { %v3722_v20 = vpop.f32.mrf.mxu0 }
  0xb7   : > { %v3730_v26 = vpop.f32.mrf.mxu2 }
  0xb9   : > { %v3732_v28 = vpop.f32.mrf.mxu1  ;;  %v3738_v33 = vpop.f32.mrf.mxu3 }
  0xbc   : > { %v3736_v32 = vpop.f32.mrf.mxu0  ;;  %3033 = vmatmul.msk.bf16.gmra.mxu1 %vm424_vm0, %v316_v27  ;;  %3075 = vmatmul.msk.bf16.gmra.mxu2 %vm424_vm0, %v3658_v49  ;;  %v3375_v27 = vld [vmem:[%s4579_s1 + $0x108] sm:$0xff] }
  0xbd   : > { %2558 = vmatpush.bf16.msra.mxu0 %v3375_v27 }
  0xbe   : > { %3119 = vmatmul.msk.bf16.gmra.mxu3 %vm424_vm0, %v3743_v34 }
  0xbf   : > { %3159 = vmatmul.msk.bf16.gmra.mxu0 %vm424_vm0, %v1348_v29  ;;  %v3746_v35 = vpop.f32.mrf.mxu2  ;;  %v291_v29 = vld [vmem:[%s3503_s28 + $0x80] sm:$0xff] }
  0xc0   : > { %v319_v41 = vpack.c.bf16 %v292_v30, %v291_v29  ;;  %v1325_v29 = vld [vmem:[%s3503_s28 + $0xa3] sm:$0xff]  ;;  %v1326_v30 = vld [vmem:[%s3503_s28 + $0xab] sm:$0xff] }
  0xc1   : > { %v3750_v36 = vpop.f32.mrf.mxu1  ;;  %v3754_v38 = vpop.f32.mrf.mxu3 }
  0xc4   : > { %v3752_v37 = vpop.f32.mrf.mxu0 }
  0xc7   : > { %v3760_v43 = vpop.f32.mrf.mxu2 }
  0xc9   : > { %v3762_v45 = vpop.f32.mrf.mxu1  ;;  %v3768_v50 = vpop.f32.mrf.mxu3 }
  0xcc   : > { %v3766_v49 = vpop.f32.mrf.mxu0  ;;  %3034 = vmatmul.msk.bf16.gmra.mxu1 %vm424_vm0, %v317_v44  ;;  %3076 = vmatmul.msk.bf16.gmra.mxu2 %vm424_vm0, %v3684_v63  ;;  %v318_v63 = vpack.c.bf16 %v290_v57, %v289_v56  ;;  %v1351_v44 = vpack.c.bf16 %v1324_v39, %v1323_v31 }
  0xce   : > { %3120 = vmatmul.msk.bf16.gmra.mxu3 %vm424_vm0, %v3773_v51 }
  0xcf   : > { %3160 = vmatmul.msk.bf16.gmra.mxu0 %vm424_vm0, %v1349_v46  ;;  %v3776_v52 = vpop.f32.mrf.mxu2  ;;  %v1051_v46 = vld [vmem:[%s3503_s28 + $0xb2] sm:$0xff] }
  0xd0   : > { %v3832_v57 = vpack.c.bf16 %v1052_v47, %v1051_v46  ;;  %v1054_v46 = vld [vmem:[%s3503_s28 + $0xca] sm:$0xff] }
  0xd1   : > { %v3780_v53 = vpop.f32.mrf.mxu1  ;;  %v1181_v55 = vpop.f32.mrf.mxu3 }
  0xd4   : > { %v3782_v54 = vpop.f32.mrf.mxu0 }
  0xd7   : > { %v3788_v61 = vpop.f32.mrf.mxu2 }
  0xd9   : > { %v3790_v0 = vpop.f32.mrf.mxu1  ;;  %v1183_v10 = vpop.f32.mrf.mxu3 }
  0xdc   : > { %v3794_v8 = vpop.f32.mrf.mxu0  ;;  %3035 = vmatmul.msk.bf16.gmra.mxu1 %vm424_vm0, %v318_v63  ;;  %3077 = vmatmul.msk.bf16.gmra.mxu2 %vm424_vm0, %v1073_v17 }
  0xde   : > { %3121 = vmatmul.msk.bf16.gmra.mxu3 %vm424_vm0, %v3798_v12 }
  0xdf   : > { %3161 = vmatmul.msk.bf16.gmra.mxu0 %vm424_vm0, %v1350_v5  ;;  %v3807_v22 = vpop.f32.mrf.mxu2 }
  0xe1   : > { %v3811_v17 = vpop.f32.mrf.mxu1  ;;  %v1186_v25 = vpop.f32.mrf.mxu3 }
  0xe4   : > { %v3813_v23 = vpop.f32.mrf.mxu0 }
  0xe7   : > { %v3825_v40 = vpop.f32.mrf.mxu2 }
  0xe9   : > { %v665_v42 = vpop.f32.mrf.mxu1  ;;  %v1188_v56 = vpop.f32.mrf.mxu3 }
  0xea   : > { %v666_v59 = vadd.f32 %v665_v42, %v3680_v62  ;;  %v1352_v42 = vpack.c.bf16 %v1326_v30, %v1325_v29  ;;  %v1327_v30 = vld [vmem:[%s3503_s28 + $0xb3] sm:$0xff] }
  0xec   : > { %v1457_v48 = vpop.f32.mrf.mxu0  ;;  %3036 = vmatmul.msk.bf16.gmra.mxu1 %vm424_vm0, %v319_v41  ;;  %3078 = vmatmul.msk.bf16.gmra.mxu2 %vm424_vm0, %v3743_v34  ;;  %v293_v34 = vld [vmem:[%s3503_s28 + $0x90] sm:$0xff] }
  0xed   : > { %v320_v39 = vpack.c.bf16 %v294_v24, %v293_v34 }
  0xee   : > { %3122 = vmatmul.msk.bf16.gmra.mxu3 %vm424_vm0, %v3832_v57 }
  0xef   : > { %3162 = vmatmul.msk.bf16.gmra.mxu0 %vm424_vm0, %v1351_v44  ;;  %v905_v60 = vpop.f32.mrf.mxu2  ;;  %v1053_v44 = vld [vmem:[%s3503_s28 + $0xc2] sm:$0xff] }
  0xf0   : > { %v995_v63 = vadd.f32 %v905_v60, %v666_v59 }
  0xf1   : > { %v667_v5 = vpop.f32.mrf.mxu1  ;;  %v1191_v13 = vpop.f32.mrf.mxu3 }
  0xf2   : > { %v1271_v6 = vadd.f32 %v1181_v55, %v995_v63  ;;  %v668_v27 = vadd.f32 %v667_v5, %v3696_v3  ;;  %v3850_v3 = vpack.c.bf16 %v1054_v46, %v1053_v44  ;;  %v1055_v44 = vld [vmem:[%s3503_s28 + $0xd2] sm:$0xff]  ;;  %v1056_v46 = vld [vmem:[%s3503_s28 + $0xda] sm:$0xff] }
  0xf4   : > { %v1459_v7 = vpop.f32.mrf.mxu0  ;;  %v3838_v14 = vadd.f32 %v1457_v48, %v1271_v6 }
  0xf7   : > { %v907_v62 = vpop.f32.mrf.mxu2 }
  0xf8   : > { %v996_v31 = vadd.f32 %v907_v62, %v668_v27  ;;  %v295_v27 = vld [vmem:[%s3503_s28 + $0xa0] sm:$0xff] }
  0xf9   : > { %v670_v41 = vpop.f32.mrf.mxu1  ;;  %v1193_v55 = vpop.f32.mrf.mxu3  ;;  %v1328_v62 = vld [vmem:[%s3503_s28 + $0xbb] sm:$0xff] }
  0xfa   : > { %v1272_v47 = vadd.f32 %v1183_v10, %v996_v31  ;;  %v671_v60 = vadd.f32 %v670_v41, %v3710_v15 }
  0xfc   : > { %v1462_v59 = vpop.f32.mrf.mxu0  ;;  %3037 = vmatmul.msk.bf16.gmra.mxu1 %vm424_vm0, %v320_v39  ;;  %3079 = vmatmul.msk.bf16.gmra.mxu2 %vm424_vm0, %v3773_v51  ;;  %v3852_v48 = vadd.f32 %v1459_v7, %v1272_v47  ;;  %v296_v7 = vld [vmem:[%s3503_s28 + $0xa8] sm:$0xff] }
  0xfd   : > { %v321_v39 = vpack.c.bf16 %v296_v7, %v295_v27 }
  0xfe   : > { %3123 = vmatmul.msk.bf16.gmra.mxu3 %vm424_vm0, %v3850_v3 }
  0xff   : > { %3163 = vmatmul.msk.bf16.gmra.mxu0 %vm424_vm0, %v1352_v42  ;;  %v910_v10 = vpop.f32.mrf.mxu2  ;;  %v1353_v42 = vpack.c.bf16 %v1328_v62, %v1327_v30  ;;  %v1329_v62 = vld [vmem:[%s3503_s28 + $0xc3] sm:$0xff] }
 0x100   : > { %v997_v63 = vadd.f32 %v910_v10, %v671_v60 }
 0x101   : > { %v672_v5 = vpop.f32.mrf.mxu1  ;;  %v1196_v34 = vpop.f32.mrf.mxu3 }
 0x102   : > { %v1273_v6 = vadd.f32 %v1186_v25, %v997_v63  ;;  %v673_v29 = vadd.f32 %v672_v5, %v3722_v20  ;;  %v3870_v20 = vpack.c.bf16 %v1056_v46, %v1055_v44  ;;  %v1057_v44 = vld [vmem:[%s3503_s28 + $0xe2] sm:$0xff]  ;;  %v1058_v46 = vld [vmem:[%s3503_s28 + $0xea] sm:$0xff] }
 0x104   : > { %v1464_v51 = vpop.f32.mrf.mxu0  ;;  %v3858_v24 = vadd.f32 %v1462_v59, %v1273_v6 }
 0x107   : > { %v912_v15 = vpop.f32.mrf.mxu2 }
 0x108   : > { %v998_v31 = vadd.f32 %v912_v15, %v673_v29  ;;  %v298_v29 = vld [vmem:[%s3503_s28 + $0xb8] sm:$0xff] }
 0x109   : > { %v675_v41 = vpop.f32.mrf.mxu1  ;;  %v1198_v25 = vpop.f32.mrf.mxu3 }
 0x10a   : > { %v1274_v47 = vadd.f32 %v1188_v56, %v998_v31  ;;  %v676_v10 = vadd.f32 %v675_v41, %v3736_v32  ;;  %v1330_v32 = vld [vmem:[%s3503_s28 + $0xcb] sm:$0xff] }
 0x10c   : > { %v1467_v60 = vpop.f32.mrf.mxu0  ;;  %3038 = vmatmul.msk.bf16.gmra.mxu1 %vm424_vm0, %v321_v39  ;;  %3080 = vmatmul.msk.bf16.gmra.mxu2 %vm424_vm0, %v3798_v12  ;;  %v3872_v59 = vadd.f32 %v1464_v51, %v1274_v47  ;;  %v297_v51 = vld [vmem:[%s3503_s28 + $0xb0] sm:$0xff] }
 0x10d   : > { %v322_v39 = vpack.c.bf16 %v298_v29, %v297_v51  ;;  %v3366_v51 = vld [vmem:[%s4579_s1 + $0xc0] sm:$0xff] }
 0x10e   : > { %3124 = vmatmul.msk.bf16.gmra.mxu3 %vm424_vm0, %v3870_v20  ;;  %2007 = vmatpush.bf16.msra.mxu2 %v3366_v51 }
 0x10f   : > { %3164 = vmatmul.msk.bf16.gmra.mxu0 %vm424_vm0, %v1353_v42  ;;  %v915_v56 = vpop.f32.mrf.mxu2  ;;  %v1354_v42 = vpack.c.bf16 %v1330_v32, %v1329_v62  ;;  %v300_v62 = vld [vmem:[%s3503_s28 + $0xc8] sm:$0xff]  ;;  %v1331_v32 = vld [vmem:[%s3503_s28 + $0xd3] sm:$0xff] }
 0x110   : > { %v999_v63 = vadd.f32 %v915_v56, %v676_v10 }
 0x111   : > { %v677_v5 = vpop.f32.mrf.mxu1  ;;  %v3878_v27 = vpop.f32.mrf.mxu3 }
 0x112   : > { %v1275_v6 = vadd.f32 %v1191_v13, %v999_v63  ;;  %v678_v30 = vadd.f32 %v677_v5, %v3752_v37  ;;  %v3894_v37 = vpack.c.bf16 %v1058_v46, %v1057_v44  ;;  %v1059_v46 = vld [vmem:[%s3503_s28 + $0xf2] sm:$0xff] }
 0x114   : > { %v1469_v12 = vpop.f32.mrf.mxu0  ;;  %v3880_v7 = vadd.f32 %v1467_v60, %v1275_v6 }
 0x117   : > { %v917_v15 = vpop.f32.mrf.mxu2 }
 0x118   : > { %v1000_v31 = vadd.f32 %v917_v15, %v678_v30  ;;  %v299_v30 = vld [vmem:[%s3503_s28 + $0xc0] sm:$0xff] }
 0x119   : > { %v680_v41 = vpop.f32.mrf.mxu1  ;;  %v3889_v10 = vpop.f32.mrf.mxu3  ;;  %v1332_v15 = vld [vmem:[%s3503_s28 + $0xdb] sm:$0xff] }
 0x11a   : > { %v1276_v47 = vadd.f32 %v1193_v55, %v1000_v31  ;;  %v681_v56 = vadd.f32 %v680_v41, %v3766_v49  ;;  %v3370_v49 = vld [vmem:[%s4579_s1 + $0xe0] sm:$0xff]  ;;  %v323_v41 = vpack.c.bf16 %v300_v62, %v299_v30  ;;  %v1355_v44 = vpack.c.bf16 %v1332_v15, %v1331_v32  ;;  %v301_v32 = vld [vmem:[%s3503_s28 + $0xd0] sm:$0xff]  ;;  %v302_v15 = vld [vmem:[%s3503_s28 + $0xd8] sm:$0xff] }
 0x11b   : > { %2283 = vmatpush.bf16.msra.mxu3 %v3370_v49 }
 0x11c   : > { %v1472_v13 = vpop.f32.mrf.mxu0  ;;  %3039 = vmatmul.msk.bf16.gmra.mxu1 %vm424_vm0, %v322_v39  ;;  %3081 = vmatmul.msk.bf16.gmra.mxu2 %vm424_vm0, %v3832_v57  ;;  %v3896_v60 = vadd.f32 %v1469_v12, %v1276_v47  ;;  %v1060_v47 = vld [vmem:[%s3503_s28 + $0xfa] sm:$0xff] }
 0x11e   : > { %3125 = vmatmul.msk.bf16.gmra.mxu3 %vm424_vm0, %v3894_v37 }
 0x11f   : > { %3165 = vmatmul.msk.bf16.gmra.mxu0 %vm424_vm0, %v1354_v42  ;;  %v920_v55 = vpop.f32.mrf.mxu2 }
 0x120   : > { %v1001_v63 = vadd.f32 %v920_v55, %v681_v56 }
 0x121   : > { %v682_v5 = vpop.f32.mrf.mxu1  ;;  %v3905_v12 = vpop.f32.mrf.mxu3 }
 0x122   : > { %v1277_v6 = vadd.f32 %v1196_v34, %v1001_v63  ;;  %v683_v34 = vadd.f32 %v682_v5, %v3782_v54  ;;  %v3925_v54 = vpack.c.bf16 %v1060_v47, %v1059_v46 }
 0x124   : > { %v1474_v57 = vpop.f32.mrf.mxu0  ;;  %v3910_v29 = vadd.f32 %v1472_v13, %v1277_v6  ;;  %v3362_v13 = vld [vmem:[%s4579_s1 + $0xa0] sm:$0xff] }
 0x125   : > { %1731 = vmatpush.bf16.msra.mxu1 %v3362_v13  ;;  %v1062_v13 = vld [vmem:[%s3503_s28 + $0x10a] sm:$0xff] }
 0x127   : > { %v922_v31 = vpop.f32.mrf.mxu2 }
 0x128   : > { %v1002_v39 = vadd.f32 %v922_v31, %v683_v34 }
 0x129   : > { %v685_v42 = vpop.f32.mrf.mxu1  ;;  %v1208_v63 = vpop.f32.mrf.mxu3 }
 0x12a   : > { %v1278_v56 = vadd.f32 %v1198_v25, %v1002_v39  ;;  %v3374_v25 = vld [vmem:[%s4579_s1 + $0x100] sm:$0xff]  ;;  %v686_v6 = vadd.f32 %v685_v42, %v3794_v8  ;;  %v1334_v39 = vld [vmem:[%s3503_s28 + $0xeb] sm:$0xff] }
 0x12b   : > { %2559 = vmatpush.bf16.msra.mxu0 %v3374_v25  ;;  %v1333_v8 = vld [vmem:[%s3503_s28 + $0xe3] sm:$0xff] }
 0x12c   : > { %v1477_v55 = vpop.f32.mrf.mxu0  ;;  %3040 = vmatmul.msk.bf16.gmra.mxu1 %vm424_vm0, %v323_v41  ;;  %3082 = vmatmul.msk.bf16.gmra.mxu2 %vm424_vm0, %v3850_v3  ;;  %v3927_v5 = vadd.f32 %v1474_v57, %v1278_v56  ;;  %v1356_v47 = vpack.c.bf16 %v1334_v39, %v1333_v8  ;;  %v1061_v56 = vld [vmem:[%s3503_s28 + $0x102] sm:$0xff]  ;;  %v1335_v39 = vld [vmem:[%s3503_s28 + $0xf3] sm:$0xff] }
 0x12e   : > { %3126 = vmatmul.msk.bf16.gmra.mxu3 %vm424_vm0, %v3925_v54 }
 0x12f   : > { %3166 = vmatmul.msk.bf16.gmra.mxu0 %vm424_vm0, %v1355_v44  ;;  %v925_v51 = vpop.f32.mrf.mxu2  ;;  %v324_v44 = vpack.c.bf16 %v302_v15, %v301_v32 }
 0x130   : > { %v1003_v3 = vadd.f32 %v925_v51, %v686_v6 }
 0x131   : > { %v687_v57 = vpop.f32.mrf.mxu1  ;;  %v1211_v62 = vpop.f32.mrf.mxu3 }
 0x132   : > { %v1279_v49 = vadd.f32 %v3878_v27, %v1003_v3  ;;  %v688_v31 = vadd.f32 %v687_v57, %v3813_v23  ;;  %v3950_v23 = vpack.c.bf16 %v1062_v13, %v1061_v56  ;;  %v1063_v56 = vld [vmem:[%s3503_s28 + $0x112] sm:$0xff]  ;;  %v1064_v13 = vld [vmem:[%s3503_s28 + $0x11a] sm:$0xff] }
 0x134   : > { %v1479_v30 = vpop.f32.mrf.mxu0  ;;  %v3937_v34 = vadd.f32 %v1477_v55, %v1279_v49 }
 0x137   : > { %v927_v41 = vpop.f32.mrf.mxu2 }
 0x138   : > { %v1004_v42 = vadd.f32 %v927_v41, %v688_v31  ;;  %v304_v31 = vld [vmem:[%s3503_s28 + $0xe8] sm:$0xff] }
 0x139   : > { %v690_v46 = vpop.f32.mrf.mxu1  ;;  %v1213_v6 = vpop.f32.mrf.mxu3 }
 0x13a   : > { %v1280_v25 = vadd.f32 %v3889_v10, %v1004_v42  ;;  %v691_v51 = vadd.f32 %v690_v46, %v3676_v58  ;;  %v1336_v58 = vld [vmem:[%s3503_s28 + $0xfb] sm:$0xff] }
 0x13c   : > { %v1482_v27 = vpop.f32.mrf.mxu0  ;;  %3041 = vmatmul.msk.bf16.gmra.mxu1 %vm424_vm0, %v324_v44  ;;  %3083 = vmatmul.msk.bf16.gmra.mxu2 %vm424_vm0, %v3870_v20  ;;  %v3952_v55 = vadd.f32 %v1479_v30, %v1280_v25  ;;  %v303_v30 = vld [vmem:[%s3503_s28 + $0xe0] sm:$0xff] }
 0x13d   : > { %v325_v44 = vpack.c.bf16 %v304_v31, %v303_v30 }
 0x13e   : > { %3127 = vmatmul.msk.bf16.gmra.mxu3 %vm424_vm0, %v3950_v23 }
 0x13f   : > { %3167 = vmatmul.msk.bf16.gmra.mxu0 %vm424_vm0, %v1356_v47  ;;  %v930_v10 = vpop.f32.mrf.mxu2  ;;  %v1357_v47 = vpack.c.bf16 %v1336_v58, %v1335_v39  ;;  %v1337_v58 = vld [vmem:[%s3503_s28 + $0x103] sm:$0xff] }
 0x140   : > { %v1005_v3 = vadd.f32 %v930_v10, %v691_v51 }
 0x141   : > { %v692_v57 = vpop.f32.mrf.mxu1  ;;  %v1216_v32 = vpop.f32.mrf.mxu3 }
 0x142   : > { %v1281_v20 = vadd.f32 %v3905_v12, %v1005_v3  ;;  %v693_v8 = vadd.f32 %v692_v57, %v3694_v2  ;;  %v3971_v2 = vpack.c.bf16 %v1064_v13, %v1063_v56  ;;  %v1065_v56 = vld [vmem:[%s3503_s28 + $0x122] sm:$0xff]  ;;  %v1066_v13 = vld [vmem:[%s3503_s28 + $0x12a] sm:$0xff] }
 0x144   : > { %v1484_v49 = vpop.f32.mrf.mxu0  ;;  %v3959_v15 = vadd.f32 %v1482_v27, %v1281_v20 }
 0x147   : > { %v932_v41 = vpop.f32.mrf.mxu2 }
 0x148   : > { %v1006_v42 = vadd.f32 %v932_v41, %v693_v8  ;;  %v305_v8 = vld [vmem:[%s3503_s28 + $0xf0] sm:$0xff] }
 0x149   : > { %v695_v46 = vpop.f32.mrf.mxu1  ;;  %v1218_v12 = vpop.f32.mrf.mxu3  ;;  %v1338_v41 = vld [vmem:[%s3503_s28 + $0x10b] sm:$0xff] }
 0x14a   : > { %v1282_v25 = vadd.f32 %v1208_v63, %v1006_v42  ;;  %v696_v10 = vadd.f32 %v695_v46, %v3706_v11 }
 0x14c   : > { %v1487_v51 = vpop.f32.mrf.mxu0  ;;  %3042 = vmatmul.msk.bf16.gmra.mxu1 %vm424_vm0, %v325_v44  ;;  %3084 = vmatmul.msk.bf16.gmra.mxu2 %vm424_vm0, %v3894_v37  ;;  %v3973_v27 = vadd.f32 %v1484_v49, %v1282_v25  ;;  %v306_v49 = vld [vmem:[%s3503_s28 + $0xf8] sm:$0xff] }
 0x14d   : > { %v326_v44 = vpack.c.bf16 %v306_v49, %v305_v8 }
 0x14e   : > { %3128 = vmatmul.msk.bf16.gmra.mxu3 %vm424_vm0, %v3971_v2 }
 0x14f   : > { %3168 = vmatmul.msk.bf16.gmra.mxu0 %vm424_vm0, %v1357_v47  ;;  %v935_v63 = vpop.f32.mrf.mxu2  ;;  %v1358_v47 = vpack.c.bf16 %v1338_v41, %v1337_v58  ;;  %v308_v58 = vld [vmem:[%s3503_s28 + $0x108] sm:$0xff]  ;;  %v1339_v41 = vld [vmem:[%s3503_s28 + $0x113] sm:$0xff] }
 0x150   : > { %v1007_v3 = vadd.f32 %v935_v63, %v696_v10 }
 0x151   : > { %v697_v57 = vpop.f32.mrf.mxu1  ;;  %v1221_v30 = vpop.f32.mrf.mxu3 }
 0x152   : > { %v1283_v20 = vadd.f32 %v1211_v62, %v1007_v3  ;;  %v698_v39 = vadd.f32 %v697_v57, %v3720_v19  ;;  %v1084_v19 = vpack.c.bf16 %v1066_v13, %v1065_v56  ;;  %v2135_v56 = vld [vmem:[%s3503_s28 + $0x25] sm:$0xff]  ;;  %v2136_v13 = vld [vmem:[%s3503_s28 + $0x2d] sm:$0xff] }
 0x154   : > { %v1489_v37 = vpop.f32.mrf.mxu0  ;;  %v3979_v31 = vadd.f32 %v1487_v51, %v1283_v20 }
 0x157   : > { %v937_v11 = vpop.f32.mrf.mxu2 }
 0x158   : > { %v1008_v42 = vadd.f32 %v937_v11, %v698_v39  ;;  %v307_v39 = vld [vmem:[%s3503_s28 + $0x100] sm:$0xff] }
 0x159   : > { %v700_v46 = vpop.f32.mrf.mxu1  ;;  %v1223_v62 = vpop.f32.mrf.mxu3  ;;  %v1340_v11 = vld [vmem:[%s3503_s28 + $0x11b] sm:$0xff] }
 0x15a   : > { %v1284_v25 = vadd.f32 %v1213_v6, %v1008_v42  ;;  %v701_v63 = vadd.f32 %v700_v46, %v3732_v28 }
 0x15c   : > { %v1492_v10 = vpop.f32.mrf.mxu0  ;;  %3043 = vmatmul.msk.bf16.gmra.mxu1 %vm424_vm0, %v326_v44  ;;  %3085 = vmatmul.msk.bf16.gmra.mxu2 %vm424_vm0, %v3925_v54  ;;  %v3991_v51 = vadd.f32 %v1489_v37, %v1284_v25  ;;  %v327_v44 = vpack.c.bf16 %v308_v58, %v307_v39  ;;  %v309_v58 = vld [vmem:[%s3503_s28 + $0x110] sm:$0xff] }
 0x15e   : > { %3129 = vmatmul.msk.bf16.gmra.mxu3 %vm424_vm0, %v1084_v19 }
 0x15f   : > { %3169 = vmatmul.msk.bf16.gmra.mxu0 %vm424_vm0, %v1358_v47  ;;  %v940_v3 = vpop.f32.mrf.mxu2  ;;  %v1359_v47 = vpack.c.bf16 %v1340_v11, %v1339_v41  ;;  %v1341_v41 = vld [vmem:[%s3503_s28 + $0x123] sm:$0xff]  ;;  %v1342_v11 = vld [vmem:[%s3503_s28 + $0x12b] sm:$0xff] }
 0x160   : > { %v1009_v6 = vadd.f32 %v940_v3, %v701_v63 }
 0x161   : > { %v702_v57 = vpop.f32.mrf.mxu1  ;;  %v1226_v49 = vpop.f32.mrf.mxu3 }
 0x162   : > { %v1285_v20 = vadd.f32 %v1216_v32, %v1009_v6  ;;  %v703_v37 = vadd.f32 %v702_v57, %v3750_v36  ;;  %v2171_v36 = vpack.c.bf16 %v2136_v13, %v2135_v56  ;;  %v2138_v56 = vld [vmem:[%s3503_s28 + $0x3d] sm:$0xff] }
 0x164   : > { %v1494_v8 = vpop.f32.mrf.mxu0  ;;  %v3996_v54 = vadd.f32 %v1492_v10, %v1285_v20 }
 0x167   : > { %v942_v42 = vpop.f32.mrf.mxu2 }
 0x168   : > { %v1010_v28 = vadd.f32 %v942_v42, %v703_v37  ;;  %v310_v37 = vld [vmem:[%s3503_s28 + $0x118] sm:$0xff] }
 0x169   : > { %v705_v46 = vpop.f32.mrf.mxu1  ;;  %v1228_v32 = vpop.f32.mrf.mxu3 }
 0x16a   : > { %v1286_v25 = vadd.f32 %v1218_v12, %v1010_v28  ;;  %v706_v63 = vadd.f32 %v705_v46, %v3762_v45  ;;  %v328_v28 = vpack.c.bf16 %v310_v37, %v309_v58  ;;  %v1360_v46 = vpack.c.bf16 %v1342_v11, %v1341_v41  ;;  %v1859_v37 = vld [vmem:[%s3503_s28 + $0x24] sm:$0xff] }
 0x16b   : > { %v2411_v11 = vld [vmem:[%s3503_s28 + $0x26] sm:$0xff] }
 0x16c   : > { %v1497_v19 = vpop.f32.mrf.mxu0  ;;  %3044 = vmatmul.msk.bf16.gmra.mxu1 %vm424_vm0, %v327_v44  ;;  %3086 = vmatmul.msk.bf16.gmra.mxu2 %vm424_vm0, %v3950_v23  ;;  %v4008_v10 = vadd.f32 %v1494_v8, %v1286_v25 }
 0x16e   : > { %3280 = vmatmul.msk.bf16.vlgmr.msra.gmra.mxu3 %vm424_vm0, %v2171_v36 }
 0x16f   : > { %3170 = vmatmul.msk.bf16.gmra.mxu0 %vm424_vm0, %v1359_v47  ;;  %v945_v3 = vpop.f32.mrf.mxu2  ;;  %v2137_v47 = vld [vmem:[%s3503_s28 + $0x35] sm:$0xff] }
 0x170   : > { %v1011_v12 = vadd.f32 %v945_v3, %v706_v63 }
 0x171   : > { %v707_v6 = vpop.f32.mrf.mxu1  ;;  %v1231_v39 = vpop.f32.mrf.mxu3 }
 0x172   : > { %v1287_v57 = vadd.f32 %v1221_v30, %v1011_v12  ;;  %v708_v8 = vadd.f32 %v707_v6, %v3780_v53  ;;  %v2172_v53 = vpack.c.bf16 %v2138_v56, %v2137_v47  ;;  %v2139_v47 = vld [vmem:[%s3503_s28 + $0x45] sm:$0xff]  ;;  %v2140_v56 = vld [vmem:[%s3503_s28 + $0x4d] sm:$0xff] }
 0x174   : > { %v1499_v20 = vpop.f32.mrf.mxu0  ;;  %v4013_v23 = vadd.f32 %v1497_v19, %v1287_v57 }
 0x177   : > { %v947_v42 = vpop.f32.mrf.mxu2 }
 0x178   : > { %v1012_v45 = vadd.f32 %v947_v42, %v708_v8  ;;  %v1860_v8 = vld [vmem:[%s3503_s28 + $0x2c] sm:$0xff] }
 0x179   : > { %v710_v44 = vpop.f32.mrf.mxu1  ;;  %v1233_v25 = vpop.f32.mrf.mxu3 }
 0x17a   : > { %v1288_v13 = vadd.f32 %v1223_v62, %v1012_v45  ;;  %v711_v62 = vadd.f32 %v710_v44, %v3790_v0  ;;  %v2412_v0 = vld [vmem:[%s3503_s28 + $0x2e] sm:$0xff]  ;;  %v1895_v44 = vpack.c.bf16 %v1860_v8, %v1859_v37  ;;  %v1862_v8 = vld [vmem:[%s3503_s28 + $0x3c] sm:$0xff] }
 0x17b   : > { %v1861_v37 = vld [vmem:[%s3503_s28 + $0x34] sm:$0xff] }
 0x17c   : > { %v1502_v30 = vpop.f32.mrf.mxu0  ;;  %3045 = vmatmul.msk.bf16.gmra.mxu1 %vm424_vm0, %v328_v28  ;;  %3087 = vmatmul.msk.bf16.gmra.mxu2 %vm424_vm0, %v3971_v2  ;;  %v4025_v19 = vadd.f32 %v1499_v20, %v1288_v13  ;;  %v1583_v2 = vld [vmem:[%s3503_s28 + $0x14] sm:$0xff]  ;;  %v1584_v20 = vld [vmem:[%s3503_s28 + $0x1c] sm:$0xff] }
 0x17d   : > { %v1619_v28 = vpack.c.bf16 %v1584_v20, %v1583_v2 }
 0x17e   : > { %3281 = vmatmul.msk.bf16.gmra.mxu3 %vm424_vm0, %v2172_v53 }
 0x17f   : > { %3171 = vmatmul.msk.bf16.gmra.mxu0 %vm424_vm0, %v1360_v46  ;;  %v950_v36 = vpop.f32.mrf.mxu2  ;;  %v2447_v46 = vpack.c.bf16 %v2412_v0, %v2411_v11  ;;  %v2413_v11 = vld [vmem:[%s3503_s28 + $0x36] sm:$0xff]  ;;  %v2414_v0 = vld [vmem:[%s3503_s28 + $0x3e] sm:$0xff] }
 0x180   : > { %v1013_v63 = vadd.f32 %v950_v36, %v711_v62 }
 0x181   : > { %v712_v3 = vpop.f32.mrf.mxu1  ;;  %v1236_v57 = vpop.f32.mrf.mxu3 }
 0x182   : > { %v1289_v12 = vadd.f32 %v1226_v49, %v1013_v63  ;;  %v713_v41 = vadd.f32 %v712_v3, %v3811_v17  ;;  %v2173_v17 = vpack.c.bf16 %v2140_v56, %v2139_v47  ;;  %v2142_v47 = vld [vmem:[%s3503_s28 + $0x5d] sm:$0xff] }
 0x184   : > { %v1504_v6 = vpop.f32.mrf.mxu0  ;;  %v4031_v58 = vadd.f32 %v1502_v30, %v1289_v12 }
 0x187   : > { %v952_v42 = vpop.f32.mrf.mxu2 }
 0x188   : > { %v1014_v45 = vadd.f32 %v952_v42, %v713_v41 }
 0x189   : > { %v715_v49 = vpop.f32.mrf.mxu1  ;;  %v1238_v30 = vpop.f32.mrf.mxu3 }
 0x18a   : > { %v1290_v13 = vadd.f32 %v1228_v32, %v1014_v45  ;;  %v716_v32 = vadd.f32 %v715_v49, %v3690_v1  ;;  %v1896_v45 = vpack.c.bf16 %v1862_v8, %v1861_v37  ;;  %v2448_v49 = vpack.c.bf16 %v2414_v0, %v2413_v11  ;;  %v1863_v37 = vld [vmem:[%s3503_s28 + $0x44] sm:$0xff]  ;;  %v1864_v8 = vld [vmem:[%s3503_s28 + $0x4c] sm:$0xff] }
 0x18b   : > { %v2416_v11 = vld [vmem:[%s3503_s28 + $0x4e] sm:$0xff] }
 0x18c   : > { %v1507_v53 = vpop.f32.mrf.mxu0  ;;  %3196 = vmatmul.msk.bf16.vlgmr.msra.gmra.mxu1 %vm424_vm0, %v1619_v28  ;;  %3238 = vmatmul.msk.bf16.vlgmr.msra.gmra.mxu2 %vm424_vm0, %v1895_v44  ;;  %v4043_v62 = vadd.f32 %v1504_v6, %v1290_v13 }
 0x18e   : > { %3282 = vmatmul.msk.bf16.gmra.mxu3 %vm424_vm0, %v2173_v17 }
 0x18f   : > { %3322 = vmatmul.msk.bf16.vlgmr.msra.gmra.mxu0 %vm424_vm0, %v2447_v46  ;;  %v955_v36 = vpop.f32.mrf.mxu2  ;;  %v2141_v46 = vld [vmem:[%s3503_s28 + $0x55] sm:$0xff] }
 0x190   : > { %v1015_v63 = vadd.f32 %v955_v36, %v716_v32 }
 0x191   : > { %v717_v3 = vpop.f32.mrf.mxu1  ;;  %v1241_v6 = vpop.f32.mrf.mxu3 }
 0x192   : > { %v1291_v12 = vadd.f32 %v1231_v39, %v1015_v63  ;;  %v718_v41 = vadd.f32 %v717_v3, %v3704_v9  ;;  %v2174_v9 = vpack.c.bf16 %v2142_v47, %v2141_v46  ;;  %v2144_v46 = vld [vmem:[%s3503_s28 + $0x6d] sm:$0xff] }
 0x194   : > { %v1509_v2 = vpop.f32.mrf.mxu0  ;;  %v4052_v20 = vadd.f32 %v1507_v53, %v1291_v12 }
 0x197   : > { %v957_v42 = vpop.f32.mrf.mxu2 }
 0x198   : > { %v1016_v1 = vadd.f32 %v957_v42, %v718_v41  ;;  %v2415_v41 = vld [vmem:[%s3503_s28 + $0x46] sm:$0xff]  ;;  %v1897_v42 = vpack.c.bf16 %v1864_v8, %v1863_v37  ;;  %v1865_v37 = vld [vmem:[%s3503_s28 + $0x54] sm:$0xff]  ;;  %v1866_v8 = vld [vmem:[%s3503_s28 + $0x5c] sm:$0xff] }
 0x199   : > { %v720_v28 = vpop.f32.mrf.mxu1  ;;  %v1243_v39 = vpop.f32.mrf.mxu3 }
 0x19a   : > { %v1292_v56 = vadd.f32 %v1233_v25, %v1016_v1  ;;  %v721_v17 = vadd.f32 %v720_v28, %v3717_v18  ;;  %v2449_v28 = vpack.c.bf16 %v2416_v11, %v2415_v41  ;;  %v2418_v41 = vld [vmem:[%s3503_s28 + $0x5e] sm:$0xff] }
 0x19c   : > { %v1512_v13 = vpop.f32.mrf.mxu0  ;;  %3197 = vmatmul.msk.bf16.gmra.mxu1 %vm424_vm0, %v1895_v44  ;;  %3239 = vmatmul.msk.bf16.gmra.mxu2 %vm424_vm0, %v1896_v45  ;;  %v4063_v53 = vadd.f32 %v1509_v2, %v1292_v56 }
 0x19e   : > { %3283 = vmatmul.msk.bf16.gmra.mxu3 %vm424_vm0, %v2174_v9 }
 0x19f   : > { %3323 = vmatmul.msk.bf16.gmra.mxu0 %vm424_vm0, %v2448_v49  ;;  %v960_v32 = vpop.f32.mrf.mxu2  ;;  %v2143_v49 = vld [vmem:[%s3503_s28 + $0x65] sm:$0xff] }
 0x1a0   : > { %v1017_v36 = vadd.f32 %v960_v32, %v721_v17 }
 0x1a1   : > { %v722_v25 = vpop.f32.mrf.mxu1  ;;  %v1246_v3 = vpop.f32.mrf.mxu3 }
 0x1a2   : > { %v1293_v63 = vadd.f32 %v1236_v57, %v1017_v36  ;;  %v723_v2 = vadd.f32 %v722_v25, %v3730_v26  ;;  %v2175_v26 = vpack.c.bf16 %v2144_v46, %v2143_v49  ;;  %v2146_v49 = vld [vmem:[%s3503_s28 + $0x7d] sm:$0xff] }
 0x1a4   : > { %v1514_v44 = vpop.f32.mrf.mxu0  ;;  %v4068_v12 = vadd.f32 %v1512_v13, %v1293_v63 }
 0x1a7   : > { %v962_v0 = vpop.f32.mrf.mxu2 }
 0x1a8   : > { %v1018_v18 = vadd.f32 %v962_v0, %v723_v2  ;;  %v2417_v2 = vld [vmem:[%s3503_s28 + $0x56] sm:$0xff]  ;;  %v1898_v0 = vpack.c.bf16 %v1866_v8, %v1865_v37  ;;  %v1867_v37 = vld [vmem:[%s3503_s28 + $0x64] sm:$0xff]  ;;  %v1868_v8 = vld [vmem:[%s3503_s28 + $0x6c] sm:$0xff] }
 0x1a9   : > { %v725_v1 = vpop.f32.mrf.mxu1  ;;  %v1248_v57 = vpop.f32.mrf.mxu3 }
 0x1aa   : > { %v1294_v47 = vadd.f32 %v1238_v30, %v1018_v18  ;;  %v726_v9 = vadd.f32 %v725_v1, %v3746_v35  ;;  %v2450_v1 = vpack.c.bf16 %v2418_v41, %v2417_v2  ;;  %v2420_v2 = vld [vmem:[%s3503_s28 + $0x6e] sm:$0xff] }
 0x1ac   : > { %v1517_v56 = vpop.f32.mrf.mxu0  ;;  %3198 = vmatmul.msk.bf16.gmra.mxu1 %vm424_vm0, %v1896_v45  ;;  %3240 = vmatmul.msk.bf16.gmra.mxu2 %vm424_vm0, %v1897_v42  ;;  %v4079_v13 = vadd.f32 %v1514_v44, %v1294_v47 }
 0x1ae   : > { %3284 = vmatmul.msk.bf16.gmra.mxu3 %vm424_vm0, %v2175_v26 }
 0x1af   : > { %3324 = vmatmul.msk.bf16.gmra.mxu0 %vm424_vm0, %v2449_v28  ;;  %v965_v17 = vpop.f32.mrf.mxu2  ;;  %v2145_v28 = vld [vmem:[%s3503_s28 + $0x75] sm:$0xff] }
 0x1b0   : > { %v1019_v32 = vadd.f32 %v965_v17, %v726_v9 }
 0x1b1   : > { %v727_v30 = vpop.f32.mrf.mxu1  ;;  %v1251_v25 = vpop.f32.mrf.mxu3 }
 0x1b2   : > { %v1295_v36 = vadd.f32 %v1241_v6, %v1019_v32  ;;  %v728_v44 = vadd.f32 %v727_v30, %v3760_v43  ;;  %v2176_v43 = vpack.c.bf16 %v2146_v49, %v2145_v28  ;;  %v2148_v28 = vld [vmem:[%s3503_s28 + $0x8d] sm:$0xff] }
 0x1b4   : > { %v1519_v45 = vpop.f32.mrf.mxu0  ;;  %v4084_v63 = vadd.f32 %v1517_v56, %v1295_v36 }
 0x1b7   : > { %v967_v11 = vpop.f32.mrf.mxu2 }
 0x1b8   : > { %v1020_v35 = vadd.f32 %v967_v11, %v728_v44  ;;  %v2419_v44 = vld [vmem:[%s3503_s28 + $0x66] sm:$0xff]  ;;  %v1899_v11 = vpack.c.bf16 %v1868_v8, %v1867_v37  ;;  %v1869_v37 = vld [vmem:[%s3503_s28 + $0x74] sm:$0xff]  ;;  %v1870_v8 = vld [vmem:[%s3503_s28 + $0x7c] sm:$0xff] }
 0x1b9   : > { %v730_v18 = vpop.f32.mrf.mxu1  ;;  %v1253_v6 = vpop.f32.mrf.mxu3 }
 0x1ba   : > { %v1296_v46 = vadd.f32 %v1243_v39, %v1020_v35  ;;  %v731_v26 = vadd.f32 %v730_v18, %v3776_v52  ;;  %v2451_v18 = vpack.c.bf16 %v2420_v2, %v2419_v44  ;;  %v2422_v44 = vld [vmem:[%s3503_s28 + $0x7e] sm:$0xff] }
 0x1bc   : > { %v1522_v47 = vpop.f32.mrf.mxu0  ;;  %3199 = vmatmul.msk.bf16.gmra.mxu1 %vm424_vm0, %v1897_v42  ;;  %3241 = vmatmul.msk.bf16.gmra.mxu2 %vm424_vm0, %v1898_v0  ;;  %v4095_v56 = vadd.f32 %v1519_v45, %v1296_v46 }
 0x1be   : > { %3285 = vmatmul.msk.bf16.gmra.mxu3 %vm424_vm0, %v2176_v43 }
 0x1bf   : > { %3325 = vmatmul.msk.bf16.gmra.mxu0 %vm424_vm0, %v2450_v1  ;;  %v970_v9 = vpop.f32.mrf.mxu2  ;;  %v2147_v1 = vld [vmem:[%s3503_s28 + $0x85] sm:$0xff] }
 0x1c0   : > { %v1021_v17 = vadd.f32 %v970_v9, %v731_v26 }
 0x1c1   : > { %v732_v39 = vpop.f32.mrf.mxu1  ;;  %v1256_v30 = vpop.f32.mrf.mxu3 }
 0x1c2   : > { %v1297_v32 = vadd.f32 %v1246_v3, %v1021_v17  ;;  %v733_v45 = vadd.f32 %v732_v39, %v3788_v61  ;;  %v2177_v61 = vpack.c.bf16 %v2148_v28, %v2147_v1  ;;  %v2150_v1 = vld [vmem:[%s3503_s28 + $0x9d] sm:$0xff] }
 0x1c4   : > { %v1524_v42 = vpop.f32.mrf.mxu0  ;;  %v4100_v36 = vadd.f32 %v1522_v47, %v1297_v32 }
 0x1c7   : > { %v972_v41 = vpop.f32.mrf.mxu2 }
 0x1c8   : > { %v1022_v52 = vadd.f32 %v972_v41, %v733_v45  ;;  %v2421_v45 = vld [vmem:[%s3503_s28 + $0x76] sm:$0xff]  ;;  %v1900_v41 = vpack.c.bf16 %v1870_v8, %v1869_v37  ;;  %v1871_v37 = vld [vmem:[%s3503_s28 + $0x84] sm:$0xff] }
 0x1c9   : > { %v735_v35 = vpop.f32.mrf.mxu1  ;;  %v1258_v3 = vpop.f32.mrf.mxu3 }
 0x1ca   : > { %v1298_v49 = vadd.f32 %v1248_v57, %v1022_v52  ;;  %v736_v43 = vadd.f32 %v735_v35, %v3807_v22  ;;  %v2452_v35 = vpack.c.bf16 %v2422_v44, %v2421_v45  ;;  %v2424_v45 = vld [vmem:[%s3503_s28 + $0x8e] sm:$0xff] }
 0x1cc   : > { %v1527_v46 = vpop.f32.mrf.mxu0  ;;  %3200 = vmatmul.msk.bf16.gmra.mxu1 %vm424_vm0, %v1898_v0  ;;  %3242 = vmatmul.msk.bf16.gmra.mxu2 %vm424_vm0, %v1899_v11  ;;  %v4111_v47 = vadd.f32 %v1524_v42, %v1298_v49 }
 0x1ce   : > { %3286 = vmatmul.msk.bf16.gmra.mxu3 %vm424_vm0, %v2177_v61 }
 0x1cf   : > { %3326 = vmatmul.msk.bf16.gmra.mxu0 %vm424_vm0, %v2451_v18  ;;  %v975_v26 = vpop.f32.mrf.mxu2  ;;  %v2149_v18 = vld [vmem:[%s3503_s28 + $0x95] sm:$0xff] }
 0x1d0   : > { %v1023_v9 = vadd.f32 %v975_v26, %v736_v43 }
 0x1d1   : > { %v737_v57 = vpop.f32.mrf.mxu1  ;;  %v1261_v39 = vpop.f32.mrf.mxu3 }
 0x1d2   : > { %v1299_v17 = vadd.f32 %v1251_v25, %v1023_v9  ;;  %v738_v42 = vadd.f32 %v737_v57, %v3825_v40  ;;  %v2178_v40 = vpack.c.bf16 %v2150_v1, %v2149_v18  ;;  %v2152_v18 = vld [vmem:[%s3503_s28 + $0xad] sm:$0xff] }
 0x1d4   : > { %v1529_v0 = vpop.f32.mrf.mxu0  ;;  %v4116_v32 = vadd.f32 %v1527_v46, %v1299_v17 }
 0x1d7   : > { %v977_v2 = vpop.f32.mrf.mxu2 }
 0x1d8   : > { %v1024_v22 = vadd.f32 %v977_v2, %v738_v42  ;;  %v2423_v42 = vld [vmem:[%s3503_s28 + $0x86] sm:$0xff] }
 0x1d9   : > { %v740_v52 = vpop.f32.mrf.mxu1  ;;  %v1263_v25 = vpop.f32.mrf.mxu3 }
 0x1da   : > { %v1300_v28 = vadd.f32 %v1253_v6, %v1024_v22  ;;  %v741_v61 = vadd.f32 %v740_v52, %v3698_v4  ;;  %v2453_v52 = vpack.c.bf16 %v2424_v45, %v2423_v42  ;;  %v2426_v42 = vld [vmem:[%s3503_s28 + $0x9e] sm:$0xff] }
 0x1dc   : > { %v1532_v49 = vpop.f32.mrf.mxu0  ;;  %3201 = vmatmul.msk.bf16.gmra.mxu1 %vm424_vm0, %v1899_v11  ;;  %3243 = vmatmul.msk.bf16.gmra.mxu2 %vm424_vm0, %v1900_v41  ;;  %v4127_v46 = vadd.f32 %v1529_v0, %v1300_v28  ;;  %v1872_v0 = vld [vmem:[%s3503_s28 + $0x8c] sm:$0xff] }
 0x1dd   : > { %v1901_v2 = vpack.c.bf16 %v1872_v0, %v1871_v37  ;;  %v1874_v37 = vld [vmem:[%s3503_s28 + $0x9c] sm:$0xff] }
 0x1de   : > { %3287 = vmatmul.msk.bf16.gmra.mxu3 %vm424_vm0, %v2178_v40 }
 0x1df   : > { %3327 = vmatmul.msk.bf16.gmra.mxu0 %vm424_vm0, %v2452_v35  ;;  %v980_v43 = vpop.f32.mrf.mxu2  ;;  %v2151_v35 = vld [vmem:[%s3503_s28 + $0xa5] sm:$0xff] }
 0x1e0   : > { %v1025_v26 = vadd.f32 %v980_v43, %v741_v61 }
 0x1e1   : > { %v742_v6 = vpop.f32.mrf.mxu1  ;;  %v4132_v57 = vpop.f32.mrf.mxu3 }
 0x1e2   : > { %v1301_v9 = vadd.f32 %v1256_v30, %v1025_v26  ;;  %v743_v8 = vadd.f32 %v742_v6, %v3712_v16  ;;  %v2179_v16 = vpack.c.bf16 %v2152_v18, %v2151_v35 }
 0x1e4   : > { %v1534_v11 = vpop.f32.mrf.mxu0  ;;  %v4134_v17 = vadd.f32 %v1532_v49, %v1301_v9 }
 0x1e7   : > { %v982_v4 = vpop.f32.mrf.mxu2 }
 0x1e8   : > { %v1026_v44 = vadd.f32 %v982_v4, %v743_v8  ;;  %v2425_v8 = vld [vmem:[%s3503_s28 + $0x96] sm:$0xff] }
 0x1e9   : > { %v745_v22 = vpop.f32.mrf.mxu1  ;;  %v4143_v28 = vpop.f32.mrf.mxu3 }
 0x1ea   : > { %v1302_v1 = vadd.f32 %v1258_v3, %v1026_v44  ;;  %v746_v40 = vadd.f32 %v745_v22, %v3724_v21  ;;  %v2454_v44 = vpack.c.bf16 %v2426_v42, %v2425_v8  ;;  %v3442_v22 = vmov 0.0  }
 0x1eb   : > { %2769 = vst [vmem:[%s4166_s14 + $0x10] sm:$0xff] %v3442_v22 }
 0x1ec   : > { %v1537_v30 = vpop.f32.mrf.mxu0  ;;  %3202 = vmatmul.msk.bf16.gmra.mxu1 %vm424_vm0, %v1900_v41  ;;  %3244 = vmatmul.msk.bf16.gmra.mxu2 %vm424_vm0, %v1901_v2  ;;  %v4147_v49 = vadd.f32 %v1534_v11, %v1302_v1  ;;  %v1873_v11 = vld [vmem:[%s3503_s28 + $0x94] sm:$0xff]  ;;  %2770 = vst [vmem:[%s4166_s14 + $0x18] sm:$0xff] %v3442_v22 }
 0x1ed   : > { %v1902_v45 = vpack.c.bf16 %v1874_v37, %v1873_v11  ;;  %2767 = vst [vmem:[%s4166_s14] sm:$0xff] %v3442_v22  ;;  %v1876_v11 = vld [vmem:[%s3503_s28 + $0xac] sm:$0xff] }
 0x1ee   : > { %3288 = vmatmul.msk.bf16.gmra.mxu3 %vm424_vm0, %v2179_v16  ;;  %2768 = vst [vmem:[%s4166_s14 + $0x8] sm:$0xff] %v3442_v22  ;;  %v2427_v37 = vld [vmem:[%s3503_s28 + $0xa6] sm:$0xff] }
 0x1ef   : > { %3328 = vmatmul.msk.bf16.gmra.mxu0 %vm424_vm0, %v2453_v52  ;;  %v985_v3 = vpop.f32.mrf.mxu2  ;;  %v2154_v52 = vld [vmem:[%s3503_s28 + $0xbd] sm:$0xff]  ;;  %2771 = vst [vmem:[%s4166_s14 + $0x20] sm:$0xff] %v3442_v22 }
 0x1f0   : > { %v1027_v61 = vadd.f32 %v985_v3, %v746_v40  ;;  %2772 = vst [vmem:[%s4166_s14 + $0x28] sm:$0xff] %v3442_v22 }
 0x1f1   : > { %v747_v43 = vpop.f32.mrf.mxu1  ;;  %v4152_v41 = vpop.f32.mrf.mxu3  ;;  %2773 = vst [vmem:[%s4166_s14 + $0x30] sm:$0xff] %v3442_v22 }
 0x1f2   : > { %v1303_v26 = vadd.f32 %v1261_v39, %v1027_v61  ;;  %v748_v0 = vadd.f32 %v747_v43, %v3738_v33  ;;  %v2153_v33 = vld [vmem:[%s3503_s28 + $0xb5] sm:$0xff]  ;;  %2774 = vst [vmem:[%s4166_s14 + $0x38] sm:$0xff] %v3442_v22 }
 0x1f3   : > { %2775 = vst [vmem:[%s4166_s14 + $0x40] sm:$0xff] %v3442_v22 }
 0x1f4   : > { %v1539_v6 = vpop.f32.mrf.mxu0  ;;  %v4154_v9 = vadd.f32 %v1537_v30, %v1303_v26  ;;  %v2180_v30 = vpack.c.bf16 %v2154_v52, %v2153_v33  ;;  %2776 = vst [vmem:[%s4166_s14 + $0x48] sm:$0xff] %v3442_v22 }
 0x1f5   : > { %2777 = vst [vmem:[%s4166_s14 + $0x50] sm:$0xff] %v3442_v22 }
 0x1f6   : > { %2778 = vst [vmem:[%s4166_s14 + $0x58] sm:$0xff] %v3442_v22 }
 0x1f7   : > { %v987_v21 = vpop.f32.mrf.mxu2  ;;  %2779 = vst [vmem:[%s4166_s14 + $0x60] sm:$0xff] %v3442_v22 }
 0x1f8   : > { %v1028_v39 = vadd.f32 %v987_v21, %v748_v0  ;;  %v2428_v0 = vld [vmem:[%s3503_s28 + $0xae] sm:$0xff]  ;;  %2780 = vst [vmem:[%s4166_s14 + $0x68] sm:$0xff] %v3442_v22 }
 0x1f9   : > { %v750_v4 = vpop.f32.mrf.mxu1  ;;  %v4176_v1 = vpop.f32.mrf.mxu3  ;;  %2781 = vst [vmem:[%s4166_s14 + $0x70] sm:$0xff] %v3442_v22 }
 0x1fa   : > { %v1304_v35 = vadd.f32 %v1263_v25, %v1028_v39  ;;  %v751_v25 = vadd.f32 %v750_v4, %v3754_v38  ;;  %2782 = vst [vmem:[%s4166_s14 + $0x78] sm:$0xff] %v3442_v22  ;;  %v2455_v4 = vpack.c.bf16 %v2428_v0, %v2427_v37  ;;  %v2429_v0 = vld [vmem:[%s3503_s28 + $0xb6] sm:$0xff] }
 0x1fb   : > { %2783 = vst [vmem:[%s4166_s14 + $0x80] sm:$0xff] %v3442_v22 }
 0x1fc   : > { %v1542_v18 = vpop.f32.mrf.mxu0  ;;  %3203 = vmatmul.msk.bf16.gmra.mxu1 %vm424_vm0, %v1901_v2  ;;  %3245 = vmatmul.msk.bf16.gmra.mxu2 %vm424_vm0, %v1902_v45  ;;  %v4182_v16 = vadd.f32 %v1539_v6, %v1304_v35  ;;  %v1875_v6 = vld [vmem:[%s3503_s28 + $0xa4] sm:$0xff]  ;;  %2784 = vst [vmem:[%s4166_s14 + $0x88] sm:$0xff] %v3442_v22 }
 0x1fd   : > { %v4219_v21 = vpack.c.bf16 %v1876_v11, %v1875_v6  ;;  %2785 = vst [vmem:[%s4166_s14 + $0x90] sm:$0xff] %v3442_v22  ;;  %v1877_v6 = vld [vmem:[%s3503_s28 + $0xb4] sm:$0xff]  ;;  %v1878_v11 = vld [vmem:[%s3503_s28 + $0xbc] sm:$0xff] }
 0x1fe   : > { %3289 = vmatmul.msk.bf16.gmra.mxu3 %vm424_vm0, %v2180_v30  ;;  %2786 = vst [vmem:[%s4166_s14 + $0x98] sm:$0xff] %v3442_v22 }
 0x1ff   : > { %3329 = vmatmul.msk.bf16.gmra.mxu0 %vm424_vm0, %v2454_v44  ;;  %v990_v2 = vpop.f32.mrf.mxu2  ;;  %v2156_v44 = vld [vmem:[%s3503_s28 + $0xcd] sm:$0xff]  ;;  %2787 = vst [vmem:[%s4166_s14 + $0xa0] sm:$0xff] %v3442_v22 }
 0x200   : > { %v1029_v40 = vadd.f32 %v990_v2, %v751_v25  ;;  %2788 = vst [vmem:[%s4166_s14 + $0xa8] sm:$0xff] %v3442_v22 }
 0x201   : > { %v752_v3 = vpop.f32.mrf.mxu1  ;;  %v4202_v43 = vpop.f32.mrf.mxu3  ;;  %2789 = vst [vmem:[%s4166_s14 + $0xb0] sm:$0xff] %v3442_v22 }
 0x202   : > { %v1305_v38 = vadd.f32 %v4132_v57, %v1029_v40  ;;  %v753_v57 = vadd.f32 %v752_v3, %v3768_v50  ;;  %v2155_v50 = vld [vmem:[%s3503_s28 + $0xc5] sm:$0xff]  ;;  %2790 = vst [vmem:[%s4166_s14 + $0xb8] sm:$0xff] %v3442_v22  ;;  %v4258_v40 = vld [vmem:[%s4580_s2] ss:$0 sm:$0xff] }
 0x203   : > { %2791 = vst [vmem:[%s4166_s14 + $0xc0] sm:$0xff] %v3442_v22 }
 0x204   : > { %v1544_v61 = vpop.f32.mrf.mxu0  ;;  %v4206_v26 = vadd.f32 %v1542_v18, %v1305_v38  ;;  %v2181_v18 = vpack.c.bf16 %v2156_v44, %v2155_v50  ;;  %2792 = vst [vmem:[%s4166_s14 + $0xc8] sm:$0xff] %v3442_v22  ;;  %v1904_v50 = vpack.c.bf16 %v1878_v11, %v1877_v6 }
 0x205   : > { %2793 = vst [vmem:[%s4166_s14 + $0xd0] sm:$0xff] %v3442_v22 }
 0x206   : > { %2794 = vst [vmem:[%s4166_s14 + $0xd8] sm:$0xff] %v3442_v22 }
 0x207   : > { %v992_v8 = vpop.f32.mrf.mxu2  ;;  %2795 = vst [vmem:[%s4166_s14 + $0xe0] sm:$0xff] %v3442_v22 }
 0x208   : > { %v1030_v42 = vadd.f32 %v992_v8, %v753_v57  ;;  %2796 = vst [vmem:[%s4166_s14 + $0xe8] sm:$0xff] %v3442_v22  ;;  %v2430_v8 = vld [vmem:[%s3503_s28 + $0xbe] sm:$0xff] }
 0x209   : > { %v1733_v39 = vpop.f32.mrf.mxu1  ;;  %v4232_v35 = vpop.f32.mrf.mxu3  ;;  %2797 = vst [vmem:[%s4166_s14 + $0xf0] sm:$0xff] %v3442_v22 }
 0x20a   : > { %v1306_v33 = vadd.f32 %v4143_v28, %v1030_v42  ;;  %v1823_v28 = vadd.f32 %v1733_v39, %v3838_v14  ;;  %2798 = vst [vmem:[%s4166_s14 + $0xf8] sm:$0xff] %v3442_v22 }
 0x20b   : > { %2799 = vst [vmem:[%s4166_s14 + $0x100] sm:$0xff] %v3442_v22 }
 0x20c   : > { %v2561_v52 = vpop.f32.mrf.mxu0  ;;  %3204 = vmatmul.msk.bf16.gmra.mxu1 %vm424_vm0, %v1902_v45  ;;  %3246 = vmatmul.msk.bf16.gmra.mxu2 %vm424_vm0, %v4219_v21  ;;  %v4239_v30 = vadd.f32 %v1544_v61, %v1306_v33  ;;  %v2456_v33 = vpack.c.bf16 %v2430_v8, %v2429_v0  ;;  %2800 = vst [vmem:[%s4166_s14 + $0x108] sm:$0xff] %v3442_v22  ;;  %v1879_v0 = vld [vmem:[%s3503_s28 + $0xc4] sm:$0xff]  ;;  %v1880_v8 = vld [vmem:[%s3503_s28 + $0xcc] sm:$0xff] }
 0x20d   : > { %2801 = vst [vmem:[%s4166_s14 + $0x110] sm:$0xff] %v3442_v22 }
 0x20e   : > { %3290 = vmatmul.msk.bf16.gmra.mxu3 %vm424_vm0, %v2181_v18  ;;  %2802 = vst [vmem:[%s4166_s14 + $0x118] sm:$0xff] %v3442_v22 }
 0x20f   : > { %3330 = vmatmul.msk.bf16.gmra.mxu0 %vm424_vm0, %v2455_v4  ;;  %v2009_v45 = vpop.f32.mrf.mxu2  ;;  %2803 = vst [vmem:[%s4166_s14 + $0x120] sm:$0xff] %v3442_v22 }
 0x210   : > { %v2099_v25 = vadd.f32 %v2009_v45, %v1823_v28  ;;  %2804 = vst [vmem:[%s4166_s14 + $0x128] sm:$0xff] %v3442_v22 }
 0x211   : > { %v1735_v2 = vpop.f32.mrf.mxu1  ;;  %v4264_v38 = vpop.f32.mrf.mxu3  ;;  %2805 = vst [vmem:[%s4166_s14 + $0x130] sm:$0xff] %v3442_v22 }
 0x212   : > { %v2375_v14 = vadd.f32 %v4152_v41, %v2099_v25  ;;  %v4271_v41 = vld [vmem:[%s265_s11] ss:$0 sm:$0xff]  ;;  %v1824_v37 = vadd.f32 %v1735_v2, %v3852_v48  ;;  %v2157_v48 = vld [vmem:[%s3503_s28 + $0xd5] sm:$0xff]  ;;  %2806 = vst [vmem:[%s4166_s14 + $0x138] sm:$0xff] %v3442_v22 }
 0x213   : > { %2807 = vst [vmem:[%s4166_s14 + $0x140] sm:$0xff] %v3442_v22 }
 0x214   : > { %v2563_v3 = vpop.f32.mrf.mxu0  ;;  %v2651_v61 = vadd.f32 %v2561_v52, %v2375_v14  ;;  %v2158_v52 = vld [vmem:[%s3503_s28 + $0xdd] sm:$0xff] }
 0x215   : > { %v2182_v2 = vpack.c.bf16 %v2158_v52, %v2157_v48  ;;  %v1905_v48 = vpack.c.bf16 %v1880_v8, %v1879_v0 }
 0x216   : > { %v2691_v57 = vadd.f32 %v4258_v40, %v2651_v61 }
 0x217   : > { %v2011_v42 = vpop.f32.mrf.mxu2 }
 0x218   : > { %v2731_v39 = vadd.f32 %v4271_v41, %v2691_v57  ;;  %v2100_v4 = vadd.f32 %v2011_v42, %v1824_v37 }
 0x219   : > { %v1738_v44 = vpop.f32.mrf.mxu1  ;;  %v4298_v45 = vpop.f32.mrf.mxu3 }
 0x21a   : > { %2808 = vst [vmem:[%s4166_s14 + $0x13] sm:$0xff] %v2731_v39  ;;  %v2376_v18 = vadd.f32 %v4176_v1, %v2100_v4  ;;  %v1825_v14 = vadd.f32 %v1738_v44, %v3858_v24  ;;  %v2431_v4 = vld [vmem:[%s3503_s28 + $0xc6] sm:$0xff]  ;;  %v2432_v44 = vld [vmem:[%s3503_s28 + $0xce] sm:$0xff] }
 0x21c   : > { %v2566_v28 = vpop.f32.mrf.mxu0  ;;  %v2652_v25 = vadd.f32 %v2563_v3, %v2376_v18  ;;  %3205 = vmatmul.msk.bf16.gmra.mxu1 %vm424_vm0, %v4219_v21  ;;  %3247 = vmatmul.msk.bf16.gmra.mxu2 %vm424_vm0, %v1904_v50  ;;  %v2457_v18 = vpack.c.bf16 %v2432_v44, %v2431_v4  ;;  %v2433_v44 = vld [vmem:[%s3503_s28 + $0xd6] sm:$0xff] }
 0x21e   : > { %v2692_v1 = vadd.f32 %v4258_v40, %v2652_v25  ;;  %3291 = vmatmul.msk.bf16.gmra.mxu3 %vm424_vm0, %v2182_v2  ;;  %v2159_v25 = vld [vmem:[%s3503_s28 + $0xe5] sm:$0xff]  ;;  %v2160_v2 = vld [vmem:[%s3503_s28 + $0xed] sm:$0xff] }
 0x21f   : > { %3331 = vmatmul.msk.bf16.gmra.mxu0 %vm424_vm0, %v2456_v33  ;;  %v2014_v21 = vpop.f32.mrf.mxu2 }
 0x220   : > { %v2732_v3 = vadd.f32 %v4271_v41, %v2692_v1  ;;  %v2101_v61 = vadd.f32 %v2014_v21, %v1825_v14 }
 0x221   : > { %v1740_v6 = vpop.f32.mrf.mxu1  ;;  %v4324_v57 = vpop.f32.mrf.mxu3 }
 0x222   : > { %v2377_v24 = vadd.f32 %v4202_v43, %v2101_v61  ;;  %2809 = vst [vmem:[%s4166_s14 + $0x1b] sm:$0xff] %v2732_v3  ;;  %v1826_v39 = vadd.f32 %v1740_v6, %v3872_v59  ;;  %v2183_v59 = vpack.c.bf16 %v2160_v2, %v2159_v25  ;;  %v2161_v2 = vld [vmem:[%s3503_s28 + $0xf5] sm:$0xff] }
 0x224   : > { %v2568_v11 = vpop.f32.mrf.mxu0  ;;  %v2653_v37 = vadd.f32 %v2566_v28, %v2377_v24 }
 0x226   : > { %v2693_v42 = vadd.f32 %v4258_v40, %v2653_v37 }
 0x227   : > { %v2016_v33 = vpop.f32.mrf.mxu2 }
 0x228   : > { %v2733_v22 = vadd.f32 %v4271_v41, %v2693_v42  ;;  %v2102_v43 = vadd.f32 %v2016_v33, %v1826_v39  ;;  %v1881_v42 = vld [vmem:[%s3503_s28 + $0xd4] sm:$0xff]  ;;  %v2434_v33 = vld [vmem:[%s3503_s28 + $0xde] sm:$0xff] }
 0x229   : > { %v1743_v52 = vpop.f32.mrf.mxu1  ;;  %v4337_v14 = vpop.f32.mrf.mxu3  ;;  %v2458_v25 = vpack.c.bf16 %v2434_v33, %v2433_v44  ;;  %v2436_v44 = vld [vmem:[%s3503_s28 + $0xee] sm:$0xff] }
 0x22a   : > { %2810 = vst [vmem:[%s4166_s14 + $0x23] sm:$0xff] %v2733_v22  ;;  %v2378_v28 = vadd.f32 %v4232_v35, %v2102_v43  ;;  %v1827_v61 = vadd.f32 %v1743_v52, %v3880_v7  ;;  %v1882_v7 = vld [vmem:[%s3503_s28 + $0xdc] sm:$0xff] }
 0x22c   : > { %v2571_v1 = vpop.f32.mrf.mxu0  ;;  %v2654_v21 = vadd.f32 %v2568_v11, %v2378_v28  ;;  %3206 = vmatmul.msk.bf16.gmra.mxu1 %vm424_vm0, %v1904_v50  ;;  %3248 = vmatmul.msk.bf16.gmra.mxu2 %vm424_vm0, %v1905_v48  ;;  %v2162_v28 = vld [vmem:[%s3503_s28 + $0xfd] sm:$0xff] }
 0x22e   : > { %v2694_v3 = vadd.f32 %v4258_v40, %v2654_v21  ;;  %3292 = vmatmul.msk.bf16.gmra.mxu3 %vm424_vm0, %v2183_v59 }
 0x22f   : > { %3332 = vmatmul.msk.bf16.gmra.mxu0 %vm424_vm0, %v2457_v18  ;;  %v2019_v35 = vpop.f32.mrf.mxu2 }
 0x230   : > { %v2734_v6 = vadd.f32 %v4271_v41, %v2694_v3  ;;  %v2103_v24 = vadd.f32 %v2019_v35, %v1827_v61 }
 0x231   : > { %v1745_v50 = vpop.f32.mrf.mxu1  ;;  %v4348_v0 = vpop.f32.mrf.mxu3 }
 0x232   : > { %2811 = vst [vmem:[%s4166_s14 + $0x2b] sm:$0xff] %v2734_v6  ;;  %v2379_v11 = vadd.f32 %v4264_v38, %v2103_v24  ;;  %v1828_v4 = vadd.f32 %v1745_v50, %v3896_v60  ;;  %v1906_v38 = vpack.c.bf16 %v1882_v7, %v1881_v42  ;;  %v2184_v60 = vpack.c.bf16 %v2162_v28, %v2161_v2  ;;  %v1883_v42 = vld [vmem:[%s3503_s28 + $0xe4] sm:$0xff]  ;;  %v2164_v2 = vld [vmem:[%s3503_s28 + $0x10d] sm:$0xff] }
 0x234   : > { %v2573_v37 = vpop.f32.mrf.mxu0  ;;  %v2655_v8 = vadd.f32 %v2571_v1, %v2379_v11 }
 0x236   : > { %v2695_v39 = vadd.f32 %v4258_v40, %v2655_v8 }
 0x237   : > { %v2021_v22 = vpop.f32.mrf.mxu2 }
 0x238   : > { %v2735_v43 = vadd.f32 %v4271_v41, %v2695_v39  ;;  %v2104_v52 = vadd.f32 %v2021_v22, %v1828_v4  ;;  %v2435_v4 = vld [vmem:[%s3503_s28 + $0xe6] sm:$0xff] }
 0x239   : > { %v1748_v18 = vpop.f32.mrf.mxu1  ;;  %v4361_v59 = vpop.f32.mrf.mxu3 }
 0x23a   : > { %2812 = vst [vmem:[%s4166_s14 + $0x33] sm:$0xff] %v2735_v43  ;;  %v2380_v1 = vadd.f32 %v4298_v45, %v2104_v52  ;;  %v1829_v35 = vadd.f32 %v1748_v18, %v3910_v29  ;;  %v1884_v29 = vld [vmem:[%s3503_s28 + $0xec] sm:$0xff]  ;;  %v2459_v18 = vpack.c.bf16 %v2436_v44, %v2435_v4 }
 0x23c   : > { %v2576_v21 = vpop.f32.mrf.mxu0  ;;  %v2656_v3 = vadd.f32 %v2573_v37, %v2380_v1  ;;  %3207 = vmatmul.msk.bf16.gmra.mxu1 %vm424_vm0, %v1905_v48  ;;  %3249 = vmatmul.msk.bf16.gmra.mxu2 %vm424_vm0, %v1906_v38 }
 0x23e   : > { %v2696_v61 = vadd.f32 %v4258_v40, %v2656_v3  ;;  %3293 = vmatmul.msk.bf16.gmra.mxu3 %vm424_vm0, %v2184_v60 }
 0x23f   : > { %3333 = vmatmul.msk.bf16.gmra.mxu0 %vm424_vm0, %v2458_v25  ;;  %v2024_v45 = vpop.f32.mrf.mxu2  ;;  %v2163_v25 = vld [vmem:[%s3503_s28 + $0x105] sm:$0xff] }
 0x240   : > { %v2736_v6 = vadd.f32 %v4271_v41, %v2696_v61  ;;  %v2105_v24 = vadd.f32 %v2024_v45, %v1829_v35 }
 0x241   : > { %v1750_v48 = vpop.f32.mrf.mxu1  ;;  %v4372_v37 = vpop.f32.mrf.mxu3 }
 0x242   : > { %2813 = vst [vmem:[%s4166_s14 + $0x3b] sm:$0xff] %v2736_v6  ;;  %v2381_v50 = vadd.f32 %v4324_v57, %v2105_v24  ;;  %v1830_v39 = vadd.f32 %v1750_v48, %v3927_v5  ;;  %v1907_v57 = vpack.c.bf16 %v1884_v29, %v1883_v42  ;;  %v2185_v5 = vpack.c.bf16 %v2164_v2, %v2163_v25  ;;  %v2437_v29 = vld [vmem:[%s3503_s28 + $0xf6] sm:$0xff] }
 0x244   : > { %v2578_v11 = vpop.f32.mrf.mxu0  ;;  %v2657_v8 = vadd.f32 %v2576_v21, %v2381_v50 }
 0x246   : > { %v2697_v7 = vadd.f32 %v4258_v40, %v2657_v8 }
 0x247   : > { %v2026_v33 = vpop.f32.mrf.mxu2 }
 0x248   : > { %v2737_v22 = vadd.f32 %v4271_v41, %v2697_v7  ;;  %v2106_v43 = vadd.f32 %v2026_v33, %v1830_v39  ;;  %v2438_v7 = vld [vmem:[%s3503_s28 + $0xfe] sm:$0xff] }
 0x249   : > { %v1753_v52 = vpop.f32.mrf.mxu1  ;;  %v4385_v21 = vpop.f32.mrf.mxu3 }
 0x24a   : > { %2814 = vst [vmem:[%s4166_s14 + $0x43] sm:$0xff] %v2737_v22  ;;  %v2382_v28 = vadd.f32 %v4337_v14, %v2106_v43  ;;  %v1831_v61 = vadd.f32 %v1753_v52, %v3937_v34  ;;  %v1886_v34 = vld [vmem:[%s3503_s28 + $0xfc] sm:$0xff]  ;;  %v2460_v22 = vpack.c.bf16 %v2438_v7, %v2437_v29 }
 0x24b   : > { %v2165_v43 = vld [vmem:[%s3503_s28 + $0x115] sm:$0xff]  ;;  %v2166_v52 = vld [vmem:[%s3503_s28 + $0x11d] sm:$0xff] }
 0x24c   : > { %v2581_v1 = vpop.f32.mrf.mxu0  ;;  %v2658_v3 = vadd.f32 %v2578_v11, %v2382_v28  ;;  %3208 = vmatmul.msk.bf16.gmra.mxu1 %vm424_vm0, %v1906_v38  ;;  %3250 = vmatmul.msk.bf16.gmra.mxu2 %vm424_vm0, %v1907_v57  ;;  %v1885_v11 = vld [vmem:[%s3503_s28 + $0xf4] sm:$0xff] }
 0x24e   : > { %v2698_v60 = vadd.f32 %v4258_v40, %v2658_v3  ;;  %3294 = vmatmul.msk.bf16.gmra.mxu3 %vm424_vm0, %v2185_v5 }
 0x24f   : > { %3334 = vmatmul.msk.bf16.gmra.mxu0 %vm424_vm0, %v2459_v18  ;;  %v2029_v14 = vpop.f32.mrf.mxu2 }
 0x250   : > { %v2738_v35 = vadd.f32 %v4271_v41, %v2698_v60  ;;  %v2107_v45 = vadd.f32 %v2029_v14, %v1831_v61 }
 0x251   : > { %v1755_v38 = vpop.f32.mrf.mxu1  ;;  %v4396_v48 = vpop.f32.mrf.mxu3 }
 0x252   : > { %2815 = vst [vmem:[%s4166_s14 + $0x4b] sm:$0xff] %v2738_v35  ;;  %v2383_v6 = vadd.f32 %v4348_v0, %v2107_v45  ;;  %v1832_v42 = vadd.f32 %v1755_v38, %v3952_v55  ;;  %v1908_v0 = vpack.c.bf16 %v1886_v34, %v1885_v11  ;;  %v2186_v55 = vpack.c.bf16 %v2166_v52, %v2165_v43  ;;  %v1887_v38 = vld [vmem:[%s3503_s28 + $0x104] sm:$0xff]  ;;  %v2440_v11 = vld [vmem:[%s3503_s28 + $0x10e] sm:$0xff] }
 0x254   : > { %v2583_v24 = vpop.f32.mrf.mxu0  ;;  %v2659_v50 = vadd.f32 %v2581_v1, %v2383_v6 }
 0x256   : > { %v2699_v8 = vadd.f32 %v4258_v40, %v2659_v50  ;;  %v2439_v50 = vld [vmem:[%s3503_s28 + $0x106] sm:$0xff] }
 0x257   : > { %v2031_v39 = vpop.f32.mrf.mxu2  ;;  %v2461_v7 = vpack.c.bf16 %v2440_v11, %v2439_v50  ;;  %v2169_v50 = vld [vmem:[%s3503_s28 + $0x135] sm:$0xff]  ;;  %v2170_v11 = vld [vmem:[%s3503_s28 + $0x13d] sm:$0xff] }
 0x258   : > { %v2739_v4 = vadd.f32 %v4271_v41, %v2699_v8  ;;  %v2108_v44 = vadd.f32 %v2031_v39, %v1832_v42  ;;  %v2167_v39 = vld [vmem:[%s3503_s28 + $0x125] sm:$0xff] }
 0x259   : > { %v1758_v33 = vpop.f32.mrf.mxu1  ;;  %v4409_v2 = vpop.f32.mrf.mxu3 }
 0x25a   : > { %2816 = vst [vmem:[%s4166_s14 + $0x53] sm:$0xff] %v2739_v4  ;;  %v2384_v18 = vadd.f32 %v4361_v59, %v2108_v44  ;;  %v1833_v3 = vadd.f32 %v1758_v33, %v3959_v15  ;;  %v1888_v15 = vld [vmem:[%s3503_s28 + $0x10c] sm:$0xff] }
 0x25b   : > { %v2168_v4 = vld [vmem:[%s3503_s28 + $0x12d] sm:$0xff] }
 0x25c   : > { %v2586_v25 = vpop.f32.mrf.mxu0  ;;  %v2660_v28 = vadd.f32 %v2583_v24, %v2384_v18  ;;  %3209 = vmatmul.msk.bf16.gmra.mxu1 %vm424_vm0, %v1907_v57  ;;  %3251 = vmatmul.msk.bf16.gmra.mxu2 %vm424_vm0, %v1908_v0 }
 0x25e   : > { %v2700_v1 = vadd.f32 %v4258_v40, %v2660_v28  ;;  %3295 = vmatmul.msk.bf16.gmra.mxu3 %vm424_vm0, %v2186_v55 }
 0x25f   : > { %3335 = vmatmul.msk.bf16.gmra.mxu0 %vm424_vm0, %v2460_v22  ;;  %v2034_v59 = vpop.f32.mrf.mxu2 }
 0x260   : > { %v2740_v5 = vadd.f32 %v4271_v41, %v2700_v1  ;;  %v2109_v60 = vadd.f32 %v2034_v59, %v1833_v3 }
 0x261   : > { %v1760_v57 = vpop.f32.mrf.mxu1  ;;  %v4420_v35 = vpop.f32.mrf.mxu3 }
 0x262   : > { %2817 = vst [vmem:[%s4166_s14 + $0x5b] sm:$0xff] %v2740_v5  ;;  %v2385_v61 = vadd.f32 %v4372_v37, %v2109_v60  ;;  %v1834_v24 = vadd.f32 %v1760_v57, %v3973_v27  ;;  %v1909_v37 = vpack.c.bf16 %v1888_v15, %v1887_v38  ;;  %v2187_v27 = vpack.c.bf16 %v2168_v4, %v2167_v39  ;;  %v1889_v5 = vld [vmem:[%s3503_s28 + $0x114] sm:$0xff] }
 0x264   : > { %v2588_v14 = vpop.f32.mrf.mxu0  ;;  %v2661_v45 = vadd.f32 %v2586_v25, %v2385_v61  ;;  %v2441_v61 = vld [vmem:[%s3503_s28 + $0x116] sm:$0xff] }
 0x266   : > { %v2701_v6 = vadd.f32 %v4258_v40, %v2661_v45 }
 0x267   : > { %v2036_v34 = vpop.f32.mrf.mxu2 }
 0x268   : > { %v2741_v8 = vadd.f32 %v4271_v41, %v2701_v6  ;;  %v2110_v42 = vadd.f32 %v2036_v34, %v1834_v24 }
 0x269   : > { %v1763_v29 = vpop.f32.mrf.mxu1  ;;  %v4433_v22 = vpop.f32.mrf.mxu3 }
 0x26a   : > { %2818 = vst [vmem:[%s4166_s14 + $0x63] sm:$0xff] %v2741_v8  ;;  %v2386_v44 = vadd.f32 %v4385_v21, %v2110_v42  ;;  %v1835_v18 = vadd.f32 %v1763_v29, %v3979_v31  ;;  %v1890_v31 = vld [vmem:[%s3503_s28 + $0x11c] sm:$0xff] }
 0x26c   : > { %v2591_v33 = vpop.f32.mrf.mxu0  ;;  %v2662_v43 = vadd.f32 %v2588_v14, %v2386_v44  ;;  %3210 = vmatmul.msk.bf16.gmra.mxu1 %vm424_vm0, %v1908_v0  ;;  %3252 = vmatmul.msk.bf16.gmra.mxu2 %vm424_vm0, %v1909_v37  ;;  %v2442_v14 = vld [vmem:[%s3503_s28 + $0x11e] sm:$0xff] }
 0x26d   : > { %v2462_v24 = vpack.c.bf16 %v2442_v14, %v2441_v61 }
 0x26e   : > { %v2702_v52 = vadd.f32 %v4258_v40, %v2662_v43  ;;  %3296 = vmatmul.msk.bf16.gmra.mxu3 %vm424_vm0, %v2187_v27 }
 0x26f   : > { %3336 = vmatmul.msk.bf16.gmra.mxu0 %vm424_vm0, %v2461_v7  ;;  %v2039_v21 = vpop.f32.mrf.mxu2 }
 0x270   : > { %v2742_v25 = vadd.f32 %v4271_v41, %v2702_v52  ;;  %v2111_v28 = vadd.f32 %v2039_v21, %v1835_v18  ;;  %v1891_v18 = vld [vmem:[%s3503_s28 + $0x124] sm:$0xff]  ;;  %v1892_v21 = vld [vmem:[%s3503_s28 + $0x12c] sm:$0xff] }
 0x271   : > { %v1765_v0 = vpop.f32.mrf.mxu1  ;;  %v4444_v3 = vpop.f32.mrf.mxu3 }
 0x272   : > { %2819 = vst [vmem:[%s4166_s14 + $0x6b] sm:$0xff] %v2742_v25  ;;  %v2387_v55 = vadd.f32 %v4396_v48, %v2111_v28  ;;  %v1836_v57 = vadd.f32 %v1765_v0, %v3991_v51  ;;  %v1910_v48 = vpack.c.bf16 %v1890_v31, %v1889_v5  ;;  %v2188_v51 = vpack.c.bf16 %v2170_v11, %v2169_v50  ;;  %v2443_v28 = vld [vmem:[%s3503_s28 + $0x126] sm:$0xff]  ;;  %v2444_v0 = vld [vmem:[%s3503_s28 + $0x12e] sm:$0xff] }
 0x273   : > { %v1911_v5 = vpack.c.bf16 %v1892_v21, %v1891_v18 }
 0x274   : > { %v2593_v1 = vpop.f32.mrf.mxu0  ;;  %v2663_v59 = vadd.f32 %v2591_v33, %v2387_v55 }
 0x276   : > { %v2703_v60 = vadd.f32 %v4258_v40, %v2663_v59 }
 0x277   : > { %v2041_v45 = vpop.f32.mrf.mxu2 }
 0x278   : > { %v2743_v38 = vadd.f32 %v4271_v41, %v2703_v60  ;;  %v2112_v15 = vadd.f32 %v2041_v45, %v1836_v57 }
 0x279   : > { %v1768_v6 = vpop.f32.mrf.mxu1  ;;  %v2327_v42 = vpop.f32.mrf.mxu3 }
 0x27a   : > { %2820 = vst [vmem:[%s4166_s14 + $0x73] sm:$0xff] %v2743_v38  ;;  %v2388_v34 = vadd.f32 %v4409_v2, %v2112_v15  ;;  %v1837_v39 = vadd.f32 %v1768_v6, %v3996_v54 }
 0x27c   : > { %v2596_v8 = vpop.f32.mrf.mxu0  ;;  %v2664_v29 = vadd.f32 %v2593_v1, %v2388_v34  ;;  %3211 = vmatmul.msk.bf16.gmra.mxu1 %vm424_vm0, %v1909_v37  ;;  %3253 = vmatmul.msk.bf16.gmra.mxu2 %vm424_vm0, %v1910_v48  ;;  %v1893_v34 = vld [vmem:[%s3503_s28 + $0x134] sm:$0xff] }
 0x27e   : > { %v2704_v7 = vadd.f32 %v4258_v40, %v2664_v29  ;;  %3297 = vmatmul.msk.bf16.gmra.mxu3 %vm424_vm0, %v2188_v51 }
 0x27f   : > { %3337 = vmatmul.msk.bf16.gmra.mxu0 %vm424_vm0, %v2462_v24  ;;  %v2044_v4 = vpop.f32.mrf.mxu2 }
 0x280   : > { %v2744_v2 = vadd.f32 %v4271_v41, %v2704_v7  ;;  %v2113_v44 = vadd.f32 %v2044_v4, %v1837_v39  ;;  %v2445_v7 = vld [vmem:[%s3503_s28 + $0x136] sm:$0xff] }
 0x281   : > { %v1770_v37 = vpop.f32.mrf.mxu1  ;;  %v2330_v27 = vpop.f32.mrf.mxu3 }
 0x282   : > { %2821 = vst [vmem:[%s4166_s14 + $0x7b] sm:$0xff] %v2744_v2  ;;  %v2389_v33 = vadd.f32 %v4420_v35, %v2113_v44  ;;  %v1838_v54 = vadd.f32 %v1770_v37, %v4008_v10  ;;  %v2463_v35 = vpack.c.bf16 %v2444_v0, %v2443_v28 }
 0x284   : > { %v2598_v43 = vpop.f32.mrf.mxu0  ;;  %v2665_v52 = vadd.f32 %v2596_v8, %v2389_v33  ;;  %v1894_v8 = vld [vmem:[%s3503_s28 + $0x13c] sm:$0xff] }
 0x285   : > { %v1912_v44 = vpack.c.bf16 %v1894_v8, %v1893_v34 }
 0x286   : > { %v2705_v25 = vadd.f32 %v4258_v40, %v2665_v52 }
 0x287   : > { %v2046_v55 = vpop.f32.mrf.mxu2 }
 0x288   : > { %v2745_v1 = vadd.f32 %v4271_v41, %v2705_v25  ;;  %v2114_v59 = vadd.f32 %v2046_v55, %v1838_v54 }
 0x289   : > { %v1773_v31 = vpop.f32.mrf.mxu1  ;;  %v2332_v61 = vpop.f32.mrf.mxu3 }
 0x28a   : > { %2822 = vst [vmem:[%s4166_s14 + $0x83] sm:$0xff] %v2745_v1  ;;  %v2390_v60 = vadd.f32 %v4433_v22, %v2114_v59  ;;  %v1839_v45 = vadd.f32 %v1773_v31, %v4013_v23  ;;  %v2446_v23 = vld [vmem:[%s3503_s28 + $0x13e] sm:$0xff] }
 0x28c   : > { %v2601_v57 = vpop.f32.mrf.mxu0  ;;  %v2666_v14 = vadd.f32 %v2598_v43, %v2390_v60  ;;  %3212 = vmatmul.msk.bf16.gmra.mxu1 %vm424_vm0, %v1910_v48  ;;  %3254 = vmatmul.msk.bf16.gmra.mxu2 %vm424_vm0, %v1911_v5 }
 0x28e   : > { %v2706_v10 = vadd.f32 %v4258_v40, %v2666_v14 }
 0x28f   : > { %3338 = vmatmul.msk.bf16.gmra.mxu0 %vm424_vm0, %v2463_v35  ;;  %v2049_v38 = vpop.f32.mrf.mxu2 }
 0x290   : > { %v2746_v22 = vadd.f32 %v4271_v41, %v2706_v10  ;;  %v2115_v15 = vadd.f32 %v2049_v38, %v1839_v45 }
 0x291   : > { %v1775_v6 = vpop.f32.mrf.mxu1  ;;  %v2335_v50 = vpop.f32.mrf.mxu3 }
 0x292   : > { %2823 = vst [vmem:[%s4166_s14 + $0x8b] sm:$0xff] %v2746_v22  ;;  %v2391_v24 = vadd.f32 %v4444_v3, %v2115_v15  ;;  %v1840_v51 = vadd.f32 %v1775_v6, %v4025_v19  ;;  %v2464_v3 = vpack.c.bf16 %v2446_v23, %v2445_v7 }
 0x294   : > { %v2603_v48 = vpop.f32.mrf.mxu0  ;;  %v2667_v11 = vadd.f32 %v2601_v57, %v2391_v24 }
 0x296   : > { %v2707_v29 = vadd.f32 %v4258_v40, %v2667_v11 }
 0x297   : > { %v2051_v39 = vpop.f32.mrf.mxu2 }
 0x298   : > { %v2747_v4 = vadd.f32 %v4271_v41, %v2707_v29  ;;  %v2116_v2 = vadd.f32 %v2051_v39, %v1840_v51 }
 0x299   : > { %v1778_v37 = vpop.f32.mrf.mxu1  ;;  %v2337_v19 = vpop.f32.mrf.mxu3 }
 0x29a   : > { %2824 = vst [vmem:[%s4166_s14 + $0x93] sm:$0xff] %v2747_v4  ;;  %v2392_v33 = vadd.f32 %v2327_v42, %v2116_v2  ;;  %v1841_v21 = vadd.f32 %v1778_v37, %v4031_v58 }
 0x29c   : > { %v2606_v43 = vpop.f32.mrf.mxu0  ;;  %v2668_v52 = vadd.f32 %v2603_v48, %v2392_v33  ;;  %3213 = vmatmul.msk.bf16.gmra.mxu1 %vm424_vm0, %v1911_v5  ;;  %3255 = vmatmul.msk.bf16.gmra.mxu2 %vm424_vm0, %v1912_v44 }
 0x29e   : > { %v2708_v18 = vadd.f32 %v4258_v40, %v2668_v52 }
 0x29f   : > { %3339 = vmatmul.msk.bf16.gmra.mxu0 %vm424_vm0, %v2464_v3  ;;  %v2054_v25 = vpop.f32.mrf.mxu2 }
 0x2a0   : > { %v2748_v54 = vadd.f32 %v4271_v41, %v2708_v18  ;;  %v2117_v28 = vadd.f32 %v2054_v25, %v1841_v21 }
 0x2a1   : > { %v1780_v0 = vpop.f32.mrf.mxu1  ;;  %v2340_v35 = vpop.f32.mrf.mxu3 }
 0x2a2   : > { %2825 = vst [vmem:[%s4166_s14 + $0x9b] sm:$0xff] %v2748_v54  ;;  %v2393_v42 = vadd.f32 %v2330_v27, %v2117_v28  ;;  %v1842_v5 = vadd.f32 %v1780_v0, %v4043_v62 }
 0x2a4   : > { %v2608_v55 = vpop.f32.mrf.mxu0  ;;  %v2669_v1 = vadd.f32 %v2606_v43, %v2393_v42 }
 0x2a6   : > { %v2709_v59 = vadd.f32 %v4258_v40, %v2669_v1 }
 0x2a7   : > { %v2056_v31 = vpop.f32.mrf.mxu2 }
 0x2a8   : > { %v2749_v60 = vadd.f32 %v4271_v41, %v2709_v59  ;;  %v2118_v58 = vadd.f32 %v2056_v31, %v1842_v5 }
 0x2a9   : > { %v1783_v57 = vpop.f32.mrf.mxu1  ;;  %v2342_v24 = vpop.f32.mrf.mxu3 }
 0x2aa   : > { %2826 = vst [vmem:[%s4166_s14 + $0xa3] sm:$0xff] %v2749_v60  ;;  %v2394_v14 = vadd.f32 %v2332_v61, %v2118_v58  ;;  %v1843_v27 = vadd.f32 %v1783_v57, %v4052_v20 }
 0x2ac   : > { %v2611_v10 = vpop.f32.mrf.mxu0  ;;  %v2670_v45 = vadd.f32 %v2608_v55, %v2394_v14 }
 0x2ae   : > { %v2710_v38 = vadd.f32 %v4258_v40, %v2670_v45 }
 0x2af   : > { %v2059_v22 = vpop.f32.mrf.mxu2 }
 0x2b0   : > { %v2750_v15 = vadd.f32 %v4271_v41, %v2710_v38  ;;  %v2119_v62 = vadd.f32 %v2059_v22, %v1843_v27 }
 0x2b1   : > { %v1785_v6 = vpop.f32.mrf.mxu1  ;;  %v2345_v4 = vpop.f32.mrf.mxu3 }
 0x2b2   : > { %2827 = vst [vmem:[%s4166_s14 + $0xab] sm:$0xff] %v2750_v15  ;;  %v2395_v48 = vadd.f32 %v2335_v50, %v2119_v62  ;;  %v1844_v61 = vadd.f32 %v1785_v6, %v4063_v53 }
 0x2b4   : > { %v2613_v11 = vpop.f32.mrf.mxu0  ;;  %v2671_v34 = vadd.f32 %v2611_v10, %v2395_v48 }
 0x2b6   : > { %v2711_v8 = vadd.f32 %v4258_v40, %v2671_v34 }
 0x2b7   : > { %v2061_v29 = vpop.f32.mrf.mxu2 }
 0x2b8   : > { %v2751_v51 = vadd.f32 %v4271_v41, %v2711_v8  ;;  %v2120_v20 = vadd.f32 %v2061_v29, %v1844_v61 }
 0x2b9   : > { %v1788_v7 = vpop.f32.mrf.mxu1  ;;  %v2347_v21 = vpop.f32.mrf.mxu3 }
 0x2ba   : > { %2828 = vst [vmem:[%s4166_s14 + $0xb3] sm:$0xff] %v2751_v51  ;;  %v2396_v23 = vadd.f32 %v2337_v19, %v2120_v20  ;;  %v1845_v50 = vadd.f32 %v1788_v7, %v4068_v12 }
 0x2bc   : > { %v2616_v39 = vpop.f32.mrf.mxu0  ;;  %v2672_v2 = vadd.f32 %v2613_v11, %v2396_v23 }
 0x2be   : > { %v2712_v44 = vadd.f32 %v4258_v40, %v2672_v2 }
 0x2bf   : > { %v2064_v37 = vpop.f32.mrf.mxu2 }
 0x2c0   : > { %v2752_v3 = vadd.f32 %v4271_v41, %v2712_v44  ;;  %v2121_v53 = vadd.f32 %v2064_v37, %v1845_v50 }
 0x2c1   : > { %v1790_v33 = vpop.f32.mrf.mxu1 }
 0x2c2   : > { %2829 = vst [vmem:[%s4166_s14 + $0xbb] sm:$0xff] %v2752_v3  ;;  %v2397_v43 = vadd.f32 %v2340_v35, %v2121_v53  ;;  %v1846_v25 = vadd.f32 %v1790_v33, %v4079_v13  ;;  %v2350_v35 = vpop.f32.mrf.mxu3 }
 0x2c4   : > { %v2618_v52 = vpop.f32.mrf.mxu0  ;;  %v2673_v18 = vadd.f32 %v2616_v39, %v2397_v43 }
 0x2c6   : > { %v2713_v19 = vadd.f32 %v4258_v40, %v2673_v18 }
 0x2c7   : > { %v2066_v54 = vpop.f32.mrf.mxu2 }
 0x2c8   : > { %v2753_v28 = vadd.f32 %v4271_v41, %v2713_v19  ;;  %v2122_v12 = vadd.f32 %v2066_v54, %v1846_v25 }
 0x2c9   : > { %v1793_v0 = vpop.f32.mrf.mxu1 }
 0x2ca   : > { %2830 = vst [vmem:[%s4166_s14 + $0xc3] sm:$0xff] %v2753_v28  ;;  %v2398_v42 = vadd.f32 %v2342_v24, %v2122_v12  ;;  %v1847_v5 = vadd.f32 %v1793_v0, %v4084_v63  ;;  %v2352_v62 = vpop.f32.mrf.mxu3 }
 0x2cc   : > { %v2621_v55 = vpop.f32.mrf.mxu0  ;;  %v2674_v1 = vadd.f32 %v2618_v52, %v2398_v42 }
 0x2ce   : > { %v2714_v59 = vadd.f32 %v4258_v40, %v2674_v1 }
 0x2cf   : > { %v2069_v31 = vpop.f32.mrf.mxu2 }
 0x2d0   : > { %v2754_v60 = vadd.f32 %v4271_v41, %v2714_v59  ;;  %v2123_v13 = vadd.f32 %v2069_v31, %v1847_v5 }
 0x2d1   : > { %v1795_v58 = vpop.f32.mrf.mxu1 }
 0x2d2   : > { %2831 = vst [vmem:[%s4166_s14 + $0xcb] sm:$0xff] %v2754_v60  ;;  %v2399_v57 = vadd.f32 %v2345_v4, %v2123_v13  ;;  %v1848_v38 = vadd.f32 %v1795_v58, %v4095_v56  ;;  %v2355_v7 = vpop.f32.mrf.mxu3 }
 0x2d4   : > { %v2623_v14 = vpop.f32.mrf.mxu0  ;;  %v2675_v10 = vadd.f32 %v2621_v55, %v2399_v57 }
 0x2d6   : > { %v2715_v45 = vadd.f32 %v4258_v40, %v2675_v10 }
 0x2d7   : > { %v2071_v27 = vpop.f32.mrf.mxu2 }
 0x2d8   : > { %v2755_v22 = vadd.f32 %v4271_v41, %v2715_v45  ;;  %v2124_v63 = vadd.f32 %v2071_v27, %v1848_v38 }
 0x2d9   : > { %v1798_v15 = vpop.f32.mrf.mxu1 }
 0x2da   : > { %2832 = vst [vmem:[%s4166_s14 + $0xd3] sm:$0xff] %v2755_v22  ;;  %v2400_v6 = vadd.f32 %v2347_v21, %v2124_v63  ;;  %v1849_v34 = vadd.f32 %v1798_v15, %v4100_v36  ;;  %v2357_v33 = vpop.f32.mrf.mxu3 }
 0x2dc   : > { %v2626_v24 = vpop.f32.mrf.mxu0  ;;  %v2676_v48 = vadd.f32 %v2623_v14, %v2400_v6 }
 0x2de   : > { %v2716_v11 = vadd.f32 %v4258_v40, %v2676_v48 }
 0x2df   : > { %v2074_v8 = vpop.f32.mrf.mxu2 }
 0x2e0   : > { %v2756_v61 = vadd.f32 %v4271_v41, %v2716_v11  ;;  %v2125_v56 = vadd.f32 %v2074_v8, %v1849_v34 }
 0x2e1   : > { %v1800_v29 = vpop.f32.mrf.mxu1 }
 0x2e2   : > { %2833 = vst [vmem:[%s4166_s14 + $0xdb] sm:$0xff] %v2756_v61  ;;  %v2401_v51 = vadd.f32 %v2350_v35, %v2125_v56  ;;  %v1850_v4 = vadd.f32 %v1800_v29, %v4111_v47  ;;  %v2360_v55 = vpop.f32.mrf.mxu3 }
 0x2e4   : > { %v2628_v20 = vpop.f32.mrf.mxu0  ;;  %v2677_v23 = vadd.f32 %v2626_v24, %v2401_v51 }
 0x2e6   : > { %v2717_v39 = vadd.f32 %v4258_v40, %v2677_v23 }
 0x2e7   : > { %v2076_v2 = vpop.f32.mrf.mxu2 }
 0x2e8   : > { %v2757_v44 = vadd.f32 %v4271_v41, %v2717_v39  ;;  %v2126_v36 = vadd.f32 %v2076_v2, %v1850_v4 }
 0x2e9   : > { %v1803_v50 = vpop.f32.mrf.mxu1 }
 0x2ea   : > { %2834 = vst [vmem:[%s4166_s14 + $0xe3] sm:$0xff] %v2757_v44  ;;  %v2402_v37 = vadd.f32 %v2352_v62, %v2126_v36  ;;  %v1851_v52 = vadd.f32 %v1803_v50, %v4116_v32  ;;  %v2362_v10 = vpop.f32.mrf.mxu3 }
 0x2ec   : > { %v2631_v3 = vpop.f32.mrf.mxu0  ;;  %v2678_v53 = vadd.f32 %v2628_v20, %v2402_v37 }
 0x2ee   : > { %v2718_v43 = vadd.f32 %v4258_v40, %v2678_v53 }
 0x2ef   : > { %v2079_v18 = vpop.f32.mrf.mxu2 }
 0x2f0   : > { %v2758_v21 = vadd.f32 %v4271_v41, %v2718_v43  ;;  %v2127_v47 = vadd.f32 %v2079_v18, %v1851_v52 }
 0x2f1   : > { %v1805_v19 = vpop.f32.mrf.mxu1 }
 0x2f2   : > { %2835 = vst [vmem:[%s4166_s14 + $0xeb] sm:$0xff] %v2758_v21  ;;  %v2403_v25 = vadd.f32 %v2355_v7, %v2127_v47  ;;  %v1852_v0 = vadd.f32 %v1805_v19, %v4127_v46  ;;  %v2365_v48 = vpop.f32.mrf.mxu3 }
 0x2f4   : > { %v2633_v54 = vpop.f32.mrf.mxu0  ;;  %v2679_v28 = vadd.f32 %v2631_v3, %v2403_v25 }
 0x2f6   : > { %v2719_v12 = vadd.f32 %v4258_v40, %v2679_v28 }
 0x2f7   : > { %v2081_v42 = vpop.f32.mrf.mxu2 }
 0x2f8   : > { %v2759_v1 = vadd.f32 %v4271_v41, %v2719_v12  ;;  %v2128_v32 = vadd.f32 %v2081_v42, %v1852_v0 }
 0x2f9   : > { %v1808_v59 = vpop.f32.mrf.mxu1 }
 0x2fa   : > { %2836 = vst [vmem:[%s4166_s14 + $0xf3] sm:$0xff] %v2759_v1  ;;  %v2404_v5 = vadd.f32 %v2357_v33, %v2128_v32  ;;  %v1853_v13 = vadd.f32 %v1808_v59, %v4134_v17  ;;  %v2367_v23 = vpop.f32.mrf.mxu3 }
 0x2fc   : > { %v2636_v31 = vpop.f32.mrf.mxu0  ;;  %v2680_v35 = vadd.f32 %v2633_v54, %v2404_v5 }
 0x2fe   : > { %v2720_v60 = vadd.f32 %v4258_v40, %v2680_v35 }
 0x2ff   : > { %v2084_v58 = vpop.f32.mrf.mxu2 }
 0x300   : > { %v2760_v57 = vadd.f32 %v4271_v41, %v2720_v60  ;;  %v2129_v46 = vadd.f32 %v2084_v58, %v1853_v13 }
 0x301   : > { %v1810_v14 = vpop.f32.mrf.mxu1 }
 0x302   : > { %2837 = vst [vmem:[%s4166_s14 + $0xfb] sm:$0xff] %v2760_v57  ;;  %v2405_v45 = vadd.f32 %v2360_v55, %v2129_v46  ;;  %v1854_v63 = vadd.f32 %v1810_v14, %v4147_v49  ;;  %v2370_v43 = vpop.f32.mrf.mxu3 }
 0x304   : > { %v2638_v38 = vpop.f32.mrf.mxu0  ;;  %v2681_v27 = vadd.f32 %v2636_v31, %v2405_v45 }
 0x306   : > { %v2721_v22 = vadd.f32 %v4258_v40, %v2681_v27 }
 0x307   : > { %v2086_v15 = vpop.f32.mrf.mxu2 }
 0x308   : > { %v2761_v62 = vadd.f32 %v4271_v41, %v2721_v22  ;;  %v2130_v17 = vadd.f32 %v2086_v15, %v1854_v63 }
 0x309   : > { %v1813_v6 = vpop.f32.mrf.mxu1 }
 0x30a   : > { %2838 = vst [vmem:[%s4166_s14 + $0x103] sm:$0xff] %v2761_v62  ;;  %v2406_v24 = vadd.f32 %v2362_v10, %v2130_v17  ;;  %v1855_v61 = vadd.f32 %v1813_v6, %v4154_v9  ;;  %v2372_v42 = vpop.f32.mrf.mxu3 }
 0x30c   : > { %v2682_v11 = vadd.f32 %v2638_v38, %v2406_v24  ;;  %v2641_v34 = vpop.f32.mrf.mxu0 }
 0x30e   : > { %v2722_v8 = vadd.f32 %v4258_v40, %v2682_v11 }
 0x30f   : > { %v2089_v56 = vpop.f32.mrf.mxu2 }
 0x310   : > { %v2762_v29 = vadd.f32 %v4271_v41, %v2722_v8  ;;  %v2131_v49 = vadd.f32 %v2089_v56, %v1855_v61 }
 0x311   : > { %v1815_v51 = vpop.f32.mrf.mxu1 }
 0x312   : > { %2839 = vst [vmem:[%s4166_s14 + $0x10b] sm:$0xff] %v2762_v29  ;;  %v2407_v20 = vadd.f32 %v2365_v48, %v2131_v49  ;;  %v1856_v4 = vadd.f32 %v1815_v51, %v4182_v16 }
 0x314   : > { %v2683_v7 = vadd.f32 %v2641_v34, %v2407_v20  ;;  %v2643_v2 = vpop.f32.mrf.mxu0 }
 0x316   : > { %v2723_v39 = vadd.f32 %v4258_v40, %v2683_v7 }
 0x317   : > { %v2091_v44 = vpop.f32.mrf.mxu2 }
 0x318   : > { %v2763_v36 = vadd.f32 %v4271_v41, %v2723_v39  ;;  %v2132_v9 = vadd.f32 %v2091_v44, %v1856_v4 }
 0x319   : > { %v1818_v50 = vpop.f32.mrf.mxu1 }
 0x31a   : > { %2840 = vst [vmem:[%s4166_s14 + $0x113] sm:$0xff] %v2763_v36  ;;  %v2408_v37 = vadd.f32 %v2367_v23, %v2132_v9  ;;  %v1857_v33 = vadd.f32 %v1818_v50, %v4206_v26 }
 0x31c   : > { %v2684_v3 = vadd.f32 %v2643_v2, %v2408_v37  ;;  %v2646_v21 = vpop.f32.mrf.mxu0 }
 0x31e   : > { %v2724_v53 = vadd.f32 %v4258_v40, %v2684_v3 }
 0x31f   : > { %v2094_v52 = vpop.f32.mrf.mxu2 }
 0x320   : > { %v2764_v18 = vadd.f32 %v4271_v41, %v2724_v53  ;;  %v2133_v16 = vadd.f32 %v2094_v52, %v1857_v33 }
 0x321   : > { %v1820_v19 = vpop.f32.mrf.mxu1 }
 0x322   : > { %2841 = vst [vmem:[%s4166_s14 + $0x11b] sm:$0xff] %v2764_v18  ;;  %v2409_v47 = vadd.f32 %v2370_v43, %v2133_v16  ;;  %v1858_v28 = vadd.f32 %v1820_v19, %v4239_v30 }
 0x324   : > { %v2685_v25 = vadd.f32 %v2646_v21, %v2409_v47  ;;  %v2648_v1 = vpop.f32.mrf.mxu0 }
 0x326   : > { %v2725_v54 = vadd.f32 %v4258_v40, %v2685_v25 }
 0x327   : > { %v2096_v12 = vpop.f32.mrf.mxu2 }
 0x328   : > { %v2765_v0 = vadd.f32 %v4271_v41, %v2725_v54  ;;  %v2134_v26 = vadd.f32 %v2096_v12, %v1858_v28 }
 0x32a   : > { %2842 = vst [vmem:[%s4166_s14 + $0x123] sm:$0xff] %v2765_v0  ;;  %v2410_v55 = vadd.f32 %v2372_v42, %v2134_v26 }
 0x32c   : > { %v2686_v32 = vadd.f32 %v2648_v1, %v2410_v55 }
 0x32e   : > { %v2726_v59 = vadd.f32 %v4258_v40, %v2686_v32 }
 0x330   : > { %v2766_v5 = vadd.f32 %v4271_v41, %v2726_v59 }
 0x332   : > { %2843 = vst [vmem:[%s4166_s14 + $0x12b] sm:$0xff] %v2766_v5 }
 0x333 PF: > { %s14_s17 = sadd.s32 1, %s3440_s17   ;;  %s4583_s15 = smov %s3436_s16 }
 0x334   : > { %p11_p5 = scmp.ge.s32.totalorder %s14_s17, 4   ;;  %s4584_s16 = smov %s4586_s18 }
 0x336   :  { %13 = sbr.rel (!%p11_p5) target bundleno = 2 (0x2), region = 83 }

// kernel: resnet_block_forward.9
= control target key start
LH: loop header
LB: loop body
LE: loop exit
PB: predicated region body
PF: predicated region fallthrough
CT: control target
= control target key end

     0   :  { %s3749_s21 = smov 0   ;;  %s3751_s22 = smov 0   ;;  %s4709_s0 = inlined_call_operand.vmem [shape: f32[2,328,128], index: 0, kind: input, shape index: {}]   ;;  %s4710_s1 = inlined_call_operand.vmem [shape: bf16[9,128,128], index: 1, kind: input, shape index: {}]   ;;  %s4711_s2 = inlined_call_operand.vmem [shape: f32[1,128], index: 2, kind: input, shape index: {}]   ;;  %s4712_s3 = inlined_call_operand.vmem [shape: f32[2,328,64], index: 3, kind: input, shape index: {}]   ;;  %s4713_s4 = inlined_call_operand.vmem [shape: bf16[64,128], index: 4, kind: input, shape index: {}]   ;;  %s4714_s5 = inlined_call_operand.vmem [shape: f32[1,128], index: 5, kind: input, shape index: {}]   ;;  %s4715_s6 = inlined_call_operand.vmem [shape: f32[2,288,128], index: 6, kind: output, shape index: {}]  }
   0x1   :  { %s3753_s23 = smov 0  }
   0x2 LB: > { %s28_s24 = sadd.s32 1, %s3708_s22  ;;  %p3112_p0 = scmp.ge.s32.totalorder %s3712_s23, 1  ;;  %s3712_s23 = sphi %s3753_s23, %s16_s23   ;;  %s3708_s22 = sphi %s3751_s22, %s4717_s22   ;;  %s3704_s21 = sphi %s3749_s21, %s4716_s21  }
   0x3   : > { %p30_p1 = scmp.ge.s32.totalorder %s28_s24, 2  ;;  %p270_p2 = scmp.lt.s32.totalorder %s3712_s23, 3 }
   0x5   : > { %s4719_s24 = smov (%p30_p1, %s28_s24), 0  ;;  %p271_p3 = pnand %p3112_p0, %p270_p2 }
   0x6   : > { %p322_p4 = scmp.lt.s32.totalorder (!%p271_p3), %s3704_s21, 1 }
   0x7   : > { %274 = sbr.rel (%p271_p3) target bundleno = 901 (0x385), region = 44 }
   0xc   : > { %v3583_v0 = vld [vmem:[%s4710_s1 + $0x78] sm:$0xff]  ;;  %v3582_v2 = vld [vmem:[%s4710_s1 + $0x70] sm:$0xff]  ;;  %v3581_v4 = vld [vmem:[%s4710_s1 + $0x68] sm:$0xff]  ;;  %s4721_s21 = smov (!%p322_p4, %s3704_s21), 1  ;;  %vm2694_vm0 = vcmask 523264  }
   0xd   : > { %v3575_v1 = vld [vmem:[%s4710_s1 + $0x38] sm:$0xff]  ;;  %3644 = vmatpush.bf16.msra.mxu2 %v3583_v0  ;;  %v3574_v3 = vld [vmem:[%s4710_s1 + $0x30] sm:$0xff]  ;;  %544 = vmatpush.bf16.msra.mxu0 %v3583_v0  ;;  %v3573_v5 = vld [vmem:[%s4710_s1 + $0x28] sm:$0xff]  ;;  %s3660_s29 = smul.u32 328, %s4721_s21 }
   0xe   : > { %3652 = vmatpush.bf16.msra.mxu3 %v3575_v1  ;;  %691 = vmatpush.bf16.msra.mxu1 %v3575_v1  ;;  %v3580_v6 = vld [vmem:[%s4710_s1 + $0x60] sm:$0xff]  ;;  %v3579_v8 = vld [vmem:[%s4710_s1 + $0x58] sm:$0xff]  ;;  %v3578_v10 = vld [vmem:[%s4710_s1 + $0x50] sm:$0xff]  ;;  %s3661_s17 = smul.u32 288, %s4721_s21 }
   0xf   : > { %v3572_v7 = vld [vmem:[%s4710_s1 + $0x20] sm:$0xff]  ;;  %v3571_v9 = vld [vmem:[%s4710_s1 + $0x18] sm:$0xff]  ;;  %v3570_v11 = vld [vmem:[%s4710_s1 + $0x10] sm:$0xff]  ;;  %s3821_s12 = scalar_lea.vmem %s4709_s0, %s3660_s29  ;;  %s4323_s13 = scalar_lea.vmem %s4712_s3, %s3660_s29 }
  0x10   : > { %v3577_v12 = vld [vmem:[%s4710_s1 + $0x48] sm:$0xff]  ;;  %v3576_v14 = vld [vmem:[%s4710_s1 + $0x40] sm:$0xff]  ;;  %v443_v16 = vld [vmem:[%s3821_s12 + $0x91] sm:$0xff]  ;;  %s4484_s20 = scalar_lea.vmem %s4715_s6, %s3661_s17 }
  0x11   : > { %3645 = vmatpush.bf16.msra.mxu2 %v3582_v2  ;;  %545 = vmatpush.bf16.msra.mxu0 %v3582_v2  ;;  %v3569_v13 = vld [vmem:[%s4710_s1 + $0x8] sm:$0xff]  ;;  %v3568_v15 = vld [vmem:[%s4710_s1] sm:$0xff]  ;;  %v373_v18 = vld [vmem:[%s3821_s12 + $0x90] sm:$0xff] }
  0x12   : > { %3653 = vmatpush.bf16.msra.mxu3 %v3574_v3  ;;  %692 = vmatpush.bf16.msra.mxu1 %v3574_v3  ;;  %v444_v17 = vld [vmem:[%s3821_s12 + $0x99] sm:$0xff]  ;;  %v425_v20 = vld [vmem:[%s3821_s12 + $0x1] sm:$0xff]  ;;  %v426_v21 = vld [vmem:[%s3821_s12 + $0x9] sm:$0xff] }
  0x13   : > { %v374_v19 = vld [vmem:[%s3821_s12 + $0x98] sm:$0xff]  ;;  %v355_v22 = vld [vmem:[%s3821_s12] sm:$0xff]  ;;  %v356_v23 = vld [vmem:[%s3821_s12 + $0x8] sm:$0xff]  ;;  %v470_v26 = vpack.c.bf16 %v444_v17, %v443_v16  ;;  %v461_v28 = vpack.c.bf16 %v426_v21, %v425_v20 }
  0x14   : > { %v3591_v24 = vld [vmem:[%s4710_s1 + $0xb8] sm:$0xff]  ;;  %v400_v27 = vpack.c.bf16 %v374_v19, %v373_v18  ;;  %v391_v29 = vpack.c.bf16 %v356_v23, %v355_v22  ;;  %v3590_v32 = vld [vmem:[%s4710_s1 + $0xb0] sm:$0xff]  ;;  %v3589_v36 = vld [vmem:[%s4710_s1 + $0xa8] sm:$0xff] }
  0x15   : > { %3646 = vmatpush.bf16.msra.mxu2 %v3581_v4  ;;  %546 = vmatpush.bf16.msra.mxu0 %v3581_v4  ;;  %v3599_v25 = vld [vmem:[%s4710_s1 + $0xf8] sm:$0xff]  ;;  %v3598_v33 = vld [vmem:[%s4710_s1 + $0xf0] sm:$0xff]  ;;  %v3597_v37 = vld [vmem:[%s4710_s1 + $0xe8] sm:$0xff] }
  0x16   : > { %3654 = vmatpush.bf16.msra.mxu3 %v3573_v5  ;;  %693 = vmatpush.bf16.msra.mxu1 %v3573_v5  ;;  %v3607_v30 = vld [vmem:[%s4710_s1 + $0x138] sm:$0xff]  ;;  %v3606_v34 = vld [vmem:[%s4710_s1 + $0x130] sm:$0xff]  ;;  %v3605_v38 = vld [vmem:[%s4710_s1 + $0x128] sm:$0xff] }
  0x17   : > { %v3615_v31 = vld [vmem:[%s4710_s1 + $0x178] sm:$0xff]  ;;  %v3614_v35 = vld [vmem:[%s4710_s1 + $0x170] sm:$0xff]  ;;  %v445_v39 = vld [vmem:[%s3821_s12 + $0xa1] sm:$0xff] }
  0x18   : > { %v446_v40 = vld [vmem:[%s3821_s12 + $0xa9] sm:$0xff]  ;;  %v375_v41 = vld [vmem:[%s3821_s12 + $0xa0] sm:$0xff]  ;;  %v427_v43 = vld [vmem:[%s3821_s12 + $0x11] sm:$0xff] }
  0x19   : > { %3647 = vmatpush.bf16.msra.mxu2 %v3580_v6  ;;  %547 = vmatpush.bf16.msra.mxu0 %v3580_v6  ;;  %v376_v42 = vld [vmem:[%s3821_s12 + $0xa8] sm:$0xff]  ;;  %v428_v44 = vld [vmem:[%s3821_s12 + $0x19] sm:$0xff]  ;;  %v357_v45 = vld [vmem:[%s3821_s12 + $0x10] sm:$0xff]  ;;  %v471_v47 = vpack.c.bf16 %v446_v40, %v445_v39 }
  0x1a   : > { %3655 = vmatpush.bf16.msra.mxu3 %v3572_v7  ;;  %694 = vmatpush.bf16.msra.mxu1 %v3572_v7  ;;  %v358_v46 = vld [vmem:[%s3821_s12 + $0x18] sm:$0xff]  ;;  %v401_v48 = vpack.c.bf16 %v376_v42, %v375_v41  ;;  %v462_v49 = vpack.c.bf16 %v428_v44, %v427_v43  ;;  %v3613_v51 = vld [vmem:[%s4710_s1 + $0x168] sm:$0xff]  ;;  %v3588_v52 = vld [vmem:[%s4710_s1 + $0xa0] sm:$0xff] }
  0x1b   : > { %v392_v50 = vpack.c.bf16 %v358_v46, %v357_v45  ;;  %v3596_v53 = vld [vmem:[%s4710_s1 + $0xe0] sm:$0xff]  ;;  %v447_v54 = vld [vmem:[%s3821_s12 + $0xb1] sm:$0xff]  ;;  %v430_v59 = vld [vmem:[%s3821_s12 + $0x29] sm:$0xff] }
  0x1c   : > { %v448_v55 = vld [vmem:[%s3821_s12 + $0xb9] sm:$0xff]  ;;  %v377_v56 = vld [vmem:[%s3821_s12 + $0xb0] sm:$0xff]  ;;  %v429_v58 = vld [vmem:[%s3821_s12 + $0x21] sm:$0xff] }
  0x1d   : > { %3648 = vmatpush.bf16.msra.mxu2 %v3579_v8  ;;  %548 = vmatpush.bf16.msra.mxu0 %v3579_v8  ;;  %v378_v57 = vld [vmem:[%s3821_s12 + $0xb8] sm:$0xff]  ;;  %v359_v60 = vld [vmem:[%s3821_s12 + $0x20] sm:$0xff]  ;;  %v360_v61 = vld [vmem:[%s3821_s12 + $0x28] sm:$0xff]  ;;  %v472_v62 = vpack.c.bf16 %v448_v55, %v447_v54  ;;  %v463_v0 = vpack.c.bf16 %v430_v59, %v429_v58 }
  0x1e   : > { %3656 = vmatpush.bf16.msra.mxu3 %v3571_v9  ;;  %695 = vmatpush.bf16.msra.mxu1 %v3571_v9  ;;  %v402_v63 = vpack.c.bf16 %v378_v57, %v377_v56  ;;  %v393_v1 = vpack.c.bf16 %v360_v61, %v359_v60  ;;  %v3604_v2 = vld [vmem:[%s4710_s1 + $0x120] sm:$0xff]  ;;  %v3587_v4 = vld [vmem:[%s4710_s1 + $0x98] sm:$0xff]  ;;  %v450_v7 = vld [vmem:[%s3821_s12 + $0xc9] sm:$0xff] }
  0x1f   : > { %v3612_v3 = vld [vmem:[%s4710_s1 + $0x160] sm:$0xff]  ;;  %v3595_v5 = vld [vmem:[%s4710_s1 + $0xd8] sm:$0xff]  ;;  %v380_v9 = vld [vmem:[%s3821_s12 + $0xc8] sm:$0xff] }
  0x20   : > { %v449_v6 = vld [vmem:[%s3821_s12 + $0xc1] sm:$0xff]  ;;  %v3603_v18 = vld [vmem:[%s4710_s1 + $0x118] sm:$0xff]  ;;  %v3586_v20 = vld [vmem:[%s4710_s1 + $0x90] sm:$0xff] }
  0x21   : > { %3649 = vmatpush.bf16.msra.mxu2 %v3578_v10  ;;  %549 = vmatpush.bf16.msra.mxu0 %v3578_v10  ;;  %v379_v8 = vld [vmem:[%s3821_s12 + $0xc0] sm:$0xff]  ;;  %v431_v10 = vld [vmem:[%s3821_s12 + $0x31] sm:$0xff]  ;;  %v454_v39 = vld [vmem:[%s3821_s12 + $0xe9] sm:$0xff] }
  0x22   : > { %3657 = vmatpush.bf16.msra.mxu3 %v3570_v11  ;;  %696 = vmatpush.bf16.msra.mxu1 %v3570_v11  ;;  %v432_v11 = vld [vmem:[%s3821_s12 + $0x39] sm:$0xff]  ;;  %v3594_v21 = vld [vmem:[%s4710_s1 + $0xd0] sm:$0xff]  ;;  %v384_v41 = vld [vmem:[%s3821_s12 + $0xe8] sm:$0xff] }
  0x23   : > { %v464_v16 = vpack.c.bf16 %v432_v11, %v431_v10  ;;  %v3611_v19 = vld [vmem:[%s4710_s1 + $0x158] sm:$0xff]  ;;  %v383_v40 = vld [vmem:[%s3821_s12 + $0xe0] sm:$0xff]  ;;  %v365_v44 = vld [vmem:[%s3821_s12 + $0x50] sm:$0xff] }
  0x24   : > { %v451_v22 = vld [vmem:[%s3821_s12 + $0xd1] sm:$0xff]  ;;  %v452_v23 = vld [vmem:[%s3821_s12 + $0xd9] sm:$0xff]  ;;  %v437_v57 = vld [vmem:[%s3821_s12 + $0x61] sm:$0xff] }
  0x25   : > { %3650 = vmatpush.bf16.msra.mxu2 %v3577_v12  ;;  %550 = vmatpush.bf16.msra.mxu0 %v3577_v12  ;;  %v361_v12 = vld [vmem:[%s3821_s12 + $0x30] sm:$0xff]  ;;  %v436_v43 = vld [vmem:[%s3821_s12 + $0x59] sm:$0xff]  ;;  %v368_v60 = vld [vmem:[%s3821_s12 + $0x68] sm:$0xff] }
  0x26   : > { %3658 = vmatpush.bf16.msra.mxu3 %v3569_v13  ;;  %697 = vmatpush.bf16.msra.mxu1 %v3569_v13  ;;  %v362_v13 = vld [vmem:[%s3821_s12 + $0x38] sm:$0xff]  ;;  %v385_v55 = vld [vmem:[%s3821_s12 + $0xf0] sm:$0xff]  ;;  %v367_v59 = vld [vmem:[%s3821_s12 + $0x60] sm:$0xff] }
  0x27   : > { %v394_v17 = vpack.c.bf16 %v362_v13, %v361_v12  ;;  %v435_v42 = vld [vmem:[%s3821_s12 + $0x51] sm:$0xff]  ;;  %v456_v54 = vld [vmem:[%s3821_s12 + $0xf9] sm:$0xff]  ;;  %v438_v58 = vld [vmem:[%s3821_s12 + $0x69] sm:$0xff] }
  0x28   : > { %v366_v45 = vld [vmem:[%s3821_s12 + $0x58] sm:$0xff]  ;;  %v3608_v13 = vld [vmem:[%s4710_s1 + $0x140] sm:$0xff] }
  0x29   : > { %3651 = vmatpush.bf16.msra.mxu2 %v3576_v14  ;;  %551 = vmatpush.bf16.msra.mxu0 %v3576_v14  ;;  %v473_v14 = vpack.c.bf16 %v450_v7, %v449_v6  ;;  %v386_v56 = vld [vmem:[%s3821_s12 + $0xf8] sm:$0xff]  ;;  %v388_v6 = vld [vmem:[%s3821_s12 + $0x108] sm:$0xff] }
  0x2a   : > { %3659 = vmatpush.bf16.msra.mxu3 %v3568_v15  ;;  %698 = vmatpush.bf16.msra.mxu1 %v3568_v15  ;;  %v403_v15 = vpack.c.bf16 %v380_v9, %v379_v8  ;;  %v439_v7 = vld [vmem:[%s3821_s12 + $0x71] sm:$0xff]  ;;  %v440_v8 = vld [vmem:[%s3821_s12 + $0x79] sm:$0xff] }
  0x2b   : > { %v369_v9 = vld [vmem:[%s3821_s12 + $0x70] sm:$0xff]  ;;  %v370_v10 = vld [vmem:[%s3821_s12 + $0x78] sm:$0xff] }
  0x2c   : > { %597 = vmatmul.bf16.vlgmr.msra.gmra.mxu2 %v470_v26  ;;  %552 = vmatmul.bf16.vlgmr.msra.gmra.mxu0 %v461_v28  ;;  %v433_v26 = vld [vmem:[%s3821_s12 + $0x41] sm:$0xff] }
  0x2d   : > { %909 = vmatpush.bf16.msrb.mxu2 %v3591_v24  ;;  %744 = vmatmul.bf16.vlgmr.msra.gmra.mxu3 %v400_v27  ;;  %v381_v24 = vld [vmem:[%s3821_s12 + $0xd0] sm:$0xff]  ;;  %v363_v28 = vld [vmem:[%s3821_s12 + $0x40] sm:$0xff] }
  0x2e   : > { %1163 = vmatpush.bf16.msrb.mxu3 %v3599_v25  ;;  %699 = vmatmul.bf16.vlgmr.msra.gmra.mxu1 %v391_v29  ;;  %v382_v25 = vld [vmem:[%s3821_s12 + $0xd8] sm:$0xff]  ;;  %v434_v27 = vld [vmem:[%s3821_s12 + $0x49] sm:$0xff] }
  0x2f   : > { %1417 = vmatpush.bf16.msrb.mxu0 %v3607_v30  ;;  %1671 = vmatpush.bf16.msrb.mxu1 %v3615_v31  ;;  %v364_v29 = vld [vmem:[%s3821_s12 + $0x48] sm:$0xff]  ;;  %v474_v30 = vpack.c.bf16 %v452_v23, %v451_v22  ;;  %v404_v31 = vpack.c.bf16 %v382_v25, %v381_v24  ;;  %v390_v22 = vld [vmem:[%s3821_s12 + $0x118] sm:$0xff]  ;;  %v371_v25 = vld [vmem:[%s3821_s12 + $0x80] sm:$0xff] }
  0x30   : > { %v441_v23 = vld [vmem:[%s3821_s12 + $0x81] sm:$0xff]  ;;  %v442_v24 = vld [vmem:[%s3821_s12 + $0x89] sm:$0xff] }
  0x31   : > { %910 = vmatpush.bf16.msrb.mxu2 %v3590_v32  ;;  %v465_v32 = vpack.c.bf16 %v434_v27, %v433_v26  ;;  %v372_v26 = vld [vmem:[%s3821_s12 + $0x88] sm:$0xff] }
  0x32   : > { %1164 = vmatpush.bf16.msrb.mxu3 %v3598_v33  ;;  %v395_v33 = vpack.c.bf16 %v364_v29, %v363_v28  ;;  %v3643_v29 = vld [vmem:[%s4713_s4 + $0x18] sm:$0xff] }
  0x33   : > { %1418 = vmatpush.bf16.msrb.mxu0 %v3606_v34  ;;  %1672 = vmatpush.bf16.msrb.mxu1 %v3614_v35  ;;  %v3602_v34 = vld [vmem:[%s4710_s1 + $0x110] sm:$0xff] }
  0x34   : > { %v3610_v35 = vld [vmem:[%s4710_s1 + $0x150] sm:$0xff] }
  0x35   : > { %911 = vmatpush.bf16.msrb.mxu2 %v3589_v36  ;;  %v3585_v36 = vld [vmem:[%s4710_s1 + $0x88] sm:$0xff] }
  0x36   : > { %1165 = vmatpush.bf16.msrb.mxu3 %v3597_v37  ;;  %v3593_v37 = vld [vmem:[%s4710_s1 + $0xc8] sm:$0xff] }
  0x37   : > { %1419 = vmatpush.bf16.msrb.mxu0 %v3605_v38  ;;  %1673 = vmatpush.bf16.msrb.mxu1 %v3613_v51  ;;  %v453_v38 = vld [vmem:[%s3821_s12 + $0xe1] sm:$0xff] }
  0x38   : > { %v475_v46 = vpack.c.bf16 %v454_v39, %v453_v38  ;;  %v3609_v51 = vld [vmem:[%s4710_s1 + $0x148] sm:$0xff] }
  0x39   : > { %912 = vmatpush.bf16.msrb.mxu2 %v3588_v52  ;;  %v3584_v52 = vld [vmem:[%s4710_s1 + $0x80] sm:$0xff] }
  0x3a   : > { %1166 = vmatpush.bf16.msrb.mxu3 %v3596_v53  ;;  %v455_v53 = vld [vmem:[%s3821_s12 + $0xf1] sm:$0xff] }
  0x3b   : > { %1420 = vmatpush.bf16.msrb.mxu0 %v3604_v2  ;;  %1674 = vmatpush.bf16.msrb.mxu1 %v3612_v3  ;;  %v476_v61 = vpack.c.bf16 %v456_v54, %v455_v53  ;;  %v3600_v2 = vld [vmem:[%s4710_s1 + $0x100] sm:$0xff] }
  0x3c   : > { %602 = vmatmul.bf16.gmra.mxu2 %v471_v47  ;;  %557 = vmatmul.bf16.gmra.mxu0 %v462_v49  ;;  %v405_v47 = vpack.c.bf16 %v384_v41, %v383_v40  ;;  %v396_v49 = vpack.c.bf16 %v366_v45, %v365_v44  ;;  %v457_v3 = vld [vmem:[%s3821_s12 + $0x101] sm:$0xff]  ;;  %v1298_v45 = vld [vmem:[%s3821_s12 + $0x13] sm:$0xff] }
  0x3d   : > { %749 = vmatmul.bf16.gmra.mxu3 %v401_v48  ;;  %913 = vmatpush.bf16.msrb.mxu2 %v3587_v4  ;;  %v466_v48 = vpack.c.bf16 %v436_v43, %v435_v42  ;;  %v458_v4 = vld [vmem:[%s3821_s12 + $0x109] sm:$0xff]  ;;  %v1044_v43 = vld [vmem:[%s3821_s12 + $0x12] sm:$0xff]  ;;  %v1045_v44 = vld [vmem:[%s3821_s12 + $0x1a] sm:$0xff] }
  0x3e   : > { %704 = vmatmul.bf16.gmra.mxu1 %v392_v50  ;;  %1167 = vmatpush.bf16.msrb.mxu3 %v3595_v5  ;;  %v3601_v50 = vld [vmem:[%s4710_s1 + $0x108] sm:$0xff]  ;;  %v387_v5 = vld [vmem:[%s3821_s12 + $0x100] sm:$0xff]  ;;  %v477_v11 = vpack.c.bf16 %v458_v4, %v457_v3  ;;  %v1080_v53 = vpack.c.bf16 %v1045_v44, %v1044_v43 }
  0x3f   : > { %1421 = vmatpush.bf16.msrb.mxu0 %v3603_v18  ;;  %1675 = vmatpush.bf16.msrb.mxu1 %v3611_v19  ;;  %v407_v12 = vpack.c.bf16 %v388_v6, %v387_v5  ;;  %v3639_v18 = vld [vmem:[%s4710_s1 + $0x238] sm:$0xff]  ;;  %v790_v41 = vld [vmem:[%s3821_s12 + $0x2] sm:$0xff]  ;;  %v791_v42 = vld [vmem:[%s3821_s12 + $0xa] sm:$0xff] }
  0x40   : > { %v459_v19 = vld [vmem:[%s3821_s12 + $0x111] sm:$0xff]  ;;  %v1046_v3 = vld [vmem:[%s3821_s12 + $0x22] sm:$0xff] }
  0x41   : > { %914 = vmatpush.bf16.msrb.mxu2 %v3586_v20  ;;  %v460_v20 = vld [vmem:[%s3821_s12 + $0x119] sm:$0xff]  ;;  %v1047_v4 = vld [vmem:[%s3821_s12 + $0x2a] sm:$0xff] }
  0x42   : > { %1168 = vmatpush.bf16.msrb.mxu3 %v3594_v21  ;;  %v389_v21 = vld [vmem:[%s3821_s12 + $0x110] sm:$0xff]  ;;  %v478_v27 = vpack.c.bf16 %v460_v20, %v459_v19  ;;  %v1300_v5 = vld [vmem:[%s3821_s12 + $0x23] sm:$0xff] }
  0x43   : > { %1422 = vmatpush.bf16.msrb.mxu0 %v3602_v34  ;;  %1676 = vmatpush.bf16.msrb.mxu1 %v3610_v35  ;;  %v408_v28 = vpack.c.bf16 %v390_v22, %v389_v21  ;;  %v1301_v6 = vld [vmem:[%s3821_s12 + $0x2b] sm:$0xff] }
  0x45   : > { %915 = vmatpush.bf16.msrb.mxu2 %v3585_v36 }
  0x46   : > { %1169 = vmatpush.bf16.msrb.mxu3 %v3593_v37 }
  0x47   : > { %1423 = vmatpush.bf16.msrb.mxu0 %v3601_v50  ;;  %1677 = vmatpush.bf16.msrb.mxu1 %v3609_v51 }
  0x49   : > { %916 = vmatpush.bf16.msrb.mxu2 %v3584_v52  ;;  %v826_v52 = vpack.c.bf16 %v791_v42, %v790_v41 }
  0x4b   : > { %1424 = vmatpush.bf16.msrb.mxu0 %v3600_v2  ;;  %1678 = vmatpush.bf16.msrb.mxu1 %v3608_v13  ;;  %v3638_v13 = vld [vmem:[%s4710_s1 + $0x230] sm:$0xff] }
  0x4c   : > { %607 = vmatmul.bf16.gmra.mxu2 %v472_v62  ;;  %562 = vmatmul.bf16.gmra.mxu0 %v463_v0  ;;  %v406_v62 = vpack.c.bf16 %v386_v56, %v385_v55  ;;  %v397_v0 = vpack.c.bf16 %v368_v60, %v367_v59 }
  0x4d   : > { %754 = vmatmul.bf16.gmra.mxu3 %v402_v63  ;;  %v467_v63 = vpack.c.bf16 %v438_v58, %v437_v57 }
  0x4e   : > { %709 = vmatmul.bf16.gmra.mxu1 %v393_v1  ;;  %v3592_v1 = vld [vmem:[%s4710_s1 + $0xc0] sm:$0xff] }
  0x4f   : > { %1170 = vmatpush.bf16.msrb.mxu3 %v3592_v1  ;;  %2433 = vmatpush.bf16.msra.mxu0 %v3639_v18 }
  0x50   : > { %2753 = vmatpush.bf16.msra.mxu1 %v3643_v29  ;;  %v1556_v29 = vld [vmem:[%s3821_s12 + $0x34] sm:$0xff] }
  0x53   : > { %2434 = vmatpush.bf16.msra.mxu0 %v3638_v13 }
  0x5c   : > { %612 = vmatmul.bf16.gmra.mxu2 %v473_v14  ;;  %567 = vmatmul.bf16.gmra.mxu0 %v464_v16  ;;  %v468_v14 = vpack.c.bf16 %v440_v8, %v439_v7  ;;  %v3623_v16 = vld [vmem:[%s4710_s1 + $0x1b8] sm:$0xff]  ;;  %v1554_v7 = vld [vmem:[%s3821_s12 + $0x24] sm:$0xff]  ;;  %v1555_v8 = vld [vmem:[%s3821_s12 + $0x2c] sm:$0xff] }
  0x5d   : > { %759 = vmatmul.bf16.gmra.mxu3 %v403_v15  ;;  %v398_v15 = vpack.c.bf16 %v370_v10, %v369_v9  ;;  %1925 = vmatpush.bf16.msra.mxu2 %v3623_v16 }
  0x5e   : > { %714 = vmatmul.bf16.gmra.mxu1 %v394_v17  ;;  %v3631_v17 = vld [vmem:[%s4710_s1 + $0x1f8] sm:$0xff] }
  0x5f   : > { %2179 = vmatpush.bf16.msra.mxu3 %v3631_v17 }
  0x6c   : > { %617 = vmatmul.bf16.gmra.mxu2 %v474_v30  ;;  %572 = vmatmul.bf16.gmra.mxu0 %v465_v32  ;;  %v469_v30 = vpack.c.bf16 %v442_v24, %v441_v23 }
  0x6d   : > { %764 = vmatmul.bf16.gmra.mxu3 %v404_v31  ;;  %v399_v31 = vpack.c.bf16 %v372_v26, %v371_v25  ;;  %v1048_v25 = vld [vmem:[%s3821_s12 + $0x32] sm:$0xff]  ;;  %v1049_v26 = vld [vmem:[%s3821_s12 + $0x3a] sm:$0xff] }
  0x6e   : > { %719 = vmatmul.bf16.gmra.mxu1 %v395_v33 }
  0x7c   : > { %622 = vmatmul.bf16.gmra.mxu2 %v475_v46  ;;  %577 = vmatmul.bf16.gmra.mxu0 %v466_v48  ;;  %v1299_v46 = vld [vmem:[%s3821_s12 + $0x1b] sm:$0xff] }
  0x7d   : > { %769 = vmatmul.bf16.gmra.mxu3 %v405_v47  ;;  %v1552_v47 = vld [vmem:[%s3821_s12 + $0x14] sm:$0xff]  ;;  %v1553_v48 = vld [vmem:[%s3821_s12 + $0x1c] sm:$0xff]  ;;  %v1334_v54 = vpack.c.bf16 %v1299_v46, %v1298_v45 }
  0x7e   : > { %724 = vmatmul.bf16.gmra.mxu1 %v396_v49  ;;  %v1588_v55 = vpack.c.bf16 %v1553_v48, %v1552_v47 }
  0x8c   : > { %627 = vmatmul.bf16.gmra.mxu2 %v476_v61  ;;  %582 = vmatmul.bf16.gmra.mxu0 %v467_v63  ;;  %v3630_v63 = vld [vmem:[%s4710_s1 + $0x1f0] sm:$0xff] }
  0x8d   : > { %774 = vmatmul.bf16.gmra.mxu3 %v406_v62  ;;  %v3622_v62 = vld [vmem:[%s4710_s1 + $0x1b0] sm:$0xff] }
  0x8e   : > { %729 = vmatmul.bf16.gmra.mxu1 %v397_v0  ;;  %1926 = vmatpush.bf16.msra.mxu2 %v3622_v62 }
  0x8f   : > { %2180 = vmatpush.bf16.msra.mxu3 %v3630_v63 }
  0x9c   : > { %632 = vmatmul.bf16.gmra.mxu2 %v477_v11  ;;  %587 = vmatmul.bf16.gmra.mxu0 %v468_v14  ;;  %v1335_v14 = vpack.c.bf16 %v1301_v6, %v1300_v5  ;;  %v3637_v6 = vld [vmem:[%s4710_s1 + $0x228] sm:$0xff] }
  0x9d   : > { %779 = vmatmul.bf16.gmra.mxu3 %v407_v12  ;;  %v1081_v12 = vpack.c.bf16 %v1047_v4, %v1046_v3  ;;  %2435 = vmatpush.bf16.msra.mxu0 %v3637_v6 }
  0x9e   : > { %734 = vmatmul.bf16.gmra.mxu1 %v398_v15  ;;  %v1589_v15 = vpack.c.bf16 %v1555_v8, %v1554_v7 }
  0xa9   : > { %v553_v32 = vpop.f32.mrf.mxu0 }
  0xab   : > { %v700_v33 = vpop.f32.mrf.mxu1 }
  0xac   : > { %v4009_v34 = vadd.f32 %v700_v33, %v553_v32  ;;  %637 = vmatmul.bf16.gmra.mxu2 %v478_v27  ;;  %592 = vmatmul.bf16.gmra.mxu0 %v469_v30  ;;  %v1302_v27 = vld [vmem:[%s3821_s12 + $0x33] sm:$0xff]  ;;  %v1557_v30 = vld [vmem:[%s3821_s12 + $0x3c] sm:$0xff] }
  0xad   : > { %784 = vmatmul.bf16.gmra.mxu3 %v408_v28  ;;  %v1303_v28 = vld [vmem:[%s3821_s12 + $0x3b] sm:$0xff] }
  0xae   : > { %739 = vmatmul.bf16.gmra.mxu1 %v399_v31 }
  0xaf   : > { %v598_v35 = vpop.f32.mrf.mxu2 }
  0xb0   : > { %v745_v36 = vpop.f32.mrf.mxu3 }
  0xb1   : > { %v4011_v37 = vadd.f32 %v745_v36, %v598_v35  ;;  %v555_v38 = vpop.f32.mrf.mxu0  ;;  %v1082_v35 = vpack.c.bf16 %v1049_v26, %v1048_v25  ;;  %v1336_v36 = vpack.c.bf16 %v1303_v28, %v1302_v27 }
  0xb3   : > { %v702_v39 = vpop.f32.mrf.mxu1 }
  0xb4   : > { %v4013_v40 = vadd.f32 %v702_v39, %v555_v38  ;;  %v1590_v38 = vpack.c.bf16 %v1557_v30, %v1556_v29 }
  0xb7   : > { %v600_v49 = vpop.f32.mrf.mxu2 }
  0xb8   : > { %v747_v50 = vpop.f32.mrf.mxu3 }
  0xb9   : > { %v4023_v51 = vadd.f32 %v747_v50, %v600_v49  ;;  %v558_v56 = vpop.f32.mrf.mxu0  ;;  %v3621_v49 = vld [vmem:[%s4710_s1 + $0x1a8] sm:$0xff] }
  0xba   : > { %v3629_v50 = vld [vmem:[%s4710_s1 + $0x1e8] sm:$0xff]  ;;  %1927 = vmatpush.bf16.msra.mxu2 %v3621_v49 }
  0xbb   : > { %v705_v57 = vpop.f32.mrf.mxu1  ;;  %2181 = vmatpush.bf16.msra.mxu3 %v3629_v50  ;;  %v1309_v49 = vld [vmem:[%s3821_s12 + $0x6b] sm:$0xff] }
  0xbc   : > { %v4025_v58 = vadd.f32 %v705_v57, %v558_v56  ;;  %917 = vmatmul.bf16.vlgmr.msrb.gmra.mxu2 %v826_v52  ;;  %1425 = vmatmul.bf16.vlgmr.msrb.gmra.mxu0 %v1334_v54  ;;  %v1050_v52 = vld [vmem:[%s3821_s12 + $0x42] sm:$0xff]  ;;  %v1559_v57 = vld [vmem:[%s3821_s12 + $0x4c] sm:$0xff] }
  0xbd   : > { %1171 = vmatmul.bf16.vlgmr.msrb.gmra.mxu3 %v1080_v53  ;;  %v1304_v54 = vld [vmem:[%s3821_s12 + $0x43] sm:$0xff] }
  0xbe   : > { %1679 = vmatmul.bf16.vlgmr.msrb.gmra.mxu1 %v1588_v55  ;;  %v1305_v55 = vld [vmem:[%s3821_s12 + $0x4b] sm:$0xff] }
  0xbf   : > { %v603_v59 = vpop.f32.mrf.mxu2  ;;  %v1558_v56 = vld [vmem:[%s3821_s12 + $0x44] sm:$0xff] }
  0xc0   : > { %v750_v60 = vpop.f32.mrf.mxu3  ;;  %v1562_v50 = vld [vmem:[%s3821_s12 + $0x64] sm:$0xff] }
  0xc1   : > { %v4027_v61 = vadd.f32 %v750_v60, %v603_v59  ;;  %v560_v0 = vpop.f32.mrf.mxu0 }
  0xc3   : > { %v707_v1 = vpop.f32.mrf.mxu1 }
  0xc4   : > { %v4035_v2 = vadd.f32 %v707_v1, %v560_v0  ;;  %v1337_v0 = vpack.c.bf16 %v1305_v55, %v1304_v54  ;;  %v1591_v1 = vpack.c.bf16 %v1559_v57, %v1558_v56  ;;  %v3620_v57 = vld [vmem:[%s4710_s1 + $0x1a0] sm:$0xff] }
  0xc5   : > { %1928 = vmatpush.bf16.msra.mxu2 %v3620_v57  ;;  %v1566_v57 = vld [vmem:[%s3821_s12 + $0x84] sm:$0xff] }
  0xc7   : > { %v605_v9 = vpop.f32.mrf.mxu2 }
  0xc8   : > { %v752_v10 = vpop.f32.mrf.mxu3 }
  0xc9   : > { %v4043_v11 = vadd.f32 %v752_v10, %v605_v9  ;;  %v563_v16 = vpop.f32.mrf.mxu0  ;;  %v3642_v10 = vld [vmem:[%s4713_s4 + $0x10] sm:$0xff] }
  0xca   : > { %2754 = vmatpush.bf16.msra.mxu1 %v3642_v10 }
  0xcb   : > { %v710_v17 = vpop.f32.mrf.mxu1 }
  0xcc   : > { %v4048_v18 = vadd.f32 %v710_v17, %v563_v16  ;;  %922 = vmatmul.bf16.gmra.mxu2 %v1080_v53  ;;  %1430 = vmatmul.bf16.gmra.mxu0 %v1335_v14  ;;  %v1051_v53 = vld [vmem:[%s3821_s12 + $0x4a] sm:$0xff]  ;;  %v1053_v16 = vld [vmem:[%s3821_s12 + $0x5a] sm:$0xff] }
  0xcd   : > { %1176 = vmatmul.bf16.gmra.mxu3 %v1081_v12  ;;  %v1083_v63 = vpack.c.bf16 %v1051_v53, %v1050_v52  ;;  %v1306_v17 = vld [vmem:[%s3821_s12 + $0x53] sm:$0xff] }
  0xce   : > { %1684 = vmatmul.bf16.gmra.mxu1 %v1589_v15  ;;  %v1052_v15 = vld [vmem:[%s3821_s12 + $0x52] sm:$0xff] }
  0xcf   : > { %v608_v19 = vpop.f32.mrf.mxu2  ;;  %v1084_v27 = vpack.c.bf16 %v1053_v16, %v1052_v15  ;;  %v1563_v52 = vld [vmem:[%s3821_s12 + $0x6c] sm:$0xff]  ;;  %v1057_v16 = vld [vmem:[%s3821_s12 + $0x7a] sm:$0xff] }
  0xd0   : > { %v755_v20 = vpop.f32.mrf.mxu3  ;;  %v1056_v15 = vld [vmem:[%s3821_s12 + $0x72] sm:$0xff] }
  0xd1   : > { %v4050_v21 = vadd.f32 %v755_v20, %v608_v19  ;;  %v565_v22 = vpop.f32.mrf.mxu0  ;;  %v1307_v19 = vld [vmem:[%s3821_s12 + $0x5b] sm:$0xff] }
  0xd2   : > { %v1560_v20 = vld [vmem:[%s3821_s12 + $0x54] sm:$0xff]  ;;  %v1338_v28 = vpack.c.bf16 %v1307_v19, %v1306_v17 }
  0xd3   : > { %v712_v23 = vpop.f32.mrf.mxu1  ;;  %v1310_v17 = vld [vmem:[%s3821_s12 + $0x73] sm:$0xff]  ;;  %v1311_v19 = vld [vmem:[%s3821_s12 + $0x7b] sm:$0xff] }
  0xd4   : > { %v4052_v24 = vadd.f32 %v712_v23, %v565_v22  ;;  %v1561_v22 = vld [vmem:[%s3821_s12 + $0x5c] sm:$0xff] }
  0xd5   : > { %v1592_v29 = vpack.c.bf16 %v1561_v22, %v1560_v20  ;;  %v1564_v20 = vld [vmem:[%s3821_s12 + $0x74] sm:$0xff]  ;;  %v1565_v22 = vld [vmem:[%s3821_s12 + $0x7c] sm:$0xff] }
  0xd7   : > { %v610_v31 = vpop.f32.mrf.mxu2 }
  0xd8   : > { %v757_v32 = vpop.f32.mrf.mxu3 }
  0xd9   : > { %v4060_v33 = vadd.f32 %v757_v32, %v610_v31  ;;  %v568_v39 = vpop.f32.mrf.mxu0 }
  0xdb   : > { %v715_v41 = vpop.f32.mrf.mxu1 }
  0xdc   : > { %v4062_v42 = vadd.f32 %v715_v41, %v568_v39  ;;  %927 = vmatmul.bf16.gmra.mxu2 %v1081_v12  ;;  %1435 = vmatmul.bf16.gmra.mxu0 %v1336_v36 }
  0xdd   : > { %1181 = vmatmul.bf16.gmra.mxu3 %v1082_v35 }
  0xde   : > { %1689 = vmatmul.bf16.gmra.mxu1 %v1590_v38 }
  0xdf   : > { %v613_v43 = vpop.f32.mrf.mxu2 }
  0xe0   : > { %v760_v44 = vpop.f32.mrf.mxu3 }
  0xe1   : > { %v4064_v45 = vadd.f32 %v760_v44, %v613_v43  ;;  %v570_v46 = vpop.f32.mrf.mxu0  ;;  %v1054_v44 = vld [vmem:[%s3821_s12 + $0x62] sm:$0xff] }
  0xe3   : > { %v717_v47 = vpop.f32.mrf.mxu1 }
  0xe4   : > { %v4066_v48 = vadd.f32 %v717_v47, %v570_v46  ;;  %v1055_v46 = vld [vmem:[%s3821_s12 + $0x6a] sm:$0xff] }
  0xe5   : > { %v1308_v47 = vld [vmem:[%s3821_s12 + $0x63] sm:$0xff]  ;;  %v1085_v56 = vpack.c.bf16 %v1055_v46, %v1054_v44 }
  0xe7   : > { %v615_v59 = vpop.f32.mrf.mxu2 }
  0xe8   : > { %v762_v60 = vpop.f32.mrf.mxu3 }
  0xe9   : > { %v4080_v62 = vadd.f32 %v762_v60, %v615_v59  ;;  %v573_v3 = vpop.f32.mrf.mxu0  ;;  %v3628_v59 = vld [vmem:[%s4710_s1 + $0x1e0] sm:$0xff]  ;;  %v1339_v60 = vpack.c.bf16 %v1309_v49, %v1308_v47 }
  0xea   : > { %2182 = vmatpush.bf16.msra.mxu3 %v3628_v59  ;;  %v1567_v59 = vld [vmem:[%s3821_s12 + $0x8c] sm:$0xff] }
  0xeb   : > { %v720_v4 = vpop.f32.mrf.mxu1 }
  0xec   : > { %v4082_v5 = vadd.f32 %v720_v4, %v573_v3  ;;  %932 = vmatmul.bf16.gmra.mxu2 %v1082_v35  ;;  %1440 = vmatmul.bf16.gmra.mxu0 %v1337_v0 }
  0xed   : > { %1186 = vmatmul.bf16.gmra.mxu3 %v1083_v63 }
  0xee   : > { %1694 = vmatmul.bf16.gmra.mxu1 %v1591_v1 }
  0xef   : > { %v618_v7 = vpop.f32.mrf.mxu2 }
  0xf0   : > { %v765_v8 = vpop.f32.mrf.mxu3 }
  0xf1   : > { %v4087_v9 = vadd.f32 %v765_v8, %v618_v7  ;;  %v575_v12 = vpop.f32.mrf.mxu0  ;;  %v3636_v8 = vld [vmem:[%s4710_s1 + $0x220] sm:$0xff] }
  0xf2   : > { %2436 = vmatpush.bf16.msra.mxu0 %v3636_v8 }
  0xf3   : > { %v722_v13 = vpop.f32.mrf.mxu1 }
  0xf4   : > { %v4092_v14 = vadd.f32 %v722_v13, %v575_v12 }
  0xf7   : > { %v620_v23 = vpop.f32.mrf.mxu2 }
  0xf8   : > { %v767_v25 = vpop.f32.mrf.mxu3 }
  0xf9   : > { %v4100_v26 = vadd.f32 %v767_v25, %v620_v23  ;;  %v578_v30 = vpop.f32.mrf.mxu0 }
  0xfb   : > { %v725_v31 = vpop.f32.mrf.mxu1 }
  0xfc   : > { %v4102_v32 = vadd.f32 %v725_v31, %v578_v30  ;;  %937 = vmatmul.bf16.gmra.mxu2 %v1083_v63  ;;  %1445 = vmatmul.bf16.gmra.mxu0 %v1338_v28  ;;  %v1593_v63 = vpack.c.bf16 %v1563_v52, %v1562_v50  ;;  %v1086_v28 = vpack.c.bf16 %v1057_v16, %v1056_v15  ;;  %v1058_v50 = vld [vmem:[%s3821_s12 + $0x82] sm:$0xff]  ;;  %v1059_v52 = vld [vmem:[%s3821_s12 + $0x8a] sm:$0xff]  ;;  %v3627_v15 = vld [vmem:[%s4710_s1 + $0x1d8] sm:$0xff] }
  0xfd   : > { %1191 = vmatmul.bf16.gmra.mxu3 %v1084_v27  ;;  %v1594_v30 = vpack.c.bf16 %v1565_v22, %v1564_v20 }
  0xfe   : > { %1699 = vmatmul.bf16.gmra.mxu1 %v1592_v29  ;;  %v1340_v29 = vpack.c.bf16 %v1311_v19, %v1310_v17  ;;  %2183 = vmatpush.bf16.msra.mxu3 %v3627_v15  ;;  %v1063_v15 = vld [vmem:[%s3821_s12 + $0xaa] sm:$0xff] }
  0xff   : > { %v623_v35 = vpop.f32.mrf.mxu2 }
 0x100   : > { %v770_v36 = vpop.f32.mrf.mxu3 }
 0x101   : > { %v4104_v38 = vadd.f32 %v770_v36, %v623_v35  ;;  %v580_v39 = vpop.f32.mrf.mxu0 }
 0x103   : > { %v727_v41 = vpop.f32.mrf.mxu1 }
 0x104   : > { %v4106_v43 = vadd.f32 %v727_v41, %v580_v39 }
 0x107   : > { %v625_v53 = vpop.f32.mrf.mxu2 }
 0x108   : > { %v772_v54 = vpop.f32.mrf.mxu3 }
 0x109   : > { %v4114_v55 = vadd.f32 %v772_v54, %v625_v53  ;;  %v583_v0 = vpop.f32.mrf.mxu0  ;;  %v1312_v53 = vld [vmem:[%s3821_s12 + $0x83] sm:$0xff]  ;;  %v1313_v54 = vld [vmem:[%s3821_s12 + $0x8b] sm:$0xff] }
 0x10b   : > { %v730_v1 = vpop.f32.mrf.mxu1 }
 0x10c   : > { %v4122_v3 = vadd.f32 %v730_v1, %v583_v0  ;;  %942 = vmatmul.bf16.gmra.mxu2 %v1084_v27  ;;  %1450 = vmatmul.bf16.gmra.mxu0 %v1339_v60  ;;  %v1087_v0 = vpack.c.bf16 %v1059_v52, %v1058_v50  ;;  %v1341_v1 = vpack.c.bf16 %v1313_v54, %v1312_v53 }
 0x10d   : > { %1196 = vmatmul.bf16.gmra.mxu3 %v1085_v56 }
 0x10e   : > { %1704 = vmatmul.bf16.gmra.mxu1 %v1593_v63 }
 0x10f   : > { %v628_v4 = vpop.f32.mrf.mxu2 }
 0x110   : > { %v775_v6 = vpop.f32.mrf.mxu3 }
 0x111   : > { %v4124_v7 = vadd.f32 %v775_v6, %v628_v4  ;;  %v585_v10 = vpop.f32.mrf.mxu0  ;;  %v1595_v4 = vpack.c.bf16 %v1567_v59, %v1566_v57  ;;  %v3641_v59 = vld [vmem:[%s4713_s4 + $0x8] sm:$0xff] }
 0x112   : > { %2755 = vmatpush.bf16.msra.mxu1 %v3641_v59 }
 0x113   : > { %v732_v12 = vpop.f32.mrf.mxu1 }
 0x114   : > { %v4129_v13 = vadd.f32 %v732_v12, %v585_v10  ;;  %v3619_v12 = vld [vmem:[%s4710_s1 + $0x198] sm:$0xff] }
 0x115   : > { %1929 = vmatpush.bf16.msra.mxu2 %v3619_v12 }
 0x117   : > { %v630_v23 = vpop.f32.mrf.mxu2 }
 0x118   : > { %v777_v25 = vpop.f32.mrf.mxu3 }
 0x119   : > { %v4137_v27 = vadd.f32 %v777_v25, %v630_v23  ;;  %v588_v31 = vpop.f32.mrf.mxu0  ;;  %v1060_v25 = vld [vmem:[%s3821_s12 + $0x92] sm:$0xff] }
 0x11b   : > { %v735_v35 = vpop.f32.mrf.mxu1 }
 0x11c   : > { %v4139_v36 = vadd.f32 %v735_v35, %v588_v31  ;;  %947 = vmatmul.bf16.gmra.mxu2 %v1085_v56  ;;  %1455 = vmatmul.bf16.gmra.mxu0 %v1340_v29  ;;  %v1314_v29 = vld [vmem:[%s3821_s12 + $0x93] sm:$0xff]  ;;  %v1569_v35 = vld [vmem:[%s3821_s12 + $0x9c] sm:$0xff] }
 0x11d   : > { %1201 = vmatmul.bf16.gmra.mxu3 %v1086_v28  ;;  %v1568_v31 = vld [vmem:[%s3821_s12 + $0x94] sm:$0xff] }
 0x11e   : > { %1709 = vmatmul.bf16.gmra.mxu1 %v1594_v30  ;;  %v1315_v30 = vld [vmem:[%s3821_s12 + $0x9b] sm:$0xff]  ;;  %v1596_v53 = vpack.c.bf16 %v1569_v35, %v1568_v31 }
 0x11f   : > { %v633_v39 = vpop.f32.mrf.mxu2  ;;  %v1342_v52 = vpack.c.bf16 %v1315_v30, %v1314_v29 }
 0x120   : > { %v780_v41 = vpop.f32.mrf.mxu3 }
 0x121   : > { %v4141_v44 = vadd.f32 %v780_v41, %v633_v39  ;;  %v590_v46 = vpop.f32.mrf.mxu0  ;;  %v3635_v39 = vld [vmem:[%s4710_s1 + $0x218] sm:$0xff] }
 0x122   : > { %2437 = vmatpush.bf16.msra.mxu0 %v3635_v39 }
 0x123   : > { %v737_v47 = vpop.f32.mrf.mxu1 }
 0x124   : > { %v4143_v49 = vadd.f32 %v737_v47, %v590_v46 }
 0x127   : > { %v635_v60 = vpop.f32.mrf.mxu2 }
 0x128   : > { %v782_v63 = vpop.f32.mrf.mxu3 }
 0x129   : > { %v4151_v56 = vadd.f32 %v782_v63, %v635_v60  ;;  %v593_v6 = vpop.f32.mrf.mxu0 }
 0x12b   : > { %v740_v8 = vpop.f32.mrf.mxu1 }
 0x12c   : > { %v4153_v10 = vadd.f32 %v740_v8, %v593_v6  ;;  %952 = vmatmul.bf16.gmra.mxu2 %v1086_v28  ;;  %1460 = vmatmul.bf16.gmra.mxu0 %v1341_v1  ;;  %v1061_v28 = vld [vmem:[%s3821_s12 + $0x9a] sm:$0xff] }
 0x12d   : > { %1206 = vmatmul.bf16.gmra.mxu3 %v1087_v0  ;;  %v1088_v50 = vpack.c.bf16 %v1061_v28, %v1060_v25  ;;  %v1571_v25 = vld [vmem:[%s3821_s12 + $0xac] sm:$0xff] }
 0x12e   : > { %1714 = vmatmul.bf16.gmra.mxu1 %v1595_v4 }
 0x12f   : > { %v638_v16 = vpop.f32.mrf.mxu2 }
 0x130   : > { %v785_v17 = vpop.f32.mrf.mxu3 }
 0x131   : > { %v4161_v19 = vadd.f32 %v785_v17, %v638_v16  ;;  %v595_v20 = vpop.f32.mrf.mxu0  ;;  %v1316_v16 = vld [vmem:[%s3821_s12 + $0xa3] sm:$0xff] }
 0x133   : > { %v742_v22 = vpop.f32.mrf.mxu1 }
 0x134   : > { %v4163_v23 = vadd.f32 %v742_v22, %v595_v20  ;;  %v1317_v20 = vld [vmem:[%s3821_s12 + $0xab] sm:$0xff] }
 0x135   : > { %v1570_v22 = vld [vmem:[%s3821_s12 + $0xa4] sm:$0xff]  ;;  %v1343_v35 = vpack.c.bf16 %v1317_v20, %v1316_v16  ;;  %v1573_v16 = vld [vmem:[%s3821_s12 + $0xbc] sm:$0xff] }
 0x137   : > { %v640_v41 = vpop.f32.mrf.mxu2 }
 0x138   : > { %v787_v46 = vpop.f32.mrf.mxu3 }
 0x139   : > { %v4174_v47 = vadd.f32 %v787_v46, %v640_v41  ;;  %v1426_v54 = vpop.f32.mrf.mxu0 }
 0x13b   : > { %v1680_v57 = vpop.f32.mrf.mxu1 }
 0x13c   : > { %957 = vmatmul.bf16.gmra.mxu2 %v1087_v0  ;;  %1465 = vmatmul.bf16.gmra.mxu0 %v1342_v52  ;;  %v1062_v0 = vld [vmem:[%s3821_s12 + $0xa2] sm:$0xff] }
 0x13d   : > { %1211 = vmatmul.bf16.gmra.mxu3 %v1088_v50  ;;  %v1089_v31 = vpack.c.bf16 %v1063_v15, %v1062_v0  ;;  %v1319_v0 = vld [vmem:[%s3821_s12 + $0xbb] sm:$0xff] }
 0x13e   : > { %1719 = vmatmul.bf16.gmra.mxu1 %v1596_v53 }
 0x13f   : > { %v918_v60 = vpop.f32.mrf.mxu2 }
 0x140   : > { %v1172_v63 = vpop.f32.mrf.mxu3  ;;  %v1008_v1 = vadd.f32 %v918_v60, %v4009_v34  ;;  %v1597_v34 = vpack.c.bf16 %v1571_v25, %v1570_v22 }
 0x141   : > { %v1428_v6 = vpop.f32.mrf.mxu0 }
 0x142   : > { %v1262_v4 = vadd.f32 %v1172_v63, %v1008_v1 }
 0x143   : > { %v1682_v8 = vpop.f32.mrf.mxu1 }
 0x144   : > { %v1516_v12 = vadd.f32 %v1426_v54, %v1262_v4  ;;  %v1064_v4 = vld [vmem:[%s3821_s12 + $0xb2] sm:$0xff] }
 0x146   : > { %v4183_v17 = vadd.f32 %v1680_v57, %v1516_v12  ;;  %v1065_v12 = vld [vmem:[%s3821_s12 + $0xba] sm:$0xff] }
 0x147   : > { %v920_v28 = vpop.f32.mrf.mxu2 }
 0x148   : > { %v1174_v29 = vpop.f32.mrf.mxu3  ;;  %v1009_v30 = vadd.f32 %v920_v28, %v4013_v40  ;;  %v1090_v28 = vpack.c.bf16 %v1065_v12, %v1064_v4  ;;  %v1067_v4 = vld [vmem:[%s3821_s12 + $0xca] sm:$0xff] }
 0x149   : > { %v1431_v41 = vpop.f32.mrf.mxu0  ;;  %v1320_v12 = vld [vmem:[%s3821_s12 + $0xc3] sm:$0xff] }
 0x14a   : > { %v1263_v39 = vadd.f32 %v1174_v29, %v1009_v30 }
 0x14b   : > { %v1685_v46 = vpop.f32.mrf.mxu1 }
 0x14c   : > { %v1517_v52 = vadd.f32 %v1428_v6, %v1263_v39  ;;  %962 = vmatmul.bf16.gmra.mxu2 %v1088_v50  ;;  %1470 = vmatmul.bf16.gmra.mxu0 %v1343_v35  ;;  %v1318_v6 = vld [vmem:[%s3821_s12 + $0xb3] sm:$0xff] }
 0x14d   : > { %1216 = vmatmul.bf16.gmra.mxu3 %v1089_v31  ;;  %v1572_v50 = vld [vmem:[%s3821_s12 + $0xb4] sm:$0xff]  ;;  %v1344_v29 = vpack.c.bf16 %v1319_v0, %v1318_v6  ;;  %v1574_v0 = vld [vmem:[%s3821_s12 + $0xc4] sm:$0xff] }
 0x14e   : > { %1724 = vmatmul.bf16.gmra.mxu1 %v1597_v34  ;;  %v4189_v53 = vadd.f32 %v1682_v8, %v1517_v52  ;;  %v3618_v8 = vld [vmem:[%s4710_s1 + $0x190] sm:$0xff]  ;;  %v1598_v30 = vpack.c.bf16 %v1573_v16, %v1572_v50 }
 0x14f   : > { %v923_v40 = vpop.f32.mrf.mxu2  ;;  %1930 = vmatpush.bf16.msra.mxu2 %v3618_v8  ;;  %v1575_v50 = vld [vmem:[%s3821_s12 + $0xcc] sm:$0xff] }
 0x150   : > { %v1177_v54 = vpop.f32.mrf.mxu3  ;;  %v1010_v57 = vadd.f32 %v923_v40, %v4025_v58  ;;  %v3626_v58 = vld [vmem:[%s4710_s1 + $0x1d0] sm:$0xff] }
 0x151   : > { %v1433_v60 = vpop.f32.mrf.mxu0  ;;  %2184 = vmatpush.bf16.msra.mxu3 %v3626_v58 }
 0x152   : > { %v1264_v59 = vadd.f32 %v1177_v54, %v1010_v57 }
 0x153   : > { %v1687_v63 = vpop.f32.mrf.mxu1 }
 0x154   : > { %v1518_v1 = vadd.f32 %v1431_v41, %v1264_v59 }
 0x156   : > { %v4197_v15 = vadd.f32 %v1685_v46, %v1518_v1  ;;  %v1066_v1 = vld [vmem:[%s3821_s12 + $0xc2] sm:$0xff] }
 0x157   : > { %v925_v20 = vpop.f32.mrf.mxu2 }
 0x158   : > { %v1179_v22 = vpop.f32.mrf.mxu3  ;;  %v1011_v25 = vadd.f32 %v925_v20, %v4035_v2  ;;  %v3634_v2 = vld [vmem:[%s4710_s1 + $0x210] sm:$0xff]  ;;  %v1091_v20 = vpack.c.bf16 %v1067_v4, %v1066_v1  ;;  %v1323_v1 = vld [vmem:[%s3821_s12 + $0xdb] sm:$0xff] }
 0x159   : > { %v1436_v34 = vpop.f32.mrf.mxu0  ;;  %2438 = vmatpush.bf16.msra.mxu0 %v3634_v2 }
 0x15a   : > { %v1265_v35 = vadd.f32 %v1179_v22, %v1011_v25 }
 0x15b   : > { %v1690_v39 = vpop.f32.mrf.mxu1 }
 0x15c   : > { %v1519_v41 = vadd.f32 %v1433_v60, %v1265_v35  ;;  %967 = vmatmul.bf16.gmra.mxu2 %v1089_v31  ;;  %1475 = vmatmul.bf16.gmra.mxu0 %v1344_v29 }
 0x15d   : > { %1221 = vmatmul.bf16.gmra.mxu3 %v1090_v28 }
 0x15e   : > { %1729 = vmatmul.bf16.gmra.mxu1 %v1598_v30  ;;  %v4207_v46 = vadd.f32 %v1687_v63, %v1519_v41  ;;  %v1321_v63 = vld [vmem:[%s3821_s12 + $0xcb] sm:$0xff] }
 0x15f   : > { %v928_v52 = vpop.f32.mrf.mxu2  ;;  %v1345_v22 = vpack.c.bf16 %v1321_v63, %v1320_v12  ;;  %v1577_v12 = vld [vmem:[%s3821_s12 + $0xdc] sm:$0xff] }
 0x160   : > { %v1182_v40 = vpop.f32.mrf.mxu3  ;;  %v1012_v54 = vadd.f32 %v928_v52, %v4048_v18  ;;  %v1599_v18 = vpack.c.bf16 %v1575_v50, %v1574_v0 }
 0x161   : > { %v1438_v31 = vpop.f32.mrf.mxu0 }
 0x162   : > { %v1266_v57 = vadd.f32 %v1182_v40, %v1012_v54 }
 0x163   : > { %v1692_v59 = vpop.f32.mrf.mxu1 }
 0x164   : > { %v1520_v60 = vadd.f32 %v1436_v34, %v1266_v57  ;;  %v1068_v57 = vld [vmem:[%s3821_s12 + $0xd2] sm:$0xff] }
 0x166   : > { %v4216_v6 = vadd.f32 %v1690_v39, %v1520_v60  ;;  %v1069_v60 = vld [vmem:[%s3821_s12 + $0xda] sm:$0xff] }
 0x167   : > { %v930_v16 = vpop.f32.mrf.mxu2 }
 0x168   : > { %v1184_v8 = vpop.f32.mrf.mxu3  ;;  %v1013_v58 = vadd.f32 %v930_v16, %v4052_v24  ;;  %v1092_v16 = vpack.c.bf16 %v1069_v60, %v1068_v57  ;;  %v1071_v57 = vld [vmem:[%s3821_s12 + $0xea] sm:$0xff] }
 0x169   : > { %v1441_v29 = vpop.f32.mrf.mxu0  ;;  %v1324_v60 = vld [vmem:[%s3821_s12 + $0xe3] sm:$0xff] }
 0x16a   : > { %v1267_v25 = vadd.f32 %v1184_v8, %v1013_v58 }
 0x16b   : > { %v1695_v30 = vpop.f32.mrf.mxu1 }
 0x16c   : > { %v1521_v35 = vadd.f32 %v1438_v31, %v1267_v25  ;;  %972 = vmatmul.bf16.gmra.mxu2 %v1090_v28  ;;  %1480 = vmatmul.bf16.gmra.mxu0 %v1345_v22  ;;  %v1322_v31 = vld [vmem:[%s3821_s12 + $0xd3] sm:$0xff] }
 0x16d   : > { %1226 = vmatmul.bf16.gmra.mxu3 %v1091_v20  ;;  %v1576_v28 = vld [vmem:[%s3821_s12 + $0xd4] sm:$0xff]  ;;  %v1346_v8 = vpack.c.bf16 %v1323_v1, %v1322_v31  ;;  %v1325_v31 = vld [vmem:[%s3821_s12 + $0xeb] sm:$0xff] }
 0x16e   : > { %1734 = vmatmul.bf16.gmra.mxu1 %v1599_v18  ;;  %v4222_v34 = vadd.f32 %v1692_v59, %v1521_v35  ;;  %v3617_v59 = vld [vmem:[%s4710_s1 + $0x188] sm:$0xff]  ;;  %v1600_v58 = vpack.c.bf16 %v1577_v12, %v1576_v28  ;;  %v3640_v12 = vld [vmem:[%s4713_s4] sm:$0xff] }
 0x16f   : > { %v933_v24 = vpop.f32.mrf.mxu2  ;;  %1931 = vmatpush.bf16.msra.mxu2 %v3617_v59  ;;  %v1578_v1 = vld [vmem:[%s3821_s12 + $0xe4] sm:$0xff]  ;;  %v1579_v28 = vld [vmem:[%s3821_s12 + $0xec] sm:$0xff]  ;;  %2756 = vmatpush.bf16.msra.mxu1 %v3640_v12 }
 0x170   : > { %v1187_v39 = vpop.f32.mrf.mxu3  ;;  %v1014_v41 = vadd.f32 %v933_v24, %v4062_v42  ;;  %v3625_v42 = vld [vmem:[%s4710_s1 + $0x1c8] sm:$0xff] }
 0x171   : > { %v1443_v52 = vpop.f32.mrf.mxu0  ;;  %2185 = vmatpush.bf16.msra.mxu3 %v3625_v42 }
 0x172   : > { %v1268_v2 = vadd.f32 %v1187_v39, %v1014_v41 }
 0x173   : > { %v1697_v40 = vpop.f32.mrf.mxu1 }
 0x174   : > { %v1522_v54 = vadd.f32 %v1441_v29, %v1268_v2 }
 0x176   : > { %v4230_v4 = vadd.f32 %v1695_v30, %v1522_v54  ;;  %v1070_v54 = vld [vmem:[%s3821_s12 + $0xe2] sm:$0xff] }
 0x177   : > { %v935_v63 = vpop.f32.mrf.mxu2 }
 0x178   : > { %v1189_v0 = vpop.f32.mrf.mxu3  ;;  %v1015_v50 = vadd.f32 %v935_v63, %v4066_v48  ;;  %v3633_v48 = vld [vmem:[%s4710_s1 + $0x208] sm:$0xff]  ;;  %v1093_v63 = vpack.c.bf16 %v1071_v57, %v1070_v54  ;;  %v1073_v54 = vld [vmem:[%s3821_s12 + $0xfa] sm:$0xff] }
 0x179   : > { %v1446_v18 = vpop.f32.mrf.mxu0  ;;  %2439 = vmatpush.bf16.msra.mxu0 %v3633_v48  ;;  %v1327_v57 = vld [vmem:[%s3821_s12 + $0xfb] sm:$0xff] }
 0x17a   : > { %v1269_v22 = vadd.f32 %v1189_v0, %v1015_v50  ;;  %v1347_v0 = vpack.c.bf16 %v1325_v31, %v1324_v60  ;;  %v1601_v50 = vpack.c.bf16 %v1579_v28, %v1578_v1  ;;  %v1580_v60 = vld [vmem:[%s3821_s12 + $0xf4] sm:$0xff]  ;;  %v1581_v31 = vld [vmem:[%s3821_s12 + $0xfc] sm:$0xff] }
 0x17b   : > { %v1700_v25 = vpop.f32.mrf.mxu1 }
 0x17c   : > { %v1523_v29 = vadd.f32 %v1443_v52, %v1269_v22  ;;  %977 = vmatmul.bf16.gmra.mxu2 %v1091_v20  ;;  %1485 = vmatmul.bf16.gmra.mxu0 %v1346_v8 }
 0x17d   : > { %1231 = vmatmul.bf16.gmra.mxu3 %v1092_v16 }
 0x17e   : > { %1739 = vmatmul.bf16.gmra.mxu1 %v1600_v58  ;;  %v4240_v30 = vadd.f32 %v1697_v40, %v1523_v29 }
 0x17f   : > { %v938_v35 = vpop.f32.mrf.mxu2 }
 0x180   : > { %v1192_v24 = vpop.f32.mrf.mxu3  ;;  %v1016_v39 = vadd.f32 %v938_v35, %v4082_v5 }
 0x181   : > { %v1448_v20 = vpop.f32.mrf.mxu0 }
 0x182   : > { %v1270_v41 = vadd.f32 %v1192_v24, %v1016_v39 }
 0x183   : > { %v1702_v2 = vpop.f32.mrf.mxu1 }
 0x184   : > { %v1524_v52 = vadd.f32 %v1446_v18, %v1270_v41 }
 0x186   : > { %v4250_v40 = vadd.f32 %v1700_v25, %v1524_v52  ;;  %v1072_v52 = vld [vmem:[%s3821_s12 + $0xf2] sm:$0xff] }
 0x187   : > { %v940_v59 = vpop.f32.mrf.mxu2  ;;  %v1094_v12 = vpack.c.bf16 %v1073_v54, %v1072_v52  ;;  %v1329_v52 = vld [vmem:[%s3821_s12 + $0x10b] sm:$0xff] }
 0x188   : > { %v1194_v42 = vpop.f32.mrf.mxu3  ;;  %v1017_v5 = vadd.f32 %v940_v59, %v4092_v14 }
 0x189   : > { %v1451_v58 = vpop.f32.mrf.mxu0 }
 0x18a   : > { %v1271_v8 = vadd.f32 %v1194_v42, %v1017_v5  ;;  %v1602_v42 = vpack.c.bf16 %v1581_v31, %v1580_v60  ;;  %v3632_v60 = vld [vmem:[%s4710_s1 + $0x200] sm:$0xff] }
 0x18b   : > { %v1705_v22 = vpop.f32.mrf.mxu1  ;;  %2440 = vmatpush.bf16.msra.mxu0 %v3632_v60 }
 0x18c   : > { %v1525_v18 = vadd.f32 %v1448_v20, %v1271_v8  ;;  %982 = vmatmul.bf16.gmra.mxu2 %v1092_v16  ;;  %1490 = vmatmul.bf16.gmra.mxu0 %v1347_v0  ;;  %v1326_v20 = vld [vmem:[%s3821_s12 + $0xf3] sm:$0xff] }
 0x18d   : > { %1236 = vmatmul.bf16.gmra.mxu3 %v1093_v63  ;;  %v1348_v59 = vpack.c.bf16 %v1327_v57, %v1326_v20  ;;  %v1582_v20 = vld [vmem:[%s3821_s12 + $0x104] sm:$0xff]  ;;  %v1583_v57 = vld [vmem:[%s3821_s12 + $0x10c] sm:$0xff] }
 0x18e   : > { %1744 = vmatmul.bf16.gmra.mxu1 %v1601_v50  ;;  %v4258_v25 = vadd.f32 %v1702_v2, %v1525_v18 }
 0x18f   : > { %v943_v14 = vpop.f32.mrf.mxu2 }
 0x190   : > { %v1197_v29 = vpop.f32.mrf.mxu3  ;;  %v1018_v48 = vadd.f32 %v943_v14, %v4102_v32 }
 0x191   : > { %v1453_v24 = vpop.f32.mrf.mxu0 }
 0x192   : > { %v1272_v35 = vadd.f32 %v1197_v29, %v1018_v48 }
 0x193   : > { %v1707_v39 = vpop.f32.mrf.mxu1 }
 0x194   : > { %v1526_v41 = vadd.f32 %v1451_v58, %v1272_v35  ;;  %v3624_v58 = vld [vmem:[%s4710_s1 + $0x1c0] sm:$0xff] }
 0x195   : > { %2186 = vmatpush.bf16.msra.mxu3 %v3624_v58 }
 0x196   : > { %v4264_v16 = vadd.f32 %v1705_v22, %v1526_v41  ;;  %v1328_v41 = vld [vmem:[%s3821_s12 + $0x103] sm:$0xff] }
 0x197   : > { %v945_v1 = vpop.f32.mrf.mxu2 }
 0x198   : > { %v1199_v28 = vpop.f32.mrf.mxu3  ;;  %v1019_v2 = vadd.f32 %v945_v1, %v4106_v43  ;;  %v3616_v43 = vld [vmem:[%s4710_s1 + $0x180] sm:$0xff] }
 0x199   : > { %v1456_v5 = vpop.f32.mrf.mxu0  ;;  %1932 = vmatpush.bf16.msra.mxu2 %v3616_v43 }
 0x19a   : > { %v1273_v32 = vadd.f32 %v1199_v28, %v1019_v2  ;;  %v1349_v2 = vpack.c.bf16 %v1329_v52, %v1328_v41  ;;  %v1584_v41 = vld [vmem:[%s3821_s12 + $0x114] sm:$0xff]  ;;  %v1585_v52 = vld [vmem:[%s3821_s12 + $0x11c] sm:$0xff] }
 0x19b   : > { %v1710_v0 = vpop.f32.mrf.mxu1 }
 0x19c   : > { %v1527_v50 = vadd.f32 %v1453_v24, %v1273_v32  ;;  %987 = vmatmul.bf16.gmra.mxu2 %v1093_v63  ;;  %1495 = vmatmul.bf16.gmra.mxu0 %v1348_v59  ;;  %v1074_v24 = vld [vmem:[%s3821_s12 + $0x102] sm:$0xff]  ;;  %v1603_v59 = vpack.c.bf16 %v1583_v57, %v1582_v20 }
 0x19d   : > { %1241 = vmatmul.bf16.gmra.mxu3 %v1094_v12 }
 0x19e   : > { %1749 = vmatmul.bf16.gmra.mxu1 %v1602_v42  ;;  %v4270_v8 = vadd.f32 %v1707_v39, %v1527_v50  ;;  %v1075_v39 = vld [vmem:[%s3821_s12 + $0x10a] sm:$0xff] }
 0x19f   : > { %v948_v63 = vpop.f32.mrf.mxu2  ;;  %v1095_v28 = vpack.c.bf16 %v1075_v39, %v1074_v24  ;;  %v1077_v24 = vld [vmem:[%s3821_s12 + $0x11a] sm:$0xff] }
 0x1a0   : > { %v1202_v22 = vpop.f32.mrf.mxu3  ;;  %v1020_v18 = vadd.f32 %v948_v63, %v4122_v3  ;;  %v1331_v39 = vld [vmem:[%s3821_s12 + $0x11b] sm:$0xff] }
 0x1a1   : > { %v1458_v29 = vpop.f32.mrf.mxu0 }
 0x1a2   : > { %v1274_v14 = vadd.f32 %v1202_v22, %v1020_v18 }
 0x1a3   : > { %v1712_v48 = vpop.f32.mrf.mxu1 }
 0x1a4   : > { %v1528_v35 = vadd.f32 %v1456_v5, %v1274_v14 }
 0x1a6   : > { %v4283_v54 = vadd.f32 %v1710_v0, %v1528_v35  ;;  %v1076_v35 = vld [vmem:[%s3821_s12 + $0x112] sm:$0xff] }
 0x1a7   : > { %v950_v31 = vpop.f32.mrf.mxu2  ;;  %v1096_v60 = vpack.c.bf16 %v1077_v24, %v1076_v35  ;;  %v1333_v35 = vld [vmem:[%s3821_s12 + $0x12b] sm:$0xff] }
 0x1a8   : > { %v1204_v3 = vpop.f32.mrf.mxu3  ;;  %v1021_v1 = vadd.f32 %v950_v31, %v4129_v13  ;;  %v1586_v24 = vld [vmem:[%s3821_s12 + $0x124] sm:$0xff] }
 0x1a9   : > { %v1461_v32 = vpop.f32.mrf.mxu0 }
 0x1aa   : > { %v1275_v42 = vadd.f32 %v1204_v3, %v1021_v1  ;;  %v1604_v3 = vpack.c.bf16 %v1585_v52, %v1584_v41 }
 0x1ab   : > { %v1715_v5 = vpop.f32.mrf.mxu1 }
 0x1ac   : > { %v1529_v0 = vadd.f32 %v1458_v29, %v1275_v42  ;;  %992 = vmatmul.bf16.gmra.mxu2 %v1094_v12  ;;  %1500 = vmatmul.bf16.gmra.mxu0 %v1349_v2  ;;  %v1330_v29 = vld [vmem:[%s3821_s12 + $0x113] sm:$0xff] }
 0x1ad   : > { %1246 = vmatmul.bf16.gmra.mxu3 %v1095_v28  ;;  %v1350_v31 = vpack.c.bf16 %v1331_v39, %v1330_v29  ;;  %v1587_v29 = vld [vmem:[%s3821_s12 + $0x12c] sm:$0xff] }
 0x1ae   : > { %1754 = vmatmul.bf16.gmra.mxu1 %v1603_v59  ;;  %v4291_v50 = vadd.f32 %v1712_v48, %v1529_v0 }
 0x1af   : > { %v953_v13 = vpop.f32.mrf.mxu2 }
 0x1b0   : > { %v1207_v43 = vpop.f32.mrf.mxu3  ;;  %v1022_v58 = vadd.f32 %v953_v13, %v4139_v36 }
 0x1b1   : > { %v1463_v22 = vpop.f32.mrf.mxu0 }
 0x1b2   : > { %v1276_v63 = vadd.f32 %v1207_v43, %v1022_v58 }
 0x1b3   : > { %v1717_v18 = vpop.f32.mrf.mxu1 }
 0x1b4   : > { %v1530_v14 = vadd.f32 %v1461_v32, %v1276_v63  ;;  %v1078_v63 = vld [vmem:[%s3821_s12 + $0x122] sm:$0xff] }
 0x1b6   : > { %v4297_v12 = vadd.f32 %v1715_v5, %v1530_v14  ;;  %v1079_v14 = vld [vmem:[%s3821_s12 + $0x12a] sm:$0xff] }
 0x1b7   : > { %v955_v20 = vpop.f32.mrf.mxu2  ;;  %v1097_v52 = vpack.c.bf16 %v1079_v14, %v1078_v63  ;;  %v2608_v14 = vld [vmem:[%s4323_s13 + $0x13] sm:$0xff] }
 0x1b8   : > { %v1209_v57 = vpop.f32.mrf.mxu3  ;;  %v1023_v48 = vadd.f32 %v955_v20, %v4143_v49 }
 0x1b9   : > { %v1466_v1 = vpop.f32.mrf.mxu0 }
 0x1ba   : > { %v1277_v36 = vadd.f32 %v1209_v57, %v1023_v48  ;;  %v1605_v57 = vpack.c.bf16 %v1587_v29, %v1586_v24 }
 0x1bb   : > { %v1720_v2 = vpop.f32.mrf.mxu1 }
 0x1bc   : > { %v1531_v59 = vadd.f32 %v1463_v22, %v1277_v36  ;;  %997 = vmatmul.bf16.gmra.mxu2 %v1095_v28  ;;  %1505 = vmatmul.bf16.gmra.mxu0 %v1350_v31  ;;  %v1332_v22 = vld [vmem:[%s3821_s12 + $0x123] sm:$0xff] }
 0x1bd   : > { %1251 = vmatmul.bf16.gmra.mxu3 %v1096_v60  ;;  %v1351_v20 = vpack.c.bf16 %v1333_v35, %v1332_v22  ;;  %v2609_v22 = vld [vmem:[%s4323_s13 + $0x1b] sm:$0xff] }
 0x1be   : > { %1759 = vmatmul.bf16.gmra.mxu1 %v1604_v3  ;;  %v4303_v42 = vadd.f32 %v1717_v18, %v1531_v59 }
 0x1bf   : > { %v958_v49 = vpop.f32.mrf.mxu2 }
 0x1c0   : > { %v1212_v32 = vpop.f32.mrf.mxu3  ;;  %v1024_v5 = vadd.f32 %v958_v49, %v4153_v10 }
 0x1c1   : > { %v1468_v13 = vpop.f32.mrf.mxu0 }
 0x1c2   : > { %v1278_v0 = vadd.f32 %v1212_v32, %v1024_v5  ;;  %v1806_v5 = vld [vmem:[%s3821_s12 + $0x24] sm:$0xff] }
 0x1c3   : > { %v1722_v43 = vpop.f32.mrf.mxu1 }
 0x1c4   : > { %v1532_v58 = vadd.f32 %v1466_v1, %v1278_v0  ;;  %v1807_v0 = vld [vmem:[%s3821_s12 + $0x2c] sm:$0xff] }
 0x1c6   : > { %v4309_v28 = vadd.f32 %v1720_v2, %v1532_v58  ;;  %v2314_v58 = vld [vmem:[%s3821_s12 + $0x26] sm:$0xff] }
 0x1c7   : > { %v960_v39 = vpop.f32.mrf.mxu2 }
 0x1c8   : > { %v1214_v41 = vpop.f32.mrf.mxu3  ;;  %v1025_v18 = vadd.f32 %v960_v39, %v4163_v23  ;;  %v1842_v39 = vpack.c.bf16 %v1807_v0, %v1806_v5  ;;  %v1809_v5 = vld [vmem:[%s3821_s12 + $0x3c] sm:$0xff] }
 0x1c9   : > { %v1471_v48 = vpop.f32.mrf.mxu0  ;;  %v2062_v0 = vld [vmem:[%s3821_s12 + $0x35] sm:$0xff] }
 0x1ca   : > { %v1279_v10 = vadd.f32 %v1214_v41, %v1025_v18 }
 0x1cb   : > { %v1725_v31 = vpop.f32.mrf.mxu1 }
 0x1cc   : > { %v1533_v3 = vadd.f32 %v1468_v13, %v1279_v10  ;;  %1002 = vmatmul.bf16.gmra.mxu2 %v1096_v60  ;;  %1510 = vmatmul.bf16.gmra.mxu0 %v1351_v20  ;;  %v2060_v13 = vld [vmem:[%s3821_s12 + $0x25] sm:$0xff] }
 0x1cd   : > { %1256 = vmatmul.bf16.gmra.mxu3 %v1097_v52  ;;  %v2644_v52 = vpack.c.bf16 %v2609_v22, %v2608_v14  ;;  %v2610_v14 = vld [vmem:[%s4323_s13 + $0x23] sm:$0xff] }
 0x1ce   : > { %1764 = vmatmul.bf16.gmra.mxu1 %v1605_v57  ;;  %v4315_v36 = vadd.f32 %v1722_v43, %v1533_v3  ;;  %v2061_v43 = vld [vmem:[%s3821_s12 + $0x2d] sm:$0xff] }
 0x1cf   : > { %v963_v23 = vpop.f32.mrf.mxu2  ;;  %v2096_v41 = vpack.c.bf16 %v2061_v43, %v2060_v13  ;;  %v2063_v13 = vld [vmem:[%s3821_s12 + $0x3d] sm:$0xff] }
 0x1d0   : > { %v1217_v1 = vpop.f32.mrf.mxu3  ;;  %v1026_v2 = vadd.f32 %v963_v23, %v4011_v37  ;;  %v2315_v37 = vld [vmem:[%s3821_s12 + $0x2e] sm:$0xff]  ;;  %v2316_v43 = vld [vmem:[%s3821_s12 + $0x36] sm:$0xff] }
 0x1d1   : > { %v1473_v49 = vpop.f32.mrf.mxu0  ;;  %v2350_v18 = vpack.c.bf16 %v2315_v37, %v2314_v58  ;;  %v2317_v37 = vld [vmem:[%s3821_s12 + $0x3e] sm:$0xff] }
 0x1d2   : > { %v1280_v59 = vadd.f32 %v1217_v1, %v1026_v2 }
 0x1d3   : > { %v1727_v32 = vpop.f32.mrf.mxu1 }
 0x1d4   : > { %v1534_v60 = vadd.f32 %v1471_v48, %v1280_v59 }
 0x1d6   : > { %v4330_v63 = vadd.f32 %v1725_v31, %v1534_v60  ;;  %v1808_v60 = vld [vmem:[%s3821_s12 + $0x34] sm:$0xff] }
 0x1d7   : > { %v965_v35 = vpop.f32.mrf.mxu2 }
 0x1d8   : > { %v1219_v24 = vpop.f32.mrf.mxu3  ;;  %v1027_v29 = vadd.f32 %v965_v35, %v4023_v51 }
 0x1d9   : > { %v1476_v57 = vpop.f32.mrf.mxu0 }
 0x1da   : > { %v1281_v20 = vadd.f32 %v1219_v24, %v1027_v29  ;;  %v1843_v29 = vpack.c.bf16 %v1809_v5, %v1808_v60  ;;  %v1811_v60 = vld [vmem:[%s3821_s12 + $0x4c] sm:$0xff] }
 0x1db   : > { %v1730_v10 = vpop.f32.mrf.mxu1  ;;  %v2064_v5 = vld [vmem:[%s3821_s12 + $0x45] sm:$0xff] }
 0x1dc   : > { %v1535_v48 = vadd.f32 %v1473_v49, %v1281_v20  ;;  %1933 = vmatmul.bf16.vlgmr.msra.gmra.mxu2 %v1842_v39  ;;  %2441 = vmatmul.bf16.vlgmr.msra.gmra.mxu0 %v2350_v18  ;;  %v2351_v39 = vpack.c.bf16 %v2317_v37, %v2316_v43  ;;  %v2319_v37 = vld [vmem:[%s3821_s12 + $0x4e] sm:$0xff] }
 0x1dd   : > { %2187 = vmatmul.bf16.vlgmr.msra.gmra.mxu3 %v2096_v41 }
 0x1de   : > { %3548 = vmatmul.msk.bf16.vlgmr.msra.gmra.mxu1 %vm2694_vm0, %v2644_v52  ;;  %v4337_v51 = vadd.f32 %v1727_v32, %v1535_v48  ;;  %v2611_v32 = vld [vmem:[%s4323_s13 + $0x2b] sm:$0xff] }
 0x1df   : > { %v968_v31 = vpop.f32.mrf.mxu2  ;;  %v2645_v41 = vpack.c.bf16 %v2611_v32, %v2610_v14  ;;  %v2612_v14 = vld [vmem:[%s4323_s13 + $0x33] sm:$0xff] }
 0x1e0   : > { %v1222_v3 = vpop.f32.mrf.mxu3  ;;  %v1028_v23 = vadd.f32 %v968_v31, %v4027_v61  ;;  %v2097_v61 = vpack.c.bf16 %v2063_v13, %v2062_v0  ;;  %v2065_v0 = vld [vmem:[%s3821_s12 + $0x4d] sm:$0xff] }
 0x1e1   : > { %v1478_v2 = vpop.f32.mrf.mxu0  ;;  %v2318_v13 = vld [vmem:[%s3821_s12 + $0x46] sm:$0xff] }
 0x1e2   : > { %v1282_v1 = vadd.f32 %v1222_v3, %v1028_v23 }
 0x1e3   : > { %v1732_v59 = vpop.f32.mrf.mxu1 }
 0x1e4   : > { %v1536_v49 = vadd.f32 %v1476_v57, %v1282_v1 }
 0x1e6   : > { %v4345_v58 = vadd.f32 %v1730_v10, %v1536_v49  ;;  %v1810_v49 = vld [vmem:[%s3821_s12 + $0x44] sm:$0xff] }
 0x1e7   : > { %v970_v22 = vpop.f32.mrf.mxu2 }
 0x1e8   : > { %v1224_v35 = vpop.f32.mrf.mxu3  ;;  %v1029_v24 = vadd.f32 %v970_v22, %v4043_v11 }
 0x1e9   : > { %v1481_v52 = vpop.f32.mrf.mxu0 }
 0x1ea   : > { %v1283_v18 = vadd.f32 %v1224_v35, %v1029_v24  ;;  %v1844_v24 = vpack.c.bf16 %v1811_v60, %v1810_v49  ;;  %v1813_v49 = vld [vmem:[%s3821_s12 + $0x5c] sm:$0xff] }
 0x1eb   : > { %v1735_v20 = vpop.f32.mrf.mxu1  ;;  %v2066_v60 = vld [vmem:[%s3821_s12 + $0x55] sm:$0xff] }
 0x1ec   : > { %v1537_v57 = vadd.f32 %v1478_v2, %v1283_v18  ;;  %1938 = vmatmul.bf16.gmra.mxu2 %v1843_v29  ;;  %2446 = vmatmul.bf16.gmra.mxu0 %v2351_v39  ;;  %v2352_v29 = vpack.c.bf16 %v2319_v37, %v2318_v13  ;;  %v2321_v37 = vld [vmem:[%s3821_s12 + $0x5e] sm:$0xff] }
 0x1ed   : > { %2192 = vmatmul.bf16.gmra.mxu3 %v2097_v61 }
 0x1ee   : > { %3549 = vmatmul.msk.bf16.gmra.mxu1 %vm2694_vm0, %v2645_v41  ;;  %v4352_v11 = vadd.f32 %v1732_v59, %v1537_v57  ;;  %v2613_v59 = vld [vmem:[%s4323_s13 + $0x3b] sm:$0xff] }
 0x1ef   : > { %v973_v10 = vpop.f32.mrf.mxu2  ;;  %v2646_v61 = vpack.c.bf16 %v2613_v59, %v2612_v14  ;;  %v2614_v14 = vld [vmem:[%s4323_s13 + $0x43] sm:$0xff] }
 0x1f0   : > { %v1227_v48 = vpop.f32.mrf.mxu3  ;;  %v1030_v31 = vadd.f32 %v973_v10, %v4050_v21  ;;  %v2098_v21 = vpack.c.bf16 %v2065_v0, %v2064_v5  ;;  %v2067_v5 = vld [vmem:[%s3821_s12 + $0x5d] sm:$0xff] }
 0x1f1   : > { %v1483_v23 = vpop.f32.mrf.mxu0  ;;  %v2320_v0 = vld [vmem:[%s3821_s12 + $0x56] sm:$0xff] }
 0x1f2   : > { %v1284_v3 = vadd.f32 %v1227_v48, %v1030_v31 }
 0x1f3   : > { %v1737_v1 = vpop.f32.mrf.mxu1 }
 0x1f4   : > { %v1538_v2 = vadd.f32 %v1481_v52, %v1284_v3 }
 0x1f6   : > { %v4360_v43 = vadd.f32 %v1735_v20, %v1538_v2  ;;  %v1812_v2 = vld [vmem:[%s3821_s12 + $0x54] sm:$0xff] }
 0x1f7   : > { %v975_v32 = vpop.f32.mrf.mxu2 }
 0x1f8   : > { %v1229_v22 = vpop.f32.mrf.mxu3  ;;  %v1031_v35 = vadd.f32 %v975_v32, %v4060_v33 }
 0x1f9   : > { %v1486_v41 = vpop.f32.mrf.mxu0 }
 0x1fa   : > { %v1285_v39 = vadd.f32 %v1229_v22, %v1031_v35  ;;  %v1845_v35 = vpack.c.bf16 %v1813_v49, %v1812_v2  ;;  %v1815_v2 = vld [vmem:[%s3821_s12 + $0x6c] sm:$0xff] }
 0x1fb   : > { %v1740_v18 = vpop.f32.mrf.mxu1  ;;  %v2068_v49 = vld [vmem:[%s3821_s12 + $0x65] sm:$0xff] }
 0x1fc   : > { %v1539_v52 = vadd.f32 %v1483_v23, %v1285_v39  ;;  %1943 = vmatmul.bf16.gmra.mxu2 %v1844_v24  ;;  %2451 = vmatmul.bf16.gmra.mxu0 %v2352_v29  ;;  %v2353_v24 = vpack.c.bf16 %v2321_v37, %v2320_v0  ;;  %v2323_v37 = vld [vmem:[%s3821_s12 + $0x6e] sm:$0xff] }
 0x1fd   : > { %2197 = vmatmul.bf16.gmra.mxu3 %v2098_v21 }
 0x1fe   : > { %3550 = vmatmul.msk.bf16.gmra.mxu1 %vm2694_vm0, %v2646_v61  ;;  %v4367_v33 = vadd.f32 %v1737_v1, %v1539_v52  ;;  %v2615_v1 = vld [vmem:[%s4323_s13 + $0x4b] sm:$0xff] }
 0x1ff   : > { %v978_v20 = vpop.f32.mrf.mxu2  ;;  %v2647_v21 = vpack.c.bf16 %v2615_v1, %v2614_v14  ;;  %v2616_v14 = vld [vmem:[%s4323_s13 + $0x53] sm:$0xff] }
 0x200   : > { %v1232_v57 = vpop.f32.mrf.mxu3  ;;  %v1032_v10 = vadd.f32 %v978_v20, %v4064_v45  ;;  %v2099_v45 = vpack.c.bf16 %v2067_v5, %v2066_v60  ;;  %v2069_v60 = vld [vmem:[%s3821_s12 + $0x6d] sm:$0xff] }
 0x201   : > { %v1488_v31 = vpop.f32.mrf.mxu0  ;;  %v2322_v5 = vld [vmem:[%s3821_s12 + $0x66] sm:$0xff] }
 0x202   : > { %v1286_v48 = vadd.f32 %v1232_v57, %v1032_v10 }
 0x203   : > { %v1742_v3 = vpop.f32.mrf.mxu1 }
 0x204   : > { %v1540_v23 = vadd.f32 %v1486_v41, %v1286_v48 }
 0x206   : > { %v4375_v13 = vadd.f32 %v1740_v18, %v1540_v23  ;;  %v1814_v23 = vld [vmem:[%s3821_s12 + $0x64] sm:$0xff] }
 0x207   : > { %v980_v59 = vpop.f32.mrf.mxu2 }
 0x208   : > { %v1234_v32 = vpop.f32.mrf.mxu3  ;;  %v1033_v22 = vadd.f32 %v980_v59, %v4080_v62 }
 0x209   : > { %v1491_v61 = vpop.f32.mrf.mxu0 }
 0x20a   : > { %v1287_v29 = vadd.f32 %v1234_v32, %v1033_v22  ;;  %v1846_v22 = vpack.c.bf16 %v1815_v2, %v1814_v23  ;;  %v1817_v23 = vld [vmem:[%s3821_s12 + $0x7c] sm:$0xff] }
 0x20b   : > { %v1745_v39 = vpop.f32.mrf.mxu1  ;;  %v2070_v2 = vld [vmem:[%s3821_s12 + $0x75] sm:$0xff] }
 0x20c   : > { %v1541_v41 = vadd.f32 %v1488_v31, %v1287_v29  ;;  %1948 = vmatmul.bf16.gmra.mxu2 %v1845_v35  ;;  %2456 = vmatmul.bf16.gmra.mxu0 %v2353_v24  ;;  %v2354_v35 = vpack.c.bf16 %v2323_v37, %v2322_v5  ;;  %v2325_v37 = vld [vmem:[%s3821_s12 + $0x7e] sm:$0xff] }
 0x20d   : > { %2202 = vmatmul.bf16.gmra.mxu3 %v2099_v45 }
 0x20e   : > { %3551 = vmatmul.msk.bf16.gmra.mxu1 %vm2694_vm0, %v2647_v21  ;;  %v4382_v62 = vadd.f32 %v1742_v3, %v1541_v41  ;;  %v2617_v3 = vld [vmem:[%s4323_s13 + $0x5b] sm:$0xff] }
 0x20f   : > { %v983_v18 = vpop.f32.mrf.mxu2  ;;  %v2648_v45 = vpack.c.bf16 %v2617_v3, %v2616_v14  ;;  %v2618_v14 = vld [vmem:[%s4323_s13 + $0x63] sm:$0xff] }
 0x210   : > { %v1237_v52 = vpop.f32.mrf.mxu3  ;;  %v1034_v20 = vadd.f32 %v983_v18, %v4087_v9  ;;  %v2100_v9 = vpack.c.bf16 %v2069_v60, %v2068_v49  ;;  %v2071_v49 = vld [vmem:[%s3821_s12 + $0x7d] sm:$0xff] }
 0x211   : > { %v1493_v10 = vpop.f32.mrf.mxu0  ;;  %v2324_v60 = vld [vmem:[%s3821_s12 + $0x76] sm:$0xff] }
 0x212   : > { %v1288_v57 = vadd.f32 %v1237_v52, %v1034_v20 }
 0x213   : > { %v1747_v48 = vpop.f32.mrf.mxu1 }
 0x214   : > { %v1542_v31 = vadd.f32 %v1491_v61, %v1288_v57 }
 0x216   : > { %v4390_v0 = vadd.f32 %v1745_v39, %v1542_v31  ;;  %v1816_v31 = vld [vmem:[%s3821_s12 + $0x74] sm:$0xff] }
 0x217   : > { %v985_v1 = vpop.f32.mrf.mxu2 }
 0x218   : > { %v1239_v59 = vpop.f32.mrf.mxu3  ;;  %v1035_v32 = vadd.f32 %v985_v1, %v4100_v26 }
 0x219   : > { %v1496_v21 = vpop.f32.mrf.mxu0 }
 0x21a   : > { %v1289_v24 = vadd.f32 %v1239_v59, %v1035_v32  ;;  %v1847_v32 = vpack.c.bf16 %v1817_v23, %v1816_v31  ;;  %v1819_v31 = vld [vmem:[%s3821_s12 + $0x8c] sm:$0xff] }
 0x21b   : > { %v1750_v29 = vpop.f32.mrf.mxu1  ;;  %v2072_v23 = vld [vmem:[%s3821_s12 + $0x85] sm:$0xff] }
 0x21c   : > { %v1543_v61 = vadd.f32 %v1493_v10, %v1289_v24  ;;  %1953 = vmatmul.bf16.gmra.mxu2 %v1846_v22  ;;  %2461 = vmatmul.bf16.gmra.mxu0 %v2354_v35  ;;  %v2355_v22 = vpack.c.bf16 %v2325_v37, %v2324_v60  ;;  %v2327_v37 = vld [vmem:[%s3821_s12 + $0x8e] sm:$0xff] }
 0x21d   : > { %2207 = vmatmul.bf16.gmra.mxu3 %v2100_v9 }
 0x21e   : > { %3552 = vmatmul.msk.bf16.gmra.mxu1 %vm2694_vm0, %v2648_v45  ;;  %v4397_v26 = vadd.f32 %v1747_v48, %v1543_v61  ;;  %v2619_v48 = vld [vmem:[%s4323_s13 + $0x6b] sm:$0xff] }
 0x21f   : > { %v988_v39 = vpop.f32.mrf.mxu2  ;;  %v2649_v9 = vpack.c.bf16 %v2619_v48, %v2618_v14  ;;  %v2620_v14 = vld [vmem:[%s4323_s13 + $0x73] sm:$0xff] }
 0x220   : > { %v1242_v41 = vpop.f32.mrf.mxu3  ;;  %v1036_v18 = vadd.f32 %v988_v39, %v4104_v38  ;;  %v2101_v38 = vpack.c.bf16 %v2071_v49, %v2070_v2  ;;  %v2073_v2 = vld [vmem:[%s3821_s12 + $0x8d] sm:$0xff] }
 0x221   : > { %v1498_v20 = vpop.f32.mrf.mxu0  ;;  %v2326_v49 = vld [vmem:[%s3821_s12 + $0x86] sm:$0xff] }
 0x222   : > { %v1290_v52 = vadd.f32 %v1242_v41, %v1036_v18 }
 0x223   : > { %v1752_v57 = vpop.f32.mrf.mxu1 }
 0x224   : > { %v1544_v10 = vadd.f32 %v1496_v21, %v1290_v52 }
 0x226   : > { %v4405_v5 = vadd.f32 %v1750_v29, %v1544_v10  ;;  %v1818_v10 = vld [vmem:[%s3821_s12 + $0x84] sm:$0xff] }
 0x227   : > { %v990_v3 = vpop.f32.mrf.mxu2 }
 0x228   : > { %v1244_v1 = vpop.f32.mrf.mxu3  ;;  %v1037_v59 = vadd.f32 %v990_v3, %v4114_v55 }
 0x229   : > { %v1501_v45 = vpop.f32.mrf.mxu0 }
 0x22a   : > { %v1291_v35 = vadd.f32 %v1244_v1, %v1037_v59  ;;  %v1848_v59 = vpack.c.bf16 %v1819_v31, %v1818_v10  ;;  %v1821_v10 = vld [vmem:[%s3821_s12 + $0x9c] sm:$0xff] }
 0x22b   : > { %v1755_v24 = vpop.f32.mrf.mxu1  ;;  %v2074_v31 = vld [vmem:[%s3821_s12 + $0x95] sm:$0xff] }
 0x22c   : > { %v1545_v21 = vadd.f32 %v1498_v20, %v1291_v35  ;;  %1958 = vmatmul.bf16.gmra.mxu2 %v1847_v32  ;;  %2466 = vmatmul.bf16.gmra.mxu0 %v2355_v22  ;;  %v2356_v32 = vpack.c.bf16 %v2327_v37, %v2326_v49  ;;  %v2329_v37 = vld [vmem:[%s3821_s12 + $0x9e] sm:$0xff] }
 0x22d   : > { %2212 = vmatmul.bf16.gmra.mxu3 %v2101_v38 }
 0x22e   : > { %3553 = vmatmul.msk.bf16.gmra.mxu1 %vm2694_vm0, %v2649_v9  ;;  %v4412_v55 = vadd.f32 %v1752_v57, %v1545_v21  ;;  %v2621_v57 = vld [vmem:[%s4323_s13 + $0x7b] sm:$0xff] }
 0x22f   : > { %v993_v29 = vpop.f32.mrf.mxu2  ;;  %v2650_v38 = vpack.c.bf16 %v2621_v57, %v2620_v14  ;;  %v2622_v14 = vld [vmem:[%s4323_s13 + $0x83] sm:$0xff] }
 0x230   : > { %v1247_v61 = vpop.f32.mrf.mxu3  ;;  %v1038_v39 = vadd.f32 %v993_v29, %v4124_v7  ;;  %v2102_v7 = vpack.c.bf16 %v2073_v2, %v2072_v23  ;;  %v2075_v23 = vld [vmem:[%s3821_s12 + $0x9d] sm:$0xff] }
 0x231   : > { %v1503_v18 = vpop.f32.mrf.mxu0  ;;  %v2328_v2 = vld [vmem:[%s3821_s12 + $0x96] sm:$0xff] }
 0x232   : > { %v1292_v41 = vadd.f32 %v1247_v61, %v1038_v39 }
 0x233   : > { %v1757_v52 = vpop.f32.mrf.mxu1 }
 0x234   : > { %v1546_v20 = vadd.f32 %v1501_v45, %v1292_v41 }
 0x236   : > { %v4420_v60 = vadd.f32 %v1755_v24, %v1546_v20  ;;  %v1820_v20 = vld [vmem:[%s3821_s12 + $0x94] sm:$0xff] }
 0x237   : > { %v995_v48 = vpop.f32.mrf.mxu2 }
 0x238   : > { %v1249_v3 = vpop.f32.mrf.mxu3  ;;  %v1039_v1 = vadd.f32 %v995_v48, %v4137_v27 }
 0x239   : > { %v1506_v9 = vpop.f32.mrf.mxu0 }
 0x23a   : > { %v1293_v22 = vadd.f32 %v1249_v3, %v1039_v1  ;;  %v1849_v1 = vpack.c.bf16 %v1821_v10, %v1820_v20  ;;  %v1823_v20 = vld [vmem:[%s3821_s12 + $0xac] sm:$0xff] }
 0x23b   : > { %v1760_v35 = vpop.f32.mrf.mxu1  ;;  %v2076_v10 = vld [vmem:[%s3821_s12 + $0xa5] sm:$0xff] }
 0x23c   : > { %v1547_v45 = vadd.f32 %v1503_v18, %v1293_v22  ;;  %1963 = vmatmul.bf16.gmra.mxu2 %v1848_v59  ;;  %2471 = vmatmul.bf16.gmra.mxu0 %v2356_v32  ;;  %v2357_v59 = vpack.c.bf16 %v2329_v37, %v2328_v2  ;;  %v2331_v37 = vld [vmem:[%s3821_s12 + $0xae] sm:$0xff] }
 0x23d   : > { %2217 = vmatmul.bf16.gmra.mxu3 %v2102_v7 }
 0x23e   : > { %3554 = vmatmul.msk.bf16.gmra.mxu1 %vm2694_vm0, %v2650_v38  ;;  %v4427_v27 = vadd.f32 %v1757_v52, %v1547_v45  ;;  %v2623_v52 = vld [vmem:[%s4323_s13 + $0x8b] sm:$0xff] }
 0x23f   : > { %v998_v24 = vpop.f32.mrf.mxu2  ;;  %v2651_v7 = vpack.c.bf16 %v2623_v52, %v2622_v14  ;;  %v2624_v14 = vld [vmem:[%s4323_s13 + $0x93] sm:$0xff] }
 0x240   : > { %v1252_v21 = vpop.f32.mrf.mxu3  ;;  %v1040_v29 = vadd.f32 %v998_v24, %v4141_v44  ;;  %v2103_v44 = vpack.c.bf16 %v2075_v23, %v2074_v31  ;;  %v2077_v31 = vld [vmem:[%s3821_s12 + $0xad] sm:$0xff] }
 0x241   : > { %v1508_v39 = vpop.f32.mrf.mxu0  ;;  %v2330_v23 = vld [vmem:[%s3821_s12 + $0xa6] sm:$0xff] }
 0x242   : > { %v1294_v61 = vadd.f32 %v1252_v21, %v1040_v29 }
 0x243   : > { %v1762_v41 = vpop.f32.mrf.mxu1 }
 0x244   : > { %v1548_v18 = vadd.f32 %v1506_v9, %v1294_v61 }
 0x246   : > { %v4435_v49 = vadd.f32 %v1760_v35, %v1548_v18  ;;  %v1822_v18 = vld [vmem:[%s3821_s12 + $0xa4] sm:$0xff] }
 0x247   : > { %v1000_v57 = vpop.f32.mrf.mxu2 }
 0x248   : > { %v1254_v48 = vpop.f32.mrf.mxu3  ;;  %v1041_v3 = vadd.f32 %v1000_v57, %v4151_v56 }
 0x249   : > { %v1511_v38 = vpop.f32.mrf.mxu0 }
 0x24a   : > { %v1295_v32 = vadd.f32 %v1254_v48, %v1041_v3  ;;  %v1850_v3 = vpack.c.bf16 %v1823_v20, %v1822_v18  ;;  %v1824_v18 = vld [vmem:[%s3821_s12 + $0xb4] sm:$0xff]  ;;  %v1825_v20 = vld [vmem:[%s3821_s12 + $0xbc] sm:$0xff] }
 0x24b   : > { %v1765_v22 = vpop.f32.mrf.mxu1 }
 0x24c   : > { %v1549_v9 = vadd.f32 %v1508_v39, %v1295_v32  ;;  %1968 = vmatmul.bf16.gmra.mxu2 %v1849_v1  ;;  %2476 = vmatmul.bf16.gmra.mxu0 %v2357_v59  ;;  %v2358_v1 = vpack.c.bf16 %v2331_v37, %v2330_v23  ;;  %v2333_v37 = vld [vmem:[%s3821_s12 + $0xbe] sm:$0xff] }
 0x24d   : > { %2222 = vmatmul.bf16.gmra.mxu3 %v2103_v44 }
 0x24e   : > { %3555 = vmatmul.msk.bf16.gmra.mxu1 %vm2694_vm0, %v2651_v7  ;;  %v4442_v56 = vadd.f32 %v1762_v41, %v1549_v9  ;;  %v2625_v41 = vld [vmem:[%s4323_s13 + $0x9b] sm:$0xff] }
 0x24f   : > { %v1003_v35 = vpop.f32.mrf.mxu2  ;;  %v2652_v44 = vpack.c.bf16 %v2625_v41, %v2624_v14  ;;  %v2626_v14 = vld [vmem:[%s4323_s13 + $0xa3] sm:$0xff]  ;;  %v2627_v41 = vld [vmem:[%s4323_s13 + $0xab] sm:$0xff] }
 0x250   : > { %v1257_v45 = vpop.f32.mrf.mxu3  ;;  %v1042_v24 = vadd.f32 %v1003_v35, %v4161_v19  ;;  %v2104_v19 = vpack.c.bf16 %v2077_v31, %v2076_v10  ;;  %v2078_v10 = vld [vmem:[%s3821_s12 + $0xb5] sm:$0xff] }
 0x251   : > { %v1513_v29 = vpop.f32.mrf.mxu0  ;;  %v2332_v31 = vld [vmem:[%s3821_s12 + $0xb6] sm:$0xff] }
 0x252   : > { %v1296_v21 = vadd.f32 %v1257_v45, %v1042_v24  ;;  %v4463_v24 = vld [vmem:[%s4711_s2] ss:$0 sm:$0xff] }
 0x253   : > { %v1767_v61 = vpop.f32.mrf.mxu1 }
 0x254   : > { %v1550_v39 = vadd.f32 %v1511_v38, %v1296_v21 }
 0x256   : > { %v4450_v2 = vadd.f32 %v1765_v22, %v1550_v39 }
 0x257   : > { %v1005_v52 = vpop.f32.mrf.mxu2 }
 0x258   : > { %v1259_v57 = vpop.f32.mrf.mxu3  ;;  %v1043_v48 = vadd.f32 %v1005_v52, %v4174_v47 }
 0x259   : > { %v2442_v7 = vpop.f32.mrf.mxu0 }
 0x25a   : > { %v1297_v59 = vadd.f32 %v1259_v57, %v1043_v48 }
 0x25b   : > { %v2758_v32 = vpop.f32.mrf.mxu1 }
 0x25c   : > { %v1551_v38 = vadd.f32 %v1513_v29, %v1297_v59  ;;  %1973 = vmatmul.bf16.gmra.mxu2 %v1850_v3  ;;  %2481 = vmatmul.bf16.gmra.mxu0 %v2358_v1  ;;  %v2653_v59 = vpack.c.bf16 %v2627_v41, %v2626_v14  ;;  %v2080_v14 = vld [vmem:[%s3821_s12 + $0xc5] sm:$0xff]  ;;  %v2081_v41 = vld [vmem:[%s3821_s12 + $0xcd] sm:$0xff] }
 0x25d   : > { %2227 = vmatmul.bf16.gmra.mxu3 %v2104_v19  ;;  %v1851_v19 = vpack.c.bf16 %v1825_v20, %v1824_v18 }
 0x25e   : > { %3556 = vmatmul.msk.bf16.gmra.mxu1 %vm2694_vm0, %v2652_v44  ;;  %v4457_v47 = vadd.f32 %v1767_v61, %v1551_v38  ;;  %v4468_v61 = vld [vmem:[%s4714_s5] ss:$0 sm:$0xff]  ;;  %v2359_v44 = vpack.c.bf16 %v2333_v37, %v2332_v31  ;;  %v1827_v37 = vld [vmem:[%s3821_s12 + $0xcc] sm:$0xff] }
 0x25f   : > { %v1934_v22 = vpop.f32.mrf.mxu2 }
 0x260   : > { %v2188_v9 = vpop.f32.mrf.mxu3  ;;  %v2024_v35 = vadd.f32 %v1934_v22, %v4183_v17  ;;  %v2079_v17 = vld [vmem:[%s3821_s12 + $0xbd] sm:$0xff] }
 0x261   : > { %v2444_v21 = vpop.f32.mrf.mxu0  ;;  %v2105_v1 = vpack.c.bf16 %v2079_v17, %v2078_v10 }
 0x262   : > { %v2278_v45 = vadd.f32 %v2188_v9, %v2024_v35 }
 0x263   : > { %v2760_v29 = vpop.f32.mrf.mxu1 }
 0x264   : > { %v2532_v39 = vadd.f32 %v2442_v7, %v2278_v45 }
 0x266   : > { %v2572_v23 = vadd.f32 %v4463_v24, %v2532_v39 }
 0x267   : > { %v1936_v52 = vpop.f32.mrf.mxu2 }
 0x268   : > { %v2190_v57 = vpop.f32.mrf.mxu3  ;;  %v2848_v48 = vadd.f32 %v2758_v32, %v2572_v23  ;;  %v2025_v3 = vadd.f32 %v1936_v52, %v4189_v53  ;;  %v1826_v23 = vld [vmem:[%s3821_s12 + $0xc4] sm:$0xff] }
 0x269   : > { %v2447_v22 = vpop.f32.mrf.mxu0  ;;  %v2334_v52 = vld [vmem:[%s3821_s12 + $0xc6] sm:$0xff] }
 0x26a   : > { %v2888_v7 = vadd.f32 %v4468_v61, %v2848_v48  ;;  %v2279_v38 = vadd.f32 %v2190_v57, %v2025_v3  ;;  %v2335_v48 = vld [vmem:[%s3821_s12 + $0xce] sm:$0xff]  ;;  %v2629_v3 = vld [vmem:[%s4323_s13 + $0xbb] sm:$0xff] }
 0x26b   : > { %v2763_v9 = vpop.f32.mrf.mxu1 }
 0x26c   : > { %2924 = vst [vmem:[%s4484_s20] sm:$0xff] %v2888_v7  ;;  %v2533_v32 = vadd.f32 %v2444_v21, %v2279_v38  ;;  %1978 = vmatmul.bf16.gmra.mxu2 %v1851_v19  ;;  %2486 = vmatmul.bf16.gmra.mxu0 %v2359_v44  ;;  %v2106_v7 = vpack.c.bf16 %v2081_v41, %v2080_v14  ;;  %v1828_v41 = vld [vmem:[%s3821_s12 + $0xd4] sm:$0xff] }
 0x26d   : > { %2232 = vmatmul.bf16.gmra.mxu3 %v2105_v1  ;;  %v2360_v38 = vpack.c.bf16 %v2335_v48, %v2334_v52  ;;  %v1829_v52 = vld [vmem:[%s3821_s12 + $0xdc] sm:$0xff] }
 0x26e   : > { %3557 = vmatmul.msk.bf16.gmra.mxu1 %vm2694_vm0, %v2653_v59  ;;  %v2573_v53 = vadd.f32 %v4463_v24, %v2533_v32  ;;  %v1852_v59 = vpack.c.bf16 %v1827_v37, %v1826_v23  ;;  %v2083_v48 = vld [vmem:[%s3821_s12 + $0xdd] sm:$0xff] }
 0x26f   : > { %v1939_v35 = vpop.f32.mrf.mxu2 }
 0x270   : > { %v2193_v45 = vpop.f32.mrf.mxu3  ;;  %v2849_v39 = vadd.f32 %v2760_v29, %v2573_v53  ;;  %v2026_v21 = vadd.f32 %v1939_v35, %v4197_v15  ;;  %v2628_v29 = vld [vmem:[%s4323_s13 + $0xb3] sm:$0xff] }
 0x271   : > { %v2449_v10 = vpop.f32.mrf.mxu0 }
 0x272   : > { %v2889_v18 = vadd.f32 %v4468_v61, %v2849_v39  ;;  %v2280_v20 = vadd.f32 %v2193_v45, %v2026_v21 }
 0x273   : > { %v2765_v17 = vpop.f32.mrf.mxu1 }
 0x274   : > { %2925 = vst [vmem:[%s4484_s20 + $0x8] sm:$0xff] %v2889_v18  ;;  %v2534_v31 = vadd.f32 %v2447_v22, %v2280_v20  ;;  %v2654_v22 = vpack.c.bf16 %v2629_v3, %v2628_v29  ;;  %v2336_v29 = vld [vmem:[%s3821_s12 + $0xd6] sm:$0xff] }
 0x276   : > { %v2574_v57 = vadd.f32 %v4463_v24, %v2534_v31 }
 0x277   : > { %v1941_v19 = vpop.f32.mrf.mxu2 }
 0x278   : > { %v2195_v15 = vpop.f32.mrf.mxu3  ;;  %v2850_v1 = vadd.f32 %v2763_v9, %v2574_v57  ;;  %v2027_v44 = vadd.f32 %v1941_v19, %v4207_v46  ;;  %v2082_v57 = vld [vmem:[%s3821_s12 + $0xd5] sm:$0xff]  ;;  %v2337_v19 = vld [vmem:[%s3821_s12 + $0xde] sm:$0xff] }
 0x279   : > { %v2452_v35 = vpop.f32.mrf.mxu0 }
 0x27a   : > { %v2890_v32 = vadd.f32 %v4468_v61, %v2850_v1  ;;  %v2281_v53 = vadd.f32 %v2195_v15, %v2027_v44  ;;  %v2631_v15 = vld [vmem:[%s4323_s13 + $0xcb] sm:$0xff] }
 0x27b   : > { %v2768_v45 = vpop.f32.mrf.mxu1 }
 0x27c   : > { %2926 = vst [vmem:[%s4484_s20 + $0x10] sm:$0xff] %v2890_v32  ;;  %v2535_v39 = vadd.f32 %v2449_v10, %v2281_v53  ;;  %1983 = vmatmul.bf16.gmra.mxu2 %v1852_v59  ;;  %2491 = vmatmul.bf16.gmra.mxu0 %v2360_v38  ;;  %v2107_v38 = vpack.c.bf16 %v2083_v48, %v2082_v57  ;;  %v1831_v57 = vld [vmem:[%s3821_s12 + $0xec] sm:$0xff] }
 0x27d   : > { %2237 = vmatmul.bf16.gmra.mxu3 %v2106_v7  ;;  %v1853_v7 = vpack.c.bf16 %v1829_v52, %v1828_v41  ;;  %v1830_v52 = vld [vmem:[%s3821_s12 + $0xe4] sm:$0xff] }
 0x27e   : > { %3558 = vmatmul.msk.bf16.gmra.mxu1 %vm2694_vm0, %v2654_v22  ;;  %v2575_v46 = vadd.f32 %v4463_v24, %v2535_v39  ;;  %v2361_v22 = vpack.c.bf16 %v2337_v19, %v2336_v29  ;;  %v2084_v48 = vld [vmem:[%s3821_s12 + $0xe5] sm:$0xff]  ;;  %v2085_v29 = vld [vmem:[%s3821_s12 + $0xed] sm:$0xff] }
 0x27f   : > { %v1944_v9 = vpop.f32.mrf.mxu2 }
 0x280   : > { %v2198_v21 = vpop.f32.mrf.mxu3  ;;  %v2851_v18 = vadd.f32 %v2765_v17, %v2575_v46  ;;  %v2028_v20 = vadd.f32 %v1944_v9, %v4216_v6  ;;  %v2630_v17 = vld [vmem:[%s4323_s13 + $0xc3] sm:$0xff] }
 0x281   : > { %v2454_v23 = vpop.f32.mrf.mxu0  ;;  %v2655_v32 = vpack.c.bf16 %v2631_v15, %v2630_v17  ;;  %v2339_v17 = vld [vmem:[%s3821_s12 + $0xee] sm:$0xff]  ;;  %v2633_v15 = vld [vmem:[%s4323_s13 + $0xdb] sm:$0xff] }
 0x282   : > { %v2891_v10 = vadd.f32 %v4468_v61, %v2851_v18  ;;  %v2282_v31 = vadd.f32 %v2198_v21, %v2028_v20 }
 0x283   : > { %v2770_v37 = vpop.f32.mrf.mxu1 }
 0x284   : > { %2927 = vst [vmem:[%s4484_s20 + $0x18] sm:$0xff] %v2891_v10  ;;  %v2536_v14 = vadd.f32 %v2452_v35, %v2282_v31 }
 0x286   : > { %v2576_v3 = vadd.f32 %v4463_v24, %v2536_v14 }
 0x287   : > { %v1946_v1 = vpop.f32.mrf.mxu2 }
 0x288   : > { %v2200_v6 = vpop.f32.mrf.mxu3  ;;  %v2852_v44 = vadd.f32 %v2768_v45, %v2576_v3  ;;  %v2029_v59 = vadd.f32 %v1946_v1, %v4222_v34  ;;  %v2338_v3 = vld [vmem:[%s3821_s12 + $0xe6] sm:$0xff] }
 0x289   : > { %v2457_v39 = vpop.f32.mrf.mxu0 }
 0x28a   : > { %v2892_v53 = vadd.f32 %v4468_v61, %v2852_v44  ;;  %v2283_v35 = vadd.f32 %v2200_v6, %v2029_v59  ;;  %v1854_v59 = vpack.c.bf16 %v1831_v57, %v1830_v52  ;;  %v1833_v52 = vld [vmem:[%s3821_s12 + $0xfc] sm:$0xff] }
 0x28b   : > { %v2773_v46 = vpop.f32.mrf.mxu1  ;;  %v2086_v57 = vld [vmem:[%s3821_s12 + $0xf5] sm:$0xff] }
 0x28c   : > { %2928 = vst [vmem:[%s4484_s20 + $0x20] sm:$0xff] %v2892_v53  ;;  %v2537_v9 = vadd.f32 %v2454_v23, %v2283_v35  ;;  %1988 = vmatmul.bf16.gmra.mxu2 %v1853_v7  ;;  %2496 = vmatmul.bf16.gmra.mxu0 %v2361_v22  ;;  %v2108_v7 = vpack.c.bf16 %v2085_v29, %v2084_v48  ;;  %v2087_v48 = vld [vmem:[%s3821_s12 + $0xfd] sm:$0xff] }
 0x28d   : > { %2242 = vmatmul.bf16.gmra.mxu3 %v2107_v38  ;;  %v2362_v38 = vpack.c.bf16 %v2339_v17, %v2338_v3  ;;  %v2340_v29 = vld [vmem:[%s3821_s12 + $0xf6] sm:$0xff]  ;;  %v2635_v17 = vld [vmem:[%s4323_s13 + $0xeb] sm:$0xff] }
 0x28e   : > { %3559 = vmatmul.msk.bf16.gmra.mxu1 %vm2694_vm0, %v2655_v32  ;;  %v2577_v34 = vadd.f32 %v4463_v24, %v2537_v9 }
 0x28f   : > { %v1949_v45 = vpop.f32.mrf.mxu2 }
 0x290   : > { %v2203_v21 = vpop.f32.mrf.mxu3  ;;  %v2853_v18 = vadd.f32 %v2770_v37, %v2577_v34  ;;  %v2030_v20 = vadd.f32 %v1949_v45, %v4230_v4  ;;  %v2632_v37 = vld [vmem:[%s4323_s13 + $0xd3] sm:$0xff] }
 0x291   : > { %v2459_v23 = vpop.f32.mrf.mxu0  ;;  %v2656_v22 = vpack.c.bf16 %v2633_v15, %v2632_v37 }
 0x292   : > { %v2893_v10 = vadd.f32 %v4468_v61, %v2853_v18  ;;  %v2284_v31 = vadd.f32 %v2203_v21, %v2030_v20 }
 0x293   : > { %v2775_v14 = vpop.f32.mrf.mxu1 }
 0x294   : > { %2929 = vst [vmem:[%s4484_s20 + $0x28] sm:$0xff] %v2893_v10  ;;  %v2538_v41 = vadd.f32 %v2457_v39, %v2284_v31 }
 0x296   : > { %v2578_v19 = vadd.f32 %v4463_v24, %v2538_v41  ;;  %v1832_v41 = vld [vmem:[%s3821_s12 + $0xf4] sm:$0xff] }
 0x297   : > { %v1951_v1 = vpop.f32.mrf.mxu2 }
 0x298   : > { %v2205_v4 = vpop.f32.mrf.mxu3  ;;  %v2854_v6 = vadd.f32 %v2773_v46, %v2578_v19  ;;  %v2031_v44 = vadd.f32 %v1951_v1, %v4240_v30  ;;  %v2341_v19 = vld [vmem:[%s3821_s12 + $0xfe] sm:$0xff] }
 0x299   : > { %v2462_v35 = vpop.f32.mrf.mxu0 }
 0x29a   : > { %v2894_v32 = vadd.f32 %v4468_v61, %v2854_v6  ;;  %v2285_v53 = vadd.f32 %v2205_v4, %v2031_v44  ;;  %v1855_v4 = vpack.c.bf16 %v1833_v52, %v1832_v41  ;;  %v2109_v6 = vpack.c.bf16 %v2087_v48, %v2086_v57  ;;  %v2089_v41 = vld [vmem:[%s3821_s12 + $0x10d] sm:$0xff] }
 0x29b   : > { %v2778_v39 = vpop.f32.mrf.mxu1  ;;  %v2363_v44 = vpack.c.bf16 %v2341_v19, %v2340_v29  ;;  %v2342_v52 = vld [vmem:[%s3821_s12 + $0x106] sm:$0xff]  ;;  %v2343_v48 = vld [vmem:[%s3821_s12 + $0x10e] sm:$0xff]  ;;  %v2637_v29 = vld [vmem:[%s4323_s13 + $0xfb] sm:$0xff] }
 0x29c   : > { %2930 = vst [vmem:[%s4484_s20 + $0x30] sm:$0xff] %v2894_v32  ;;  %v2539_v9 = vadd.f32 %v2459_v23, %v2285_v53  ;;  %1993 = vmatmul.bf16.gmra.mxu2 %v1854_v59  ;;  %2501 = vmatmul.bf16.gmra.mxu0 %v2362_v38 }
 0x29d   : > { %2247 = vmatmul.bf16.gmra.mxu3 %v2108_v7 }
 0x29e   : > { %3560 = vmatmul.msk.bf16.gmra.mxu1 %vm2694_vm0, %v2656_v22  ;;  %v2579_v30 = vadd.f32 %v4463_v24, %v2539_v9 }
 0x29f   : > { %v1954_v46 = vpop.f32.mrf.mxu2 }
 0x2a0   : > { %v2208_v34 = vpop.f32.mrf.mxu3  ;;  %v2855_v45 = vadd.f32 %v2775_v14, %v2579_v30  ;;  %v2032_v21 = vadd.f32 %v1954_v46, %v4250_v40  ;;  %v2634_v14 = vld [vmem:[%s4323_s13 + $0xe3] sm:$0xff] }
 0x2a1   : > { %v2464_v10 = vpop.f32.mrf.mxu0  ;;  %v2657_v59 = vpack.c.bf16 %v2635_v17, %v2634_v14 }
 0x2a2   : > { %v2895_v18 = vadd.f32 %v4468_v61, %v2855_v45  ;;  %v2286_v20 = vadd.f32 %v2208_v34, %v2032_v21 }
 0x2a3   : > { %v2780_v31 = vpop.f32.mrf.mxu1 }
 0x2a4   : > { %2931 = vst [vmem:[%s4484_s20 + $0x38] sm:$0xff] %v2895_v18  ;;  %v2540_v23 = vadd.f32 %v2462_v35, %v2286_v20  ;;  %v1834_v20 = vld [vmem:[%s3821_s12 + $0x104] sm:$0xff] }
 0x2a6   : > { %v2580_v3 = vadd.f32 %v4463_v24, %v2540_v23  ;;  %v2088_v23 = vld [vmem:[%s3821_s12 + $0x105] sm:$0xff] }
 0x2a7   : > { %v1956_v37 = vpop.f32.mrf.mxu2 }
 0x2a8   : > { %v2210_v40 = vpop.f32.mrf.mxu3  ;;  %v2856_v15 = vadd.f32 %v2778_v39, %v2580_v3  ;;  %v2033_v1 = vadd.f32 %v1956_v37, %v4258_v25  ;;  %v2110_v37 = vpack.c.bf16 %v2089_v41, %v2088_v23  ;;  %v2639_v23 = vld [vmem:[%s4323_s13 + $0x10b] sm:$0xff] }
 0x2a9   : > { %v2467_v22 = vpop.f32.mrf.mxu0 }
 0x2aa   : > { %v2896_v7 = vadd.f32 %v4468_v61, %v2856_v15  ;;  %v2287_v38 = vadd.f32 %v2210_v40, %v2033_v1  ;;  %v2364_v40 = vpack.c.bf16 %v2343_v48, %v2342_v52 }
 0x2ab   : > { %v2783_v32 = vpop.f32.mrf.mxu1 }
 0x2ac   : > { %2932 = vst [vmem:[%s4484_s20 + $0x40] sm:$0xff] %v2896_v7  ;;  %v2541_v53 = vadd.f32 %v2464_v10, %v2287_v38  ;;  %1998 = vmatmul.bf16.gmra.mxu2 %v1855_v4  ;;  %2506 = vmatmul.bf16.gmra.mxu0 %v2363_v44  ;;  %v1835_v10 = vld [vmem:[%s3821_s12 + $0x10c] sm:$0xff] }
 0x2ad   : > { %2252 = vmatmul.bf16.gmra.mxu3 %v2109_v6  ;;  %v1856_v17 = vpack.c.bf16 %v1835_v10, %v1834_v20  ;;  %v2345_v10 = vld [vmem:[%s3821_s12 + $0x11e] sm:$0xff] }
 0x2ae   : > { %3561 = vmatmul.msk.bf16.gmra.mxu1 %vm2694_vm0, %v2657_v59  ;;  %v2581_v25 = vadd.f32 %v4463_v24, %v2541_v53 }
 0x2af   : > { %v1959_v35 = vpop.f32.mrf.mxu2 }
 0x2b0   : > { %v2213_v39 = vpop.f32.mrf.mxu3  ;;  %v2857_v9 = vadd.f32 %v2780_v31, %v2581_v25  ;;  %v2034_v30 = vadd.f32 %v1959_v35, %v4264_v16  ;;  %v2636_v31 = vld [vmem:[%s4323_s13 + $0xf3] sm:$0xff] }
 0x2b1   : > { %v2469_v45 = vpop.f32.mrf.mxu0  ;;  %v2658_v15 = vpack.c.bf16 %v2637_v29, %v2636_v31 }
 0x2b2   : > { %v2897_v46 = vadd.f32 %v4468_v61, %v2857_v9  ;;  %v2288_v34 = vadd.f32 %v2213_v39, %v2034_v30  ;;  %v1836_v30 = vld [vmem:[%s3821_s12 + $0x114] sm:$0xff] }
 0x2b3   : > { %v2785_v21 = vpop.f32.mrf.mxu1 }
 0x2b4   : > { %2933 = vst [vmem:[%s4484_s20 + $0x48] sm:$0xff] %v2897_v46  ;;  %v2542_v18 = vadd.f32 %v2467_v22, %v2288_v34  ;;  %v1837_v46 = vld [vmem:[%s3821_s12 + $0x11c] sm:$0xff] }
 0x2b5   : > { %v2090_v34 = vld [vmem:[%s3821_s12 + $0x115] sm:$0xff]  ;;  %v1857_v48 = vpack.c.bf16 %v1837_v46, %v1836_v30 }
 0x2b6   : > { %v2582_v57 = vadd.f32 %v4463_v24, %v2542_v18  ;;  %v2344_v18 = vld [vmem:[%s3821_s12 + $0x116] sm:$0xff] }
 0x2b7   : > { %v1961_v3 = vpop.f32.mrf.mxu2  ;;  %v2365_v29 = vpack.c.bf16 %v2345_v10, %v2344_v18  ;;  %v2641_v30 = vld [vmem:[%s4323_s13 + $0x11b] sm:$0xff] }
 0x2b8   : > { %v2215_v16 = vpop.f32.mrf.mxu3  ;;  %v2858_v19 = vadd.f32 %v2783_v32, %v2582_v57  ;;  %v2035_v14 = vadd.f32 %v1961_v3, %v4270_v8 }
 0x2b9   : > { %v2472_v6 = vpop.f32.mrf.mxu0 }
 0x2ba   : > { %v2898_v1 = vadd.f32 %v4468_v61, %v2858_v19  ;;  %v2289_v4 = vadd.f32 %v2215_v16, %v2035_v14 }
 0x2bb   : > { %v2788_v44 = vpop.f32.mrf.mxu1 }
 0x2bc   : > { %2934 = vst [vmem:[%s4484_s20 + $0x50] sm:$0xff] %v2898_v1  ;;  %v2543_v59 = vadd.f32 %v2469_v45, %v2289_v4  ;;  %2003 = vmatmul.bf16.gmra.mxu2 %v1856_v17  ;;  %2511 = vmatmul.bf16.gmra.mxu0 %v2364_v40  ;;  %v2091_v45 = vld [vmem:[%s3821_s12 + $0x11d] sm:$0xff] }
 0x2bd   : > { %2257 = vmatmul.bf16.gmra.mxu3 %v2110_v37  ;;  %v2111_v31 = vpack.c.bf16 %v2091_v45, %v2090_v34 }
 0x2be   : > { %3562 = vmatmul.msk.bf16.gmra.mxu1 %vm2694_vm0, %v2658_v15  ;;  %v2583_v8 = vadd.f32 %v4463_v24, %v2543_v59 }
 0x2bf   : > { %v1964_v7 = vpop.f32.mrf.mxu2 }
 0x2c0   : > { %v2218_v38 = vpop.f32.mrf.mxu3  ;;  %v2859_v22 = vadd.f32 %v2785_v21, %v2583_v8  ;;  %v2036_v32 = vadd.f32 %v1964_v7, %v4283_v54  ;;  %v2638_v21 = vld [vmem:[%s4323_s13 + $0x103] sm:$0xff] }
 0x2c1   : > { %v2474_v35 = vpop.f32.mrf.mxu0  ;;  %v2659_v3 = vpack.c.bf16 %v2639_v23, %v2638_v21 }
 0x2c2   : > { %v2899_v53 = vadd.f32 %v4468_v61, %v2859_v22  ;;  %v2290_v25 = vadd.f32 %v2218_v38, %v2036_v32  ;;  %v1838_v38 = vld [vmem:[%s3821_s12 + $0x124] sm:$0xff]  ;;  %v1839_v22 = vld [vmem:[%s3821_s12 + $0x12c] sm:$0xff] }
 0x2c3   : > { %v2790_v39 = vpop.f32.mrf.mxu1  ;;  %v2092_v32 = vld [vmem:[%s3821_s12 + $0x125] sm:$0xff]  ;;  %v1858_v18 = vpack.c.bf16 %v1839_v22, %v1838_v38 }
 0x2c4   : > { %2935 = vst [vmem:[%s4484_s20 + $0x58] sm:$0xff] %v2899_v53  ;;  %v2544_v9 = vadd.f32 %v2472_v6, %v2290_v25  ;;  %v2093_v53 = vld [vmem:[%s3821_s12 + $0x12d] sm:$0xff] }
 0x2c5   : > { %v2346_v25 = vld [vmem:[%s3821_s12 + $0x126] sm:$0xff] }
 0x2c6   : > { %v2584_v20 = vadd.f32 %v4463_v24, %v2544_v9  ;;  %v2347_v9 = vld [vmem:[%s3821_s12 + $0x12e] sm:$0xff] }
 0x2c7   : > { %v1966_v41 = vpop.f32.mrf.mxu2  ;;  %v2366_v10 = vpack.c.bf16 %v2347_v9, %v2346_v25 }
 0x2c8   : > { %v2220_v54 = vpop.f32.mrf.mxu3  ;;  %v2860_v52 = vadd.f32 %v2788_v44, %v2584_v20  ;;  %v2037_v57 = vadd.f32 %v1966_v41, %v4291_v50  ;;  %v2112_v20 = vpack.c.bf16 %v2093_v53, %v2092_v32 }
 0x2c9   : > { %v2477_v14 = vpop.f32.mrf.mxu0 }
 0x2ca   : > { %v2900_v16 = vadd.f32 %v4468_v61, %v2860_v52  ;;  %v2291_v19 = vadd.f32 %v2220_v54, %v2037_v57 }
 0x2cb   : > { %v2793_v17 = vpop.f32.mrf.mxu1 }
 0x2cc   : > { %2936 = vst [vmem:[%s4484_s20 + $0x60] sm:$0xff] %v2900_v16  ;;  %v2545_v37 = vadd.f32 %v2474_v35, %v2291_v19  ;;  %2008 = vmatmul.bf16.gmra.mxu2 %v1857_v48  ;;  %2516 = vmatmul.bf16.gmra.mxu0 %v2365_v29 }
 0x2cd   : > { %2262 = vmatmul.bf16.gmra.mxu3 %v2111_v31 }
 0x2ce   : > { %3563 = vmatmul.msk.bf16.gmra.mxu1 %vm2694_vm0, %v2659_v3  ;;  %v2585_v50 = vadd.f32 %v4463_v24, %v2545_v37 }
 0x2cf   : > { %v1969_v40 = vpop.f32.mrf.mxu2 }
 0x2d0   : > { %v2223_v15 = vpop.f32.mrf.mxu3  ;;  %v2861_v1 = vadd.f32 %v2790_v39, %v2585_v50  ;;  %v2038_v4 = vadd.f32 %v1969_v40, %v4297_v12  ;;  %v2640_v39 = vld [vmem:[%s4323_s13 + $0x113] sm:$0xff]  ;;  %v1841_v40 = vld [vmem:[%s3821_s12 + $0x13c] sm:$0xff] }
 0x2d1   : > { %v2479_v59 = vpop.f32.mrf.mxu0  ;;  %v2660_v21 = vpack.c.bf16 %v2641_v30, %v2640_v39  ;;  %v1840_v50 = vld [vmem:[%s3821_s12 + $0x134] sm:$0xff] }
 0x2d2   : > { %v2901_v6 = vadd.f32 %v4468_v61, %v2861_v1  ;;  %v2292_v44 = vadd.f32 %v2223_v15, %v2038_v4  ;;  %v2094_v15 = vld [vmem:[%s3821_s12 + $0x135] sm:$0xff]  ;;  %v2095_v1 = vld [vmem:[%s3821_s12 + $0x13d] sm:$0xff]  ;;  %v1859_v32 = vpack.c.bf16 %v1841_v40, %v1840_v50 }
 0x2d3   : > { %v2795_v8 = vpop.f32.mrf.mxu1  ;;  %v2348_v4 = vld [vmem:[%s3821_s12 + $0x136] sm:$0xff]  ;;  %v2113_v53 = vpack.c.bf16 %v2095_v1, %v2094_v15 }
 0x2d4   : > { %2937 = vst [vmem:[%s4484_s20 + $0x68] sm:$0xff] %v2901_v6  ;;  %v2546_v7 = vadd.f32 %v2477_v14, %v2292_v44  ;;  %v2349_v44 = vld [vmem:[%s3821_s12 + $0x13e] sm:$0xff] }
 0x2d5   : > { %v2367_v25 = vpack.c.bf16 %v2349_v44, %v2348_v4 }
 0x2d6   : > { %v2586_v35 = vadd.f32 %v4463_v24, %v2546_v7 }
 0x2d7   : > { %v1971_v46 = vpop.f32.mrf.mxu2 }
 0x2d8   : > { %v2225_v12 = vpop.f32.mrf.mxu3  ;;  %v2862_v34 = vadd.f32 %v2793_v17, %v2586_v35  ;;  %v2039_v45 = vadd.f32 %v1971_v46, %v4303_v42 }
 0x2d9   : > { %v2482_v54 = vpop.f32.mrf.mxu0 }
 0x2da   : > { %v2902_v23 = vadd.f32 %v4468_v61, %v2862_v34  ;;  %v2293_v41 = vadd.f32 %v2225_v12, %v2039_v45 }
 0x2db   : > { %v2798_v52 = vpop.f32.mrf.mxu1 }
 0x2dc   : > { %2938 = vst [vmem:[%s4484_s20 + $0x70] sm:$0xff] %v2902_v23  ;;  %v2547_v57 = vadd.f32 %v2479_v59, %v2293_v41  ;;  %2013 = vmatmul.bf16.gmra.mxu2 %v1858_v18  ;;  %2521 = vmatmul.bf16.gmra.mxu0 %v2366_v10  ;;  %v2642_v59 = vld [vmem:[%s4323_s13 + $0x123] sm:$0xff] }
 0x2dd   : > { %2267 = vmatmul.bf16.gmra.mxu3 %v2112_v20 }
 0x2de   : > { %3564 = vmatmul.msk.bf16.gmra.mxu1 %vm2694_vm0, %v2660_v21  ;;  %v2587_v42 = vadd.f32 %v4463_v24, %v2547_v57 }
 0x2df   : > { %v1974_v48 = vpop.f32.mrf.mxu2 }
 0x2e0   : > { %v2228_v31 = vpop.f32.mrf.mxu3  ;;  %v2863_v29 = vadd.f32 %v2795_v8, %v2587_v42  ;;  %v2040_v3 = vadd.f32 %v1974_v48, %v4309_v28  ;;  %v2643_v8 = vld [vmem:[%s4323_s13 + $0x12b] sm:$0xff] }
 0x2e1   : > { %v2484_v14 = vpop.f32.mrf.mxu0  ;;  %v2661_v35 = vpack.c.bf16 %v2643_v8, %v2642_v59 }
 0x2e2   : > { %v2903_v16 = vadd.f32 %v4468_v61, %v2863_v29  ;;  %v2294_v19 = vadd.f32 %v2228_v31, %v2040_v3 }
 0x2e3   : > { %v2800_v17 = vpop.f32.mrf.mxu1 }
 0x2e4   : > { %2939 = vst [vmem:[%s4484_s20 + $0x78] sm:$0xff] %v2903_v16  ;;  %v2548_v37 = vadd.f32 %v2482_v54, %v2294_v19 }
 0x2e6   : > { %v2588_v6 = vadd.f32 %v4463_v24, %v2548_v37 }
 0x2e7   : > { %v1976_v7 = vpop.f32.mrf.mxu2 }
 0x2e8   : > { %v2230_v28 = vpop.f32.mrf.mxu3  ;;  %v2864_v38 = vadd.f32 %v2798_v52, %v2588_v6  ;;  %v2041_v22 = vadd.f32 %v1976_v7, %v4315_v36 }
 0x2e9   : > { %v2487_v30 = vpop.f32.mrf.mxu0 }
 0x2ea   : > { %v2904_v9 = vadd.f32 %v4468_v61, %v2864_v38  ;;  %v2295_v39 = vadd.f32 %v2230_v28, %v2041_v22 }
 0x2eb   : > { %v2803_v46 = vpop.f32.mrf.mxu1 }
 0x2ec   : > { %2940 = vst [vmem:[%s4484_s20 + $0x80] sm:$0xff] %v2904_v9  ;;  %v2549_v12 = vadd.f32 %v2484_v14, %v2295_v39  ;;  %2018 = vmatmul.bf16.gmra.mxu2 %v1859_v32  ;;  %2526 = vmatmul.bf16.gmra.mxu0 %v2367_v25 }
 0x2ed   : > { %2272 = vmatmul.bf16.gmra.mxu3 %v2113_v53 }
 0x2ee   : > { %3565 = vmatmul.msk.bf16.gmra.mxu1 %vm2694_vm0, %v2661_v35  ;;  %v2589_v34 = vadd.f32 %v4463_v24, %v2549_v12 }
 0x2ef   : > { %v1979_v36 = vpop.f32.mrf.mxu2 }
 0x2f0   : > { %v2233_v45 = vpop.f32.mrf.mxu3  ;;  %v2865_v18 = vadd.f32 %v2800_v17, %v2589_v34  ;;  %v2042_v20 = vadd.f32 %v1979_v36, %v4330_v63 }
 0x2f1   : > { %v2489_v23 = vpop.f32.mrf.mxu0 }
 0x2f2   : > { %v2905_v10 = vadd.f32 %v4468_v61, %v2865_v18  ;;  %v2296_v21 = vadd.f32 %v2233_v45, %v2042_v20 }
 0x2f3   : > { %v2805_v41 = vpop.f32.mrf.mxu1 }
 0x2f4   : > { %2941 = vst [vmem:[%s4484_s20 + $0x88] sm:$0xff] %v2905_v10  ;;  %v2550_v54 = vadd.f32 %v2487_v30, %v2296_v21 }
 0x2f6   : > { %v2590_v52 = vadd.f32 %v4463_v24, %v2550_v54 }
 0x2f7   : > { %v1981_v57 = vpop.f32.mrf.mxu2 }
 0x2f8   : > { %v2235_v42 = vpop.f32.mrf.mxu3  ;;  %v2866_v48 = vadd.f32 %v2803_v46, %v2590_v52  ;;  %v2043_v31 = vadd.f32 %v1981_v57, %v4337_v51 }
 0x2f9   : > { %v2492_v63 = vpop.f32.mrf.mxu0 }
 0x2fa   : > { %v2906_v29 = vadd.f32 %v4468_v61, %v2866_v48  ;;  %v2297_v3 = vadd.f32 %v2235_v42, %v2043_v31 }
 0x2fb   : > { %v2808_v16 = vpop.f32.mrf.mxu1 }
 0x2fc   : > { %2942 = vst [vmem:[%s4484_s20 + $0x90] sm:$0xff] %v2906_v29  ;;  %v2551_v19 = vadd.f32 %v2489_v23, %v2297_v3 }
 0x2fe   : > { %v2591_v14 = vadd.f32 %v4463_v24, %v2551_v19 }
 0x2ff   : > { %v1984_v17 = vpop.f32.mrf.mxu2 }
 0x300   : > { %v2238_v37 = vpop.f32.mrf.mxu3  ;;  %v2867_v50 = vadd.f32 %v2805_v41, %v2591_v14  ;;  %v2044_v40 = vadd.f32 %v1984_v17, %v4345_v58 }
 0x301   : > { %v2494_v51 = vpop.f32.mrf.mxu0 }
 0x302   : > { %v2907_v15 = vadd.f32 %v4468_v61, %v2867_v50  ;;  %v2298_v1 = vadd.f32 %v2238_v37, %v2044_v40 }
 0x303   : > { %v2810_v4 = vpop.f32.mrf.mxu1 }
 0x304   : > { %2943 = vst [vmem:[%s4484_s20 + $0x98] sm:$0xff] %v2907_v15  ;;  %v2552_v6 = vadd.f32 %v2492_v63, %v2298_v1 }
 0x306   : > { %v2592_v44 = vadd.f32 %v4463_v24, %v2552_v6 }
 0x307   : > { %v1986_v59 = vpop.f32.mrf.mxu2 }
 0x308   : > { %v2240_v8 = vpop.f32.mrf.mxu3  ;;  %v2868_v7 = vadd.f32 %v2808_v16, %v2592_v44  ;;  %v2045_v28 = vadd.f32 %v1986_v59, %v4352_v11 }
 0x309   : > { %v2497_v58 = vpop.f32.mrf.mxu0 }
 0x30a   : > { %v2908_v38 = vadd.f32 %v4468_v61, %v2868_v7  ;;  %v2299_v22 = vadd.f32 %v2240_v8, %v2045_v28 }
 0x30b   : > { %v2813_v32 = vpop.f32.mrf.mxu1 }
 0x30c   : > { %2944 = vst [vmem:[%s4484_s20 + $0xa0] sm:$0xff] %v2908_v38  ;;  %v2553_v53 = vadd.f32 %v2494_v51, %v2299_v22 }
 0x30e   : > { %v2593_v25 = vadd.f32 %v4463_v24, %v2553_v53 }
 0x30f   : > { %v1989_v35 = vpop.f32.mrf.mxu2 }
 0x310   : > { %v2243_v9 = vpop.f32.mrf.mxu3  ;;  %v2869_v39 = vadd.f32 %v2810_v4, %v2593_v25  ;;  %v2046_v30 = vadd.f32 %v1989_v35, %v4360_v43 }
 0x311   : > { %v2499_v11 = vpop.f32.mrf.mxu0 }
 0x312   : > { %v2909_v46 = vadd.f32 %v4468_v61, %v2869_v39  ;;  %v2300_v12 = vadd.f32 %v2243_v9, %v2046_v30 }
 0x313   : > { %v2815_v34 = vpop.f32.mrf.mxu1 }
 0x314   : > { %2945 = vst [vmem:[%s4484_s20 + $0xa8] sm:$0xff] %v2909_v46  ;;  %v2554_v36 = vadd.f32 %v2497_v58, %v2300_v12 }
 0x316   : > { %v2594_v45 = vadd.f32 %v4463_v24, %v2554_v36 }
 0x317   : > { %v1991_v18 = vpop.f32.mrf.mxu2 }
 0x318   : > { %v2245_v20 = vpop.f32.mrf.mxu3  ;;  %v2870_v10 = vadd.f32 %v2813_v32, %v2594_v45  ;;  %v2047_v21 = vadd.f32 %v1991_v18, %v4367_v33 }
 0x319   : > { %v2502_v43 = vpop.f32.mrf.mxu0 }
 0x31a   : > { %v2910_v23 = vadd.f32 %v4468_v61, %v2870_v10  ;;  %v2301_v41 = vadd.f32 %v2245_v20, %v2047_v21 }
 0x31b   : > { %v2818_v54 = vpop.f32.mrf.mxu1 }
 0x31c   : > { %2946 = vst [vmem:[%s4484_s20 + $0xb0] sm:$0xff] %v2910_v23  ;;  %v2555_v52 = vadd.f32 %v2499_v11, %v2301_v41 }
 0x31e   : > { %v2595_v57 = vadd.f32 %v4463_v24, %v2555_v52 }
 0x31f   : > { %v1994_v42 = vpop.f32.mrf.mxu2 }
 0x320   : > { %v2248_v48 = vpop.f32.mrf.mxu3  ;;  %v2871_v31 = vadd.f32 %v2815_v34, %v2595_v57  ;;  %v2048_v29 = vadd.f32 %v1994_v42, %v4375_v13 }
 0x321   : > { %v2504_v33 = vpop.f32.mrf.mxu0 }
 0x322   : > { %v2911_v3 = vadd.f32 %v4468_v61, %v2871_v31  ;;  %v2302_v63 = vadd.f32 %v2248_v48, %v2048_v29 }
 0x323   : > { %v2820_v16 = vpop.f32.mrf.mxu1 }
 0x324   : > { %2947 = vst [vmem:[%s4484_s20 + $0xb8] sm:$0xff] %v2911_v3  ;;  %v2556_v19 = vadd.f32 %v2502_v43, %v2302_v63 }
 0x326   : > { %v2596_v14 = vadd.f32 %v4463_v24, %v2556_v19 }
 0x327   : > { %v1996_v17 = vpop.f32.mrf.mxu2 }
 0x328   : > { %v2250_v37 = vpop.f32.mrf.mxu3  ;;  %v2872_v50 = vadd.f32 %v2818_v54, %v2596_v14  ;;  %v2049_v40 = vadd.f32 %v1996_v17, %v4382_v62 }
 0x329   : > { %v2507_v13 = vpop.f32.mrf.mxu0 }
 0x32a   : > { %v2912_v15 = vadd.f32 %v4468_v61, %v2872_v50  ;;  %v2303_v1 = vadd.f32 %v2250_v37, %v2049_v40 }
 0x32b   : > { %v2823_v51 = vpop.f32.mrf.mxu1 }
 0x32c   : > { %2948 = vst [vmem:[%s4484_s20 + $0xc0] sm:$0xff] %v2912_v15  ;;  %v2557_v4 = vadd.f32 %v2504_v33, %v2303_v1 }
 0x32e   : > { %v2597_v6 = vadd.f32 %v4463_v24, %v2557_v4 }
 0x32f   : > { %v1999_v44 = vpop.f32.mrf.mxu2 }
 0x330   : > { %v2253_v59 = vpop.f32.mrf.mxu3  ;;  %v2873_v8 = vadd.f32 %v2820_v16, %v2597_v6  ;;  %v2050_v7 = vadd.f32 %v1999_v44, %v4390_v0 }
 0x331   : > { %v2509_v62 = vpop.f32.mrf.mxu0 }
 0x332   : > { %v2913_v28 = vadd.f32 %v4468_v61, %v2873_v8  ;;  %v2304_v38 = vadd.f32 %v2253_v59, %v2050_v7 }
 0x333   : > { %v2825_v22 = vpop.f32.mrf.mxu1 }
 0x334   : > { %2949 = vst [vmem:[%s4484_s20 + $0xc8] sm:$0xff] %v2913_v28  ;;  %v2558_v58 = vadd.f32 %v2507_v13, %v2304_v38 }
 0x336   : > { %v2598_v32 = vadd.f32 %v4463_v24, %v2558_v58 }
 0x337   : > { %v2001_v53 = vpop.f32.mrf.mxu2 }
 0x338   : > { %v2255_v25 = vpop.f32.mrf.mxu3  ;;  %v2874_v35 = vadd.f32 %v2823_v51, %v2598_v32  ;;  %v2051_v9 = vadd.f32 %v2001_v53, %v4397_v26 }
 0x339   : > { %v2512_v0 = vpop.f32.mrf.mxu0 }
 0x33a   : > { %v2914_v39 = vadd.f32 %v4468_v61, %v2874_v35  ;;  %v2305_v30 = vadd.f32 %v2255_v25, %v2051_v9 }
 0x33b   : > { %v2828_v46 = vpop.f32.mrf.mxu1 }
 0x33c   : > { %2950 = vst [vmem:[%s4484_s20 + $0xd0] sm:$0xff] %v2914_v39  ;;  %v2559_v12 = vadd.f32 %v2509_v62, %v2305_v30 }
 0x33e   : > { %v2599_v11 = vadd.f32 %v4463_v24, %v2559_v12  ;;  %v3688_v12 = vld [vmem:[%s4711_s2] ss:$0 sm:$0xff] }
 0x33f   : > { %v2004_v34 = vpop.f32.mrf.mxu2 }
 0x340   : > { %v2258_v36 = vpop.f32.mrf.mxu3  ;;  %v2875_v45 = vadd.f32 %v2825_v22, %v2599_v11  ;;  %v2052_v18 = vadd.f32 %v2004_v34, %v4405_v5 }
 0x341   : > { %v2514_v26 = vpop.f32.mrf.mxu0 }
 0x342   : > { %v2915_v20 = vadd.f32 %v4468_v61, %v2875_v45  ;;  %v2306_v10 = vadd.f32 %v2258_v36, %v2052_v18 }
 0x343   : > { %v2830_v21 = vpop.f32.mrf.mxu1 }
 0x344   : > { %2951 = vst [vmem:[%s4484_s20 + $0xd8] sm:$0xff] %v2915_v20  ;;  %v2560_v23 = vadd.f32 %v2512_v0, %v2306_v10 }
 0x346   : > { %v2600_v41 = vadd.f32 %v4463_v24, %v2560_v23 }
 0x347   : > { %v2006_v43 = vpop.f32.mrf.mxu2 }
 0x348   : > { %v2260_v54 = vpop.f32.mrf.mxu3  ;;  %v2876_v52 = vadd.f32 %v2828_v46, %v2600_v41  ;;  %v2053_v57 = vadd.f32 %v2006_v43, %v4412_v55 }
 0x349   : > { %v2517_v31 = vpop.f32.mrf.mxu0 }
 0x34a   : > { %v2916_v42 = vadd.f32 %v4468_v61, %v2876_v52  ;;  %v2307_v48 = vadd.f32 %v2260_v54, %v2053_v57 }
 0x34b   : > { %v2833_v29 = vpop.f32.mrf.mxu1 }
 0x34c   : > { %2952 = vst [vmem:[%s4484_s20 + $0xe0] sm:$0xff] %v2916_v42  ;;  %v2561_v5 = vadd.f32 %v2514_v26, %v2307_v48 }
 0x34e   : > { %v2601_v3 = vadd.f32 %v4463_v24, %v2561_v5 }
 0x34f   : > { %v2009_v63 = vpop.f32.mrf.mxu2 }
 0x350   : > { %v2263_v33 = vpop.f32.mrf.mxu3  ;;  %v2877_v16 = vadd.f32 %v2830_v21, %v2601_v3  ;;  %v2054_v19 = vadd.f32 %v2009_v63, %v4420_v60 }
 0x351   : > { %v2519_v37 = vpop.f32.mrf.mxu0 }
 0x352   : > { %v2917_v14 = vadd.f32 %v4468_v61, %v2877_v16  ;;  %v2308_v17 = vadd.f32 %v2263_v33, %v2054_v19 }
 0x353   : > { %v2835_v40 = vpop.f32.mrf.mxu1 }
 0x354   : > { %2953 = vst [vmem:[%s4484_s20 + $0xe8] sm:$0xff] %v2917_v14  ;;  %v2562_v55 = vadd.f32 %v2517_v31, %v2308_v17 }
 0x356   : > { %v2602_v50 = vadd.f32 %v4463_v24, %v2562_v55 }
 0x357   : > { %v2011_v15 = vpop.f32.mrf.mxu2 }
 0x358   : > { %v2265_v1 = vpop.f32.mrf.mxu3  ;;  %v2878_v13 = vadd.f32 %v2833_v29, %v2602_v50  ;;  %v2055_v51 = vadd.f32 %v2011_v15, %v4427_v27 }
 0x359   : > { %v2522_v44 = vpop.f32.mrf.mxu0 }
 0x35a   : > { %v2918_v4 = vadd.f32 %v4468_v61, %v2878_v13  ;;  %v2309_v6 = vadd.f32 %v2265_v1, %v2055_v51 }
 0x35b   : > { %v2838_v62 = vpop.f32.mrf.mxu1 }
 0x35c   : > { %2954 = vst [vmem:[%s4484_s20 + $0xf0] sm:$0xff] %v2918_v4  ;;  %v2563_v60 = vadd.f32 %v2519_v37, %v2309_v6 }
 0x35e   : > { %v2603_v59 = vadd.f32 %v4463_v24, %v2563_v60 }
 0x35f   : > { %v2014_v8 = vpop.f32.mrf.mxu2 }
 0x360   : > { %v2268_v7 = vpop.f32.mrf.mxu3  ;;  %v2879_v28 = vadd.f32 %v2835_v40, %v2603_v59  ;;  %v2056_v38 = vadd.f32 %v2014_v8, %v4435_v49 }
 0x361   : > { %v2524_v53 = vpop.f32.mrf.mxu0 }
 0x362   : > { %v2919_v22 = vadd.f32 %v4468_v61, %v2879_v28  ;;  %v2310_v58 = vadd.f32 %v2268_v7, %v2056_v38 }
 0x363   : > { %v2840_v46 = vpop.f32.mrf.mxu1 }
 0x364   : > { %2955 = vst [vmem:[%s4484_s20 + $0xf8] sm:$0xff] %v2919_v22  ;;  %v2564_v27 = vadd.f32 %v2522_v44, %v2310_v58 }
 0x366   : > { %v2604_v32 = vadd.f32 %v4463_v24, %v2564_v27 }
 0x367   : > { %v2016_v25 = vpop.f32.mrf.mxu2 }
 0x368   : > { %v2270_v35 = vpop.f32.mrf.mxu3  ;;  %v2880_v9 = vadd.f32 %v2838_v62, %v2604_v32  ;;  %v2057_v39 = vadd.f32 %v2016_v25, %v4442_v56  ;;  %v3689_v56 = vld [vmem:[%s4714_s5] ss:$0 sm:$0xff] }
 0x369   : > { %v2527_v18 = vpop.f32.mrf.mxu0 }
 0x36a   : > { %v2920_v30 = vadd.f32 %v4468_v61, %v2880_v9  ;;  %v2311_v0 = vadd.f32 %v2270_v35, %v2057_v39 }
 0x36b   : > { %v2843_v26 = vpop.f32.mrf.mxu1 }
 0x36c   : > { %2956 = vst [vmem:[%s4484_s20 + $0x100] sm:$0xff] %v2920_v30  ;;  %v2565_v49 = vadd.f32 %v2524_v53, %v2311_v0 }
 0x36e   : > { %v2605_v11 = vadd.f32 %v3688_v12, %v2565_v49 }
 0x36f   : > { %v2019_v34 = vpop.f32.mrf.mxu2 }
 0x370   : > { %v2273_v24 = vpop.f32.mrf.mxu3  ;;  %v2881_v36 = vadd.f32 %v2840_v46, %v2605_v11  ;;  %v2058_v45 = vadd.f32 %v2019_v34, %v4450_v2 }
 0x371   : > { %v2529_v57 = vpop.f32.mrf.mxu0 }
 0x372   : > { %v2921_v61 = vadd.f32 %v3689_v56, %v2881_v36  ;;  %v2312_v20 = vadd.f32 %v2273_v24, %v2058_v45 }
 0x373   : > { %v2845_v31 = vpop.f32.mrf.mxu1 }
 0x374   : > { %2957 = vst [vmem:[%s4484_s20 + $0x108] sm:$0xff] %v2921_v61  ;;  %v2566_v10 = vadd.f32 %v2527_v18, %v2312_v20 }
 0x376   : > { %v2606_v21 = vadd.f32 %v3688_v12, %v2566_v10 }
 0x377   : > { %v2021_v23 = vpop.f32.mrf.mxu2 }
 0x378   : > { %v2882_v41 = vadd.f32 %v2843_v26, %v2606_v21  ;;  %v2059_v43 = vadd.f32 %v2021_v23, %v4457_v47  ;;  %v2275_v54 = vpop.f32.mrf.mxu3 }
 0x37a   : > { %v2922_v52 = vadd.f32 %v3689_v56, %v2882_v41  ;;  %v2313_v2 = vadd.f32 %v2275_v54, %v2059_v43 }
 0x37c   : > { %2958 = vst [vmem:[%s4484_s20 + $0x110] sm:$0xff] %v2922_v52  ;;  %v2567_v42 = vadd.f32 %v2529_v57, %v2313_v2 }
 0x37e   : > { %v2607_v48 = vadd.f32 %v3688_v12, %v2567_v42 }
 0x380   : > { %v2883_v5 = vadd.f32 %v2845_v31, %v2607_v48 }
 0x382   : > { %v2923_v29 = vadd.f32 %v3689_v56, %v2883_v5 }
 0x384   : > { %2959 = vst [vmem:[%s4484_s20 + $0x118] sm:$0xff] %v2923_v29 }
 0x385 PF: > { %s16_s23 = sadd.s32 1, %s3712_s23   ;;  %s4716_s21 = smov %s3708_s22 }
 0x386   : > { %p13_p5 = scmp.ge.s32.totalorder %s16_s23, 4   ;;  %s4717_s22 = smov %s4719_s24 }
 0x388   :  { %15 = sbr.rel (!%p13_p5) target bundleno = 2 (0x2), region = 97 }

</bundles_post_ra>
